<compile_context>
chip_gen: v5e
topology: v5e:2x2
jax: 0.10.0
libtpu: 0.0.40
codegen_flags: <defaults>
</compile_context>

<pallas_src>
import functools

import numpy as np

import jax
import jax.numpy as jnp
from jax.experimental import pallas as pl
from jax.experimental.pallas import tpu as pltpu

OUT_RES = (256, 512)


# ----------------------------------------------------------------------------
# Pallas kernel 1: conv1 + concat(seed) + squeeze_conv (weights pre-folded)
# ----------------------------------------------------------------------------

def _stem_kernel(a_ref, s_ref, wc_ref, ws_ref, b_ref, o_ref):
    o_ref[...] = (
        jnp.dot(a_ref[...], wc_ref[...], preferred_element_type=jnp.float32)
        + jnp.dot(s_ref[...], ws_ref[...], preferred_element_type=jnp.float32)
        + b_ref[...]
    )


def stem_conv1_squeeze(patches, seed_rows, w_comb, w_seed, b_comb, tm=256):
    """out = patches @ w_comb + seed_rows @ w_seed + b_comb  (bf16 in, f32 out)."""
    M, K1 = patches.shape
    K2, N = w_seed.shape
    assert w_comb.shape == (K1, N) and seed_rows.shape == (M, K2)
    assert b_comb.shape == (1, N)

    if M % tm == 0 and M // tm >= 2:
        # Large-M path (e.g. full 256x512 inputs): tile rows, weights resident.
        return pl.pallas_call(
            _stem_kernel,
            out_shape=jax.ShapeDtypeStruct((M, N), jnp.float32),
            grid=(M // tm,),
            in_specs=[
                pl.BlockSpec((tm, K1), lambda i: (i, 0)),
                pl.BlockSpec((tm, K2), lambda i: (i, 0)),
                pl.BlockSpec((K1, N), lambda i: (0, 0)),
                pl.BlockSpec((K2, N), lambda i: (0, 0)),
                pl.BlockSpec((1, N), lambda i: (0, 0)),
            ],
            out_specs=pl.BlockSpec((tm, N), lambda i: (i, 0)),
            compiler_params=pltpu.CompilerParams(
                dimension_semantics=("parallel",)),
        )(patches, seed_rows, w_comb, w_seed, b_comb)

    # Small-M path (test shape: M = B*h*w = 16): a single grid-less invocation,
    # whole problem VMEM-resident -> one 256-wide MXU pass, no step overhead.
    return pl.pallas_call(
        _stem_kernel,
        out_shape=jax.ShapeDtypeStruct((M, N), jnp.float32),
    )(patches, seed_rows, w_comb, w_seed, b_comb)


# ----------------------------------------------------------------------------
# Pallas kernel 2: fused nearest-upsample (H and W) + 5-way sum + tanh
# ----------------------------------------------------------------------------

def _make_fused_rgb_kernel(pp, n_res, pad_h, activation, tanh_dtype):
    def kernel(eh_ref, *refs):
        ew_refs = refs[:n_res]
        r_refs = refs[n_res:2 * n_res]
        o_ref = refs[2 * n_res]
        eh = eh_ref[...]                               # (oh, k_pad) 0/1 bf16
        for p in range(pp):                            # static unroll over planes
            parts = []
            for i in range(n_res):                     # W (lane) upsample: tiny matmuls
                t = jnp.dot(r_refs[i][p], ew_refs[i][...],
                            preferred_element_type=jnp.float32)   # (h_i, ow)
                parts.append(t)
            if pad_h:
                parts.append(jnp.zeros((pad_h,) + parts[0].shape[1:], jnp.float32))
            rows = jnp.concatenate(parts, axis=0)      # (k_pad, ow) f32
            # H (sublane) upsample + 5-way sum: one big matmul per plane.
            acc = jnp.dot(eh, rows.astype(jnp.bfloat16),
                          preferred_element_type=jnp.float32)     # (oh, ow) f32
            y = jnp.tanh(acc.astype(tanh_dtype)) if activation else acc
            o_ref[p] = y.astype(o_ref.dtype)
    return kernel


def _pick_tanh_dtype(out_dtype):
    if jnp.dtype(out_dtype) == jnp.dtype(jnp.float32):
        return jnp.float32
    try:
        kind = jax.devices()[0].device_kind.lower()
    except Exception:
        kind = ""
    # v5e EUP has no bf16 path -> keep tanh in f32 there; bf16 on v6e/v7x.
    return jnp.float32 if "v5" in kind else jnp.bfloat16


def fused_upsample_sum(rgbs_small, activation=True, out_res=OUT_RES,
                       out_dtype=jnp.bfloat16):
    """out = tanh(sum_i nearest_interp(rgb_i, out_res)), emitted in out_dtype.

    Both nearest-upsamples are fused into the kernel as 0/1 selection matmuls,
    so the only HBM traffic is ~35 KB of native-resolution rgbs in and the
    (B*3, 256, 512) image out (bf16 by default -> half the v2 writeback).
    """
    oh, ow = out_res
    B = rgbs_small[0].shape[0]
    nplanes = B * 3
    hs = [int(r.shape[2]) for r in rgbs_small]
    ws = [int(r.shape[3]) for r in rgbs_small]
    for h, w in zip(hs, ws):
        assert oh % h == 0 and ow % w == 0, "nearest ratios must be integral"

    sum_h = sum(hs)
    k_pad = -(-sum_h // 16) * 16        # bf16 packs 16 rows per sublane group
    pad_h = k_pad - sum_h

    # E_h: (oh, k_pad) 0/1 row-selection, column-blocked per resolution.
    eh_cols = [(np.arange(oh)[:, None] // (oh // h)
                == np.arange(h)[None, :]).astype(np.float32) for h in hs]
    if pad_h:
        eh_cols.append(np.zeros((oh, pad_h), np.float32))
    eh = jnp.asarray(np.concatenate(eh_cols, axis=1), jnp.bfloat16)   # 0/1 exact

    # E_w_i^T: (w_i, ow) 0/1 column-selection per resolution.
    ewts = [jnp.asarray((np.arange(w)[:, None]
                         == (np.arange(ow)[None, :] // (ow // w))).astype(np.float32),
                        jnp.bfloat16) for w in ws]

    # Native-resolution rgb planes: (B*3, h_i, w_i) bf16, ~35 KB total.
    xs = [r.reshape(nplanes, h, w).astype(jnp.bfloat16)
          for r, h, w in zip(rgbs_small, hs, ws)]

    # Few big steps: pp fixed at 3 (grow the grid, not pp, when B scales).
    pp = 3 if nplanes % 3 == 0 else (2 if nplanes % 2 == 0 else 1)
    grid = (nplanes // pp,)
    tanh_dtype = _pick_tanh_dtype(out_dtype)

    out = pl.pallas_call(
        _make_fused_rgb_kernel(pp, len(xs), pad_h, activation, tanh_dtype),
        out_shape=jax.ShapeDtypeStruct((nplanes, oh, ow), out_dtype),
        grid=grid,
        in_specs=(
            [pl.BlockSpec((oh, k_pad), lambda i: (0, 0))]                 # E_h resident
            + [pl.BlockSpec((w, ow), lambda i: (0, 0)) for w in ws]       # E_w_i resident
            + [pl.BlockSpec((pp, h, w), lambda i: (i, 0, 0))              # rgbs per plane
               for h, w in zip(hs, ws)]
        ),
        out_specs=pl.BlockSpec((pp, oh, ow), lambda i: (i, 0, 0)),
        compiler_params=pltpu.CompilerParams(dimension_semantics=("parallel",)),
    )(eh, *ewts, *xs)
    return out.reshape(B, 3, oh, ow)


# ----------------------------------------------------------------------------
# Plain-JAX glue for the tiny matmuls (left to XLA per perf review)
# ----------------------------------------------------------------------------

def conv2d_patch(x, w, b, k):
    """Conv2d with stride == kernel == k, no padding.  x: NCHW."""
    B, Cin, H, W = x.shape
    Cout = w.shape[0]
    h, wo = H // k, W // k
    p = x.reshape(B, Cin, h, k, wo, k).transpose(0, 2, 4, 1, 3, 5)
    p = p.reshape(B * h * wo, Cin * k * k)
    y = p @ w.reshape(Cout, Cin * k * k).T + b[None, :]
    return y.reshape(B, h, wo, Cout).transpose(0, 3, 1, 2)


def conv_transpose_2x2(x, w, b):
    """ConvTranspose2d(kernel=2, stride=2).  w: (Cin, Cout, 2, 2)."""
    B, Cin, h, wo = x.shape
    Cout = w.shape[1]
    a = x.transpose(0, 2, 3, 1).reshape(B * h * wo, Cin)
    y = a @ w.reshape(Cin, Cout * 4)
    y = y.reshape(B, h, wo, Cout, 2, 2).transpose(0, 3, 1, 4, 2, 5)
    return y.reshape(B, Cout, 2 * h, 2 * wo) + b[None, :, None, None]


def mixer_block(x, label):
    # TODO(synk): MLPCBNMixer / MLPCBNDepthWiseMixer class definitions were not
    # provided with the module source; the mixers are treated as identity here.
    del label
    return x


# ----------------------------------------------------------------------------
# Parameters
# ----------------------------------------------------------------------------

def init_params(key, channel=256):
    C = channel
    keys = iter(jax.random.split(key, 64))

    def w(shape, scale=0.05):
        return scale * jax.random.normal(next(keys), shape, jnp.float32)

    p = {}
    p["conv1_w"], p["conv1_b"] = w((C, 3, 16, 16)), w((C,))
    p["conv2_w"], p["conv2_b"] = w((C // 4, 3, 8, 8)), w((C // 4,))
    p["conv3_w"], p["conv3_b"] = w((C // 16, 3, 4, 4)), w((C // 16,))
    p["conv4_w"], p["conv4_b"] = w((C // 64, 3, 2, 2)), w((C // 64,))
    p["conv5_w"], p["conv5_b"] = w((C // 128, 3, 1, 1)), w((C // 128,))
    p["squeeze_w"], p["squeeze_b"] = w((C, 2 * C, 1, 1)), w((C,))
    chans = [C, C // 4, C // 16, C // 64, C // 128]
    for i in range(5):
        cin = chans[i]
        p[f"to_rgb{i + 1}_w"], p[f"to_rgb{i + 1}_b"] = w((3, cin, 1, 1)), w((3,))
        if i < 4:  # to_rgb5 has up=False -> no ConvTranspose
            cout = chans[i + 1]
            p[f"up{i + 1}_w"], p[f"up{i + 1}_b"] = w((cin, cout, 2, 2)), w((cout,))
    return p


def prepare_params(params):
    """One-time static weight pre-processing (reshape / fold / cast).

    conv1 -> concat(seed) -> squeeze is a chain of linear / 1x1 ops, folded
    exactly:  out = p @ (W1 @ Wsq_top) + seed @ Wsq_bot + (b1 @ Wsq_top + bsq),
    with Wsq_top the squeeze columns for the conv1 half of the cat (first C
    channels) and Wsq_bot the seed half (last C channels), matching torch order.
    """
    d = dict(params)
    C = params["conv1_w"].shape[0]
    w1 = params["conv1_w"].reshape(C, -1).T.astype(jnp.float32)          # (768, C)
    wsq = params["squeeze_w"].reshape(C, 2 * C).T.astype(jnp.float32)    # (2C, C)
    wsq_top, wsq_bot = wsq[:C], wsq[C:]
    d["stem_w_comb"] = (w1 @ wsq_top).astype(jnp.bfloat16)               # (768, C)
    d["stem_w_seed"] = wsq_bot.astype(jnp.bfloat16)                      # (C, C)
    d["stem_b_comb"] = (params["conv1_b"] @ wsq_top
                        + params["squeeze_b"]).reshape(1, C).astype(jnp.float32)
    return d


# ----------------------------------------------------------------------------
# Generator forward
# ----------------------------------------------------------------------------

def generator_forward(params, x, label, seed_key, activation=True,
                      out_dtype=jnp.bfloat16):
    img = x
    B, _, H, W = img.shape
    C = params["stem_w_seed"].shape[1]
    h, w = H // 16, W // 16

    # --- stem: conv1 + concat(seed) + squeeze_conv in one Pallas kernel ---
    patches = img.reshape(B, 3, h, 16, w, 16).transpose(0, 2, 4, 1, 3, 5)
    patches = patches.reshape(B * h * w, 3 * 16 * 16).astype(jnp.bfloat16)
    # TODO(synk): jax.random.normal is not bit-compatible with torch.randn.
    seed_l = jax.random.normal(seed_key, (B, C, h, w), jnp.float32)
    seed_rows = seed_l.transpose(0, 2, 3, 1).reshape(B * h * w, C)
    seed_rows = seed_rows.astype(jnp.bfloat16)
    x = stem_conv1_squeeze(patches, seed_rows, params["stem_w_comb"],
                           params["stem_w_seed"], params["stem_b_comb"])
    x = x.reshape(B, h, w, C).transpose(0, 3, 1, 2)          # (B, C, h, w)

    x = mixer_block(x, label)                                # mixer1 (identity)
    x = x.reshape(B, C, h, w)

    skip_convs = [("conv2_w", "conv2_b", 8), ("conv3_w", "conv3_b", 4),
                  ("conv4_w", "conv4_b", 2), ("conv5_w", "conv5_b", 1)]
    rgbs = []
    for i in range(1, 6):
        # to_rgb_i kept at native (tiny) resolution; both upsample axes are
        # fused into the final Pallas kernel.
        # TODO(synk): the 1x1 to_rgb heads themselves could also be folded into
        # the fused kernel; kept in XLA to limit kernel operand count.
        rgbs.append(conv2d_patch(x, params[f"to_rgb{i}_w"],
                                 params[f"to_rgb{i}_b"], 1))
        if i < 5:
            x = conv_transpose_2x2(x, params[f"up{i}_w"], params[f"up{i}_b"])
            wk, bk, k = skip_convs[i - 1]
            x = x + conv2d_patch(img, params[wk], params[bk], k)
            x = mixer_block(x, label)                        # mixer_{i+1}

    return fused_upsample_sum(rgbs, activation, out_dtype=out_dtype)


if __name__ == "__main__":
    B, C = 2, 256
    key = jax.random.PRNGKey(0)
    kx, kp, ks = jax.random.split(key, 3)
    x = jax.random.normal(kx, (B, 3, 32, 64), jnp.float32)   # NCHW input image
    label = jnp.zeros((B,), jnp.int32)                       # unused (identity mixers)
    params = prepare_params(init_params(kp, channel=C))      # one-time weight prep

    fwd = jax.jit(functools.partial(generator_forward, activation=True))
    out = fwd(params, x, label, ks)
    out = jax.block_until_ready(out)
    assert out.shape == (B, 3, 256, 512), out.shape
    assert bool(jnp.all(jnp.isfinite(out.astype(jnp.float32))))
    print("KERNEL_OK")
</pallas_src>

<mosaic_0001>
module attributes {stable_mosaic.version = 11 : i64} {
  func.func @_stem_kernel(%arg0: memref<16x768xbf16, #tpu.memory_space<vmem>>, %arg1: memref<16x256xbf16, #tpu.memory_space<vmem>>, %arg2: memref<768x256xbf16, #tpu.memory_space<vmem>>, %arg3: memref<256x256xbf16, #tpu.memory_space<vmem>>, %arg4: memref<1x256xf32, #tpu.memory_space<vmem>>, %arg5: memref<16x256xf32, #tpu.memory_space<vmem>>) attributes {dimension_semantics = [], scalar_prefetch = 0 : i64, scratch_operands = 0 : i64, tpu.core_type = #tpu.core_type<tc>} {
    %c0 = arith.constant 0 : index
    %c0_0 = arith.constant 0 : index
    %0 = vector.load %arg0[%c0, %c0_0] : memref<16x768xbf16, #tpu.memory_space<vmem>>, vector<16x768xbf16>
    %c0_1 = arith.constant 0 : index
    %c0_2 = arith.constant 0 : index
    %1 = vector.load %arg2[%c0_1, %c0_2] : memref<768x256xbf16, #tpu.memory_space<vmem>>, vector<768x256xbf16>
    %cst = arith.constant dense<0.000000e+00> : vector<16x256xf32>
    %2 = tpu.matmul %0, %1, %cst {dimension_numbers = #tpu.dot_dimension_numbers<[1], [0], [0], [1], [0, 0, 1, 1], [], []>} : vector<16x768xbf16>, vector<768x256xbf16>, vector<16x256xf32> -> vector<16x256xf32>
    %c0_3 = arith.constant 0 : index
    %c0_4 = arith.constant 0 : index
    %3 = vector.load %arg1[%c0_3, %c0_4] : memref<16x256xbf16, #tpu.memory_space<vmem>>, vector<16x256xbf16>
    %c0_5 = arith.constant 0 : index
    %c0_6 = arith.constant 0 : index
    %4 = vector.load %arg3[%c0_5, %c0_6] : memref<256x256xbf16, #tpu.memory_space<vmem>>, vector<256x256xbf16>
    %cst_7 = arith.constant dense<0.000000e+00> : vector<16x256xf32>
    %5 = tpu.matmul %3, %4, %cst_7 {dimension_numbers = #tpu.dot_dimension_numbers<[1], [0], [0], [1], [0, 0, 1, 1], [], []>} : vector<16x256xbf16>, vector<256x256xbf16>, vector<16x256xf32> -> vector<16x256xf32>
    %6 = arith.addf %2, %5 : vector<16x256xf32>
    %c0_8 = arith.constant 0 : index
    %c0_9 = arith.constant 0 : index
    %7 = vector.load %arg4[%c0_8, %c0_9] : memref<1x256xf32, #tpu.memory_space<vmem>>, vector<1x256xf32>
    %8 = vector.broadcast %7 : vector<1x256xf32> to vector<16x256xf32>
    %9 = arith.addf %6, %8 : vector<16x256xf32>
    %c0_10 = arith.constant 0 : index
    %c0_11 = arith.constant 0 : index
    %10 = vector.load %arg5[%c0_10, %c0_11] : memref<16x256xf32, #tpu.memory_space<vmem>>, vector<16x256xf32>
    tpu.vector_store %arg5[%c0_10, %c0_11], %9 {strides = array<i32>} : memref<16x256xf32, #tpu.memory_space<vmem>>, vector<16x256xf32>,
    return
  }
}

module attributes {stable_mosaic.version = 11 : i64} {
  func.func @kernel(%arg0: i32, %arg1: memref<256x64xbf16, #tpu.memory_space<vmem>>, %arg2: memref<4x512xbf16, #tpu.memory_space<vmem>>, %arg3: memref<8x512xbf16, #tpu.memory_space<vmem>>, %arg4: memref<16x512xbf16, #tpu.memory_space<vmem>>, %arg5: memref<32x512xbf16, #tpu.memory_space<vmem>>, %arg6: memref<64x512xbf16, #tpu.memory_space<vmem>>, %arg7: memref<3x2x4xbf16, #tpu.memory_space<vmem>>, %arg8: memref<3x4x8xbf16, #tpu.memory_space<vmem>>, %arg9: memref<3x8x16xbf16, #tpu.memory_space<vmem>>, %arg10: memref<3x16x32xbf16, #tpu.memory_space<vmem>>, %arg11: memref<3x32x64xbf16, #tpu.memory_space<vmem>>, %arg12: memref<3x256x512xbf16, #tpu.memory_space<vmem>>) attributes {dimension_semantics = [#tpu.dimension_semantics<parallel>], iteration_bounds = array<i64: 2>, scalar_prefetch = 0 : i64, scratch_operands = 0 : i64, tpu.core_type = #tpu.core_type<tc>, window_params = [{pipeline_mode = #tpu.pipeline_mode<synchronous>, transform_indices = @transform_0, window_bounds = array<i64: 256, 64>}, {pipeline_mode = #tpu.pipeline_mode<synchronous>, transform_indices = @transform_1, window_bounds = array<i64: 4, 512>}, {pipeline_mode = #tpu.pipeline_mode<synchronous>, transform_indices = @transform_2, window_bounds = array<i64: 8, 512>}, {pipeline_mode = #tpu.pipeline_mode<synchronous>, transform_indices = @transform_3, window_bounds = array<i64: 16, 512>}, {pipeline_mode = #tpu.pipeline_mode<synchronous>, transform_indices = @transform_4, window_bounds = array<i64: 32, 512>}, {pipeline_mode = #tpu.pipeline_mode<synchronous>, transform_indices = @transform_5, window_bounds = array<i64: 64, 512>}, {transform_indices = @transform_6, window_bounds = array<i64: 3, 2, 4>}, {transform_indices = @transform_7, window_bounds = array<i64: 3, 4, 8>}, {transform_indices = @transform_8, window_bounds = array<i64: 3, 8, 16>}, {transform_indices = @transform_9, window_bounds = array<i64: 3, 16, 32>}, {transform_indices = @transform_10, window_bounds = array<i64: 3, 32, 64>}, {transform_indices = @transform_11, window_bounds = array<i64: 3, 256, 512>}]} {
    %c0 = arith.constant 0 : index
    %c0_0 = arith.constant 0 : index
    %0 = vector.load %arg1[%c0, %c0_0] : memref<256x64xbf16, #tpu.memory_space<vmem>>, vector<256x64xbf16>
    %c0_1 = arith.constant 0 : index
    %c0_2 = arith.constant 0 : index
    %c0_3 = arith.constant 0 : index
    %1 = vector.load %arg7[%c0_1, %c0_2, %c0_3] : memref<3x2x4xbf16, #tpu.memory_space<vmem>>, vector<1x2x4xbf16>
    %2 = vector.shape_cast %1 : vector<1x2x4xbf16> to vector<2x4xbf16>
    %c0_4 = arith.constant 0 : index
    %c0_5 = arith.constant 0 : index
    %3 = vector.load %arg2[%c0_4, %c0_5] : memref<4x512xbf16, #tpu.memory_space<vmem>>, vector<4x512xbf16>
    %cst = arith.constant dense<0.000000e+00> : vector<2x512xf32>
    %4 = tpu.matmul %2, %3, %cst {dimension_numbers = #tpu.dot_dimension_numbers<[1], [0], [0], [1], [0, 0, 1, 1], [], []>} : vector<2x4xbf16>, vector<4x512xbf16>, vector<2x512xf32> -> vector<2x512xf32>
    %c0_6 = arith.constant 0 : index
    %c0_7 = arith.constant 0 : index
    %c0_8 = arith.constant 0 : index
    %5 = vector.load %arg8[%c0_6, %c0_7, %c0_8] : memref<3x4x8xbf16, #tpu.memory_space<vmem>>, vector<1x4x8xbf16>
    %6 = vector.shape_cast %5 : vector<1x4x8xbf16> to vector<4x8xbf16>
    %c0_9 = arith.constant 0 : index
    %c0_10 = arith.constant 0 : index
    %7 = vector.load %arg3[%c0_9, %c0_10] : memref<8x512xbf16, #tpu.memory_space<vmem>>, vector<8x512xbf16>
    %cst_11 = arith.constant dense<0.000000e+00> : vector<4x512xf32>
    %8 = tpu.matmul %6, %7, %cst_11 {dimension_numbers = #tpu.dot_dimension_numbers<[1], [0], [0], [1], [0, 0, 1, 1], [], []>} : vector<4x8xbf16>, vector<8x512xbf16>, vector<4x512xf32> -> vector<4x512xf32>
    %c0_12 = arith.constant 0 : index
    %c0_13 = arith.constant 0 : index
    %c0_14 = arith.constant 0 : index
    %9 = vector.load %arg9[%c0_12, %c0_13, %c0_14] : memref<3x8x16xbf16, #tpu.memory_space<vmem>>, vector<1x8x16xbf16>
    %10 = vector.shape_cast %9 : vector<1x8x16xbf16> to vector<8x16xbf16>
    %c0_15 = arith.constant 0 : index
    %c0_16 = arith.constant 0 : index
    %11 = vector.load %arg4[%c0_15, %c0_16] : memref<16x512xbf16, #tpu.memory_space<vmem>>, vector<16x512xbf16>
    %cst_17 = arith.constant dense<0.000000e+00> : vector<8x512xf32>
    %12 = tpu.matmul %10, %11, %cst_17 {dimension_numbers = #tpu.dot_dimension_numbers<[1], [0], [0], [1], [0, 0, 1, 1], [], []>} : vector<8x16xbf16>, vector<16x512xbf16>, vector<8x512xf32> -> vector<8x512xf32>
    %c0_18 = arith.constant 0 : index
    %c0_19 = arith.constant 0 : index
    %c0_20 = arith.constant 0 : index
    %13 = vector.load %arg10[%c0_18, %c0_19, %c0_20] : memref<3x16x32xbf16, #tpu.memory_space<vmem>>, vector<1x16x32xbf16>
    %14 = vector.shape_cast %13 : vector<1x16x32xbf16> to vector<16x32xbf16>
    %c0_21 = arith.constant 0 : index
    %c0_22 = arith.constant 0 : index
    %15 = vector.load %arg5[%c0_21, %c0_22] : memref<32x512xbf16, #tpu.memory_space<vmem>>, vector<32x512xbf16>
    %cst_23 = arith.constant dense<0.000000e+00> : vector<16x512xf32>
    %16 = tpu.matmul %14, %15, %cst_23 {dimension_numbers = #tpu.dot_dimension_numbers<[1], [0], [0], [1], [0, 0, 1, 1], [], []>} : vector<16x32xbf16>, vector<32x512xbf16>, vector<16x512xf32> -> vector<16x512xf32>
    %c0_24 = arith.constant 0 : index
    %c0_25 = arith.constant 0 : index
    %c0_26 = arith.constant 0 : index
    %17 = vector.load %arg11[%c0_24, %c0_25, %c0_26] : memref<3x32x64xbf16, #tpu.memory_space<vmem>>, vector<1x32x64xbf16>
    %18 = vector.shape_cast %17 : vector<1x32x64xbf16> to vector<32x64xbf16>
    %c0_27 = arith.constant 0 : index
    %c0_28 = arith.constant 0 : index
    %19 = vector.load %arg6[%c0_27, %c0_28] : memref<64x512xbf16, #tpu.memory_space<vmem>>, vector<64x512xbf16>
    %cst_29 = arith.constant dense<0.000000e+00> : vector<32x512xf32>
    %20 = tpu.matmul %18, %19, %cst_29 {dimension_numbers = #tpu.dot_dimension_numbers<[1], [0], [0], [1], [0, 0, 1, 1], [], []>} : vector<32x64xbf16>, vector<64x512xbf16>, vector<32x512xf32> -> vector<32x512xf32>
    %cst_30 = arith.constant 0.000000e+00 : f32
    %21 = vector.broadcast %cst_30 : f32 to vector<2x512xf32>
    %22 = tpu.concatenate %4, %8, %12, %16, %20, %21 in 0 : vector<2x512xf32>, vector<4x512xf32>, vector<8x512xf32>, vector<16x512xf32>, vector<32x512xf32>, vector<2x512xf32> -> vector<64x512xf32>
    %23 = arith.truncf %22 : vector<64x512xf32> to vector<64x512xbf16>
    %cst_31 = arith.constant dense<0.000000e+00> : vector<256x512xf32>
    %24 = tpu.matmul %0, %23, %cst_31 {dimension_numbers = #tpu.dot_dimension_numbers<[1], [0], [0], [1], [0, 0, 1, 1], [], []>} : vector<256x64xbf16>, vector<64x512xbf16>, vector<256x512xf32> -> vector<256x512xf32>
    %25 = arith.truncf %24 : vector<256x512xf32> to vector<256x512xbf16>
    %26 = math.tanh %25 : vector<256x512xbf16>
    %c0_32 = arith.constant 0 : index
    %c0_33 = arith.constant 0 : index
    %c0_34 = arith.constant 0 : index
    %27 = vector.load %arg12[%c0_32, %c0_33, %c0_34] : memref<3x256x512xbf16, #tpu.memory_space<vmem>>, vector<1x256x512xbf16>
    %28 = vector.shape_cast %27 : vector<1x256x512xbf16> to vector<256x512xbf16>
    %29 = vector.shape_cast %26 : vector<256x512xbf16> to vector<1x256x512xbf16>
    tpu.vector_store %arg12[%c0_32, %c0_33, %c0_34], %29 {strides = array<i32>} : memref<3x256x512xbf16, #tpu.memory_space<vmem>>, vector<1x256x512xbf16>,
    %c1 = arith.constant 1 : index
    %c0_35 = arith.constant 0 : index
    %c0_36 = arith.constant 0 : index
    %30 = vector.load %arg7[%c1, %c0_35, %c0_36] : memref<3x2x4xbf16, #tpu.memory_space<vmem>>, vector<1x2x4xbf16>
    %31 = vector.shape_cast %30 : vector<1x2x4xbf16> to vector<2x4xbf16>
    %c0_37 = arith.constant 0 : index
    %c0_38 = arith.constant 0 : index
    %32 = vector.load %arg2[%c0_37, %c0_38] : memref<4x512xbf16, #tpu.memory_space<vmem>>, vector<4x512xbf16>
    %cst_39 = arith.constant dense<0.000000e+00> : vector<2x512xf32>
    %33 = tpu.matmul %31, %32, %cst_39 {dimension_numbers = #tpu.dot_dimension_numbers<[1], [0], [0], [1], [0, 0, 1, 1], [], []>} : vector<2x4xbf16>, vector<4x512xbf16>, vector<2x512xf32> -> vector<2x512xf32>
    %c1_40 = arith.constant 1 : index
    %c0_41 = arith.constant 0 : index
    %c0_42 = arith.constant 0 : index
    %34 = vector.load %arg8[%c1_40, %c0_41, %c0_42] : memref<3x4x8xbf16, #tpu.memory_space<vmem>>, vector<1x4x8xbf16>
    %35 = vector.shape_cast %34 : vector<1x4x8xbf16> to vector<4x8xbf16>
    %c0_43 = arith.constant 0 : index
    %c0_44 = arith.constant 0 : index
    %36 = vector.load %arg3[%c0_43, %c0_44] : memref<8x512xbf16, #tpu.memory_space<vmem>>, vector<8x512xbf16>
    %cst_45 = arith.constant dense<0.000000e+00> : vector<4x512xf32>
    %37 = tpu.matmul %35, %36, %cst_45 {dimension_numbers = #tpu.dot_dimension_numbers<[1], [0], [0], [1], [0, 0, 1, 1], [], []>} : vector<4x8xbf16>, vector<8x512xbf16>, vector<4x512xf32> -> vector<4x512xf32>
    %c1_46 = arith.constant 1 : index
    %c0_47 = arith.constant 0 : index
    %c0_48 = arith.constant 0 : index
    %38 = vector.load %arg9[%c1_46, %c0_47, %c0_48] : memref<3x8x16xbf16, #tpu.memory_space<vmem>>, vector<1x8x16xbf16>
    %39 = vector.shape_cast %38 : vector<1x8x16xbf16> to vector<8x16xbf16>
    %c0_49 = arith.constant 0 : index
    %c0_50 = arith.constant 0 : index
    %40 = vector.load %arg4[%c0_49, %c0_50] : memref<16x512xbf16, #tpu.memory_space<vmem>>, vector<16x512xbf16>
    %cst_51 = arith.constant dense<0.000000e+00> : vector<8x512xf32>
    %41 = tpu.matmul %39, %40, %cst_51 {dimension_numbers = #tpu.dot_dimension_numbers<[1], [0], [0], [1], [0, 0, 1, 1], [], []>} : vector<8x16xbf16>, vector<16x512xbf16>, vector<8x512xf32> -> vector<8x512xf32>
    %c1_52 = arith.constant 1 : index
    %c0_53 = arith.constant 0 : index
    %c0_54 = arith.constant 0 : index
    %42 = vector.load %arg10[%c1_52, %c0_53, %c0_54] : memref<3x16x32xbf16, #tpu.memory_space<vmem>>, vector<1x16x32xbf16>
    %43 = vector.shape_cast %42 : vector<1x16x32xbf16> to vector<16x32xbf16>
    %c0_55 = arith.constant 0 : index
    %c0_56 = arith.constant 0 : index
    %44 = vector.load %arg5[%c0_55, %c0_56] : memref<32x512xbf16, #tpu.memory_space<vmem>>, vector<32x512xbf16>
    %cst_57 = arith.constant dense<0.000000e+00> : vector<16x512xf32>
    %45 = tpu.matmul %43, %44, %cst_57 {dimension_numbers = #tpu.dot_dimension_numbers<[1], [0], [0], [1], [0, 0, 1, 1], [], []>} : vector<16x32xbf16>, vector<32x512xbf16>, vector<16x512xf32> -> vector<16x512xf32>
    %c1_58 = arith.constant 1 : index
    %c0_59 = arith.constant 0 : index
    %c0_60 = arith.constant 0 : index
    %46 = vector.load %arg11[%c1_58, %c0_59, %c0_60] : memref<3x32x64xbf16, #tpu.memory_space<vmem>>, vector<1x32x64xbf16>
    %47 = vector.shape_cast %46 : vector<1x32x64xbf16> to vector<32x64xbf16>
    %c0_61 = arith.constant 0 : index
    %c0_62 = arith.constant 0 : index
    %48 = vector.load %arg6[%c0_61, %c0_62] : memref<64x512xbf16, #tpu.memory_space<vmem>>, vector<64x512xbf16>
    %cst_63 = arith.constant dense<0.000000e+00> : vector<32x512xf32>
    %49 = tpu.matmul %47, %48, %cst_63 {dimension_numbers = #tpu.dot_dimension_numbers<[1], [0], [0], [1], [0, 0, 1, 1], [], []>} : vector<32x64xbf16>, vector<64x512xbf16>, vector<32x512xf32> -> vector<32x512xf32>
    %cst_64 = arith.constant 0.000000e+00 : f32
    %50 = vector.broadcast %cst_64 : f32 to vector<2x512xf32>
    %51 = tpu.concatenate %33, %37, %41, %45, %49, %50 in 0 : vector<2x512xf32>, vector<4x512xf32>, vector<8x512xf32>, vector<16x512xf32>, vector<32x512xf32>, vector<2x512xf32> -> vector<64x512xf32>
    %52 = arith.truncf %51 : vector<64x512xf32> to vector<64x512xbf16>
    %cst_65 = arith.constant dense<0.000000e+00> : vector<256x512xf32>
    %53 = tpu.matmul %0, %52, %cst_65 {dimension_numbers = #tpu.dot_dimension_numbers<[1], [0], [0], [1], [0, 0, 1, 1], [], []>} : vector<256x64xbf16>, vector<64x512xbf16>, vector<256x512xf32> -> vector<256x512xf32>
    %54 = arith.truncf %53 : vector<256x512xf32> to vector<256x512xbf16>
    %55 = math.tanh %54 : vector<256x512xbf16>
    %c1_66 = arith.constant 1 : index
    %c0_67 = arith.constant 0 : index
    %c0_68 = arith.constant 0 : index
    %56 = vector.load %arg12[%c1_66, %c0_67, %c0_68] : memref<3x256x512xbf16, #tpu.memory_space<vmem>>, vector<1x256x512xbf16>
    %57 = vector.shape_cast %56 : vector<1x256x512xbf16> to vector<256x512xbf16>
    %58 = vector.shape_cast %55 : vector<256x512xbf16> to vector<1x256x512xbf16>
    tpu.vector_store %arg12[%c1_66, %c0_67, %c0_68], %58 {strides = array<i32>} : memref<3x256x512xbf16, #tpu.memory_space<vmem>>, vector<1x256x512xbf16>,
    %c2 = arith.constant 2 : index
    %c0_69 = arith.constant 0 : index
    %c0_70 = arith.constant 0 : index
    %59 = vector.load %arg7[%c2, %c0_69, %c0_70] : memref<3x2x4xbf16, #tpu.memory_space<vmem>>, vector<1x2x4xbf16>
    %60 = vector.shape_cast %59 : vector<1x2x4xbf16> to vector<2x4xbf16>
    %c0_71 = arith.constant 0 : index
    %c0_72 = arith.constant 0 : index
    %61 = vector.load %arg2[%c0_71, %c0_72] : memref<4x512xbf16, #tpu.memory_space<vmem>>, vector<4x512xbf16>
    %cst_73 = arith.constant dense<0.000000e+00> : vector<2x512xf32>
    %62 = tpu.matmul %60, %61, %cst_73 {dimension_numbers = #tpu.dot_dimension_numbers<[1], [0], [0], [1], [0, 0, 1, 1], [], []>} : vector<2x4xbf16>, vector<4x512xbf16>, vector<2x512xf32> -> vector<2x512xf32>
    %c2_74 = arith.constant 2 : index
    %c0_75 = arith.constant 0 : index
    %c0_76 = arith.constant 0 : index
    %63 = vector.load %arg8[%c2_74, %c0_75, %c0_76] : memref<3x4x8xbf16, #tpu.memory_space<vmem>>, vector<1x4x8xbf16>
    %64 = vector.shape_cast %63 : vector<1x4x8xbf16> to vector<4x8xbf16>
    %c0_77 = arith.constant 0 : index
    %c0_78 = arith.constant 0 : index
    %65 = vector.load %arg3[%c0_77, %c0_78] : memref<8x512xbf16, #tpu.memory_space<vmem>>, vector<8x512xbf16>
    %cst_79 = arith.constant dense<0.000000e+00> : vector<4x512xf32>
    %66 = tpu.matmul %64, %65, %cst_79 {dimension_numbers = #tpu.dot_dimension_numbers<[1], [0], [0], [1], [0, 0, 1, 1], [], []>} : vector<4x8xbf16>, vector<8x512xbf16>, vector<4x512xf32> -> vector<4x512xf32>
    %c2_80 = arith.constant 2 : index
    %c0_81 = arith.constant 0 : index
    %c0_82 = arith.constant 0 : index
    %67 = vector.load %arg9[%c2_80, %c0_81, %c0_82] : memref<3x8x16xbf16, #tpu.memory_space<vmem>>, vector<1x8x16xbf16>
    %68 = vector.shape_cast %67 : vector<1x8x16xbf16> to vector<8x16xbf16>
    %c0_83 = arith.constant 0 : index
    %c0_84 = arith.constant 0 : index
    %69 = vector.load %arg4[%c0_83, %c0_84] : memref<16x512xbf16, #tpu.memory_space<vmem>>, vector<16x512xbf16>
    %cst_85 = arith.constant dense<0.000000e+00> : vector<8x512xf32>
    %70 = tpu.matmul %68, %69, %cst_85 {dimension_numbers = #tpu.dot_dimension_numbers<[1], [0], [0], [1], [0, 0, 1, 1], [], []>} : vector<8x16xbf16>, vector<16x512xbf16>, vector<8x512xf32> -> vector<8x512xf32>
    %c2_86 = arith.constant 2 : index
    %c0_87 = arith.constant 0 : index
    %c0_88 = arith.constant 0 : index
    %71 = vector.load %arg10[%c2_86, %c0_87, %c0_88] : memref<3x16x32xbf16, #tpu.memory_space<vmem>>, vector<1x16x32xbf16>
    %72 = vector.shape_cast %71 : vector<1x16x32xbf16> to vector<16x32xbf16>
    %c0_89 = arith.constant 0 : index
    %c0_90 = arith.constant 0 : index
    %73 = vector.load %arg5[%c0_89, %c0_90] : memref<32x512xbf16, #tpu.memory_space<vmem>>, vector<32x512xbf16>
    %cst_91 = arith.constant dense<0.000000e+00> : vector<16x512xf32>
    %74 = tpu.matmul %72, %73, %cst_91 {dimension_numbers = #tpu.dot_dimension_numbers<[1], [0], [0], [1], [0, 0, 1, 1], [], []>} : vector<16x32xbf16>, vector<32x512xbf16>, vector<16x512xf32> -> vector<16x512xf32>
    %c2_92 = arith.constant 2 : index
    %c0_93 = arith.constant 0 : index
    %c0_94 = arith.constant 0 : index
    %75 = vector.load %arg11[%c2_92, %c0_93, %c0_94] : memref<3x32x64xbf16, #tpu.memory_space<vmem>>, vector<1x32x64xbf16>
    %76 = vector.shape_cast %75 : vector<1x32x64xbf16> to vector<32x64xbf16>
    %c0_95 = arith.constant 0 : index
    %c0_96 = arith.constant 0 : index
    %77 = vector.load %arg6[%c0_95, %c0_96] : memref<64x512xbf16, #tpu.memory_space<vmem>>, vector<64x512xbf16>
    %cst_97 = arith.constant dense<0.000000e+00> : vector<32x512xf32>
    %78 = tpu.matmul %76, %77, %cst_97 {dimension_numbers = #tpu.dot_dimension_numbers<[1], [0], [0], [1], [0, 0, 1, 1], [], []>} : vector<32x64xbf16>, vector<64x512xbf16>, vector<32x512xf32> -> vector<32x512xf32>
    %cst_98 = arith.constant 0.000000e+00 : f32
    %79 = vector.broadcast %cst_98 : f32 to vector<2x512xf32>
    %80 = tpu.concatenate %62, %66, %70, %74, %78, %79 in 0 : vector<2x512xf32>, vector<4x512xf32>, vector<8x512xf32>, vector<16x512xf32>, vector<32x512xf32>, vector<2x512xf32> -> vector<64x512xf32>
    %81 = arith.truncf %80 : vector<64x512xf32> to vector<64x512xbf16>
    %cst_99 = arith.constant dense<0.000000e+00> : vector<256x512xf32>
    %82 = tpu.matmul %0, %81, %cst_99 {dimension_numbers = #tpu.dot_dimension_numbers<[1], [0], [0], [1], [0, 0, 1, 1], [], []>} : vector<256x64xbf16>, vector<64x512xbf16>, vector<256x512xf32> -> vector<256x512xf32>
    %83 = arith.truncf %82 : vector<256x512xf32> to vector<256x512xbf16>
    %84 = math.tanh %83 : vector<256x512xbf16>
    %c2_100 = arith.constant 2 : index
    %c0_101 = arith.constant 0 : index
    %c0_102 = arith.constant 0 : index
    %85 = vector.load %arg12[%c2_100, %c0_101, %c0_102] : memref<3x256x512xbf16, #tpu.memory_space<vmem>>, vector<1x256x512xbf16>
    %86 = vector.shape_cast %85 : vector<1x256x512xbf16> to vector<256x512xbf16>
    %87 = vector.shape_cast %84 : vector<256x512xbf16> to vector<1x256x512xbf16>
    tpu.vector_store %arg12[%c2_100, %c0_101, %c0_102], %87 {strides = array<i32>} : memref<3x256x512xbf16, #tpu.memory_space<vmem>>, vector<1x256x512xbf16>,
    return
  }
  func.func @transform_0(%arg0: i32) -> (i32, i32) {
    %c0_i32 = arith.constant 0 : i32
    %c0_i32_0 = arith.constant 0 : i32
    %c0_i32_1 = arith.constant 0 : i32
    return %c0_i32, %c0_i32_0 : i32, i32
  }
  func.func @transform_1(%arg0: i32) -> (i32, i32) {
    %c0_i32 = arith.constant 0 : i32
    %c0_i32_0 = arith.constant 0 : i32
    %c0_i32_1 = arith.constant 0 : i32
    return %c0_i32, %c0_i32_0 : i32, i32
  }
  func.func @transform_2(%arg0: i32) -> (i32, i32) {
    %c0_i32 = arith.constant 0 : i32
    %c0_i32_0 = arith.constant 0 : i32
    %c0_i32_1 = arith.constant 0 : i32
    return %c0_i32, %c0_i32_0 : i32, i32
  }
  func.func @transform_3(%arg0: i32) -> (i32, i32) {
    %c0_i32 = arith.constant 0 : i32
    %c0_i32_0 = arith.constant 0 : i32
    %c0_i32_1 = arith.constant 0 : i32
    return %c0_i32, %c0_i32_0 : i32, i32
  }
  func.func @transform_4(%arg0: i32) -> (i32, i32) {
    %c0_i32 = arith.constant 0 : i32
    %c0_i32_0 = arith.constant 0 : i32
    %c0_i32_1 = arith.constant 0 : i32
    return %c0_i32, %c0_i32_0 : i32, i32
  }
  func.func @transform_5(%arg0: i32) -> (i32, i32) {
    %c0_i32 = arith.constant 0 : i32
    %c0_i32_0 = arith.constant 0 : i32
    %c0_i32_1 = arith.constant 0 : i32
    return %c0_i32, %c0_i32_0 : i32, i32
  }
  func.func @transform_6(%arg0: i32) -> (i32, i32, i32) {
    %c0_i32 = arith.constant 0 : i32
    %c0_i32_0 = arith.constant 0 : i32
    %c0_i32_1 = arith.constant 0 : i32
    return %arg0, %c0_i32, %c0_i32_0 : i32, i32, i32
  }
  func.func @transform_7(%arg0: i32) -> (i32, i32, i32) {
    %c0_i32 = arith.constant 0 : i32
    %c0_i32_0 = arith.constant 0 : i32
    %c0_i32_1 = arith.constant 0 : i32
    return %arg0, %c0_i32, %c0_i32_0 : i32, i32, i32
  }
  func.func @transform_8(%arg0: i32) -> (i32, i32, i32) {
    %c0_i32 = arith.constant 0 : i32
    %c0_i32_0 = arith.constant 0 : i32
    %c0_i32_1 = arith.constant 0 : i32
    return %arg0, %c0_i32, %c0_i32_0 : i32, i32, i32
  }
  func.func @transform_9(%arg0: i32) -> (i32, i32, i32) {
    %c0_i32 = arith.constant 0 : i32
    %c0_i32_0 = arith.constant 0 : i32
    %c0_i32_1 = arith.constant 0 : i32
    return %arg0, %c0_i32, %c0_i32_0 : i32, i32, i32
  }
  func.func @transform_10(%arg0: i32) -> (i32, i32, i32) {
    %c0_i32 = arith.constant 0 : i32
    %c0_i32_0 = arith.constant 0 : i32
    %c0_i32_1 = arith.constant 0 : i32
    return %arg0, %c0_i32, %c0_i32_0 : i32, i32, i32
  }
  func.func @transform_11(%arg0: i32) -> (i32, i32, i32) {
    %c0_i32 = arith.constant 0 : i32
    %c0_i32_0 = arith.constant 0 : i32
    %c0_i32_1 = arith.constant 0 : i32
    return %arg0, %c0_i32, %c0_i32_0 : i32, i32, i32
  }
}

</mosaic_0001>

<bundles_post_ra>
// kernel: generator_forward.2
= control target key start
LH: loop header
LB: loop body
LE: loop exit
PB: predicated region body
PF: predicated region fallthrough
CT: control target
= control target key end

     0   :  { %s2643_s3 = inlined_call_operand.vmem [shape: bf16[256,256], index: 3, kind: input, shape index: {}]   ;;  %s2644_s2 = inlined_call_operand.vmem [shape: bf16[768,256], index: 2, kind: input, shape index: {}]   ;;  %s2645_s1 = inlined_call_operand.vmem [shape: bf16[16,256], index: 1, kind: input, shape index: {}]   ;;  %s2646_s0 = inlined_call_operand.vmem [shape: bf16[16,768], index: 0, kind: input, shape index: {}]   ;;  %s2647_s4 = inlined_call_operand.vmem [shape: f32[1,256], index: 4, kind: input, shape index: {}]   ;;  %s2648_s5 = inlined_call_operand.vmem [shape: f32[16,256], index: 5, kind: output, shape index: {}]  }
   0x1   :  { %v1144_v0 = vld [vmem:[%s2643_s3 + $0x70] sm:$0xf]  ;;  %v1741_v1 = vld [vmem:[%s2643_s3 + $0x74] sm:$0xf0]  ;;  %v1740_v5 = vld [vmem:[%s2643_s3 + $0x74] sm:$0xf] }
   0x2   :  { %v1208_v2 = vld [vmem:[%s2643_s3 + $0xf0] sm:$0xf]  ;;  %v1145_v3 = vor.u32 %v1741_v1, %v1144_v0  ;;  %v1757_v4 = vld [vmem:[%s2643_s3 + $0xf4] sm:$0xf0]  ;;  %v1146_v6 = vld [vmem:[%s2643_s3 + $0x78] sm:$0xf0] }
   0x3   :  { %v1209_v7 = vor.u32 %v1757_v4, %v1208_v2  ;;  %v1149_v8 = vor.u32 %v1740_v5, %v1146_v6  ;;  %v1756_v9 = vld [vmem:[%s2643_s3 + $0xf4] sm:$0xf]  ;;  %v1210_v10 = vld [vmem:[%s2643_s3 + $0xf8] sm:$0xf0]  ;;  %v1136_v11 = vld [vmem:[%s2643_s3 + $0x60] sm:$0xf] }
   0x4   :  { %326 = vmatpush.bf16.msra.mxu0 %v1145_v3  ;;  %v1213_v12 = vor.u32 %v1756_v9, %v1210_v10  ;;  %v1739_v13 = vld [vmem:[%s2643_s3 + $0x64] sm:$0xf0]  ;;  %v1200_v14 = vld [vmem:[%s2643_s3 + $0xe0] sm:$0xf]  ;;  %v1738_v18 = vld [vmem:[%s2643_s3 + $0x64] sm:$0xf] }
   0x5   :  { %v1755_v15 = vld [vmem:[%s2643_s3 + $0xe4] sm:$0xf0]  ;;  %340 = vmatpush.bf16.msra.mxu1 %v1209_v7  ;;  %354 = vmatpush.bf16.msra.mxu2 %v1149_v8  ;;  %v1137_v16 = vor.u32 %v1739_v13, %v1136_v11  ;;  %v1138_v19 = vld [vmem:[%s2643_s3 + $0x68] sm:$0xf0]  ;;  %v1754_v20 = vld [vmem:[%s2643_s3 + $0xe4] sm:$0xf] }
   0x6   :  { %v1201_v17 = vor.u32 %v1755_v15, %v1200_v14  ;;  %368 = vmatpush.bf16.msra.mxu3 %v1213_v12  ;;  %v1141_v21 = vor.u32 %v1738_v18, %v1138_v19  ;;  %v1202_v22 = vld [vmem:[%s2643_s3 + $0xe8] sm:$0xf0]  ;;  %v1128_v23 = vld [vmem:[%s2643_s3 + $0x50] sm:$0xf]  ;;  %v1737_v24 = vld [vmem:[%s2643_s3 + $0x54] sm:$0xf0] }
   0x7   :  { %v1205_v25 = vor.u32 %v1754_v20, %v1202_v22  ;;  %v1192_v26 = vld [vmem:[%s2643_s3 + $0xd0] sm:$0xf]  ;;  %v1753_v27 = vld [vmem:[%s2643_s3 + $0xd4] sm:$0xf0]  ;;  %v1736_v28 = vld [vmem:[%s2643_s3 + $0x54] sm:$0xf]  ;;  %v1129_v29 = vor.u32 %v1737_v24, %v1128_v23 }
   0x8   :  { %327 = vmatpush.bf16.msra.mxu0 %v1137_v16  ;;  %v1130_v30 = vld [vmem:[%s2643_s3 + $0x58] sm:$0xf0]  ;;  %v1752_v31 = vld [vmem:[%s2643_s3 + $0xd4] sm:$0xf]  ;;  %v1193_v33 = vor.u32 %v1753_v27, %v1192_v26  ;;  %v1120_v35 = vld [vmem:[%s2643_s3 + $0x40] sm:$0xf] }
   0x9   :  { %v1194_v32 = vld [vmem:[%s2643_s3 + $0xd8] sm:$0xf0]  ;;  %341 = vmatpush.bf16.msra.mxu1 %v1201_v17  ;;  %355 = vmatpush.bf16.msra.mxu2 %v1141_v21  ;;  %v1133_v34 = vor.u32 %v1736_v28, %v1130_v30  ;;  %v1735_v36 = vld [vmem:[%s2643_s3 + $0x44] sm:$0xf0]  ;;  %v1184_v37 = vld [vmem:[%s2643_s3 + $0xc0] sm:$0xf] }
   0xa   :  { %369 = vmatpush.bf16.msra.mxu3 %v1205_v25  ;;  %v1197_v38 = vor.u32 %v1752_v31, %v1194_v32  ;;  %v1751_v39 = vld [vmem:[%s2643_s3 + $0xc4] sm:$0xf0]  ;;  %v1734_v40 = vld [vmem:[%s2643_s3 + $0x44] sm:$0xf]  ;;  %v1122_v41 = vld [vmem:[%s2643_s3 + $0x48] sm:$0xf0]  ;;  %v1121_v44 = vor.u32 %v1735_v36, %v1120_v35 }
   0xb   :  { %v1750_v42 = vld [vmem:[%s2643_s3 + $0xc4] sm:$0xf]  ;;  %v1186_v43 = vld [vmem:[%s2643_s3 + $0xc8] sm:$0xf0]  ;;  %v1185_v45 = vor.u32 %v1751_v39, %v1184_v37  ;;  %v1125_v46 = vor.u32 %v1734_v40, %v1122_v41  ;;  %v1112_v47 = vld [vmem:[%s2643_s3 + $0x30] sm:$0xf] }
   0xc   :  { %328 = vmatpush.bf16.msra.mxu0 %v1129_v29  ;;  %v1733_v48 = vld [vmem:[%s2643_s3 + $0x34] sm:$0xf0]  ;;  %v1176_v49 = vld [vmem:[%s2643_s3 + $0xb0] sm:$0xf]  ;;  %v1189_v50 = vor.u32 %v1750_v42, %v1186_v43  ;;  %v1732_v52 = vld [vmem:[%s2643_s3 + $0x34] sm:$0xf] }
   0xd   :  { %342 = vmatpush.bf16.msra.mxu1 %v1193_v33  ;;  %356 = vmatpush.bf16.msra.mxu2 %v1133_v34  ;;  %v1749_v51 = vld [vmem:[%s2643_s3 + $0xb4] sm:$0xf0]  ;;  %v1114_v53 = vld [vmem:[%s2643_s3 + $0x38] sm:$0xf0]  ;;  %v1748_v54 = vld [vmem:[%s2643_s3 + $0xb4] sm:$0xf]  ;;  %v1113_v56 = vor.u32 %v1733_v48, %v1112_v47 }
   0xe   :  { %370 = vmatpush.bf16.msra.mxu3 %v1197_v38  ;;  %v1178_v55 = vld [vmem:[%s2643_s3 + $0xb8] sm:$0xf0]  ;;  %v1177_v57 = vor.u32 %v1749_v51, %v1176_v49  ;;  %v1117_v58 = vor.u32 %v1732_v52, %v1114_v53  ;;  %v1104_v59 = vld [vmem:[%s2643_s3 + $0x20] sm:$0xf]  ;;  %v1731_v60 = vld [vmem:[%s2643_s3 + $0x24] sm:$0xf0] }
   0xf   :  { %v1168_v61 = vld [vmem:[%s2643_s3 + $0xa0] sm:$0xf]  ;;  %v1181_v62 = vor.u32 %v1748_v54, %v1178_v55  ;;  %v1747_v63 = vld [vmem:[%s2643_s3 + $0xa4] sm:$0xf0]  ;;  %v1730_v0 = vld [vmem:[%s2643_s3 + $0x24] sm:$0xf]  ;;  %v1105_v4 = vor.u32 %v1731_v60, %v1104_v59 }
  0x10   :  { %329 = vmatpush.bf16.msra.mxu0 %v1121_v44  ;;  %v1106_v1 = vld [vmem:[%s2643_s3 + $0x28] sm:$0xf0]  ;;  %v1746_v2 = vld [vmem:[%s2643_s3 + $0xa4] sm:$0xf]  ;;  %v1169_v5 = vor.u32 %v1747_v63, %v1168_v61  ;;  %v1096_v7 = vld [vmem:[%s2643_s3 + $0x10] sm:$0xf] }
  0x11   :  { %343 = vmatpush.bf16.msra.mxu1 %v1185_v45  ;;  %357 = vmatpush.bf16.msra.mxu2 %v1125_v46  ;;  %v1170_v3 = vld [vmem:[%s2643_s3 + $0xa8] sm:$0xf0]  ;;  %v1109_v6 = vor.u32 %v1730_v0, %v1106_v1  ;;  %v1729_v8 = vld [vmem:[%s2643_s3 + $0x14] sm:$0xf0]  ;;  %v1160_v9 = vld [vmem:[%s2643_s3 + $0x90] sm:$0xf] }
  0x12   :  { %371 = vmatpush.bf16.msra.mxu3 %v1189_v50  ;;  %v1173_v10 = vor.u32 %v1746_v2, %v1170_v3  ;;  %v1745_v11 = vld [vmem:[%s2643_s3 + $0x94] sm:$0xf0]  ;;  %v1728_v12 = vld [vmem:[%s2643_s3 + $0x14] sm:$0xf]  ;;  %v1098_v13 = vld [vmem:[%s2643_s3 + $0x18] sm:$0xf0]  ;;  %v1097_v16 = vor.u32 %v1729_v8, %v1096_v7 }
  0x13   :  { %v1744_v14 = vld [vmem:[%s2643_s3 + $0x94] sm:$0xf]  ;;  %v1162_v15 = vld [vmem:[%s2643_s3 + $0x98] sm:$0xf0]  ;;  %v1088_v17 = vld [vmem:[%s2643_s3] sm:$0xf]  ;;  %v1161_v19 = vor.u32 %v1745_v11, %v1160_v9  ;;  %v1101_v20 = vor.u32 %v1728_v12, %v1098_v13 }
  0x14   :  { %330 = vmatpush.bf16.msra.mxu0 %v1113_v56  ;;  %v1727_v18 = vld [vmem:[%s2643_s3 + $0x4] sm:$0xf0]  ;;  %v1152_v21 = vld [vmem:[%s2643_s3 + $0x80] sm:$0xf]  ;;  %v1726_v23 = vld [vmem:[%s2643_s3 + $0x4] sm:$0xf]  ;;  %v1165_v24 = vor.u32 %v1744_v14, %v1162_v15 }
  0x15   :  { %344 = vmatpush.bf16.msra.mxu1 %v1177_v57  ;;  %358 = vmatpush.bf16.msra.mxu2 %v1117_v58  ;;  %v1743_v22 = vld [vmem:[%s2643_s3 + $0x84] sm:$0xf0]  ;;  %v1090_v25 = vld [vmem:[%s2643_s3 + $0x8] sm:$0xf0]  ;;  %v1742_v26 = vld [vmem:[%s2643_s3 + $0x84] sm:$0xf]  ;;  %v1089_v31 = vor.u32 %v1727_v18, %v1088_v17 }
  0x16   :  { %372 = vmatpush.bf16.msra.mxu3 %v1181_v62  ;;  %v1154_v27 = vld [vmem:[%s2643_s3 + $0x88] sm:$0xf0]  ;;  %v1296_v28 = vld [vmem:[%s2644_s2 + $0x70] sm:$0xf]  ;;  %v1643_v29 = vld [vmem:[%s2644_s2 + $0x74] sm:$0xf0]  ;;  %v1153_v35 = vor.u32 %v1743_v22, %v1152_v21  ;;  %v1093_v36 = vor.u32 %v1726_v23, %v1090_v25 }
  0x17   :  { %v1360_v30 = vld [vmem:[%s2644_s2 + $0xf0] sm:$0xf]  ;;  %v1659_v32 = vld [vmem:[%s2644_s2 + $0xf4] sm:$0xf0]  ;;  %v1157_v39 = vor.u32 %v1742_v26, %v1154_v27  ;;  %v1297_v40 = vor.u32 %v1643_v29, %v1296_v28  ;;  %v1288_v41 = vld [vmem:[%s2644_s2 + $0x60] sm:$0xf] }
  0x18   :  { %331 = vmatpush.bf16.msra.mxu0 %v1105_v4  ;;  %v1424_v33 = vld [vmem:[%s2644_s2 + $0x170] sm:$0xf]  ;;  %v1675_v34 = vld [vmem:[%s2644_s2 + $0x174] sm:$0xf0]  ;;  %v1361_v42 = vor.u32 %v1659_v32, %v1360_v30  ;;  %v1641_v44 = vld [vmem:[%s2644_s2 + $0x64] sm:$0xf0] }
  0x19   :  { %345 = vmatpush.bf16.msra.mxu1 %v1169_v5  ;;  %359 = vmatpush.bf16.msra.mxu2 %v1109_v6  ;;  %v1488_v37 = vld [vmem:[%s2644_s2 + $0x1f0] sm:$0xf]  ;;  %v1691_v38 = vld [vmem:[%s2644_s2 + $0x1f4] sm:$0xf0]  ;;  %v1425_v43 = vor.u32 %v1675_v34, %v1424_v33  ;;  %v1352_v45 = vld [vmem:[%s2644_s2 + $0xe0] sm:$0xf]  ;;  %v1289_v54 = vor.u32 %v1641_v44, %v1288_v41 }
  0x1a   :  { %373 = vmatpush.bf16.msra.mxu3 %v1173_v10  ;;  %v1657_v46 = vld [vmem:[%s2644_s2 + $0xe4] sm:$0xf0]  ;;  %v1489_v47 = vor.u32 %v1691_v38, %v1488_v37  ;;  %v1416_v48 = vld [vmem:[%s2644_s2 + $0x160] sm:$0xf]  ;;  %v1280_v55 = vld [vmem:[%s2644_s2 + $0x50] sm:$0xf] }
  0x1b   :  { %v1673_v49 = vld [vmem:[%s2644_s2 + $0x164] sm:$0xf0]  ;;  %v1480_v50 = vld [vmem:[%s2644_s2 + $0x1e0] sm:$0xf]  ;;  %v1639_v56 = vld [vmem:[%s2644_s2 + $0x54] sm:$0xf0]  ;;  %v1353_v58 = vor.u32 %v1657_v46, %v1352_v45 }
  0x1c   :  { %332 = vmatpush.bf16.msra.mxu0 %v1097_v16  ;;  %v1689_v51 = vld [vmem:[%s2644_s2 + $0x1e4] sm:$0xf0]  ;;  %v1080_v52 = vld [vmem:[%s2645_s1] sm:$0xf]  ;;  %v1417_v59 = vor.u32 %v1673_v49, %v1416_v48  ;;  %v1344_v60 = vld [vmem:[%s2644_s2 + $0xd0] sm:$0xf]  ;;  %v1281_v6 = vor.u32 %v1639_v56, %v1280_v55 }
  0x1d   :  { %346 = vmatpush.bf16.msra.mxu1 %v1161_v19  ;;  %360 = vmatpush.bf16.msra.mxu2 %v1101_v20  ;;  %v1725_v53 = vld [vmem:[%s2645_s1 + $0x4] sm:$0xf0]  ;;  %v1655_v61 = vld [vmem:[%s2644_s2 + $0xd4] sm:$0xf0]  ;;  %v1408_v62 = vld [vmem:[%s2644_s2 + $0x150] sm:$0xf]  ;;  %v1481_v63 = vor.u32 %v1689_v51, %v1480_v50 }
  0x1e   :  { %374 = vmatpush.bf16.msra.mxu3 %v1165_v24  ;;  %v1081_v57 = vor.u32 %v1725_v53, %v1080_v52  ;;  %v1671_v0 = vld [vmem:[%s2644_s2 + $0x154] sm:$0xf0]  ;;  %v1724_v1 = vld [vmem:[%s2645_s1 + $0x4] sm:$0xf]  ;;  %v1082_v2 = vld [vmem:[%s2645_s1 + $0x8] sm:$0xf0]  ;;  %v1345_v7 = vor.u32 %v1655_v61, %v1344_v60 }
  0x1f   :  { %v1472_v3 = vld [vmem:[%s2644_s2 + $0x1d0] sm:$0xf]  ;;  %v1687_v4 = vld [vmem:[%s2644_s2 + $0x1d4] sm:$0xf0]  ;;  %v1085_v5 = vor.u32 %v1724_v1, %v1082_v2  ;;  %v1409_v8 = vor.u32 %v1671_v0, %v1408_v62  ;;  %v1272_v9 = vld [vmem:[%s2644_s2 + $0x40] sm:$0xf] }
  0x20   :  { %333 = vmatpush.bf16.msra.mxu0 %v1089_v31  ;;  %v1637_v10 = vld [vmem:[%s2644_s2 + $0x44] sm:$0xf0]  ;;  %v1336_v11 = vld [vmem:[%s2644_s2 + $0xc0] sm:$0xf]  ;;  %v1473_v12 = vor.u32 %v1687_v4, %v1472_v3  ;;  %v1264_v21 = vld [vmem:[%s2644_s2 + $0x30] sm:$0xf] }
  0x21   :  { %347 = vmatpush.bf16.msra.mxu1 %v1153_v35  ;;  %361 = vmatpush.bf16.msra.mxu2 %v1093_v36  ;;  %v1653_v13 = vld [vmem:[%s2644_s2 + $0xc4] sm:$0xf0]  ;;  %v1400_v14 = vld [vmem:[%s2644_s2 + $0x140] sm:$0xf]  ;;  %v1273_v18 = vor.u32 %v1637_v10, %v1272_v9  ;;  %v1635_v22 = vld [vmem:[%s2644_s2 + $0x34] sm:$0xf0] }
  0x22   :  { %375 = vmatpush.bf16.msra.mxu3 %v1157_v39  ;;  %v1669_v15 = vld [vmem:[%s2644_s2 + $0x144] sm:$0xf0]  ;;  %v1464_v16 = vld [vmem:[%s2644_s2 + $0x1c0] sm:$0xf]  ;;  %v1337_v19 = vor.u32 %v1653_v13, %v1336_v11  ;;  %v1328_v23 = vld [vmem:[%s2644_s2 + $0xb0] sm:$0xf]  ;;  %v1265_v30 = vor.u32 %v1635_v22, %v1264_v21 }
  0x23   :  { %334 = vmatmul.bf16.vlgmr.msra.gmra.mxu0 %v1081_v57  ;;  %v1685_v17 = vld [vmem:[%s2644_s2 + $0x1c4] sm:$0xf0]  ;;  %v1401_v20 = vor.u32 %v1669_v15, %v1400_v14  ;;  %v1651_v25 = vld [vmem:[%s2644_s2 + $0xb4] sm:$0xf0]  ;;  %v1392_v26 = vld [vmem:[%s2644_s2 + $0x130] sm:$0xf] }
  0x24   :  { %892 = vmatpush.bf16.msrb.mxu0 %v1297_v40  ;;  %362 = vmatmul.bf16.vlgmr.msra.gmra.mxu2 %v1081_v57  ;;  %v1465_v24 = vor.u32 %v1685_v17, %v1464_v16  ;;  %v1667_v27 = vld [vmem:[%s2644_s2 + $0x134] sm:$0xf0]  ;;  %v1456_v28 = vld [vmem:[%s2644_s2 + $0x1b0] sm:$0xf]  ;;  %v1329_v31 = vor.u32 %v1651_v25, %v1328_v23  ;;  %v1256_v33 = vld [vmem:[%s2644_s2 + $0x20] sm:$0xf] }
  0x25   :  { %906 = vmatpush.bf16.msrb.mxu1 %v1361_v42  ;;  %920 = vmatpush.bf16.msrb.mxu2 %v1425_v43  ;;  %v1683_v29 = vld [vmem:[%s2644_s2 + $0x1b4] sm:$0xf0]  ;;  %v1393_v32 = vor.u32 %v1667_v27, %v1392_v26  ;;  %v1633_v34 = vld [vmem:[%s2644_s2 + $0x24] sm:$0xf0]  ;;  %v1320_v35 = vld [vmem:[%s2644_s2 + $0xa0] sm:$0xf] }
  0x26   :  { %934 = vmatpush.bf16.msrb.mxu3 %v1489_v47  ;;  %348 = vmatmul.bf16.vlgmr.msra.gmra.mxu1 %v1085_v5  ;;  %v1457_v36 = vor.u32 %v1683_v29, %v1456_v28  ;;  %v1649_v37 = vld [vmem:[%s2644_s2 + $0xa4] sm:$0xf0]  ;;  %v1384_v38 = vld [vmem:[%s2644_s2 + $0x120] sm:$0xf]  ;;  %v1257_v42 = vor.u32 %v1633_v34, %v1256_v33  ;;  %v1248_v43 = vld [vmem:[%s2644_s2 + $0x10] sm:$0xf] }
  0x27   :  { %376 = vmatmul.bf16.vlgmr.msra.gmra.mxu3 %v1085_v5  ;;  %v1665_v39 = vld [vmem:[%s2644_s2 + $0x124] sm:$0xf0]  ;;  %v1448_v40 = vld [vmem:[%s2644_s2 + $0x1a0] sm:$0xf]  ;;  %v1321_v44 = vor.u32 %v1649_v37, %v1320_v35  ;;  %v1631_v46 = vld [vmem:[%s2644_s2 + $0x14] sm:$0xf0] }
  0x28   :  { %893 = vmatpush.bf16.msrb.mxu0 %v1289_v54  ;;  %v1681_v41 = vld [vmem:[%s2644_s2 + $0x1a4] sm:$0xf0]  ;;  %v1385_v45 = vor.u32 %v1665_v39, %v1384_v38  ;;  %v1312_v47 = vld [vmem:[%s2644_s2 + $0x90] sm:$0xf]  ;;  %v1647_v48 = vld [vmem:[%s2644_s2 + $0x94] sm:$0xf0]  ;;  %v1249_v56 = vor.u32 %v1631_v46, %v1248_v43 }
  0x29   :  { %907 = vmatpush.bf16.msrb.mxu1 %v1353_v58  ;;  %921 = vmatpush.bf16.msrb.mxu2 %v1417_v59  ;;  %v1449_v49 = vor.u32 %v1681_v41, %v1448_v40  ;;  %v1376_v50 = vld [vmem:[%s2644_s2 + $0x110] sm:$0xf]  ;;  %v1663_v51 = vld [vmem:[%s2644_s2 + $0x114] sm:$0xf0]  ;;  %v1240_v54 = vld [vmem:[%s2644_s2] sm:$0xf]  ;;  %v1313_v61 = vor.u32 %v1647_v48, %v1312_v47 }
  0x2a   :  { %935 = vmatpush.bf16.msrb.mxu3 %v1481_v63  ;;  %v1440_v52 = vld [vmem:[%s2644_s2 + $0x190] sm:$0xf]  ;;  %v1679_v53 = vld [vmem:[%s2644_s2 + $0x194] sm:$0xf0]  ;;  %v1629_v55 = vld [vmem:[%s2644_s2 + $0x4] sm:$0xf0]  ;;  %v1377_v62 = vor.u32 %v1663_v51, %v1376_v50 }
  0x2b   :  { %v1304_v57 = vld [vmem:[%s2644_s2 + $0x80] sm:$0xf]  ;;  %v1645_v58 = vld [vmem:[%s2644_s2 + $0x84] sm:$0xf0]  ;;  %v1552_v1 = vld [vmem:[%s2644_s2 + $0x270] sm:$0xf]  ;;  %v1441_v2 = vor.u32 %v1679_v53, %v1440_v52  ;;  %v1241_v9 = vor.u32 %v1629_v55, %v1240_v54 }
  0x2c   :  { %894 = vmatpush.bf16.msrb.mxu0 %v1281_v6  ;;  %v1368_v59 = vld [vmem:[%s2644_s2 + $0x100] sm:$0xf]  ;;  %v1661_v60 = vld [vmem:[%s2644_s2 + $0x104] sm:$0xf0]  ;;  %v1707_v3 = vld [vmem:[%s2644_s2 + $0x274] sm:$0xf0]  ;;  %v1305_v13 = vor.u32 %v1645_v58, %v1304_v57 }
  0x2d   :  { %908 = vmatpush.bf16.msrb.mxu1 %v1345_v7  ;;  %922 = vmatpush.bf16.msrb.mxu2 %v1409_v8  ;;  %v1432_v63 = vld [vmem:[%s2644_s2 + $0x180] sm:$0xf]  ;;  %v1677_v0 = vld [vmem:[%s2644_s2 + $0x184] sm:$0xf0]  ;;  %v1616_v4 = vld [vmem:[%s2644_s2 + $0x2f0] sm:$0xf]  ;;  %v1369_v14 = vor.u32 %v1661_v60, %v1368_v59 }
  0x2e   :  { %936 = vmatpush.bf16.msrb.mxu3 %v1473_v12  ;;  %v1723_v5 = vld [vmem:[%s2644_s2 + $0x2f4] sm:$0xf0]  ;;  %v1642_v6 = vld [vmem:[%s2644_s2 + $0x74] sm:$0xf]  ;;  %v1298_v7 = vld [vmem:[%s2644_s2 + $0x78] sm:$0xf0] }
  0x2f   :  { %v1658_v8 = vld [vmem:[%s2644_s2 + $0xf4] sm:$0xf]  ;;  %v1362_v10 = vld [vmem:[%s2644_s2 + $0xf8] sm:$0xf0]  ;;  %v1216_v11 = vld [vmem:[%s2646_s0] sm:$0xf]  ;;  %v1617_v23 = vor.u32 %v1723_v5, %v1616_v4 }
  0x30   :  { %895 = vmatpush.bf16.msrb.mxu0 %v1273_v18  ;;  %v1625_v12 = vld [vmem:[%s2646_s0 + $0x14] sm:$0xf0]  ;;  %v1224_v15 = vld [vmem:[%s2646_s0 + $0x8] sm:$0xf]  ;;  %v1626_v16 = vld [vmem:[%s2646_s0 + $0x1c] sm:$0xf0]  ;;  %v1433_v18 = vor.u32 %v1677_v0, %v1432_v63  ;;  %v1365_v28 = vor.u32 %v1658_v8, %v1362_v10 }
  0x31   :  { %909 = vmatpush.bf16.msrb.mxu1 %v1337_v19  ;;  %923 = vmatpush.bf16.msrb.mxu2 %v1401_v20  ;;  %v1622_v17 = vld [vmem:[%s2646_s0 + $0x4] sm:$0xf]  ;;  %v1553_v19 = vor.u32 %v1707_v3, %v1552_v1  ;;  %v1218_v20 = vld [vmem:[%s2646_s0 + $0x18] sm:$0xf0]  ;;  %v1623_v21 = vld [vmem:[%s2646_s0 + $0xc] sm:$0xf]  ;;  %v2241_v29 = vor.u32 %v1625_v12, %v1216_v11  ;;  %v2252_v33 = vor.u32 %v1626_v16, %v1224_v15 }
  0x32   :  { %937 = vmatpush.bf16.msrb.mxu3 %v1465_v24  ;;  %v1226_v22 = vld [vmem:[%s2646_s0 + $0x20] sm:$0xf0]  ;;  %v1301_v24 = vor.u32 %v1642_v6, %v1298_v7  ;;  %v1544_v25 = vld [vmem:[%s2644_s2 + $0x260] sm:$0xf]  ;;  %v1705_v26 = vld [vmem:[%s2644_s2 + $0x264] sm:$0xf0]  ;;  %v2254_v34 = vor.u32 %v1622_v17, %v1218_v20 }
  0x33   :  { %v1608_v27 = vld [vmem:[%s2644_s2 + $0x2e0] sm:$0xf]  ;;  %v1656_v35 = vld [vmem:[%s2644_s2 + $0xe4] sm:$0xf]  ;;  %v2262_v37 = vor.u32 %v1623_v21, %v1226_v22  ;;  %v1545_v38 = vor.u32 %v1705_v26, %v1544_v25  ;;  %v1536_v41 = vld [vmem:[%s2644_s2 + $0x250] sm:$0xf] }
  0x34   :  { %896 = vmatpush.bf16.msrb.mxu0 %v1265_v30  ;;  %v1721_v30 = vld [vmem:[%s2644_s2 + $0x2e4] sm:$0xf0]  ;;  %v1600_v43 = vld [vmem:[%s2644_s2 + $0x2d0] sm:$0xf]  ;;  %v1638_v46 = vld [vmem:[%s2644_s2 + $0x54] sm:$0xf] }
  0x35   :  { %910 = vmatpush.bf16.msrb.mxu1 %v1329_v31  ;;  %924 = vmatpush.bf16.msrb.mxu2 %v1393_v32  ;;  %v1640_v31 = vld [vmem:[%s2644_s2 + $0x64] sm:$0xf]  ;;  %v1290_v32 = vld [vmem:[%s2644_s2 + $0x68] sm:$0xf0]  ;;  %v1609_v39 = vor.u32 %v1721_v30, %v1608_v27  ;;  %v1282_v47 = vld [vmem:[%s2644_s2 + $0x58] sm:$0xf0] }
  0x36   :  { %938 = vmatpush.bf16.msrb.mxu3 %v1457_v36  ;;  %v1354_v36 = vld [vmem:[%s2644_s2 + $0xe8] sm:$0xf0]  ;;  %v1293_v40 = vor.u32 %v1640_v31, %v1290_v32  ;;  %v1654_v48 = vld [vmem:[%s2644_s2 + $0xd4] sm:$0xf]  ;;  %v1285_v52 = vor.u32 %v1638_v46, %v1282_v47  ;;  %v1528_v53 = vld [vmem:[%s2644_s2 + $0x240] sm:$0xf] }
  0x37   :  { %v1701_v54 = vld [vmem:[%s2644_s2 + $0x244] sm:$0xf0]  ;;  %v1592_v55 = vld [vmem:[%s2644_s2 + $0x2c0] sm:$0xf]  ;;  %v1636_v58 = vld [vmem:[%s2644_s2 + $0x44] sm:$0xf] }
  0x38   :  { %897 = vmatpush.bf16.msrb.mxu0 %v1257_v42  ;;  %v1703_v42 = vld [vmem:[%s2644_s2 + $0x254] sm:$0xf0]  ;;  %v1717_v57 = vld [vmem:[%s2644_s2 + $0x2c4] sm:$0xf0]  ;;  %v1274_v59 = vld [vmem:[%s2644_s2 + $0x48] sm:$0xf0] }
  0x39   :  { %911 = vmatpush.bf16.msrb.mxu1 %v1321_v44  ;;  %925 = vmatpush.bf16.msrb.mxu2 %v1385_v45  ;;  %v1357_v44 = vor.u32 %v1656_v35, %v1354_v36  ;;  %v1719_v45 = vld [vmem:[%s2644_s2 + $0x2d4] sm:$0xf0]  ;;  %v1537_v50 = vor.u32 %v1703_v42, %v1536_v41  ;;  %v1652_v60 = vld [vmem:[%s2644_s2 + $0xc4] sm:$0xf]  ;;  %v1593_v63 = vor.u32 %v1717_v57, %v1592_v55  ;;  %v1520_v1 = vld [vmem:[%s2644_s2 + $0x230] sm:$0xf] }
  0x3a   :  { %939 = vmatpush.bf16.msrb.mxu3 %v1449_v49  ;;  %v1346_v49 = vld [vmem:[%s2644_s2 + $0xd8] sm:$0xf0]  ;;  %v1601_v51 = vor.u32 %v1719_v45, %v1600_v43  ;;  %v1277_v0 = vor.u32 %v1636_v58, %v1274_v59  ;;  %v1584_v3 = vld [vmem:[%s2644_s2 + $0x2b0] sm:$0xf]  ;;  %v1715_v5 = vld [vmem:[%s2644_s2 + $0x2b4] sm:$0xf0] }
  0x3b   :  { %v1634_v6 = vld [vmem:[%s2644_s2 + $0x34] sm:$0xf]  ;;  %v1266_v7 = vld [vmem:[%s2644_s2 + $0x38] sm:$0xf0]  ;;  %v1585_v11 = vor.u32 %v1715_v5, %v1584_v3  ;;  %v1576_v15 = vld [vmem:[%s2644_s2 + $0x2a0] sm:$0xf] }
  0x3c   :  { %898 = vmatpush.bf16.msrb.mxu0 %v1249_v56  ;;  %v1349_v56 = vor.u32 %v1654_v48, %v1346_v49  ;;  %v1650_v8 = vld [vmem:[%s2644_s2 + $0xb4] sm:$0xf]  ;;  %v1269_v12 = vor.u32 %v1634_v6, %v1266_v7  ;;  %v1713_v17 = vld [vmem:[%s2644_s2 + $0x2a4] sm:$0xf0]  ;;  %v1648_v20 = vld [vmem:[%s2644_s2 + $0xa4] sm:$0xf] }
  0x3d   :  { %912 = vmatpush.bf16.msrb.mxu1 %v1313_v61  ;;  %926 = vmatpush.bf16.msrb.mxu2 %v1377_v62  ;;  %v1338_v61 = vld [vmem:[%s2644_s2 + $0xc8] sm:$0xf0]  ;;  %v1529_v62 = vor.u32 %v1701_v54, %v1528_v53  ;;  %v1504_v25 = vld [vmem:[%s2644_s2 + $0x210] sm:$0xf]  ;;  %v1695_v26 = vld [vmem:[%s2644_s2 + $0x214] sm:$0xf0] }
  0x3e   :  { %940 = vmatpush.bf16.msrb.mxu3 %v1441_v2  ;;  %v1699_v2 = vld [vmem:[%s2644_s2 + $0x234] sm:$0xf0]  ;;  %v1341_v4 = vor.u32 %v1652_v60, %v1338_v61  ;;  %v1322_v21 = vld [vmem:[%s2644_s2 + $0xa8] sm:$0xf0]  ;;  %v1568_v27 = vld [vmem:[%s2644_s2 + $0x290] sm:$0xf] }
  0x3f   :  { %v1521_v10 = vor.u32 %v1699_v2, %v1520_v1  ;;  %v1711_v30 = vld [vmem:[%s2644_s2 + $0x294] sm:$0xf0]  ;;  %v1630_v31 = vld [vmem:[%s2644_s2 + $0x14] sm:$0xf]  ;;  %v1250_v32 = vld [vmem:[%s2644_s2 + $0x18] sm:$0xf0] }
  0x40   :  { %899 = vmatpush.bf16.msrb.mxu0 %v1241_v9  ;;  %v1330_v9 = vld [vmem:[%s2644_s2 + $0xb8] sm:$0xf0]  ;;  %v1646_v35 = vld [vmem:[%s2644_s2 + $0x94] sm:$0xf]  ;;  %v1560_v41 = vld [vmem:[%s2644_s2 + $0x280] sm:$0xf]  ;;  %v1569_v42 = vor.u32 %v1711_v30, %v1568_v27  ;;  %v1253_v43 = vor.u32 %v1630_v31, %v1250_v32 }
  0x41   :  { %913 = vmatpush.bf16.msrb.mxu1 %v1305_v13  ;;  %927 = vmatpush.bf16.msrb.mxu2 %v1369_v14  ;;  %v1512_v13 = vld [vmem:[%s2644_s2 + $0x220] sm:$0xf]  ;;  %v1697_v14 = vld [vmem:[%s2644_s2 + $0x224] sm:$0xf0]  ;;  %v1333_v16 = vor.u32 %v1650_v8, %v1330_v9  ;;  %v1314_v36 = vld [vmem:[%s2644_s2 + $0x98] sm:$0xf0] }
  0x42   :  { %941 = vmatpush.bf16.msrb.mxu3 %v1433_v18  ;;  %v1632_v18 = vld [vmem:[%s2644_s2 + $0x24] sm:$0xf]  ;;  %v1513_v22 = vor.u32 %v1697_v14, %v1512_v13  ;;  %v1242_v46 = vld [vmem:[%s2644_s2 + $0x8] sm:$0xf0]  ;;  %v1317_v47 = vor.u32 %v1646_v35, %v1314_v36  ;;  %v1490_v53 = vld [vmem:[%s2644_s2 + $0x1f8] sm:$0xf0] }
  0x43   :  { %900 = vmatmul.bf16.vlgmr.msrb.gmra.mxu0 %v2241_v29  ;;  %v1628_v45 = vld [vmem:[%s2644_s2 + $0x4] sm:$0xf]  ;;  %v1306_v49 = vld [vmem:[%s2644_s2 + $0x88] sm:$0xf0]  ;;  %v1706_v55 = vld [vmem:[%s2644_s2 + $0x274] sm:$0xf] }
  0x44   :  { %948 = vmatpush.bf16.msra.mxu0 %v1553_v19  ;;  %928 = vmatmul.bf16.vlgmr.msrb.gmra.mxu2 %v2252_v33  ;;  %v1258_v19 = vld [vmem:[%s2644_s2 + $0x28] sm:$0xf0]  ;;  %v1644_v48 = vld [vmem:[%s2644_s2 + $0x84] sm:$0xf]  ;;  %v1722_v57 = vld [vmem:[%s2644_s2 + $0x2f4] sm:$0xf]  ;;  %v1245_v59 = vor.u32 %v1628_v45, %v1242_v46 }
  0x45   :  { %962 = vmatpush.bf16.msra.mxu1 %v1617_v23  ;;  %976 = vmatpush.bf16.msra.mxu2 %v1301_v24  ;;  %v1577_v23 = vor.u32 %v1713_v17, %v1576_v15  ;;  %v1261_v24 = vor.u32 %v1632_v18, %v1258_v19  ;;  %v1618_v60 = vld [vmem:[%s2644_s2 + $0x2f8] sm:$0xf0]  ;;  %v1232_v61 = vld [vmem:[%s2646_s0 + $0x10] sm:$0xf]  ;;  %v1624_v1 = vld [vmem:[%s2646_s0 + $0x14] sm:$0xf] }
  0x46   :  { %990 = vmatpush.bf16.msra.mxu3 %v1365_v28  ;;  %914 = vmatmul.bf16.vlgmr.msrb.gmra.mxu1 %v2254_v34  ;;  %v1325_v28 = vor.u32 %v1648_v20, %v1322_v21  ;;  %v1234_v2 = vld [vmem:[%s2646_s0 + $0x28] sm:$0xf0]  ;;  %v1672_v5 = vld [vmem:[%s2644_s2 + $0x164] sm:$0xf]  ;;  %v1621_v8 = vor.u32 %v1722_v57, %v1618_v60  ;;  %v1670_v19 = vld [vmem:[%s2644_s2 + $0x154] sm:$0xf] }
  0x47   :  { %942 = vmatmul.bf16.vlgmr.msrb.gmra.mxu3 %v2262_v37  ;;  %v1418_v6 = vld [vmem:[%s2644_s2 + $0x168] sm:$0xf0]  ;;  %v1688_v7 = vld [vmem:[%s2644_s2 + $0x1e4] sm:$0xf]  ;;  %v2468_v13 = vor.u32 %v1624_v1, %v1234_v2  ;;  %v1410_v20 = vld [vmem:[%s2644_s2 + $0x158] sm:$0xf0] }
  0x48   :  { %949 = vmatpush.bf16.msra.mxu0 %v1545_v38  ;;  %v1505_v38 = vor.u32 %v1695_v26, %v1504_v25  ;;  %v1720_v14 = vld [vmem:[%s2644_s2 + $0x2e4] sm:$0xf]  ;;  %v1610_v15 = vld [vmem:[%s2644_s2 + $0x2e8] sm:$0xf0]  ;;  %v1686_v21 = vld [vmem:[%s2644_s2 + $0x1d4] sm:$0xf] }
  0x49   :  { %963 = vmatpush.bf16.msra.mxu1 %v1609_v39  ;;  %977 = vmatpush.bf16.msra.mxu2 %v1293_v40  ;;  %v1496_v39 = vld [vmem:[%s2644_s2 + $0x200] sm:$0xf]  ;;  %v1693_v40 = vld [vmem:[%s2644_s2 + $0x204] sm:$0xf0]  ;;  %v1538_v25 = vld [vmem:[%s2644_s2 + $0x258] sm:$0xf0] }
  0x4a   :  { %991 = vmatpush.bf16.msra.mxu3 %v1357_v44  ;;  %v1709_v44 = vld [vmem:[%s2644_s2 + $0x284] sm:$0xf0]  ;;  %v1497_v54 = vor.u32 %v1693_v40, %v1496_v39  ;;  %v1718_v26 = vld [vmem:[%s2644_s2 + $0x2d4] sm:$0xf]  ;;  %v1602_v27 = vld [vmem:[%s2644_s2 + $0x2d8] sm:$0xf0] }
  0x4b   :  { %v1561_v58 = vor.u32 %v1709_v44, %v1560_v41  ;;  %v1402_v32 = vld [vmem:[%s2644_s2 + $0x148] sm:$0xf0]  ;;  %v1684_v35 = vld [vmem:[%s2644_s2 + $0x1c4] sm:$0xf]  ;;  %v1666_v45 = vld [vmem:[%s2644_s2 + $0x134] sm:$0xf] }
  0x4c   :  { %950 = vmatpush.bf16.msra.mxu0 %v1537_v50  ;;  %v1674_v50 = vld [vmem:[%s2644_s2 + $0x174] sm:$0xf]  ;;  %v1466_v36 = vld [vmem:[%s2644_s2 + $0x1c8] sm:$0xf0]  ;;  %v1716_v40 = vld [vmem:[%s2644_s2 + $0x2c4] sm:$0xf] }
  0x4d   :  { %964 = vmatpush.bf16.msra.mxu1 %v1601_v51  ;;  %978 = vmatpush.bf16.msra.mxu2 %v1285_v52  ;;  %v1426_v51 = vld [vmem:[%s2644_s2 + $0x178] sm:$0xf0]  ;;  %v1690_v52 = vld [vmem:[%s2644_s2 + $0x1f4] sm:$0xf]  ;;  %v1530_v39 = vld [vmem:[%s2644_s2 + $0x248] sm:$0xf0] }
  0x4e   :  { %992 = vmatpush.bf16.msra.mxu3 %v1349_v56  ;;  %v1554_v56 = vld [vmem:[%s2644_s2 + $0x278] sm:$0xf0]  ;;  %v1493_v3 = vor.u32 %v1690_v52, %v1490_v53  ;;  %v1594_v41 = vld [vmem:[%s2644_s2 + $0x2c8] sm:$0xf0]  ;;  %v1714_v52 = vld [vmem:[%s2644_s2 + $0x2b4] sm:$0xf] }
  0x4f   :  { %v1394_v46 = vld [vmem:[%s2644_s2 + $0x138] sm:$0xf0]  ;;  %v1664_v57 = vld [vmem:[%s2644_s2 + $0x124] sm:$0xf]  ;;  %v1578_v1 = vld [vmem:[%s2644_s2 + $0x2a8] sm:$0xf0] }
  0x50   :  { %951 = vmatpush.bf16.msra.mxu0 %v1529_v62  ;;  %v1627_v62 = vld [vmem:[%s2646_s0 + $0x24] sm:$0xf0]  ;;  %v1586_v53 = vld [vmem:[%s2644_s2 + $0x2b8] sm:$0xf0] }
  0x51   :  { %965 = vmatpush.bf16.msra.mxu1 %v1593_v63  ;;  %979 = vmatpush.bf16.msra.mxu2 %v1277_v0  ;;  %v1309_v63 = vor.u32 %v1644_v48, %v1306_v49  ;;  %v1429_v0 = vor.u32 %v1674_v50, %v1426_v51  ;;  %v2457_v9 = vor.u32 %v1627_v62, %v1232_v61  ;;  %v1458_v49 = vld [vmem:[%s2644_s2 + $0x1b8] sm:$0xf0]  ;;  %v1698_v50 = vld [vmem:[%s2644_s2 + $0x234] sm:$0xf]  ;;  %v1450_v61 = vld [vmem:[%s2644_s2 + $0x1a8] sm:$0xf0] }
  0x52   :  { %993 = vmatpush.bf16.msra.mxu3 %v1341_v4  ;;  %v1557_v4 = vor.u32 %v1706_v55, %v1554_v56  ;;  %v1597_v48 = vor.u32 %v1716_v40, %v1594_v41  ;;  %v1522_v51 = vld [vmem:[%s2644_s2 + $0x238] sm:$0xf0]  ;;  %v1589_v60 = vor.u32 %v1714_v52, %v1586_v53  ;;  %v1696_v62 = vld [vmem:[%s2644_s2 + $0x224] sm:$0xf] }
  0x53   :  { %v1525_v56 = vor.u32 %v1698_v50, %v1522_v51  ;;  %v1060_v50 = vld [vmem:[%s2647_s4] sm:$0x3] }
  0x54   :  { %952 = vmatpush.bf16.msra.mxu0 %v1521_v10  ;;  %v1482_v10 = vld [vmem:[%s2644_s2 + $0x1e8] sm:$0xf0] }
  0x55   :  { %966 = vmatpush.bf16.msra.mxu1 %v1585_v11  ;;  %980 = vmatpush.bf16.msra.mxu2 %v1269_v12  ;;  %v1704_v11 = vld [vmem:[%s2644_s2 + $0x264] sm:$0xf]  ;;  %v1546_v12 = vld [vmem:[%s2644_s2 + $0x268] sm:$0xf0]  ;;  %v1485_v17 = vor.u32 %v1688_v7, %v1482_v10  ;;  %v1678_v7 = vld [vmem:[%s2644_s2 + $0x194] sm:$0xf] }
  0x56   :  { %994 = vmatpush.bf16.msra.mxu3 %v1333_v16  ;;  %v1421_v16 = vor.u32 %v1672_v5, %v1418_v6  ;;  %v1549_v18 = vor.u32 %v1704_v11, %v1546_v12  ;;  %v1662_v5 = vld [vmem:[%s2644_s2 + $0x114] sm:$0xf]  ;;  %v1378_v6 = vld [vmem:[%s2644_s2 + $0x118] sm:$0xf0] }
  0x57   :  { %v1442_v10 = vld [vmem:[%s2644_s2 + $0x198] sm:$0xf0]  ;;  %v1694_v11 = vld [vmem:[%s2644_s2 + $0x214] sm:$0xf] }
  0x58   :  { %953 = vmatpush.bf16.msra.mxu0 %v1513_v22  ;;  %v1613_v22 = vor.u32 %v1720_v14, %v1610_v15  ;;  %v1506_v12 = vld [vmem:[%s2644_s2 + $0x218] sm:$0xf0]  ;;  %v1710_v14 = vld [vmem:[%s2644_s2 + $0x294] sm:$0xf] }
  0x59   :  { %967 = vmatpush.bf16.msra.mxu1 %v1577_v23  ;;  %981 = vmatpush.bf16.msra.mxu2 %v1261_v24  ;;  %v1474_v23 = vld [vmem:[%s2644_s2 + $0x1d8] sm:$0xf0]  ;;  %v1702_v24 = vld [vmem:[%s2644_s2 + $0x254] sm:$0xf] }
  0x5a   :  { %995 = vmatpush.bf16.msra.mxu3 %v1325_v28  ;;  %v1413_v28 = vor.u32 %v1670_v19, %v1410_v20  ;;  %v1477_v30 = vor.u32 %v1686_v21, %v1474_v23  ;;  %v1541_v31 = vor.u32 %v1702_v24, %v1538_v25  ;;  %v1570_v15 = vld [vmem:[%s2644_s2 + $0x298] sm:$0xf0]  ;;  %v1660_v19 = vld [vmem:[%s2644_s2 + $0x104] sm:$0xf]  ;;  %v1370_v20 = vld [vmem:[%s2644_s2 + $0x108] sm:$0xf0] }
  0x5b   :  { %v1676_v21 = vld [vmem:[%s2644_s2 + $0x184] sm:$0xf]  ;;  %v1434_v23 = vld [vmem:[%s2644_s2 + $0x188] sm:$0xf0] }
  0x5c   :  { %954 = vmatpush.bf16.msra.mxu0 %v1505_v38  ;;  %v1700_v38 = vld [vmem:[%s2644_s2 + $0x244] sm:$0xf]  ;;  %v1498_v25 = vld [vmem:[%s2644_s2 + $0x208] sm:$0xf0] }
  0x5d   :  { %968 = vmatpush.bf16.msra.mxu1 %v1569_v42  ;;  %982 = vmatpush.bf16.msra.mxu2 %v1253_v43  ;;  %v1469_v43 = vor.u32 %v1684_v35, %v1466_v36  ;;  %v1533_v44 = vor.u32 %v1700_v38, %v1530_v39  ;;  %v1692_v24 = vld [vmem:[%s2644_s2 + $0x204] sm:$0xf] }
  0x5e   :  { %996 = vmatpush.bf16.msra.mxu3 %v1317_v47  ;;  %v1682_v47 = vld [vmem:[%s2644_s2 + $0x1b4] sm:$0xf] }
  0x5f   :  { %v1461_v55 = vor.u32 %v1682_v47, %v1458_v49 }
  0x60   :  { %955 = vmatpush.bf16.msra.mxu0 %v1497_v54  ;;  %v1397_v54 = vor.u32 %v1666_v45, %v1394_v46 }
  0x61   :  { %969 = vmatpush.bf16.msra.mxu1 %v1561_v58  ;;  %983 = vmatpush.bf16.msra.mxu2 %v1245_v59  ;;  %v1386_v58 = vld [vmem:[%s2644_s2 + $0x128] sm:$0xf0]  ;;  %v1680_v59 = vld [vmem:[%s2644_s2 + $0x1a4] sm:$0xf] }
  0x62   :  { %997 = vmatpush.bf16.msra.mxu3 %v1309_v63  ;;  %v1514_v63 = vld [vmem:[%s2644_s2 + $0x228] sm:$0xf0]  ;;  %v1389_v2 = vor.u32 %v1664_v57, %v1386_v58  ;;  %v1062_v57 = vperm.slane %v1060_v50, 0 }
  0x63   :  { %956 = vmatmul.bf16.vlgmr.msra.gmra.mxu0 %v2457_v9 }
  0x64   :  { %1004 = vmatpush.bf16.msrb.mxu0 %v1429_v0  ;;  %984 = vmatmul.bf16.vlgmr.msra.gmra.mxu2 %v2241_v29  ;;  %v1668_v29 = vld [vmem:[%s2644_s2 + $0x144] sm:$0xf] }
  0x65   :  { %1018 = vmatpush.bf16.msrb.mxu1 %v1493_v3  ;;  %1032 = vmatpush.bf16.msrb.mxu2 %v1557_v4  ;;  %v1405_v42 = vor.u32 %v1668_v29, %v1402_v32  ;;  %v1712_v0 = vld [vmem:[%s2644_s2 + $0x2a4] sm:$0xf]  ;;  %v1453_v3 = vor.u32 %v1680_v59, %v1450_v61  ;;  %v1517_v4 = vor.u32 %v1696_v62, %v1514_v63 }
  0x66   :  { %1046 = vmatpush.bf16.msrb.mxu3 %v1621_v8  ;;  %970 = vmatmul.bf16.vlgmr.msra.gmra.mxu1 %v2468_v13  ;;  %v1581_v8 = vor.u32 %v1712_v0, %v1578_v1 }
  0x67   :  { %998 = vmatmul.bf16.vlgmr.msra.gmra.mxu3 %v2254_v34  ;;  %v1605_v34 = vor.u32 %v1718_v26, %v1602_v27  ;;  %v1708_v26 = vld [vmem:[%s2644_s2 + $0x284] sm:$0xf]  ;;  %v1562_v27 = vld [vmem:[%s2644_s2 + $0x288] sm:$0xf0] }
  0x68   :  { %1005 = vmatpush.bf16.msrb.mxu0 %v1421_v16  ;;  %v1381_v16 = vor.u32 %v1662_v5, %v1378_v6  ;;  %v1565_v29 = vor.u32 %v1708_v26, %v1562_v27 }
  0x69   :  { %1019 = vmatpush.bf16.msrb.mxu1 %v1485_v17  ;;  %1033 = vmatpush.bf16.msrb.mxu2 %v1549_v18  ;;  %v1445_v17 = vor.u32 %v1678_v7, %v1442_v10  ;;  %v1509_v18 = vor.u32 %v1694_v11, %v1506_v12 }
  0x6a   :  { %1047 = vmatpush.bf16.msrb.mxu3 %v1613_v22  ;;  %v1573_v22 = vor.u32 %v1710_v14, %v1570_v15 }
  0x6c   :  { %1006 = vmatpush.bf16.msrb.mxu0 %v1413_v28  ;;  %v1373_v28 = vor.u32 %v1660_v19, %v1370_v20 }
  0x6d   :  { %1020 = vmatpush.bf16.msrb.mxu1 %v1477_v30  ;;  %1034 = vmatpush.bf16.msrb.mxu2 %v1541_v31  ;;  %v1437_v30 = vor.u32 %v1676_v21, %v1434_v23  ;;  %v1501_v31 = vor.u32 %v1692_v24, %v1498_v25  ;;  %v1063_v23 = vperm.slane %v1060_v50, 1 }
  0x6e   :  { %1048 = vmatpush.bf16.msrb.mxu3 %v1605_v34 }
  0x70   :  { %1007 = vmatpush.bf16.msrb.mxu0 %v1405_v42 }
  0x71   :  { %1021 = vmatpush.bf16.msrb.mxu1 %v1469_v43  ;;  %1035 = vmatpush.bf16.msrb.mxu2 %v1533_v44 }
  0x72   :  { %1049 = vmatpush.bf16.msrb.mxu3 %v1597_v48 }
  0x74   :  { %1008 = vmatpush.bf16.msrb.mxu0 %v1397_v54 }
  0x75   :  { %1022 = vmatpush.bf16.msrb.mxu1 %v1461_v55  ;;  %1036 = vmatpush.bf16.msrb.mxu2 %v1525_v56 }
  0x76   :  { %1050 = vmatpush.bf16.msrb.mxu3 %v1589_v60 }
  0x78   :  { %1009 = vmatpush.bf16.msrb.mxu0 %v1389_v2 }
  0x79   :  { %1023 = vmatpush.bf16.msrb.mxu1 %v1453_v3  ;;  %1037 = vmatpush.bf16.msrb.mxu2 %v1517_v4 }
  0x7a   :  { %1051 = vmatpush.bf16.msrb.mxu3 %v1581_v8 }
  0x7c   :  { %1010 = vmatpush.bf16.msrb.mxu0 %v1381_v16 }
  0x7d   :  { %1024 = vmatpush.bf16.msrb.mxu1 %v1445_v17  ;;  %1038 = vmatpush.bf16.msrb.mxu2 %v1509_v18 }
  0x7e   :  { %1052 = vmatpush.bf16.msrb.mxu3 %v1573_v22 }
  0x80   :  { %1011 = vmatpush.bf16.msrb.mxu0 %v1373_v28 }
  0x81   :  { %1025 = vmatpush.bf16.msrb.mxu1 %v1437_v30  ;;  %1039 = vmatpush.bf16.msrb.mxu2 %v1501_v31 }
  0x82   :  { %1053 = vmatpush.bf16.msrb.mxu3 %v1565_v29 }
  0x83   :  { %1012 = vmatmul.bf16.vlgmr.msrb.gmra.mxu0 %v2252_v33 }
  0x84   :  { %1026 = vmatmul.bf16.vlgmr.msrb.gmra.mxu1 %v2262_v37  ;;  %1040 = vmatmul.bf16.vlgmr.msrb.gmra.mxu2 %v2457_v9 }
  0x85   :  { %1054 = vmatmul.bf16.vlgmr.msrb.gmra.mxu3 %v2468_v13 }
  0xa0   :  { %v335_v32 = vpop.f32.mrf.mxu0 }
  0xa3   :  { %v349_v35 = vpop.f32.mrf.mxu1 }
  0xa4   :  { %v350_v42 = vadd.f32 %v349_v35, %v335_v32 }
  0xa7   :  { %v363_v34 = vpop.f32.mrf.mxu2 }
  0xa8   :  { %v337_v36 = vpop.f32.mrf.mxu0 }
  0xaa   :  { %v377_v39 = vpop.f32.mrf.mxu3 }
  0xab   :  { %v351_v38 = vpop.f32.mrf.mxu1  ;;  %v378_v6 = vadd.f32 %v377_v39, %v363_v34 }
  0xac   :  { %v352_v9 = vadd.f32 %v351_v38, %v337_v36 }
  0xaf   :  { %v365_v40 = vpop.f32.mrf.mxu2 }
  0xb2   :  { %v379_v44 = vpop.f32.mrf.mxu3 }
  0xb3   :  { %v380_v14 = vadd.f32 %v379_v44, %v365_v40 }
  0xc0   :  { %v901_v41 = vpop.f32.mrf.mxu0 }
  0xc1   :  { %v902_v45 = vadd.f32 %v901_v41, %v350_v42 }
  0xc3   :  { %v915_v43 = vpop.f32.mrf.mxu1 }
  0xc4   :  { %v916_v33 = vadd.f32 %v915_v43, %v902_v45 }
  0xc7   :  { %v929_v46 = vpop.f32.mrf.mxu2 }
  0xc8   :  { %v903_v47 = vpop.f32.mrf.mxu0  ;;  %v930_v49 = vadd.f32 %v929_v46, %v916_v33 }
  0xc9   :  { %v904_v13 = vadd.f32 %v903_v47, %v352_v9 }
  0xca   :  { %v943_v48 = vpop.f32.mrf.mxu3 }
  0xcb   :  { %v917_v37 = vpop.f32.mrf.mxu1  ;;  %v944_v51 = vadd.f32 %v943_v48, %v930_v49 }
  0xcc   :  { %v918_v54 = vadd.f32 %v917_v37, %v904_v13 }
  0xcf   :  { %v931_v52 = vpop.f32.mrf.mxu2 }
  0xd0   :  { %v932_v58 = vadd.f32 %v931_v52, %v918_v54 }
  0xd2   :  { %v945_v60 = vpop.f32.mrf.mxu3 }
  0xd3   :  { %v946_v62 = vadd.f32 %v945_v60, %v932_v58 }
  0xe0   :  { %v957_v53 = vpop.f32.mrf.mxu0 }
  0xe1   :  { %v958_v55 = vadd.f32 %v957_v53, %v944_v51 }
  0xe3   :  { %v971_v56 = vpop.f32.mrf.mxu1 }
  0xe4   :  { %v972_v59 = vadd.f32 %v971_v56, %v958_v55 }
  0xe6   :  { %v1066_v61 = vadd.f32 %v1062_v57, %v972_v59 }
  0xe7   :  { %v985_v4 = vpop.f32.mrf.mxu2 }
  0xe8   :  { %1070 = vst [vmem:[%s2648_s5] sm:$0xff] %v1066_v61  ;;  %v959_v63 = vpop.f32.mrf.mxu0  ;;  %v986_v7 = vadd.f32 %v985_v4, %v378_v6 }
  0xe9   :  { %v960_v0 = vadd.f32 %v959_v63, %v946_v62 }
  0xea   :  { %v999_v5 = vpop.f32.mrf.mxu3 }
  0xeb   :  { %v973_v1 = vpop.f32.mrf.mxu1  ;;  %v1000_v10 = vadd.f32 %v999_v5, %v986_v7 }
  0xec   :  { %v974_v2 = vadd.f32 %v973_v1, %v960_v0 }
  0xee   :  { %v1068_v3 = vadd.f32 %v1062_v57, %v974_v2 }
  0xef   :  { %v987_v8 = vpop.f32.mrf.mxu2 }
  0xf0   :  { %1072 = vst [vmem:[%s2648_s5 + $0x10] sm:$0xff] %v1068_v3  ;;  %v988_v17 = vadd.f32 %v987_v8, %v380_v14 }
  0xf2   :  { %v1001_v11 = vpop.f32.mrf.mxu3 }
  0xf3   :  { %v1002_v20 = vadd.f32 %v1001_v11, %v988_v17 }
 0x100   :  { %v1013_v12 = vpop.f32.mrf.mxu0 }
 0x101   :  { %v1014_v15 = vadd.f32 %v1013_v12, %v1000_v10  ;;  %v1027_v16 = vpop.f32.mrf.mxu1 }
 0x103   :  { %v1028_v18 = vadd.f32 %v1027_v16, %v1014_v15 }
 0x107   :  { %v1041_v19 = vpop.f32.mrf.mxu2 }
 0x108   :  { %v1042_v21 = vadd.f32 %v1041_v19, %v1028_v18  ;;  %v1055_v22 = vpop.f32.mrf.mxu3  ;;  %v1015_v24 = vpop.f32.mrf.mxu0 }
 0x109   :  { %v1016_v26 = vadd.f32 %v1015_v24, %v1002_v20  ;;  %v1029_v28 = vpop.f32.mrf.mxu1 }
 0x10a   :  { %v1056_v25 = vadd.f32 %v1055_v22, %v1042_v21 }
 0x10b   :  { %v1030_v30 = vadd.f32 %v1029_v28, %v1016_v26 }
 0x10c   :  { %v1067_v27 = vadd.f32 %v1063_v23, %v1056_v25 }
 0x10e   :  { %1071 = vst [vmem:[%s2648_s5 + $0x8] sm:$0xff] %v1067_v27 }
 0x10f   :  { %v1043_v31 = vpop.f32.mrf.mxu2 }
 0x110   :  { %v1044_v29 = vadd.f32 %v1043_v31, %v1030_v30  ;;  %v1057_v32 = vpop.f32.mrf.mxu3 }
 0x112   :  { %v1058_v35 = vadd.f32 %v1057_v32, %v1044_v29 }
 0x114   :  { %v1069_v34 = vadd.f32 %v1063_v23, %v1058_v35 }
 0x116   :  { %1073 = vst [vmem:[%s2648_s5 + $0x18] sm:$0xff] %v1069_v34 }

// kernel: generator_forward.3
= control target key start
LH: loop header
LB: loop body
LE: loop exit
PB: predicated region body
PF: predicated region fallthrough
CT: control target
= control target key end

     0   :  { %s8944_s0 = inlined_call_operand.vmem [shape: bf16[256,64], index: 0, kind: input, shape index: {}]   ;;  %s8945_s1 = inlined_call_operand.vmem [shape: bf16[4,512], index: 1, kind: input, shape index: {}]   ;;  %s8946_s2 = inlined_call_operand.vmem [shape: bf16[8,512], index: 2, kind: input, shape index: {}]   ;;  %s8947_s3 = inlined_call_operand.vmem [shape: bf16[16,512], index: 3, kind: input, shape index: {}]   ;;  %s8948_s4 = inlined_call_operand.vmem [shape: bf16[32,512], index: 4, kind: input, shape index: {}]   ;;  %s8949_s5 = inlined_call_operand.vmem [shape: bf16[64,512], index: 5, kind: input, shape index: {}]   ;;  %s8950_s6 = inlined_call_operand.vmem [shape: bf16[6,2,4], index: 6, kind: input, shape index: {}]   ;;  %s8951_s7 = inlined_call_operand.vmem [shape: bf16[6,4,8], index: 7, kind: input, shape index: {}]   ;;  %s8952_s8 = inlined_call_operand.vmem [shape: bf16[6,8,16], index: 8, kind: input, shape index: {}]   ;;  %s8953_s9 = inlined_call_operand.vmem [shape: bf16[6,16,32], index: 9, kind: input, shape index: {}]   ;;  %s8954_s10 = inlined_call_operand.vmem [shape: bf16[6,32,64], index: 10, kind: input, shape index: {}]   ;;  %s8955_s11 = inlined_call_operand.hbm [shape: bf16[6,256,512], index: 11, kind: output, shape index: {}]  }
   0x1   :  { %8959 = sst [smem:[#allocation8_spill]] %s8945_s1 }
   0x2   :  { %8960 = sst [smem:[#allocation9_spill]] %s8950_s6 }
   0x3   :  { %8961 = sst [smem:[#allocation10_spill]] %s8951_s7 }
   0x4   :  { %8962 = sst [smem:[#allocation11_spill]] %s8952_s8 }
   0x5   :  { %16 = vsyncpa [#allocation3], 0 }
   0x6   :  { %18 = vsyncpa [#allocation3 + $0x1], 0  ;;  %s7255_s17 = smov 0   ;;  %s7257_s18 = smov 0  }
   0x7   :  { %s7259_s19 = smov 0   ;;  %s7261_s20 = smov 0  }
   0x8 LB: > { %8963 = sst [smem:[#allocation5_spill]] %s7186_s19  ;;  %s7276_s21 = sadd.s32 4294967295, %s7190_s20   ;;  %s7190_s20 = sphi %s7261_s20, %s8974_s20   ;;  %s7186_s19 = sphi %s7259_s19, %s8976_s19   ;;  %s7182_s18 = sphi %s7257_s18, %s8978_s18   ;;  %s7178_s17 = sphi %s7255_s17, %s8977_s17  }
   0x9   : > { %s5275_s22 = sadd.s32 4294967294, %s7190_s20   ;;  %s7280_s23 = sadd.s32 1, %s7190_s20  }
   0xa   : > { %8964 = sst [smem:[#allocation6_spill]] %s7280_s23  ;;  %s287_s24 = sadd.s32 1, %s7186_s19 }
   0xb   : > { %s284_s25 = ssub.s32 %s7190_s20, %s7280_s23  ;;  %p297_p0 = scmp.ne.s32.totalorder %s7186_s19, %s7182_s18 }
   0xc   : > { %p285_p1 = scmp.eq.s32.totalorder %s284_s25, 0  ;;  %p298_p2 = scmp.eq.s32.totalorder %s7276_s21, 1 }
   0xd   : > { %p303_p3 = scmp.ne.s32.totalorder %s7182_s18, %s7178_s17  ;;  %p304_p4 = scmp.eq.s32.totalorder %s5275_s22, 1 }
   0xe   : > { %s7291_s26 = scalar_select %p285_p1, %s7186_s19, %s287_s24  }
   0xf   : > { %p7293_p5 = por %p298_p2, %p297_p0  ;;  %p7297_p6 = por %p304_p4, %p303_p3 }
  0x10   : > { %8965 = sst [smem:[#allocation7_spill]] %s7291_s26  ;;  %p5278_p7 = scmp.ge.s32.totalorder %s7190_s20, 1 }
  0x11   : > { %p386_p8 = scmp.lt.s32.totalorder %s7190_s20, 3 }
  0x13   : > { %p387_p9 = pnand %p5278_p7, %p386_p8 }
  0x14   : > { %s8968_s1 = sld [smem:[#allocation8_spill]] (!%p387_p9)  ;;  %s447_s12 = smul.u32 (!%p387_p9), 3, %s7276_s21 }
  0x15   : > { %390 = sbr.rel (%p387_p9) target bundleno = 1672 (0x688), region = 64  ;;  %s8969_s6 = sld [smem:[#allocation9_spill]] (!%p387_p9) }
  0x16   : > { %p448_p10 = scmp.lt.s32.totalorder (!%p387_p9), %s447_s12, 5  ;;  %s8970_s7 = sld [smem:[#allocation10_spill]] (!%p387_p9) }
  0x17   : > { %s8971_s8 = sld [smem:[#allocation11_spill]] (!%p387_p9)  ;;  %s444_s19 = sand.u32 (!%p387_p9), 1, %s7182_s18  }
  0x18   : > { %s6285_s26 = smul.u32 (!%p387_p9), 1536, %s444_s19 }
  0x19   : > { %s6284_s13 = smul.u32 (!%p387_p9), 1536, %s7276_s21  ;;  %s5152_s21 = scalar_lea.sflag (!%p387_p9), [#allocation3], %s444_s19 }
  0x1a   : > { %v7306_v0 = vld [vmem:[%s8968_s1] sm:$0xff]  ;;  %v587_v4 = vld [vmem:[%s8946_s2 + $0x8] sm:$0xff]  ;;  %s8980_s12 = smov (!%p448_p10, %s447_s12), 5  ;;  %vm602_vm0 = vcmask 1043456   ;;  %vm524_vm1 = vcmask 1041408   ;;  %vm520_vm2 = vcmask 31744  }
  0x1b   : > { %v586_v1 = vld [vmem:[%s8946_s2] sm:$0xff]  ;;  %515 = vst [vmem:[#allocation1] ss:$4 sm:$0xff] %v7306_v0  ;;  %v593_v6 = vunpack.c.h.b16 %v587_v4  ;;  %v592_v7 = vunpack.c.l.b16 %v587_v4  ;;  %s7322_s25 = scalar_lea.vmem %s8969_s6, %s8980_s12  ;;  %v6191_v12 = vld [vmem:[%s8947_s3 + $0xc] sm:$0xf0]  ;;  %s5279_s1 = sshll.u32 %s8980_s12, 1 }
  0x1c   : > { %v590_v2 = vunpack.c.l.b16 %v586_v1  ;;  %v591_v3 = vunpack.c.h.b16 %v586_v1  ;;  %v5295_v11 = vld [vmem:[%s8947_s3] sm:$0xf]  ;;  %v6189_v13 = vld [vmem:[%s8947_s3 + $0x4] sm:$0xf]  ;;  %v5297_v14 = vld [vmem:[%s8947_s3 + $0x10] sm:$0xf0]  ;;  %s7366_s24 = scalar_lea.vmem %s8970_s7, %s5279_s1 }
  0x1d   : > { %v597_v10 = vpack.c.b16 %v593_v6, %v593_v6  ;;  %v596_v17 = vpack.c.b16 %v592_v7, %v592_v7  ;;  %v5303_v18 = vld [vmem:[%s8947_s3 + $0x8] sm:$0xf]  ;;  %v6192_v19 = vld [vmem:[%s8947_s3 + $0x14] sm:$0xf0]  ;;  %v6190_v20 = vld [vmem:[%s8947_s3 + $0xc] sm:$0xf]  ;;  %v5296_v32 = vor.u32 %v6191_v12, %v5295_v11  ;;  %v5300_v33 = vor.u32 %v6189_v13, %v5297_v14 }
  0x1e   : > { %v594_v5 = vpack.c.b16 %v590_v2, %v590_v2  ;;  %v595_v8 = vpack.c.b16 %v591_v3, %v591_v3  ;;  %v5305_v21 = vld [vmem:[%s8947_s3 + $0x18] sm:$0xf0]  ;;  %v512_v28 = vld [vmem:[%s7322_s25] sm:$0x1]  ;;  %v5304_v34 = vor.u32 %v6192_v19, %v5303_v18  ;;  %v6200_v37 = vld [vmem:[%s8948_s4 + $0x2c] sm:$0xf0] }
  0x1f   : > { %v613_v30 = vsel %vm602_vm0, %v597_v10, 0  ;;  %v610_v31 = vsel %vm602_vm0, %v596_v17, 0  ;;  %v5308_v35 = vor.u32 %v6190_v20, %v5305_v21  ;;  %v5335_v36 = vld [vmem:[%s8948_s4 + $0x20] sm:$0xf]  ;;  %v6198_v38 = vld [vmem:[%s8948_s4 + $0x24] sm:$0xf] }
  0x20   : > { %v604_v9 = vsel %vm602_vm0, %v594_v5, 0  ;;  %v607_v25 = vsel %vm602_vm0, %v595_v8, 0  ;;  %v5337_v39 = vld [vmem:[%s8948_s4 + $0x30] sm:$0xf0]  ;;  %v5343_v40 = vld [vmem:[%s8948_s4 + $0x28] sm:$0xf]  ;;  %v5336_v45 = vor.u32 %v6200_v37, %v5335_v36 }
  0x21   : > { %v6201_v41 = vld [vmem:[%s8948_s4 + $0x34] sm:$0xf0]  ;;  %v6199_v42 = vld [vmem:[%s8948_s4 + $0x2c] sm:$0xf]  ;;  %v5345_v43 = vld [vmem:[%s8948_s4 + $0x38] sm:$0xf0]  ;;  %v5340_v46 = vor.u32 %v6198_v38, %v5337_v39 }
  0x22   : > { %v516_v15 = vld.sshfl [vmem:[#allocation1] sm:$0xff pattern:$0x73625140]  ;;  %v517_v16 = vld.sshfl [vmem:[#allocation1 + $0x8] sm:$0xff pattern:$0x73625140]  ;;  %v5344_v49 = vor.u32 %v6201_v41, %v5343_v40  ;;  %v5348_v50 = vor.u32 %v6199_v42, %v5345_v43 }
  0x23   : > { %v525_v22 = vsel %vm524_vm1, %v516_v15, 0  ;;  %v527_v23 = vsel %vm524_vm1, %v517_v16, 0  ;;  %v518_v24 = vld.sshfl [vmem:[#allocation1 + $0x10] sm:$0xff pattern:$0x73625140]  ;;  %vm598_vm3 = vcmask 64512  }
  0x24   : > { %540 = vmatpush.bf16.msra.mxu0 %v525_v22  ;;  %553 = vmatpush.bf16.msra.mxu1 %v527_v23  ;;  %v529_v26 = vsel %vm524_vm1, %v518_v24, 0  ;;  %v519_v27 = vld.sshfl [vmem:[#allocation1 + $0x18] sm:$0xff pattern:$0x73625140]  ;;  %v585_v44 = vld [vmem:[%s7366_s24] sm:$0x3] }
  0x25   : > { %566 = vmatpush.bf16.msra.mxu2 %v529_v26  ;;  %v531_v29 = vsel %vm524_vm1, %v519_v27, 0  ;;  %2149 = vst [vmem:[#allocation1] ss:$4 sm:$0xff] %v7306_v0  ;;  %v5319_v47 = vld [vmem:[%s8948_s4] sm:$0xf]  ;;  %s5280_s7 = sshll.u32 %s8980_s12, 2 }
  0x26   : > { %579 = vmatpush.bf16.msra.mxu3 %v531_v29  ;;  %v6196_v48 = vld [vmem:[%s8948_s4 + $0xc] sm:$0xf0]  ;;  %v6194_v51 = vld [vmem:[%s8948_s4 + $0x4] sm:$0xf]  ;;  %v5321_v52 = vld [vmem:[%s8948_s4 + $0x10] sm:$0xf0]  ;;  %s7425_s22 = scalar_lea.vmem %s8971_s8, %s5280_s7 }
  0x27   : > { %5285 = vmatmul.msk.bf16.vlgmr.msra.gmra.mxu0 %vm520_vm2, %v512_v28  ;;  %5286 = vmatmul.msk.bf16.vlgmr.msra.gmra.mxu1 %vm520_vm2, %v512_v28  ;;  %v5327_v53 = vld [vmem:[%s8948_s4 + $0x8] sm:$0xf]  ;;  %v6197_v54 = vld [vmem:[%s8948_s4 + $0x14] sm:$0xf0]  ;;  %v6195_v55 = vld [vmem:[%s8948_s4 + $0xc] sm:$0xf]  ;;  %v5320_v57 = vor.u32 %v6196_v48, %v5319_v47  ;;  %v5324_v58 = vor.u32 %v6194_v51, %v5321_v52 }
  0x28   : > { %622 = vmatpush.bf16.msrb.mxu0 %v604_v9  ;;  %635 = vmatpush.bf16.msrb.mxu1 %v607_v25  ;;  %v5329_v56 = vld [vmem:[%s8948_s4 + $0x18] sm:$0xf0]  ;;  %v5328_v59 = vor.u32 %v6197_v54, %v5327_v53  ;;  %v5411_v61 = vld [vmem:[%s8949_s5 + $0x60] sm:$0xf]  ;;  %v6218_v62 = vld [vmem:[%s8949_s5 + $0x6c] sm:$0xf0] }
  0x29   : > { %5287 = vmatmul.msk.bf16.vlgmr.msra.gmra.mxu2 %vm520_vm2, %v512_v28  ;;  %5288 = vmatmul.msk.bf16.vlgmr.msra.gmra.mxu3 %vm520_vm2, %v512_v28  ;;  %v5332_v60 = vor.u32 %v6195_v55, %v5329_v56  ;;  %v6216_v63 = vld [vmem:[%s8949_s5 + $0x64] sm:$0xf]  ;;  %v5413_v1 = vld [vmem:[%s8949_s5 + $0x70] sm:$0xf0]  ;;  %v5419_v2 = vld [vmem:[%s8949_s5 + $0x68] sm:$0xf]  ;;  %v5412_v7 = vor.u32 %v6218_v62, %v5411_v61 }
  0x2a   : > { %661 = vmatpush.bf16.msrb.mxu3 %v613_v30  ;;  %648 = vmatpush.bf16.msrb.mxu2 %v610_v31  ;;  %v6219_v3 = vld [vmem:[%s8949_s5 + $0x74] sm:$0xf0]  ;;  %v6217_v4 = vld [vmem:[%s8949_s5 + $0x6c] sm:$0xf]  ;;  %v5421_v5 = vld [vmem:[%s8949_s5 + $0x78] sm:$0xf0]  ;;  %v5416_v8 = vor.u32 %v6216_v63, %v5413_v1 }
  0x2b   : > { %v667_v6 = vld [vmem:[%s7425_s22] sm:$0xf]  ;;  %vm692_vm4 = vcmask 130048   ;;  %v6214_v10 = vld [vmem:[%s8949_s5 + $0x4c] sm:$0xf0]  ;;  %v5420_v11 = vor.u32 %v6219_v3, %v5419_v2  ;;  %v5424_v12 = vor.u32 %v6217_v4, %v5421_v5  ;;  %s6171_s29 = sshll.u32 %s8980_s12, 3 }
  0x2c   : > { %703 = vmatpush.bf16.msra.mxu0 %v5296_v32  ;;  %716 = vmatpush.bf16.msra.mxu1 %v5300_v33  ;;  %v5395_v9 = vld [vmem:[%s8949_s5 + $0x40] sm:$0xf]  ;;  %v6212_v13 = vld [vmem:[%s8949_s5 + $0x44] sm:$0xf]  ;;  %v5397_v14 = vld [vmem:[%s8949_s5 + $0x50] sm:$0xf0]  ;;  %s7532_s16 = scalar_lea.vmem %s8953_s9, %s6171_s29 }
  0x2d   : > { %v5403_v15 = vld [vmem:[%s8949_s5 + $0x48] sm:$0xf]  ;;  %v6215_v16 = vld [vmem:[%s8949_s5 + $0x54] sm:$0xf0]  ;;  %v6213_v17 = vld [vmem:[%s8949_s5 + $0x4c] sm:$0xf]  ;;  %v5396_v19 = vor.u32 %v6214_v10, %v5395_v9  ;;  %v5400_v20 = vor.u32 %v6212_v13, %v5397_v14 }
  0x2e   : > { %729 = vmatpush.bf16.msra.mxu2 %v5304_v34  ;;  %742 = vmatpush.bf16.msra.mxu3 %v5308_v35  ;;  %v5405_v18 = vld [vmem:[%s8949_s5 + $0x58] sm:$0xf0]  ;;  %v5379_v21 = vld [vmem:[%s8949_s5 + $0x20] sm:$0xf]  ;;  %v6210_v22 = vld [vmem:[%s8949_s5 + $0x2c] sm:$0xf0]  ;;  %v5404_v23 = vor.u32 %v6215_v16, %v5403_v15 }
  0x2f   : > { %v5408_v24 = vor.u32 %v6213_v17, %v5405_v18  ;;  %v6208_v25 = vld [vmem:[%s8949_s5 + $0x24] sm:$0xf]  ;;  %v5381_v26 = vld [vmem:[%s8949_s5 + $0x30] sm:$0xf0]  ;;  %v5387_v27 = vld [vmem:[%s8949_s5 + $0x28] sm:$0xf]  ;;  %v5380_v31 = vor.u32 %v6210_v22, %v5379_v21 }
  0x30   : > { %v6211_v28 = vld [vmem:[%s8949_s5 + $0x34] sm:$0xf0]  ;;  %v6209_v29 = vld [vmem:[%s8949_s5 + $0x2c] sm:$0xf]  ;;  %v5389_v30 = vld [vmem:[%s8949_s5 + $0x38] sm:$0xf0]  ;;  %v5384_v32 = vor.u32 %v6208_v25, %v5381_v26 }
  0x31   : > { %v5363_v33 = vld [vmem:[%s8949_s5] sm:$0xf]  ;;  %v6206_v34 = vld [vmem:[%s8949_s5 + $0xc] sm:$0xf0]  ;;  %v5388_v35 = vor.u32 %v6211_v28, %v5387_v27  ;;  %v5392_v36 = vor.u32 %v6209_v29, %v5389_v30  ;;  %v6204_v37 = vld [vmem:[%s8949_s5 + $0x4] sm:$0xf] }
  0x32   : > { %v5365_v38 = vld [vmem:[%s8949_s5 + $0x10] sm:$0xf0]  ;;  %v5371_v39 = vld [vmem:[%s8949_s5 + $0x8] sm:$0xf]  ;;  %v6207_v40 = vld [vmem:[%s8949_s5 + $0x14] sm:$0xf0]  ;;  %v5364_v43 = vor.u32 %v6206_v34, %v5363_v33 }
  0x33   : > { %v6205_v41 = vld [vmem:[%s8949_s5 + $0xc] sm:$0xf]  ;;  %v5373_v42 = vld [vmem:[%s8949_s5 + $0x18] sm:$0xf0]  ;;  %v6193_v47 = vld [vmem:[%s7532_s16] sm:$0xff]  ;;  %vm803_vm5 = vcmask 261120  }
  0x34   : > { %s6172_s23 = sshll.u32 %s8980_s12, 4  ;;  %vm973_vm6 = vcmask 523264   ;;  %vm1088_vm7 = vcmask 1045504   ;;  %vm7192_vm8 = vmmov 1   ;;  %s7749_s29 = scalar_lea.vmem [#allocation2], %s6285_s26 }
  0x35   : > { %s7543_s6 = scalar_lea.vmem %s8954_s10, %s6172_s23  ;;  %vm7621_vm9 = vmpackc.low %vm1088_vm7, %vm7192_vm8  ;;  %s5164_s26 = scalar_lea.hbm %s8955_s11, %s6284_s13 }
  0x36   : > { %v6202_v48 = vld [vmem:[%s7543_s6] sm:$0xff]  ;;  %s7148_s12 = scalar_lea.hbm %s8955_s11, 3072 }
  0x37   : > { %5289 = vmatmul.msk.bf16.vlgmr.msrb.gmra.mxu0 %vm598_vm3, %v585_v44  ;;  %5290 = vmatmul.msk.bf16.vlgmr.msrb.gmra.mxu1 %vm598_vm3, %v585_v44 }
  0x38   : > { %813 = vmatpush.bf16.msrb.mxu0 %v5336_v45  ;;  %827 = vmatpush.bf16.msrb.mxu1 %v5340_v46  ;;  %v5372_v45 = vor.u32 %v6207_v40, %v5371_v39  ;;  %v5376_v46 = vor.u32 %v6205_v41, %v5373_v42 }
  0x39   : > { %5291 = vmatmul.msk.bf16.vlgmr.msrb.gmra.mxu2 %vm598_vm3, %v585_v44  ;;  %5292 = vmatmul.msk.bf16.vlgmr.msrb.gmra.mxu3 %vm598_vm3, %v585_v44  ;;  %v5368_v44 = vor.u32 %v6204_v37, %v5365_v38 }
  0x3a   : > { %841 = vmatpush.bf16.msrb.mxu2 %v5344_v49  ;;  %855 = vmatpush.bf16.msrb.mxu3 %v5348_v50  ;;  %v6203_v49 = vld [vmem:[%s7543_s6 + $0x8] sm:$0xff] }
  0x3c   : > { %814 = vmatpush.bf16.msrb.mxu0 %v5320_v57  ;;  %828 = vmatpush.bf16.msrb.mxu1 %v5324_v58 }
  0x3e   : > { %842 = vmatpush.bf16.msrb.mxu2 %v5328_v59  ;;  %856 = vmatpush.bf16.msrb.mxu3 %v5332_v60 }
  0x47   : > { %5309 = vmatmul.msk.bf16.vlgmr.msra.gmra.mxu0 %vm692_vm4, %v667_v6  ;;  %5310 = vmatmul.msk.bf16.vlgmr.msra.gmra.mxu1 %vm692_vm4, %v667_v6 }
  0x48   : > { %984 = vmatpush.bf16.msra.mxu0 %v5412_v7  ;;  %1003 = vmatpush.bf16.msra.mxu1 %v5416_v8 }
  0x49   : > { %5311 = vmatmul.msk.bf16.vlgmr.msra.gmra.mxu2 %vm692_vm4, %v667_v6  ;;  %5312 = vmatmul.msk.bf16.vlgmr.msra.gmra.mxu3 %vm692_vm4, %v667_v6 }
  0x4a   : > { %1022 = vmatpush.bf16.msra.mxu2 %v5420_v11  ;;  %1041 = vmatpush.bf16.msra.mxu3 %v5424_v12 }
  0x4c   : > { %985 = vmatpush.bf16.msra.mxu0 %v5396_v19  ;;  %1004 = vmatpush.bf16.msra.mxu1 %v5400_v20 }
  0x4e   : > { %1023 = vmatpush.bf16.msra.mxu2 %v5404_v23  ;;  %1042 = vmatpush.bf16.msra.mxu3 %v5408_v24 }
  0x50   : > { %986 = vmatpush.bf16.msra.mxu0 %v5380_v31  ;;  %1005 = vmatpush.bf16.msra.mxu1 %v5384_v32 }
  0x52   : > { %1024 = vmatpush.bf16.msra.mxu2 %v5388_v35  ;;  %1043 = vmatpush.bf16.msra.mxu3 %v5392_v36 }
  0x54   : > { %987 = vmatpush.bf16.msra.mxu0 %v5364_v43  ;;  %1006 = vmatpush.bf16.msra.mxu1 %v5368_v44 }
  0x56   : > { %1025 = vmatpush.bf16.msra.mxu2 %v5372_v45  ;;  %1044 = vmatpush.bf16.msra.mxu3 %v5376_v46 }
  0x57   : > { %5349 = vmatmul.msk.bf16.vlgmr.msrb.gmra.mxu0 %vm803_vm5, %v6193_v47  ;;  %5350 = vmatmul.msk.bf16.vlgmr.msrb.gmra.mxu1 %vm803_vm5, %v6193_v47 }
  0x59   : > { %5351 = vmatmul.msk.bf16.vlgmr.msrb.gmra.mxu2 %vm803_vm5, %v6193_v47  ;;  %5352 = vmatmul.msk.bf16.vlgmr.msrb.gmra.mxu3 %vm803_vm5, %v6193_v47 }
  0x67   : > { %5425 = vmatmul.msk.bf16.vlgmr.msra.gmra.mxu0 %vm973_vm6, %v6202_v48  ;;  %5427 = vmatmul.msk.bf16.vlgmr.msra.gmra.mxu1 %vm973_vm6, %v6202_v48 }
  0x69   : > { %5429 = vmatmul.msk.bf16.vlgmr.msra.gmra.mxu2 %vm973_vm6, %v6202_v48  ;;  %5431 = vmatmul.msk.bf16.vlgmr.msra.gmra.mxu3 %vm973_vm6, %v6202_v48 }
  0x77   : > { %5426 = vmatmul.msk.bf16.gmra.mxu0 %vm973_vm6, %v6203_v49  ;;  %5428 = vmatmul.msk.bf16.gmra.mxu1 %vm973_vm6, %v6203_v49 }
  0x79   : > { %5430 = vmatmul.msk.bf16.gmra.mxu2 %vm973_vm6, %v6203_v49  ;;  %5432 = vmatmul.msk.bf16.gmra.mxu3 %vm973_vm6, %v6203_v49 }
  0xa4   : > { %v542_v50 = vpop.f32.mrf.mxu0  ;;  %v555_v51 = vpop.f32.mrf.mxu1 }
  0xac   : > { %v568_v52 = vpop.f32.mrf.mxu2  ;;  %v581_v53 = vpop.f32.mrf.mxu3 }
  0xad   : > { %v544_v54 = vpop.f32.mrf.mxu0  ;;  %v557_v55 = vpop.f32.mrf.mxu1 }
  0xb4   : > { %v570_v56 = vpop.f32.mrf.mxu2  ;;  %v583_v57 = vpop.f32.mrf.mxu3 }
  0xb5   : > { %v624_v58 = vpop.f32.mrf.mxu0  ;;  %v637_v60 = vpop.f32.mrf.mxu1 }
  0xb6   : > { %v1060_v59 = vrot.slane %v624_v58, 6  ;;  %v1061_v61 = vrot.slane %v637_v60, 6 }
  0xb8   : > { %v1177_v62 = vsel %vm524_vm1, %v542_v50, %v1060_v59  ;;  %v1178_v63 = vsel %vm524_vm1, %v555_v51, %v1061_v61 }
  0xbc   : > { %v650_v1 = vpop.f32.mrf.mxu2  ;;  %v663_v3 = vpop.f32.mrf.mxu3 }
  0xbd   : > { %v1062_v2 = vrot.slane %v650_v1, 6  ;;  %v626_v4 = vpop.f32.mrf.mxu0  ;;  %v1063_v5 = vrot.slane %v663_v3, 6  ;;  %v639_v6 = vpop.f32.mrf.mxu1 }
  0xbf   : > { %v1179_v7 = vsel %vm524_vm1, %v568_v52, %v1062_v2  ;;  %v1180_v8 = vsel %vm524_vm1, %v581_v53, %v1063_v5 }
  0xc4   : > { %v652_v9 = vpop.f32.mrf.mxu2  ;;  %v665_v10 = vpop.f32.mrf.mxu3 }
  0xc5   : > { %v705_v11 = vpop.f32.mrf.mxu0  ;;  %v718_v13 = vpop.f32.mrf.mxu1 }
  0xc6   : > { %v1072_v12 = vrot.slane %v705_v11, 2  ;;  %v1073_v14 = vrot.slane %v718_v13, 2 }
  0xc8   : > { %v7560_v15 = vsel %vm1088_vm7, %v1177_v62, %v1072_v12  ;;  %v7563_v16 = vsel %vm1088_vm7, %v1178_v63, %v1073_v14 }
  0xcc   : > { %v731_v17 = vpop.f32.mrf.mxu2  ;;  %v744_v19 = vpop.f32.mrf.mxu3 }
  0xcd   : > { %v1074_v18 = vrot.slane %v731_v17, 2  ;;  %v707_v20 = vpop.f32.mrf.mxu0  ;;  %v1075_v21 = vrot.slane %v744_v19, 2  ;;  %v720_v22 = vpop.f32.mrf.mxu1 }
  0xcf   : > { %v7566_v23 = vsel %vm1088_vm7, %v1179_v7, %v1074_v18  ;;  %v7569_v24 = vsel %vm1088_vm7, %v1180_v8, %v1075_v21 }
  0xd4   : > { %v733_v25 = vpop.f32.mrf.mxu2  ;;  %v746_v26 = vpop.f32.mrf.mxu3 }
  0xd5   : > { %v7571_v27 = vpop.f32.mrf.mxu0  ;;  %v7574_v29 = vpop.f32.mrf.mxu1 }
  0xd6   : > { %v1089_v28 = vrot.slane %v7571_v27, 2  ;;  %v1090_v30 = vrot.slane %v7574_v29, 2 }
  0xd8   : > { %v7578_v31 = vsel %vm1088_vm7, %v1072_v12, %v1089_v28  ;;  %v7585_v33 = vsel %vm1088_vm7, %v1073_v14, %v1090_v30 }
  0xd9   : > { %v1197_v32 = vpack.c.bf16 %v7578_v31, %v7560_v15  ;;  %v1198_v34 = vpack.c.bf16 %v7585_v33, %v7563_v16  ;;  %v2153_v15 = vld.sshfl [vmem:[#allocation1 + $0x18] sm:$0xff pattern:$0x73625140]  ;;  %v2150_v16 = vld.sshfl [vmem:[#allocation1] sm:$0xff pattern:$0x73625140] }
  0xda   : > { %v2151_v33 = vld.sshfl [vmem:[#allocation1 + $0x8] sm:$0xff pattern:$0x73625140] }
  0xdc   : > { %v7589_v35 = vpop.f32.mrf.mxu2  ;;  %v7592_v37 = vpop.f32.mrf.mxu3 }
  0xdd   : > { %v1091_v36 = vrot.slane %v7589_v35, 2  ;;  %v818_v38 = vpop.f32.mrf.mxu0  ;;  %v1092_v39 = vrot.slane %v7592_v37, 2  ;;  %v832_v40 = vpop.f32.mrf.mxu1  ;;  %v2159_v35 = vsel %vm524_vm1, %v2151_v33, 0  ;;  %v6178_v37 = vld [vmem:[%s8944_s0 + $0x28] sm:$0xff] }
  0xde   : > { %v1093_v7 = vrot.slane %v818_v38, 2  ;;  %v1095_v14 = vrot.slane %v832_v40, 2 }
  0xdf   : > { %v7598_v41 = vsel %vm1088_vm7, %v1074_v18, %v1091_v36  ;;  %v7605_v43 = vsel %vm1088_vm7, %v1075_v21, %v1092_v39 }
  0xe0   : > { %v1199_v42 = vpack.c.bf16 %v7598_v41, %v7566_v23  ;;  %v1200_v44 = vpack.c.bf16 %v7605_v43, %v7569_v24  ;;  %v1094_v26 = vsel %vm1088_vm7, %v1089_v28, %v1093_v7  ;;  %v6174_v23 = vld [vmem:[%s8944_s0 + $0x8] sm:$0xff]  ;;  %v6175_v24 = vld [vmem:[%s8944_s0 + $0x10] sm:$0xff]  ;;  %v6180_v41 = vld [vmem:[%s8944_s0 + $0x38] sm:$0xff] }
  0xe4   : > { %v7609_v45 = vpop.f32.mrf.mxu2  ;;  %v7611_v46 = vpop.f32.mrf.mxu3 }
  0xe5   : > { %v989_v47 = vpop.f32.mrf.mxu0  ;;  %v1008_v48 = vpop.f32.mrf.mxu1 }
  0xe6   : > { %v1129_v4 = vrot.slane %v989_v47, 2  ;;  %v1130_v8 = vrot.slane %v1008_v48, 2 }
  0xe8   : > { %v1189_v47 = vsel %vm1088_vm7, %v1093_v7, %v1129_v4 }
  0xec   : > { %v7613_v49 = vpop.f32.mrf.mxu2  ;;  %v7615_v50 = vpop.f32.mrf.mxu3 }
  0xed   : > { %v991_v51 = vpop.f32.mrf.mxu0  ;;  %v1010_v52 = vpop.f32.mrf.mxu1 }
  0xee   : > { %v1133_v62 = vrot.slane %v991_v51, 2  ;;  %v1135_v2 = vrot.slane %v1010_v52, 2  ;;  %v1096_v52 = vsel %vm1088_vm7, %v1090_v30, %v1095_v14 }
  0xf0   : > { %v1134_v12 = vsel %vm1088_vm7, %v1129_v4, %v1133_v62  ;;  %v1136_v17 = vsel %vm1088_vm7, %v1130_v8, %v1135_v2 }
  0xf4   : > { %v1029_v53 = vpop.f32.mrf.mxu2  ;;  %v7617_v54 = vpop.f32.mrf.mxu3 }
  0xf5   : > { %v994_v55 = vpop.f32.mrf.mxu0  ;;  %v1013_v56 = vpop.f32.mrf.mxu1  ;;  %v1137_v48 = vrot.slane %v1029_v53, 2 }
  0xf6   : > { %v1141_v57 = vrot.slane %v994_v55, 2  ;;  %v1143_v59 = vrot.slane %v1013_v56, 2  ;;  %v1190_v55 = vsel %vm1088_vm7, %v1095_v14, %v1130_v8  ;;  %v1139_v56 = vrot.slane %v7617_v54, 2  ;;  %v2152_v8 = vld.sshfl [vmem:[#allocation1 + $0x10] sm:$0xff pattern:$0x73625140] }
  0xf7   : > { %v1202_v29 = vpack.c.bf16 %v1190_v55, %v1096_v52  ;;  %v1097_v54 = vrot.slane %v7609_v45, 2  ;;  %v6173_v45 = vld [vmem:[%s8944_s0] sm:$0xff]  ;;  %v2161_v31 = vsel %vm524_vm1, %v2152_v8, 0  ;;  %3652 = vst [vmem:[#allocation1] ss:$4 sm:$0xff] %v7306_v0  ;;  %v6176_v0 = vld [vmem:[%s8944_s0 + $0x18] sm:$0xff] }
  0xf8   : > { %v1142_v13 = vsel %vm1088_vm7, %v1133_v62, %v1141_v57  ;;  %v1144_v18 = vsel %vm1088_vm7, %v1135_v2, %v1143_v59  ;;  %v1099_v62 = vrot.slane %v7611_v46, 2 }
  0xf9   : > { %v1205_v25 = vpack.c.bf16 %v1142_v13, %v1134_v12  ;;  %v1206_v40 = vpack.c.bf16 %v1144_v18, %v1136_v17  ;;  %v1098_v46 = vsel %vm1088_vm7, %v1091_v36, %v1097_v54  ;;  %v6177_v36 = vld [vmem:[%s8944_s0 + $0x20] sm:$0xff] }
  0xfc   : > { %v1032_v58 = vpop.f32.mrf.mxu2  ;;  %v1051_v60 = vpop.f32.mrf.mxu3 }
  0xfd   : > { %v996_v61 = vpop.f32.mrf.mxu0  ;;  %v1015_v1 = vpop.f32.mrf.mxu1  ;;  %v1145_v20 = vrot.slane %v1032_v58, 2  ;;  %v1147_v27 = vrot.slane %v1051_v60, 2  ;;  %v1131_v58 = vrot.slane %v7613_v49, 2  ;;  %v1201_v60 = vpack.c.bf16 %v1189_v47, %v1094_v26 }
  0xfe   : > { %v1149_v63 = vrot.slane %v996_v61, 2  ;;  %v1151_v3 = vrot.slane %v1015_v1, 2  ;;  %v1132_v61 = vrot.slane %v7615_v50, 2 }
  0xff   : > { %v1146_v53 = vsel %vm1088_vm7, %v1137_v48, %v1145_v20  ;;  %v1148_v30 = vsel %vm1088_vm7, %v1139_v56, %v1147_v27  ;;  %v1138_v49 = vsel %vm1088_vm7, %v1131_v58, %v1137_v48  ;;  %v1191_v2 = vsel %vm1088_vm7, %v1097_v54, %v1131_v58 }
 0x100   : > { %v1150_v5 = vsel %vm1088_vm7, %v1141_v57, %v1149_v63  ;;  %v1152_v10 = vsel %vm1088_vm7, %v1143_v59, %v1151_v3  ;;  %v1140_v50 = vsel %vm1088_vm7, %v1132_v61, %v1139_v56  ;;  %v1203_v4 = vpack.c.bf16 %v1191_v2, %v1098_v46 }
 0x101   : > { %v5498_v9 = vpack.c.bf16 %v1149_v63, %v1150_v5  ;;  %v5517_v11 = vpack.c.bf16 %v1151_v3, %v1152_v10  ;;  %v1207_v63 = vpack.c.bf16 %v1146_v53, %v1138_v49  ;;  %v1208_v1 = vpack.c.bf16 %v1148_v30, %v1140_v50 }
 0x102   : > { %v1192_v3 = vsel %vm1088_vm7, %v1099_v62, %v1132_v61  ;;  %v1100_v5 = vsel %vm1088_vm7, %v1092_v39, %v1099_v62  ;;  %v6179_v39 = vld [vmem:[%s8944_s0 + $0x30] sm:$0xff] }
 0x103   : > { %5499 = vmatpush.bf16.msk.msrb.mxu0 %vm7621_vm9, %v5498_v9  ;;  %5518 = vmatpush.bf16.msk.msrb.mxu1 %vm7621_vm9, %v5517_v11  ;;  %v1204_v7 = vpack.c.bf16 %v1192_v3, %v1100_v5 }
 0x104   : > { %v1034_v19 = vpop.f32.mrf.mxu2  ;;  %v1053_v22 = vpop.f32.mrf.mxu3 }
 0x105   : > { %v1153_v21 = vrot.slane %v1034_v19, 2  ;;  %v1155_v38 = vrot.slane %v1053_v22, 2 }
 0x107   : > { %v1154_v51 = vsel %vm1088_vm7, %v1145_v20, %v1153_v21  ;;  %1346 = vmatpush.bf16.msrb.mxu0 %v1205_v25  ;;  %v1156_v28 = vsel %vm1088_vm7, %v1147_v27, %v1155_v38  ;;  %1435 = vmatpush.bf16.msrb.mxu1 %v1206_v40  ;;  %v6182_v27 = vld [vmem:[%s8944_s0 + $0x48] sm:$0xff] }
 0x108   : > { %v5536_v57 = vpack.c.bf16 %v1153_v21, %v1154_v51  ;;  %v5555_v59 = vpack.c.bf16 %v1155_v38, %v1156_v28 }
 0x10a   : > { %5537 = vmatpush.bf16.msk.msrb.mxu2 %vm7621_vm9, %v5536_v57  ;;  %5556 = vmatpush.bf16.msk.msrb.mxu3 %vm7621_vm9, %v5555_v59 }
 0x10b   : > { %1347 = vmatpush.bf16.msrb.mxu0 %v1201_v60  ;;  %1436 = vmatpush.bf16.msrb.mxu1 %v1202_v29 }
 0x10e   : > { %1524 = vmatpush.bf16.msrb.mxu2 %v1207_v63  ;;  %1613 = vmatpush.bf16.msrb.mxu3 %v1208_v1 }
 0x10f   : > { %1348 = vmatpush.bf16.msrb.mxu0 %v1197_v32  ;;  %1437 = vmatpush.bf16.msrb.mxu1 %v1198_v34  ;;  %v2163_v32 = vsel %vm524_vm1, %v2153_v15, 0  ;;  %v2157_v34 = vsel %vm524_vm1, %v2150_v16, 0 }
 0x112   : > { %1525 = vmatpush.bf16.msrb.mxu2 %v1203_v4  ;;  %5500 = vmatmul.msk.bf16.vlgmr.msrb.gmra.mxu0 %vm973_vm6, %v6173_v45 }
 0x113   : > { %1614 = vmatpush.bf16.msrb.mxu3 %v1204_v7  ;;  %5519 = vmatmul.msk.bf16.vlgmr.msrb.gmra.mxu1 %vm973_vm6, %v6173_v45  ;;  %v6183_v7 = vld [vmem:[%s8944_s0 + $0x50] sm:$0xff] }
 0x114   : > { %2172 = vmatpush.bf16.msra.mxu0 %v2157_v34  ;;  %2185 = vmatpush.bf16.msra.mxu1 %v2159_v35 }
 0x116   : > { %1526 = vmatpush.bf16.msrb.mxu2 %v1199_v42  ;;  %v6181_v42 = vld [vmem:[%s8944_s0 + $0x40] sm:$0xff] }
 0x117   : > { %1615 = vmatpush.bf16.msrb.mxu3 %v1200_v44 }
 0x119   : > { %5538 = vmatmul.msk.bf16.vlgmr.msrb.gmra.mxu2 %vm973_vm6, %v6173_v45 }
 0x11a   : > { %2198 = vmatpush.bf16.msra.mxu2 %v2161_v31  ;;  %5557 = vmatmul.msk.bf16.vlgmr.msrb.gmra.mxu3 %vm973_vm6, %v6173_v45 }
 0x11b   : > { %2211 = vmatpush.bf16.msra.mxu3 %v2163_v32 }
 0x122   : > { %5501 = vmatmul.msk.bf16.gmra.mxu0 %vm973_vm6, %v6174_v23 }
 0x123   : > { %5520 = vmatmul.msk.bf16.gmra.mxu1 %vm973_vm6, %v6174_v23 }
 0x129   : > { %5539 = vmatmul.msk.bf16.gmra.mxu2 %vm973_vm6, %v6174_v23 }
 0x12a   : > { %5558 = vmatmul.msk.bf16.gmra.mxu3 %vm973_vm6, %v6174_v23 }
 0x132   : > { %5502 = vmatmul.msk.bf16.gmra.mxu0 %vm973_vm6, %v6175_v24 }
 0x133   : > { %5521 = vmatmul.msk.bf16.gmra.mxu1 %vm973_vm6, %v6175_v24 }
 0x139   : > { %5540 = vmatmul.msk.bf16.gmra.mxu2 %vm973_vm6, %v6175_v24 }
 0x13a   : > { %5559 = vmatmul.msk.bf16.gmra.mxu3 %vm973_vm6, %v6175_v24 }
 0x142   : > { %5503 = vmatmul.msk.bf16.gmra.mxu0 %vm973_vm6, %v6176_v0 }
 0x143   : > { %5522 = vmatmul.msk.bf16.gmra.mxu1 %vm973_vm6, %v6176_v0 }
 0x149   : > { %5541 = vmatmul.msk.bf16.gmra.mxu2 %vm973_vm6, %v6176_v0 }
 0x14a   : > { %5560 = vmatmul.msk.bf16.gmra.mxu3 %vm973_vm6, %v6176_v0 }
 0x152   : > { %5504 = vmatmul.msk.bf16.gmra.mxu0 %vm973_vm6, %v6177_v36 }
 0x153   : > { %5523 = vmatmul.msk.bf16.gmra.mxu1 %vm973_vm6, %v6177_v36 }
 0x159   : > { %5542 = vmatmul.msk.bf16.gmra.mxu2 %vm973_vm6, %v6177_v36 }
 0x15a   : > { %5561 = vmatmul.msk.bf16.gmra.mxu3 %vm973_vm6, %v6177_v36 }
 0x162   : > { %5505 = vmatmul.msk.bf16.gmra.mxu0 %vm973_vm6, %v6178_v37 }
 0x163   : > { %5524 = vmatmul.msk.bf16.gmra.mxu1 %vm973_vm6, %v6178_v37 }
 0x169   : > { %5543 = vmatmul.msk.bf16.gmra.mxu2 %vm973_vm6, %v6178_v37 }
 0x16a   : > { %5562 = vmatmul.msk.bf16.gmra.mxu3 %vm973_vm6, %v6178_v37 }
 0x172   : > { %5506 = vmatmul.msk.bf16.gmra.mxu0 %vm973_vm6, %v6179_v39 }
 0x173   : > { %5525 = vmatmul.msk.bf16.gmra.mxu1 %vm973_vm6, %v6179_v39 }
 0x179   : > { %5544 = vmatmul.msk.bf16.gmra.mxu2 %vm973_vm6, %v6179_v39 }
 0x17a   : > { %5563 = vmatmul.msk.bf16.gmra.mxu3 %vm973_vm6, %v6179_v39 }
 0x182   : > { %5507 = vmatmul.msk.bf16.gmra.mxu0 %vm973_vm6, %v6180_v41 }
 0x183   : > { %5526 = vmatmul.msk.bf16.gmra.mxu1 %vm973_vm6, %v6180_v41 }
 0x189   : > { %5545 = vmatmul.msk.bf16.gmra.mxu2 %vm973_vm6, %v6180_v41 }
 0x18a   : > { %5564 = vmatmul.msk.bf16.gmra.mxu3 %vm973_vm6, %v6180_v41 }
 0x18f   : > { %v1350_v43 = vpop.f32.mrf.mxu0 }
 0x190   : > { %v1439_v44 = vpop.f32.mrf.mxu1 }
 0x191   : > { %v1697_v9 = vpack.c.bf16 %v1439_v44, %v1350_v43 }
 0x192   : > { %5508 = vmatmul.msk.bf16.gmra.mxu0 %vm973_vm6, %v6181_v42 }
 0x193   : > { %v1761_v10 = vunpack.c.l.bf16 %v1697_v9  ;;  %v1762_v11 = vunpack.c.h.bf16 %v1697_v9  ;;  %5527 = vmatmul.msk.bf16.gmra.mxu1 %vm973_vm6, %v6181_v42 }
 0x195   : > { %6328 = vtanh.f32 %v1761_v10 }
 0x196   : > { %6330 = vtanh.f32 %v1762_v11 }
 0x197   : > { %v1352_v12 = vpop.f32.mrf.mxu0 }
 0x198   : > { %v1441_v13 = vpop.f32.mrf.mxu1 }
 0x199   : > { %v1699_v14 = vpack.c.bf16 %v1441_v13, %v1352_v12  ;;  %5546 = vmatmul.msk.bf16.gmra.mxu2 %vm973_vm6, %v6181_v42 }
 0x19a   : > { %5565 = vmatmul.msk.bf16.gmra.mxu3 %vm973_vm6, %v6181_v42 }
 0x19b   : > { %v6329_v17 = vpop.eup %6328  ;;  %v1765_v18 = vunpack.c.l.bf16 %v1699_v14  ;;  %v1766_v19 = vunpack.c.h.bf16 %v1699_v14 }
 0x19c   : > { %v6331_v20 = vpop.eup %6330  ;;  %v1528_v21 = vpop.f32.mrf.mxu2 }
 0x19d   : > { %v2017_v22 = vpack.c.bf16 %v6331_v20, %v6329_v17  ;;  %6332 = vtanh.f32 %v1765_v18  ;;  %v1617_v25 = vpop.f32.mrf.mxu3 }
 0x19e   : > { %6334 = vtanh.f32 %v1766_v19  ;;  %v1698_v26 = vpack.c.bf16 %v1617_v25, %v1528_v21 }
 0x19f   : > { %2081 = vst [vmem:[%s7749_s29] sm:$0xff] %v2017_v22  ;;  %v1355_v38 = vpop.f32.mrf.mxu0 }
 0x1a0   : > { %v1763_v40 = vunpack.c.l.bf16 %v1698_v26  ;;  %v1764_v47 = vunpack.c.h.bf16 %v1698_v26  ;;  %v1444_v48 = vpop.f32.mrf.mxu1 }
 0x1a1   : > { %v1701_v51 = vpack.c.bf16 %v1444_v48, %v1355_v38 }
 0x1a2   : > { %6336 = vtanh.f32 %v1763_v40  ;;  %5509 = vmatmul.msk.bf16.gmra.mxu0 %vm973_vm6, %v6182_v27 }
 0x1a3   : > { %v6333_v52 = vpop.eup %6332  ;;  %6338 = vtanh.f32 %v1764_v47  ;;  %v1769_v55 = vunpack.c.l.bf16 %v1701_v51  ;;  %v1770_v56 = vunpack.c.h.bf16 %v1701_v51  ;;  %5528 = vmatmul.msk.bf16.gmra.mxu1 %vm973_vm6, %v6182_v27 }
 0x1a4   : > { %v6335_v57 = vpop.eup %6334  ;;  %v1530_v28 = vpop.f32.mrf.mxu2 }
 0x1a5   : > { %v2019_v58 = vpack.c.bf16 %v6335_v57, %v6333_v52  ;;  %6340 = vtanh.f32 %v1769_v55  ;;  %v1619_v59 = vpop.f32.mrf.mxu3 }
 0x1a6   : > { %6342 = vtanh.f32 %v1770_v56  ;;  %v1700_v60 = vpack.c.bf16 %v1619_v59, %v1530_v28 }
 0x1a7   : > { %2083 = vst [vmem:[%s7749_s29 + $0x10] sm:$0xff] %v2019_v58  ;;  %v1357_v53 = vpop.f32.mrf.mxu0 }
 0x1a8   : > { %v6337_v61 = vpop.eup %6336  ;;  %v1767_v29 = vunpack.c.l.bf16 %v1700_v60  ;;  %v1768_v30 = vunpack.c.h.bf16 %v1700_v60  ;;  %v1446_v54 = vpop.f32.mrf.mxu1 }
 0x1a9   : > { %v6339_v49 = vpop.eup %6338  ;;  %v1703_v62 = vpack.c.bf16 %v1446_v54, %v1357_v53  ;;  %5547 = vmatmul.msk.bf16.gmra.mxu2 %vm973_vm6, %v6182_v27 }
 0x1aa   : > { %v2018_v63 = vpack.c.bf16 %v6339_v49, %v6337_v61  ;;  %6344 = vtanh.f32 %v1767_v29  ;;  %5566 = vmatmul.msk.bf16.gmra.mxu3 %vm973_vm6, %v6182_v27  ;;  %v6184_v27 = vld [vmem:[%s8944_s0 + $0x58] sm:$0xff] }
 0x1ab   : > { %v6341_v50 = vpop.eup %6340  ;;  %6346 = vtanh.f32 %v1768_v30  ;;  %v1773_v1 = vunpack.c.l.bf16 %v1703_v62  ;;  %v1774_v2 = vunpack.c.h.bf16 %v1703_v62 }
 0x1ac   : > { %v6343_v3 = vpop.eup %6342  ;;  %2082 = vst [vmem:[%s7749_s29 + $0x8] sm:$0xff] %v2018_v63  ;;  %v1533_v45 = vpop.f32.mrf.mxu2 }
 0x1ad   : > { %v2021_v46 = vpack.c.bf16 %v6343_v3, %v6341_v50  ;;  %6348 = vtanh.f32 %v1773_v1  ;;  %v1622_v4 = vpop.f32.mrf.mxu3 }
 0x1ae   : > { %6350 = vtanh.f32 %v1774_v2  ;;  %v1702_v5 = vpack.c.bf16 %v1622_v4, %v1533_v45 }
 0x1af   : > { %2085 = vst [vmem:[%s7749_s29 + $0x20] sm:$0xff] %v2021_v46  ;;  %v1360_v8 = vpop.f32.mrf.mxu0 }
 0x1b0   : > { %v6345_v15 = vpop.eup %6344  ;;  %v1771_v31 = vunpack.c.l.bf16 %v1702_v5  ;;  %v1772_v32 = vunpack.c.h.bf16 %v1702_v5  ;;  %v1449_v16 = vpop.f32.mrf.mxu1 }
 0x1b1   : > { %v6347_v33 = vpop.eup %6346  ;;  %v1705_v34 = vpack.c.bf16 %v1449_v16, %v1360_v8 }
 0x1b2   : > { %v2020_v35 = vpack.c.bf16 %v6347_v33, %v6345_v15  ;;  %6352 = vtanh.f32 %v1771_v31  ;;  %5510 = vmatmul.msk.bf16.gmra.mxu0 %vm973_vm6, %v6183_v7  ;;  %v6185_v31 = vld [vmem:[%s8944_s0 + $0x60] sm:$0xff] }
 0x1b3   : > { %v6349_v23 = vpop.eup %6348  ;;  %6354 = vtanh.f32 %v1772_v32  ;;  %v1777_v24 = vunpack.c.l.bf16 %v1705_v34  ;;  %v1778_v0 = vunpack.c.h.bf16 %v1705_v34  ;;  %5529 = vmatmul.msk.bf16.gmra.mxu1 %vm973_vm6, %v6183_v7 }
 0x1b4   : > { %v6351_v36 = vpop.eup %6350  ;;  %2084 = vst [vmem:[%s7749_s29 + $0x18] sm:$0xff] %v2020_v35  ;;  %v1535_v37 = vpop.f32.mrf.mxu2 }
 0x1b5   : > { %v2023_v39 = vpack.c.bf16 %v6351_v36, %v6349_v23  ;;  %6356 = vtanh.f32 %v1777_v24  ;;  %v1624_v41 = vpop.f32.mrf.mxu3 }
 0x1b6   : > { %6358 = vtanh.f32 %v1778_v0  ;;  %v1704_v42 = vpack.c.bf16 %v1624_v41, %v1535_v37 }
 0x1b7   : > { %2087 = vst [vmem:[%s7749_s29 + $0x30] sm:$0xff] %v2023_v39  ;;  %v1362_v43 = vpop.f32.mrf.mxu0 }
 0x1b8   : > { %v6353_v44 = vpop.eup %6352  ;;  %v1775_v9 = vunpack.c.l.bf16 %v1704_v42  ;;  %v1776_v10 = vunpack.c.h.bf16 %v1704_v42  ;;  %v1451_v11 = vpop.f32.mrf.mxu1 }
 0x1b9   : > { %v6355_v12 = vpop.eup %6354  ;;  %v1707_v13 = vpack.c.bf16 %v1451_v11, %v1362_v43  ;;  %5548 = vmatmul.msk.bf16.gmra.mxu2 %vm973_vm6, %v6183_v7 }
 0x1ba   : > { %v2022_v14 = vpack.c.bf16 %v6355_v12, %v6353_v44  ;;  %6360 = vtanh.f32 %v1775_v9  ;;  %5567 = vmatmul.msk.bf16.gmra.mxu3 %vm973_vm6, %v6183_v7 }
 0x1bb   : > { %v6357_v17 = vpop.eup %6356  ;;  %6362 = vtanh.f32 %v1776_v10  ;;  %v1781_v18 = vunpack.c.l.bf16 %v1707_v13  ;;  %v1782_v19 = vunpack.c.h.bf16 %v1707_v13 }
 0x1bc   : > { %v6359_v20 = vpop.eup %6358  ;;  %2086 = vst [vmem:[%s7749_s29 + $0x28] sm:$0xff] %v2022_v14  ;;  %v1538_v21 = vpop.f32.mrf.mxu2 }
 0x1bd   : > { %v2025_v22 = vpack.c.bf16 %v6359_v20, %v6357_v17  ;;  %6364 = vtanh.f32 %v1781_v18  ;;  %v1627_v25 = vpop.f32.mrf.mxu3 }
 0x1be   : > { %6366 = vtanh.f32 %v1782_v19  ;;  %v1706_v26 = vpack.c.bf16 %v1627_v25, %v1538_v21 }
 0x1bf   : > { %2089 = vst [vmem:[%s7749_s29 + $0x40] sm:$0xff] %v2025_v22  ;;  %v1365_v38 = vpop.f32.mrf.mxu0 }
 0x1c0   : > { %v6361_v40 = vpop.eup %6360  ;;  %v1779_v47 = vunpack.c.l.bf16 %v1706_v26  ;;  %v1780_v48 = vunpack.c.h.bf16 %v1706_v26  ;;  %v1454_v51 = vpop.f32.mrf.mxu1 }
 0x1c1   : > { %v6363_v52 = vpop.eup %6362  ;;  %v1709_v55 = vpack.c.bf16 %v1454_v51, %v1365_v38 }
 0x1c2   : > { %v2024_v56 = vpack.c.bf16 %v6363_v52, %v6361_v40  ;;  %6368 = vtanh.f32 %v1779_v47  ;;  %5511 = vmatmul.msk.bf16.gmra.mxu0 %vm973_vm6, %v6184_v27  ;;  %v6186_v47 = vld [vmem:[%s8944_s0 + $0x68] sm:$0xff] }
 0x1c3   : > { %v6365_v57 = vpop.eup %6364  ;;  %6370 = vtanh.f32 %v1780_v48  ;;  %v1785_v28 = vunpack.c.l.bf16 %v1709_v55  ;;  %v1786_v58 = vunpack.c.h.bf16 %v1709_v55  ;;  %5530 = vmatmul.msk.bf16.gmra.mxu1 %vm973_vm6, %v6184_v27 }
 0x1c4   : > { %v6367_v59 = vpop.eup %6366  ;;  %2088 = vst [vmem:[%s7749_s29 + $0x38] sm:$0xff] %v2024_v56  ;;  %v1540_v60 = vpop.f32.mrf.mxu2 }
 0x1c5   : > { %v2027_v53 = vpack.c.bf16 %v6367_v59, %v6365_v57  ;;  %6372 = vtanh.f32 %v1785_v28  ;;  %v1629_v61 = vpop.f32.mrf.mxu3 }
 0x1c6   : > { %6374 = vtanh.f32 %v1786_v58  ;;  %v1708_v29 = vpack.c.bf16 %v1629_v61, %v1540_v60 }
 0x1c7   : > { %2091 = vst [vmem:[%s7749_s29 + $0x50] sm:$0xff] %v2027_v53  ;;  %v1367_v30 = vpop.f32.mrf.mxu0 }
 0x1c8   : > { %v6369_v54 = vpop.eup %6368  ;;  %v1783_v49 = vunpack.c.l.bf16 %v1708_v29  ;;  %v1784_v62 = vunpack.c.h.bf16 %v1708_v29  ;;  %v1456_v63 = vpop.f32.mrf.mxu1 }
 0x1c9   : > { %v6371_v50 = vpop.eup %6370  ;;  %v1711_v1 = vpack.c.bf16 %v1456_v63, %v1367_v30  ;;  %5549 = vmatmul.msk.bf16.gmra.mxu2 %vm973_vm6, %v6184_v27 }
 0x1ca   : > { %v2026_v2 = vpack.c.bf16 %v6371_v50, %v6369_v54  ;;  %6376 = vtanh.f32 %v1783_v49  ;;  %5568 = vmatmul.msk.bf16.gmra.mxu3 %vm973_vm6, %v6184_v27 }
 0x1cb   : > { %v6373_v3 = vpop.eup %6372  ;;  %6378 = vtanh.f32 %v1784_v62  ;;  %v1789_v45 = vunpack.c.l.bf16 %v1711_v1  ;;  %v1790_v46 = vunpack.c.h.bf16 %v1711_v1 }
 0x1cc   : > { %v6375_v4 = vpop.eup %6374  ;;  %2090 = vst [vmem:[%s7749_s29 + $0x48] sm:$0xff] %v2026_v2  ;;  %v1543_v5 = vpop.f32.mrf.mxu2 }
 0x1cd   : > { %v2029_v7 = vpack.c.bf16 %v6375_v4, %v6373_v3  ;;  %6380 = vtanh.f32 %v1789_v45  ;;  %v1632_v8 = vpop.f32.mrf.mxu3 }
 0x1ce   : > { %6382 = vtanh.f32 %v1790_v46  ;;  %v1710_v15 = vpack.c.bf16 %v1632_v8, %v1543_v5 }
 0x1cf   : > { %2093 = vst [vmem:[%s7749_s29 + $0x60] sm:$0xff] %v2029_v7  ;;  %v1370_v32 = vpop.f32.mrf.mxu0 }
 0x1d0   : > { %v6377_v16 = vpop.eup %6376  ;;  %v1787_v33 = vunpack.c.l.bf16 %v1710_v15  ;;  %v1788_v34 = vunpack.c.h.bf16 %v1710_v15  ;;  %v1459_v35 = vpop.f32.mrf.mxu1 }
 0x1d1   : > { %v6379_v23 = vpop.eup %6378  ;;  %v1713_v24 = vpack.c.bf16 %v1459_v35, %v1370_v32 }
 0x1d2   : > { %v2028_v0 = vpack.c.bf16 %v6379_v23, %v6377_v16  ;;  %6384 = vtanh.f32 %v1787_v33  ;;  %5512 = vmatmul.msk.bf16.gmra.mxu0 %vm973_vm6, %v6185_v31  ;;  %v6187_v33 = vld [vmem:[%s8944_s0 + $0x70] sm:$0xff] }
 0x1d3   : > { %v6381_v36 = vpop.eup %6380  ;;  %6386 = vtanh.f32 %v1788_v34  ;;  %v1793_v37 = vunpack.c.l.bf16 %v1713_v24  ;;  %v1794_v39 = vunpack.c.h.bf16 %v1713_v24  ;;  %5531 = vmatmul.msk.bf16.gmra.mxu1 %vm973_vm6, %v6185_v31 }
 0x1d4   : > { %v6383_v41 = vpop.eup %6382  ;;  %2092 = vst [vmem:[%s7749_s29 + $0x58] sm:$0xff] %v2028_v0  ;;  %v1545_v42 = vpop.f32.mrf.mxu2 }
 0x1d5   : > { %v2031_v43 = vpack.c.bf16 %v6383_v41, %v6381_v36  ;;  %6388 = vtanh.f32 %v1793_v37  ;;  %v1634_v44 = vpop.f32.mrf.mxu3 }
 0x1d6   : > { %6390 = vtanh.f32 %v1794_v39  ;;  %v1712_v9 = vpack.c.bf16 %v1634_v44, %v1545_v42 }
 0x1d7   : > { %2095 = vst [vmem:[%s7749_s29 + $0x70] sm:$0xff] %v2031_v43  ;;  %v1372_v10 = vpop.f32.mrf.mxu0 }
 0x1d8   : > { %v6385_v11 = vpop.eup %6384  ;;  %v1791_v12 = vunpack.c.l.bf16 %v1712_v9  ;;  %v1792_v13 = vunpack.c.h.bf16 %v1712_v9  ;;  %v1461_v14 = vpop.f32.mrf.mxu1 }
 0x1d9   : > { %v6387_v17 = vpop.eup %6386  ;;  %v1715_v18 = vpack.c.bf16 %v1461_v14, %v1372_v10  ;;  %5550 = vmatmul.msk.bf16.gmra.mxu2 %vm973_vm6, %v6185_v31 }
 0x1da   : > { %v2030_v19 = vpack.c.bf16 %v6387_v17, %v6385_v11  ;;  %6392 = vtanh.f32 %v1791_v12  ;;  %5569 = vmatmul.msk.bf16.gmra.mxu3 %vm973_vm6, %v6185_v31 }
 0x1db   : > { %v6389_v20 = vpop.eup %6388  ;;  %6394 = vtanh.f32 %v1792_v13  ;;  %v1797_v21 = vunpack.c.l.bf16 %v1715_v18  ;;  %v1798_v22 = vunpack.c.h.bf16 %v1715_v18 }
 0x1dc   : > { %v6391_v25 = vpop.eup %6390  ;;  %2094 = vst [vmem:[%s7749_s29 + $0x68] sm:$0xff] %v2030_v19  ;;  %v1548_v26 = vpop.f32.mrf.mxu2 }
 0x1dd   : > { %v2033_v27 = vpack.c.bf16 %v6391_v25, %v6389_v20  ;;  %6396 = vtanh.f32 %v1797_v21  ;;  %v1637_v38 = vpop.f32.mrf.mxu3 }
 0x1de   : > { %6398 = vtanh.f32 %v1798_v22  ;;  %v1714_v40 = vpack.c.bf16 %v1637_v38, %v1548_v26 }
 0x1df   : > { %2097 = vst [vmem:[%s7749_s29 + $0x80] sm:$0xff] %v2033_v27  ;;  %v1375_v48 = vpop.f32.mrf.mxu0 }
 0x1e0   : > { %v6393_v51 = vpop.eup %6392  ;;  %v1795_v52 = vunpack.c.l.bf16 %v1714_v40  ;;  %v1796_v55 = vunpack.c.h.bf16 %v1714_v40  ;;  %v1464_v56 = vpop.f32.mrf.mxu1 }
 0x1e1   : > { %v6395_v57 = vpop.eup %6394  ;;  %v1717_v28 = vpack.c.bf16 %v1464_v56, %v1375_v48 }
 0x1e2   : > { %v2032_v58 = vpack.c.bf16 %v6395_v57, %v6393_v51  ;;  %6400 = vtanh.f32 %v1795_v52  ;;  %5513 = vmatmul.msk.bf16.gmra.mxu0 %vm973_vm6, %v6186_v47  ;;  %v6188_v57 = vld [vmem:[%s8944_s0 + $0x78] sm:$0xff] }
 0x1e3   : > { %v6397_v59 = vpop.eup %6396  ;;  %6402 = vtanh.f32 %v1796_v55  ;;  %v1801_v60 = vunpack.c.l.bf16 %v1717_v28  ;;  %v1802_v53 = vunpack.c.h.bf16 %v1717_v28  ;;  %5532 = vmatmul.msk.bf16.gmra.mxu1 %vm973_vm6, %v6186_v47 }
 0x1e4   : > { %v6399_v61 = vpop.eup %6398  ;;  %2096 = vst [vmem:[%s7749_s29 + $0x78] sm:$0xff] %v2032_v58  ;;  %v1550_v29 = vpop.f32.mrf.mxu2 }
 0x1e5   : > { %v2035_v30 = vpack.c.bf16 %v6399_v61, %v6397_v59  ;;  %6404 = vtanh.f32 %v1801_v60  ;;  %v1639_v54 = vpop.f32.mrf.mxu3 }
 0x1e6   : > { %6406 = vtanh.f32 %v1802_v53  ;;  %v1716_v49 = vpack.c.bf16 %v1639_v54, %v1550_v29 }
 0x1e7   : > { %2099 = vst [vmem:[%s7749_s29 + $0x90] sm:$0xff] %v2035_v30  ;;  %v1377_v62 = vpop.f32.mrf.mxu0 }
 0x1e8   : > { %v6401_v63 = vpop.eup %6400  ;;  %v1799_v50 = vunpack.c.l.bf16 %v1716_v49  ;;  %v1800_v1 = vunpack.c.h.bf16 %v1716_v49  ;;  %v1466_v2 = vpop.f32.mrf.mxu1 }
 0x1e9   : > { %v6403_v3 = vpop.eup %6402  ;;  %v1719_v45 = vpack.c.bf16 %v1466_v2, %v1377_v62  ;;  %5551 = vmatmul.msk.bf16.gmra.mxu2 %vm973_vm6, %v6186_v47 }
 0x1ea   : > { %v2034_v46 = vpack.c.bf16 %v6403_v3, %v6401_v63  ;;  %6408 = vtanh.f32 %v1799_v50  ;;  %5570 = vmatmul.msk.bf16.gmra.mxu3 %vm973_vm6, %v6186_v47  ;;  %v2219_v47 = vld [vmem:[%s8946_s2] sm:$0xff]  ;;  %v2220_v50 = vld [vmem:[%s8946_s2 + $0x8] sm:$0xff] }
 0x1eb   : > { %v6405_v4 = vpop.eup %6404  ;;  %6410 = vtanh.f32 %v1800_v1  ;;  %v1805_v5 = vunpack.c.l.bf16 %v1719_v45  ;;  %v1806_v7 = vunpack.c.h.bf16 %v1719_v45  ;;  %v2223_v52 = vunpack.c.l.b16 %v2219_v47 }
 0x1ec   : > { %v6407_v8 = vpop.eup %6406  ;;  %2098 = vst [vmem:[%s7749_s29 + $0x88] sm:$0xff] %v2034_v46  ;;  %v1553_v15 = vpop.f32.mrf.mxu2  ;;  %v2224_v55 = vunpack.c.h.b16 %v2219_v47  ;;  %v2225_v45 = vunpack.c.l.b16 %v2220_v50 }
 0x1ed   : > { %v2037_v31 = vpack.c.bf16 %v6407_v8, %v6405_v4  ;;  %6412 = vtanh.f32 %v1805_v5  ;;  %v1642_v32 = vpop.f32.mrf.mxu3  ;;  %v2227_v58 = vpack.c.b16 %v2223_v52, %v2223_v52  ;;  %v2226_v5 = vunpack.c.h.b16 %v2220_v50 }
 0x1ee   : > { %6414 = vtanh.f32 %v1806_v7  ;;  %v1718_v16 = vpack.c.bf16 %v1642_v32, %v1553_v15  ;;  %v2228_v59 = vpack.c.b16 %v2224_v55, %v2224_v55  ;;  %v2229_v15 = vpack.c.b16 %v2225_v45, %v2225_v45 }
 0x1ef   : > { %2101 = vst [vmem:[%s7749_s29 + $0xa0] sm:$0xff] %v2037_v31  ;;  %v1380_v34 = vpop.f32.mrf.mxu0  ;;  %v2235_v49 = vsel %vm602_vm0, %v2227_v58, 0  ;;  %v2230_v32 = vpack.c.b16 %v2226_v5, %v2226_v5 }
 0x1f0   : > { %v6409_v35 = vpop.eup %6408  ;;  %v1803_v23 = vunpack.c.l.bf16 %v1718_v16  ;;  %v1804_v24 = vunpack.c.h.bf16 %v1718_v16  ;;  %v1469_v0 = vpop.f32.mrf.mxu1  ;;  %v2238_v62 = vsel %vm602_vm0, %v2228_v59, 0  ;;  %2253 = vmatpush.bf16.msrb.mxu0 %v2235_v49  ;;  %v5594_v59 = vld [vmem:[%s8947_s3 + $0x8] sm:$0xf] }
 0x1f1   : > { %v6411_v36 = vpop.eup %6410  ;;  %v1721_v37 = vpack.c.bf16 %v1469_v0, %v1380_v34  ;;  %2266 = vmatpush.bf16.msrb.mxu1 %v2238_v62  ;;  %v2244_v0 = vsel %vm602_vm0, %v2230_v32, 0 }
 0x1f2   : > { %v2036_v39 = vpack.c.bf16 %v6411_v36, %v6409_v35  ;;  %6416 = vtanh.f32 %v1803_v23  ;;  %5514 = vmatmul.msk.bf16.gmra.mxu0 %vm973_vm6, %v6187_v33  ;;  %2292 = vmatpush.bf16.msrb.mxu3 %v2244_v0 }
 0x1f3   : > { %v6413_v41 = vpop.eup %6412  ;;  %6418 = vtanh.f32 %v1804_v24  ;;  %v1809_v42 = vunpack.c.l.bf16 %v1721_v37  ;;  %v1810_v43 = vunpack.c.h.bf16 %v1721_v37  ;;  %5533 = vmatmul.msk.bf16.gmra.mxu1 %vm973_vm6, %v6187_v33 }
 0x1f4   : > { %v6415_v44 = vpop.eup %6414  ;;  %2100 = vst [vmem:[%s7749_s29 + $0x98] sm:$0xff] %v2036_v39  ;;  %v1555_v9 = vpop.f32.mrf.mxu2 }
 0x1f5   : > { %v2039_v10 = vpack.c.bf16 %v6415_v44, %v6413_v41  ;;  %6420 = vtanh.f32 %v1809_v42  ;;  %v1644_v11 = vpop.f32.mrf.mxu3 }
 0x1f6   : > { %6422 = vtanh.f32 %v1810_v43  ;;  %v1720_v12 = vpack.c.bf16 %v1644_v11, %v1555_v9 }
 0x1f7   : > { %2103 = vst [vmem:[%s7749_s29 + $0xb0] sm:$0xff] %v2039_v10  ;;  %v1382_v13 = vpop.f32.mrf.mxu0 }
 0x1f8   : > { %v6417_v14 = vpop.eup %6416  ;;  %v1807_v17 = vunpack.c.l.bf16 %v1720_v12  ;;  %v1808_v18 = vunpack.c.h.bf16 %v1720_v12  ;;  %v1471_v19 = vpop.f32.mrf.mxu1  ;;  %v5573_v12 = vld [vmem:[%s7322_s25 + $0x1] sm:$0x1] }
 0x1f9   : > { %v6419_v20 = vpop.eup %6418  ;;  %v1723_v21 = vpack.c.bf16 %v1471_v19, %v1382_v13  ;;  %5552 = vmatmul.msk.bf16.gmra.mxu2 %vm973_vm6, %v6187_v33 }
 0x1fa   : > { %v2038_v22 = vpack.c.bf16 %v6419_v20, %v6417_v14  ;;  %6424 = vtanh.f32 %v1807_v17  ;;  %5571 = vmatmul.msk.bf16.gmra.mxu3 %vm973_vm6, %v6187_v33  ;;  %v2241_v33 = vsel %vm602_vm0, %v2229_v15, 0  ;;  %v5586_v17 = vld [vmem:[%s8947_s3] sm:$0xf] }
 0x1fb   : > { %v6421_v25 = vpop.eup %6420  ;;  %6426 = vtanh.f32 %v1808_v18  ;;  %v1813_v26 = vunpack.c.l.bf16 %v1723_v21  ;;  %v1814_v27 = vunpack.c.h.bf16 %v1723_v21  ;;  %2279 = vmatpush.bf16.msrb.mxu2 %v2241_v33  ;;  %v6222_v18 = vld [vmem:[%s8947_s3 + $0xc] sm:$0xf0]  ;;  %v5628_v15 = vld [vmem:[%s8948_s4 + $0x20] sm:$0xf]  ;;  %v6229_v33 = vld [vmem:[%s8948_s4 + $0x24] sm:$0xf] }
 0x1fc   : > { %v6423_v38 = vpop.eup %6422  ;;  %2102 = vst [vmem:[%s7749_s29 + $0xa8] sm:$0xff] %v2038_v22  ;;  %v1558_v40 = vpop.f32.mrf.mxu2 }
 0x1fd   : > { %v2041_v48 = vpack.c.bf16 %v6423_v38, %v6421_v25  ;;  %6428 = vtanh.f32 %v1813_v26  ;;  %v1647_v51 = vpop.f32.mrf.mxu3  ;;  %v5587_v25 = vor.u32 %v6222_v18, %v5586_v17  ;;  %v6220_v26 = vld [vmem:[%s8947_s3 + $0x4] sm:$0xf] }
 0x1fe   : > { %6430 = vtanh.f32 %v1814_v27  ;;  %v1722_v56 = vpack.c.bf16 %v1647_v51, %v1558_v40  ;;  %v5588_v27 = vld [vmem:[%s8947_s3 + $0x10] sm:$0xf0] }
 0x1ff   : > { %2105 = vst [vmem:[%s7749_s29 + $0xc0] sm:$0xff] %v2041_v48  ;;  %v1385_v28 = vpop.f32.mrf.mxu0  ;;  %v5591_v47 = vor.u32 %v6220_v26, %v5588_v27  ;;  %v6230_v27 = vld [vmem:[%s8948_s4 + $0x2c] sm:$0xf] }
 0x200   : > { %v6425_v60 = vpop.eup %6424  ;;  %v1811_v53 = vunpack.c.l.bf16 %v1722_v56  ;;  %v1812_v61 = vunpack.c.h.bf16 %v1722_v56  ;;  %v1474_v29 = vpop.f32.mrf.mxu1 }
 0x201   : > { %v6427_v30 = vpop.eup %6426  ;;  %v1725_v54 = vpack.c.bf16 %v1474_v29, %v1385_v28 }
 0x202   : > { %v2040_v63 = vpack.c.bf16 %v6427_v30, %v6425_v60  ;;  %6432 = vtanh.f32 %v1811_v53  ;;  %5515 = vmatmul.msk.bf16.gmra.mxu0 %vm973_vm6, %v6188_v57  ;;  %v6223_v60 = vld [vmem:[%s8947_s3 + $0x14] sm:$0xf0]  ;;  %v6221_v53 = vld [vmem:[%s8947_s3 + $0xc] sm:$0xf]  ;;  %v5596_v30 = vld [vmem:[%s8947_s3 + $0x18] sm:$0xf0] }
 0x203   : > { %v6429_v1 = vpop.eup %6428  ;;  %6434 = vtanh.f32 %v1812_v61  ;;  %v1817_v2 = vunpack.c.l.bf16 %v1725_v54  ;;  %v1818_v3 = vunpack.c.h.bf16 %v1725_v54  ;;  %5534 = vmatmul.msk.bf16.gmra.mxu1 %vm973_vm6, %v6188_v57  ;;  %v5595_v29 = vor.u32 %v6223_v60, %v5594_v59 }
 0x204   : > { %v6431_v46 = vpop.eup %6430  ;;  %2104 = vst [vmem:[%s7749_s29 + $0xb8] sm:$0xff] %v2040_v63  ;;  %v1560_v4 = vpop.f32.mrf.mxu2  ;;  %v5599_v49 = vor.u32 %v6221_v53, %v5596_v30  ;;  %v6226_v53 = vld [vmem:[%s8948_s4 + $0xc] sm:$0xf] }
 0x205   : > { %v2043_v7 = vpack.c.bf16 %v6431_v46, %v6429_v1  ;;  %6436 = vtanh.f32 %v1817_v2  ;;  %v1649_v8 = vpop.f32.mrf.mxu3 }
 0x206   : > { %6438 = vtanh.f32 %v1818_v3  ;;  %v1724_v31 = vpack.c.bf16 %v1649_v8, %v1560_v4 }
 0x207   : > { %2107 = vst [vmem:[%s7749_s29 + $0xd0] sm:$0xff] %v2043_v7  ;;  %v1387_v16 = vpop.f32.mrf.mxu0 }
 0x208   : > { %v6433_v34 = vpop.eup %6432  ;;  %v1815_v35 = vunpack.c.l.bf16 %v1724_v31  ;;  %v1816_v23 = vunpack.c.h.bf16 %v1724_v31  ;;  %v1476_v24 = vpop.f32.mrf.mxu1  ;;  %v6231_v31 = vld [vmem:[%s8948_s4 + $0x2c] sm:$0xf0] }
 0x209   : > { %v6435_v36 = vpop.eup %6434  ;;  %v1727_v37 = vpack.c.bf16 %v1476_v24, %v1387_v16  ;;  %5553 = vmatmul.msk.bf16.gmra.mxu2 %vm973_vm6, %v6188_v57  ;;  %v5629_v0 = vor.u32 %v6231_v31, %v5628_v15 }
 0x20a   : > { %v2042_v39 = vpack.c.bf16 %v6435_v36, %v6433_v34  ;;  %6440 = vtanh.f32 %v1815_v35  ;;  %5572 = vmatmul.msk.bf16.gmra.mxu3 %vm973_vm6, %v6188_v57  ;;  %v5630_v34 = vld [vmem:[%s8948_s4 + $0x30] sm:$0xf0] }
 0x20b   : > { %v6437_v41 = vpop.eup %6436  ;;  %6442 = vtanh.f32 %v1816_v23  ;;  %v1821_v42 = vunpack.c.l.bf16 %v1727_v37  ;;  %v1822_v43 = vunpack.c.h.bf16 %v1727_v37  ;;  %v5578_v23 = vld [vmem:[%s7366_s24 + $0x2] sm:$0x3] }
 0x20c   : > { %v6439_v44 = vpop.eup %6438  ;;  %2106 = vst [vmem:[%s7749_s29 + $0xc8] sm:$0xff] %v2042_v39  ;;  %v1563_v9 = vpop.f32.mrf.mxu2 }
 0x20d   : > { %v2045_v10 = vpack.c.bf16 %v6439_v44, %v6437_v41  ;;  %6444 = vtanh.f32 %v1821_v42  ;;  %v1652_v11 = vpop.f32.mrf.mxu3  ;;  %v5633_v42 = vor.u32 %v6229_v33, %v5630_v34  ;;  %v6227_v44 = vld [vmem:[%s8948_s4 + $0xc] sm:$0xf0] }
 0x20e   : > { %6446 = vtanh.f32 %v1822_v43  ;;  %v1726_v13 = vpack.c.bf16 %v1652_v11, %v1563_v9  ;;  %v5612_v43 = vld [vmem:[%s8948_s4] sm:$0xf]  ;;  %v6225_v11 = vld [vmem:[%s8948_s4 + $0x4] sm:$0xf] }
 0x20f   : > { %2109 = vst [vmem:[%s7749_s29 + $0xe0] sm:$0xff] %v2045_v10  ;;  %v1390_v14 = vpop.f32.mrf.mxu0 }
 0x210   : > { %v6441_v19 = vpop.eup %6440  ;;  %v1819_v20 = vunpack.c.l.bf16 %v1726_v13  ;;  %v1820_v21 = vunpack.c.h.bf16 %v1726_v13  ;;  %v1479_v22 = vpop.f32.mrf.mxu1 }
 0x211   : > { %v6443_v38 = vpop.eup %6442  ;;  %v1729_v40 = vpack.c.bf16 %v1479_v22, %v1390_v14 }
 0x212   : > { %v2044_v48 = vpack.c.bf16 %v6443_v38, %v6441_v19  ;;  %6448 = vtanh.f32 %v1819_v20  ;;  %5574 = vmatmul.msk.bf16.vlgmr.msra.gmra.mxu0 %vm520_vm2, %v5573_v12  ;;  %v5613_v19 = vor.u32 %v6227_v44, %v5612_v43  ;;  %v5636_v20 = vld [vmem:[%s8948_s4 + $0x28] sm:$0xf]  ;;  %v5638_v38 = vld [vmem:[%s8948_s4 + $0x38] sm:$0xf0] }
 0x213   : > { %v6445_v51 = vpop.eup %6444  ;;  %6450 = vtanh.f32 %v1820_v21  ;;  %v1825_v52 = vunpack.c.l.bf16 %v1729_v40  ;;  %v1826_v55 = vunpack.c.h.bf16 %v1729_v40  ;;  %5575 = vmatmul.msk.bf16.vlgmr.msra.gmra.mxu1 %vm520_vm2, %v5573_v12  ;;  %2334 = vmatpush.bf16.msra.mxu0 %v5587_v25  ;;  %v6232_v21 = vld [vmem:[%s8948_s4 + $0x34] sm:$0xf0]  ;;  %v5716_v44 = vld [vmem:[%s8949_s5 + $0x68] sm:$0xf] }
 0x214   : > { %v6447_v56 = vpop.eup %6446  ;;  %2108 = vst [vmem:[%s7749_s29 + $0xd8] sm:$0xff] %v2044_v48  ;;  %v1565_v57 = vpop.f32.mrf.mxu2  ;;  %2347 = vmatpush.bf16.msra.mxu1 %v5591_v47 }
 0x215   : > { %v2047_v28 = vpack.c.bf16 %v6447_v56, %v6445_v51  ;;  %6452 = vtanh.f32 %v1825_v52  ;;  %v1654_v58 = vpop.f32.mrf.mxu3  ;;  %v5637_v51 = vor.u32 %v6232_v21, %v5636_v20  ;;  %v5620_v56 = vld [vmem:[%s8948_s4 + $0x8] sm:$0xf]  ;;  %v5676_v21 = vld [vmem:[%s8949_s5 + $0x20] sm:$0xf] }
 0x216   : > { %6454 = vtanh.f32 %v1826_v55  ;;  %v1728_v61 = vpack.c.bf16 %v1654_v58, %v1565_v57  ;;  %v5641_v55 = vor.u32 %v6230_v27, %v5638_v38  ;;  %v6228_v57 = vld [vmem:[%s8948_s4 + $0x14] sm:$0xf0]  ;;  %v6239_v27 = vld [vmem:[%s8949_s5 + $0x24] sm:$0xf]  ;;  %v5678_v38 = vld [vmem:[%s8949_s5 + $0x30] sm:$0xf0] }
 0x217   : > { %2111 = vst [vmem:[%s7749_s29 + $0xf0] sm:$0xff] %v2047_v28  ;;  %v1392_v54 = vpop.f32.mrf.mxu0 }
 0x218   : > { %v6449_v62 = vpop.eup %6448  ;;  %v1823_v63 = vunpack.c.l.bf16 %v1728_v61  ;;  %v1824_v50 = vunpack.c.h.bf16 %v1728_v61  ;;  %v1481_v1 = vpop.f32.mrf.mxu1  ;;  %v5622_v61 = vld [vmem:[%s8948_s4 + $0x18] sm:$0xf0] }
 0x219   : > { %v6451_v2 = vpop.eup %6450  ;;  %v1731_v3 = vpack.c.bf16 %v1481_v1, %v1392_v54  ;;  %5576 = vmatmul.msk.bf16.vlgmr.msra.gmra.mxu2 %vm520_vm2, %v5573_v12  ;;  %v5625_v1 = vor.u32 %v6226_v53, %v5622_v61  ;;  %v5681_v61 = vor.u32 %v6239_v27, %v5678_v38 }
 0x21a   : > { %v2046_v45 = vpack.c.bf16 %v6451_v2, %v6449_v62  ;;  %6456 = vtanh.f32 %v1823_v63  ;;  %5577 = vmatmul.msk.bf16.vlgmr.msra.gmra.mxu3 %vm520_vm2, %v5573_v12  ;;  %2360 = vmatpush.bf16.msra.mxu2 %v5595_v29  ;;  %v5614_v12 = vld [vmem:[%s8948_s4 + $0x10] sm:$0xf0] }
 0x21b   : > { %v6453_v46 = vpop.eup %6452  ;;  %6458 = vtanh.f32 %v1824_v50  ;;  %v1829_v4 = vunpack.c.l.bf16 %v1731_v3  ;;  %v1830_v5 = vunpack.c.h.bf16 %v1731_v3  ;;  %2373 = vmatpush.bf16.msra.mxu3 %v5599_v49  ;;  %v5617_v26 = vor.u32 %v6225_v11, %v5614_v12 }
 0x21c   : > { %v6455_v7 = vpop.eup %6454  ;;  %2110 = vst [vmem:[%s7749_s29 + $0xe8] sm:$0xff] %v2046_v45  ;;  %v1568_v8 = vpop.f32.mrf.mxu2  ;;  %v5621_v49 = vor.u32 %v6228_v57, %v5620_v56  ;;  %v5708_v45 = vld [vmem:[%s8949_s5 + $0x60] sm:$0xf]  ;;  %v6244_v57 = vld [vmem:[%s8949_s5 + $0x4c] sm:$0xf] }
 0x21d   : > { %v2049_v32 = vpack.c.bf16 %v6455_v7, %v6453_v46  ;;  %6460 = vtanh.f32 %v1829_v4  ;;  %v1657_v16 = vpop.f32.mrf.mxu3  ;;  %v6249_v46 = vld [vmem:[%s8949_s5 + $0x6c] sm:$0xf0]  ;;  %v6247_v7 = vld [vmem:[%s8949_s5 + $0x64] sm:$0xf] }
 0x21e   : > { %6462 = vtanh.f32 %v1830_v5  ;;  %v1730_v35 = vpack.c.bf16 %v1657_v16, %v1568_v8  ;;  %v5710_v8 = vld [vmem:[%s8949_s5 + $0x70] sm:$0xf0]  ;;  %v5709_v16 = vor.u32 %v6249_v46, %v5708_v45 }
 0x21f   : > { %2113 = vst [vmem:[%s7749_s29 + $0x100] sm:$0xff] %v2049_v32  ;;  %v1395_v24 = vpop.f32.mrf.mxu0  ;;  %v7938_v32 = vld [vmem:[%s7425_s22 + $0x4] sm:$0xf] }
 0x220   : > { %v6457_v36 = vpop.eup %6456  ;;  %v1827_v37 = vunpack.c.l.bf16 %v1730_v35  ;;  %v1828_v39 = vunpack.c.h.bf16 %v1730_v35  ;;  %v1484_v41 = vpop.f32.mrf.mxu1 }
 0x221   : > { %v6459_v9 = vpop.eup %6458  ;;  %v1733_v10 = vpack.c.bf16 %v1484_v41, %v1395_v24  ;;  %v5713_v24 = vor.u32 %v6247_v7, %v5710_v8  ;;  %v6243_v41 = vld [vmem:[%s8949_s5 + $0x44] sm:$0xf]  ;;  %v6242_v7 = vld [vmem:[%s8949_s5 + $0x34] sm:$0xf0] }
 0x222   : > { %v2048_v13 = vpack.c.bf16 %v6459_v9, %v6457_v36  ;;  %6464 = vtanh.f32 %v1827_v37  ;;  %5579 = vmatmul.msk.bf16.vlgmr.msrb.gmra.mxu0 %vm598_vm3, %v5578_v23  ;;  %v6245_v36 = vld [vmem:[%s8949_s5 + $0x4c] sm:$0xf0] }
 0x223   : > { %v6461_v14 = vpop.eup %6460  ;;  %6466 = vtanh.f32 %v1828_v39  ;;  %v1833_v17 = vunpack.c.l.bf16 %v1733_v10  ;;  %v1834_v18 = vunpack.c.h.bf16 %v1733_v10  ;;  %5580 = vmatmul.msk.bf16.vlgmr.msrb.gmra.mxu1 %vm598_vm3, %v5578_v23  ;;  %2444 = vmatpush.bf16.msrb.mxu0 %v5629_v0  ;;  %v5692_v0 = vld [vmem:[%s8949_s5 + $0x40] sm:$0xf] }
 0x224   : > { %v6463_v22 = vpop.eup %6462  ;;  %2112 = vst [vmem:[%s7749_s29 + $0xf8] sm:$0xff] %v2048_v13  ;;  %v1570_v25 = vpop.f32.mrf.mxu2  ;;  %2458 = vmatpush.bf16.msrb.mxu1 %v5633_v42  ;;  %v5694_v42 = vld [vmem:[%s8949_s5 + $0x50] sm:$0xf0]  ;;  %v5693_v12 = vor.u32 %v6245_v36, %v5692_v0  ;;  %v6250_v13 = vld [vmem:[%s8949_s5 + $0x74] sm:$0xf0] }
 0x225   : > { %v2051_v40 = vpack.c.bf16 %v6463_v22, %v6461_v14  ;;  %6468 = vtanh.f32 %v1833_v17  ;;  %v1659_v47 = vpop.f32.mrf.mxu3  ;;  %v6248_v14 = vld [vmem:[%s8949_s5 + $0x6c] sm:$0xf]  ;;  %v5718_v17 = vld [vmem:[%s8949_s5 + $0x78] sm:$0xf0]  ;;  %v5697_v20 = vor.u32 %v6243_v41, %v5694_v42  ;;  %v6241_v22 = vld [vmem:[%s8949_s5 + $0x2c] sm:$0xf0] }
 0x226   : > { %6470 = vtanh.f32 %v1834_v18  ;;  %v1732_v48 = vpack.c.bf16 %v1659_v47, %v1570_v25  ;;  %v5717_v47 = vor.u32 %v6250_v13, %v5716_v44  ;;  %v5677_v56 = vor.u32 %v6241_v22, %v5676_v21 }
 0x227   : > { %2115 = vst [vmem:[%s7749_s29 + $0x110] sm:$0xff] %v2051_v40  ;;  %v1397_v52 = vpop.f32.mrf.mxu0  ;;  %2445 = vmatpush.bf16.msrb.mxu0 %v5613_v19 }
 0x228   : > { %v6465_v28 = vpop.eup %6464  ;;  %v1831_v58 = vunpack.c.l.bf16 %v1732_v48  ;;  %v1832_v59 = vunpack.c.h.bf16 %v1732_v48  ;;  %v1486_v60 = vpop.f32.mrf.mxu1  ;;  %2459 = vmatpush.bf16.msrb.mxu1 %v5617_v26  ;;  %v5700_v48 = vld [vmem:[%s8949_s5 + $0x48] sm:$0xf] }
 0x229   : > { %v6467_v29 = vpop.eup %6466  ;;  %v1735_v30 = vpack.c.bf16 %v1486_v60, %v1397_v52  ;;  %5581 = vmatmul.msk.bf16.vlgmr.msrb.gmra.mxu2 %vm598_vm3, %v5578_v23 }
 0x22a   : > { %v2050_v54 = vpack.c.bf16 %v6467_v29, %v6465_v28  ;;  %6472 = vtanh.f32 %v1831_v58  ;;  %5582 = vmatmul.msk.bf16.vlgmr.msrb.gmra.mxu3 %vm598_vm3, %v5578_v23  ;;  %2472 = vmatpush.bf16.msrb.mxu2 %v5637_v51  ;;  %v6246_v51 = vld [vmem:[%s8949_s5 + $0x54] sm:$0xf0]  ;;  %v5702_v28 = vld [vmem:[%s8949_s5 + $0x58] sm:$0xf0]  ;;  %v5660_v29 = vld [vmem:[%s8949_s5] sm:$0xf] }
 0x22b   : > { %v6469_v62 = vpop.eup %6468  ;;  %6474 = vtanh.f32 %v1832_v59  ;;  %v1837_v63 = vunpack.c.l.bf16 %v1735_v30  ;;  %v1838_v50 = vunpack.c.h.bf16 %v1735_v30  ;;  %2486 = vmatpush.bf16.msrb.mxu3 %v5641_v55  ;;  %v5721_v55 = vor.u32 %v6248_v14, %v5718_v17  ;;  %v6237_v30 = vld [vmem:[%s8949_s5 + $0xc] sm:$0xf0] }
 0x22c   : > { %v6471_v2 = vpop.eup %6470  ;;  %2114 = vst [vmem:[%s7749_s29 + $0x108] sm:$0xff] %v2050_v54  ;;  %v1573_v3 = vpop.f32.mrf.mxu2 }
 0x22d   : > { %v2053_v4 = vpack.c.bf16 %v6471_v2, %v6469_v62  ;;  %6476 = vtanh.f32 %v1837_v63  ;;  %v1662_v5 = vpop.f32.mrf.mxu3  ;;  %v6235_v62 = vld [vmem:[%s8949_s5 + $0x4] sm:$0xf]  ;;  %v5662_v63 = vld [vmem:[%s8949_s5 + $0x10] sm:$0xf0]  ;;  %v5705_v2 = vor.u32 %v6244_v57, %v5702_v28 }
 0x22e   : > { %6478 = vtanh.f32 %v1838_v50  ;;  %v1734_v15 = vpack.c.bf16 %v1662_v5, %v1573_v3  ;;  %2473 = vmatpush.bf16.msrb.mxu2 %v5621_v49  ;;  %v5684_v5 = vld [vmem:[%s8949_s5 + $0x28] sm:$0xf] }
 0x22f   : > { %2117 = vst [vmem:[%s7749_s29 + $0x120] sm:$0xff] %v2053_v4  ;;  %v1400_v31 = vpop.f32.mrf.mxu0  ;;  %2487 = vmatpush.bf16.msrb.mxu3 %v5625_v1  ;;  %v5701_v1 = vor.u32 %v6246_v51, %v5700_v48  ;;  %v5661_v4 = vor.u32 %v6237_v30, %v5660_v29  ;;  %v6233_v30 = vld [vmem:[%s7543_s6 + $0x10] sm:$0xff] }
 0x230   : > { %v6473_v33 = vpop.eup %6472  ;;  %v1835_v34 = vunpack.c.l.bf16 %v1734_v15  ;;  %v1836_v35 = vunpack.c.h.bf16 %v1734_v15  ;;  %v1489_v23 = vpop.f32.mrf.mxu1 }
 0x231   : > { %v6475_v37 = vpop.eup %6474  ;;  %v1737_v39 = vpack.c.bf16 %v1489_v23, %v1400_v31  ;;  %v5665_v31 = vor.u32 %v6235_v62, %v5662_v63  ;;  %v6224_v23 = vld [vmem:[%s7532_s16 + $0x8] sm:$0xff] }
 0x232   : > { %v2052_v43 = vpack.c.bf16 %v6475_v37, %v6473_v33  ;;  %6480 = vtanh.f32 %v1835_v34  ;;  %5600 = vmatmul.msk.bf16.vlgmr.msra.gmra.mxu0 %vm692_vm4, %v7938_v32  ;;  %v5668_v37 = vld [vmem:[%s8949_s5 + $0x8] sm:$0xf] }
 0x233   : > { %v6477_v9 = vpop.eup %6476  ;;  %6482 = vtanh.f32 %v1836_v35  ;;  %v1841_v10 = vunpack.c.l.bf16 %v1737_v39  ;;  %v1842_v11 = vunpack.c.h.bf16 %v1737_v39  ;;  %5601 = vmatmul.msk.bf16.vlgmr.msra.gmra.mxu1 %vm692_vm4, %v7938_v32  ;;  %2615 = vmatpush.bf16.msra.mxu0 %v5709_v16  ;;  %v5686_v16 = vld [vmem:[%s8949_s5 + $0x38] sm:$0xf0]  ;;  %v6238_v39 = vld [vmem:[%s8949_s5 + $0x14] sm:$0xf0] }
 0x234   : > { %v6479_v18 = vpop.eup %6478  ;;  %2116 = vst [vmem:[%s7749_s29 + $0x118] sm:$0xff] %v2052_v43  ;;  %v1575_v19 = vpop.f32.mrf.mxu2  ;;  %2634 = vmatpush.bf16.msra.mxu1 %v5713_v24  ;;  %v5685_v24 = vor.u32 %v6242_v7, %v5684_v5  ;;  %v5669_v14 = vor.u32 %v6238_v39, %v5668_v37 }
 0x235   : > { %v2055_v25 = vpack.c.bf16 %v6479_v18, %v6477_v9  ;;  %6484 = vtanh.f32 %v1841_v10  ;;  %v1664_v26 = vpop.f32.mrf.mxu3  ;;  %v6236_v9 = vld [vmem:[%s8949_s5 + $0xc] sm:$0xf]  ;;  %v5670_v10 = vld [vmem:[%s8949_s5 + $0x18] sm:$0xf0] }
 0x236   : > { %6486 = vtanh.f32 %v1842_v11  ;;  %v1736_v40 = vpack.c.bf16 %v1664_v26, %v1575_v19 }
 0x237   : > { %2119 = vst [vmem:[%s7749_s29 + $0x130] sm:$0xff] %v2055_v25  ;;  %v1402_v52 = vpop.f32.mrf.mxu0  ;;  %2616 = vmatpush.bf16.msra.mxu0 %v5693_v12 }
 0x238   : > { %v6481_v58 = vpop.eup %6480  ;;  %v1839_v59 = vunpack.c.l.bf16 %v1736_v40  ;;  %v1840_v60 = vunpack.c.h.bf16 %v1736_v40  ;;  %v1491_v53 = vpop.f32.mrf.mxu1  ;;  %2635 = vmatpush.bf16.msra.mxu1 %v5697_v20  ;;  %v5673_v20 = vor.u32 %v6236_v9, %v5670_v10  ;;  %v6234_v10 = vld [vmem:[%s7543_s6 + $0x18] sm:$0xff] }
 0x239   : > { %v6483_v54 = vpop.eup %6482  ;;  %v1739_v49 = vpack.c.bf16 %v1491_v53, %v1402_v52  ;;  %5602 = vmatmul.msk.bf16.vlgmr.msra.gmra.mxu2 %vm692_vm4, %v7938_v32 }
 0x23a   : > { %v2054_v50 = vpack.c.bf16 %v6483_v54, %v6481_v58  ;;  %6488 = vtanh.f32 %v1839_v59  ;;  %5603 = vmatmul.msk.bf16.vlgmr.msra.gmra.mxu3 %vm692_vm4, %v7938_v32  ;;  %2653 = vmatpush.bf16.msra.mxu2 %v5717_v47  ;;  %v6240_v32 = vld [vmem:[%s8949_s5 + $0x2c] sm:$0xf] }
 0x23b   : > { %v6485_v3 = vpop.eup %6484  ;;  %6490 = vtanh.f32 %v1840_v60  ;;  %v1845_v45 = vunpack.c.l.bf16 %v1739_v49  ;;  %v1846_v46 = vunpack.c.h.bf16 %v1739_v49  ;;  %2672 = vmatpush.bf16.msra.mxu3 %v5721_v55  ;;  %2617 = vmatpush.bf16.msra.mxu0 %v5677_v56  ;;  %v5689_v36 = vor.u32 %v6240_v32, %v5686_v16 }
 0x23c   : > { %v6487_v8 = vpop.eup %6486  ;;  %2118 = vst [vmem:[%s7749_s29 + $0x128] sm:$0xff] %v2054_v50  ;;  %v1578_v15 = vpop.f32.mrf.mxu2  ;;  %2636 = vmatpush.bf16.msra.mxu1 %v5681_v61 }
 0x23d   : > { %v2057_v33 = vpack.c.bf16 %v6487_v8, %v6485_v3  ;;  %6492 = vtanh.f32 %v1845_v45  ;;  %v1667_v34 = vpop.f32.mrf.mxu3 }
 0x23e   : > { %6494 = vtanh.f32 %v1846_v46  ;;  %v1738_v35 = vpack.c.bf16 %v1667_v34, %v1578_v15  ;;  %2654 = vmatpush.bf16.msra.mxu2 %v5701_v1 }
 0x23f   : > { %2121 = vst [vmem:[%s7749_s29 + $0x140] sm:$0xff] %v2057_v33  ;;  %v1405_v0 = vpop.f32.mrf.mxu0  ;;  %2673 = vmatpush.bf16.msra.mxu3 %v5705_v2  ;;  %2618 = vmatpush.bf16.msra.mxu0 %v5661_v4 }
 0x240   : > { %v6489_v41 = vpop.eup %6488  ;;  %v1843_v42 = vunpack.c.l.bf16 %v1738_v35  ;;  %v1844_v43 = vunpack.c.h.bf16 %v1738_v35  ;;  %v1494_v44 = vpop.f32.mrf.mxu1  ;;  %2637 = vmatpush.bf16.msra.mxu1 %v5665_v31 }
 0x241   : > { %v6491_v11 = vpop.eup %6490  ;;  %v1741_v12 = vpack.c.bf16 %v1494_v44, %v1405_v0 }
 0x242   : > { %v2056_v13 = vpack.c.bf16 %v6491_v11, %v6489_v41  ;;  %6496 = vtanh.f32 %v1843_v42  ;;  %5642 = vmatmul.msk.bf16.vlgmr.msrb.gmra.mxu0 %vm803_vm5, %v6224_v23  ;;  %2655 = vmatpush.bf16.msra.mxu2 %v5685_v24 }
 0x243   : > { %v6493_v17 = vpop.eup %6492  ;;  %6498 = vtanh.f32 %v1844_v43  ;;  %v1849_v18 = vunpack.c.l.bf16 %v1741_v12  ;;  %v1850_v19 = vunpack.c.h.bf16 %v1741_v12  ;;  %5643 = vmatmul.msk.bf16.vlgmr.msrb.gmra.mxu1 %vm803_vm5, %v6224_v23  ;;  %2674 = vmatpush.bf16.msra.mxu3 %v5689_v36 }
 0x244   : > { %v6495_v21 = vpop.eup %6494  ;;  %2120 = vst [vmem:[%s7749_s29 + $0x138] sm:$0xff] %v2056_v13  ;;  %v1580_v22 = vpop.f32.mrf.mxu2 }
 0x245   : > { %v2059_v25 = vpack.c.bf16 %v6495_v21, %v6493_v17  ;;  %6500 = vtanh.f32 %v1849_v18  ;;  %v1669_v26 = vpop.f32.mrf.mxu3 }
 0x246   : > { %6502 = vtanh.f32 %v1850_v19  ;;  %v1740_v27 = vpack.c.bf16 %v1669_v26, %v1580_v22  ;;  %2656 = vmatpush.bf16.msra.mxu2 %v5669_v14 }
 0x247   : > { %2123 = vst [vmem:[%s7749_s29 + $0x150] sm:$0xff] %v2059_v25  ;;  %v1407_v38 = vpop.f32.mrf.mxu0  ;;  %2675 = vmatpush.bf16.msra.mxu3 %v5673_v20 }
 0x248   : > { %v6497_v40 = vpop.eup %6496  ;;  %v1847_v47 = vunpack.c.l.bf16 %v1740_v27  ;;  %v1848_v48 = vunpack.c.h.bf16 %v1740_v27  ;;  %v1496_v51 = vpop.f32.mrf.mxu1 }
 0x249   : > { %v6499_v52 = vpop.eup %6498  ;;  %v1743_v55 = vpack.c.bf16 %v1496_v51, %v1407_v38  ;;  %5644 = vmatmul.msk.bf16.vlgmr.msrb.gmra.mxu2 %vm803_vm5, %v6224_v23 }
 0x24a   : > { %v2058_v56 = vpack.c.bf16 %v6499_v52, %v6497_v40  ;;  %6504 = vtanh.f32 %v1847_v47  ;;  %5645 = vmatmul.msk.bf16.vlgmr.msrb.gmra.mxu3 %vm803_vm5, %v6224_v23 }
 0x24b   : > { %v6501_v57 = vpop.eup %6500  ;;  %6506 = vtanh.f32 %v1848_v48  ;;  %v1853_v28 = vunpack.c.l.bf16 %v1743_v55  ;;  %v1854_v58 = vunpack.c.h.bf16 %v1743_v55 }
 0x24c   : > { %v6503_v59 = vpop.eup %6502  ;;  %2122 = vst [vmem:[%s7749_s29 + $0x148] sm:$0xff] %v2058_v56  ;;  %v1583_v60 = vpop.f32.mrf.mxu2 }
 0x24d   : > { %v2061_v53 = vpack.c.bf16 %v6503_v59, %v6501_v57  ;;  %6508 = vtanh.f32 %v1853_v28  ;;  %v1672_v61 = vpop.f32.mrf.mxu3 }
 0x24e   : > { %6510 = vtanh.f32 %v1854_v58  ;;  %v1742_v29 = vpack.c.bf16 %v1672_v61, %v1583_v60 }
 0x24f   : > { %2125 = vst [vmem:[%s7749_s29 + $0x160] sm:$0xff] %v2061_v53  ;;  %v1410_v54 = vpop.f32.mrf.mxu0 }
 0x250   : > { %v6505_v49 = vpop.eup %6504  ;;  %v1851_v62 = vunpack.c.l.bf16 %v1742_v29  ;;  %v1852_v63 = vunpack.c.h.bf16 %v1742_v29  ;;  %v1499_v50 = vpop.f32.mrf.mxu1 }
 0x251   : > { %v6507_v1 = vpop.eup %6506  ;;  %v1745_v2 = vpack.c.bf16 %v1499_v50, %v1410_v54 }
 0x252   : > { %v2060_v3 = vpack.c.bf16 %v6507_v1, %v6505_v49  ;;  %6512 = vtanh.f32 %v1851_v62  ;;  %5722 = vmatmul.msk.bf16.vlgmr.msra.gmra.mxu0 %vm973_vm6, %v6233_v30 }
 0x253   : > { %v6509_v45 = vpop.eup %6508  ;;  %6514 = vtanh.f32 %v1852_v63  ;;  %v1857_v46 = vunpack.c.l.bf16 %v1745_v2  ;;  %v1858_v4 = vunpack.c.h.bf16 %v1745_v2  ;;  %5724 = vmatmul.msk.bf16.vlgmr.msra.gmra.mxu1 %vm973_vm6, %v6233_v30 }
 0x254   : > { %v6511_v5 = vpop.eup %6510  ;;  %2124 = vst [vmem:[%s7749_s29 + $0x158] sm:$0xff] %v2060_v3  ;;  %v1585_v7 = vpop.f32.mrf.mxu2 }
 0x255   : > { %v2063_v8 = vpack.c.bf16 %v6511_v5, %v6509_v45  ;;  %6516 = vtanh.f32 %v1857_v46  ;;  %v1674_v15 = vpop.f32.mrf.mxu3 }
 0x256   : > { %6518 = vtanh.f32 %v1858_v4  ;;  %v1744_v31 = vpack.c.bf16 %v1674_v15, %v1585_v7 }
 0x257   : > { %2127 = vst [vmem:[%s7749_s29 + $0x170] sm:$0xff] %v2063_v8  ;;  %v1412_v32 = vpop.f32.mrf.mxu0 }
 0x258   : > { %v6513_v16 = vpop.eup %6512  ;;  %v1855_v33 = vunpack.c.l.bf16 %v1744_v31  ;;  %v1856_v34 = vunpack.c.h.bf16 %v1744_v31  ;;  %v1501_v35 = vpop.f32.mrf.mxu1 }
 0x259   : > { %v6515_v23 = vpop.eup %6514  ;;  %v1747_v24 = vpack.c.bf16 %v1501_v35, %v1412_v32  ;;  %5726 = vmatmul.msk.bf16.vlgmr.msra.gmra.mxu2 %vm973_vm6, %v6233_v30 }
 0x25a   : > { %v2062_v0 = vpack.c.bf16 %v6515_v23, %v6513_v16  ;;  %6520 = vtanh.f32 %v1855_v33  ;;  %5728 = vmatmul.msk.bf16.vlgmr.msra.gmra.mxu3 %vm973_vm6, %v6233_v30 }
 0x25b   : > { %v6517_v36 = vpop.eup %6516  ;;  %6522 = vtanh.f32 %v1856_v34  ;;  %v1861_v37 = vunpack.c.l.bf16 %v1747_v24  ;;  %v1862_v39 = vunpack.c.h.bf16 %v1747_v24 }
 0x25c   : > { %v6519_v41 = vpop.eup %6518  ;;  %2126 = vst [vmem:[%s7749_s29 + $0x168] sm:$0xff] %v2062_v0  ;;  %v1588_v42 = vpop.f32.mrf.mxu2 }
 0x25d   : > { %v2065_v43 = vpack.c.bf16 %v6519_v41, %v6517_v36  ;;  %6524 = vtanh.f32 %v1861_v37  ;;  %v1677_v44 = vpop.f32.mrf.mxu3 }
 0x25e   : > { %6526 = vtanh.f32 %v1862_v39  ;;  %v1746_v9 = vpack.c.bf16 %v1677_v44, %v1588_v42 }
 0x25f   : > { %2129 = vst [vmem:[%s7749_s29 + $0x180] sm:$0xff] %v2065_v43  ;;  %v1415_v11 = vpop.f32.mrf.mxu0 }
 0x260   : > { %v6521_v12 = vpop.eup %6520  ;;  %v1859_v13 = vunpack.c.l.bf16 %v1746_v9  ;;  %v1860_v14 = vunpack.c.h.bf16 %v1746_v9  ;;  %v1504_v17 = vpop.f32.mrf.mxu1 }
 0x261   : > { %v6523_v18 = vpop.eup %6522  ;;  %v1749_v19 = vpack.c.bf16 %v1504_v17, %v1415_v11 }
 0x262   : > { %v2064_v20 = vpack.c.bf16 %v6523_v18, %v6521_v12  ;;  %6528 = vtanh.f32 %v1859_v13  ;;  %5723 = vmatmul.msk.bf16.gmra.mxu0 %vm973_vm6, %v6234_v10 }
 0x263   : > { %v6525_v21 = vpop.eup %6524  ;;  %6530 = vtanh.f32 %v1860_v14  ;;  %v1865_v22 = vunpack.c.l.bf16 %v1749_v19  ;;  %v1866_v25 = vunpack.c.h.bf16 %v1749_v19  ;;  %5725 = vmatmul.msk.bf16.gmra.mxu1 %vm973_vm6, %v6234_v10 }
 0x264   : > { %v6527_v26 = vpop.eup %6526  ;;  %2128 = vst [vmem:[%s7749_s29 + $0x178] sm:$0xff] %v2064_v20  ;;  %v1590_v27 = vpop.f32.mrf.mxu2 }
 0x265   : > { %v2067_v38 = vpack.c.bf16 %v6527_v26, %v6525_v21  ;;  %6532 = vtanh.f32 %v1865_v22  ;;  %v1679_v40 = vpop.f32.mrf.mxu3 }
 0x266   : > { %6534 = vtanh.f32 %v1866_v25  ;;  %v1748_v47 = vpack.c.bf16 %v1679_v40, %v1590_v27 }
 0x267   : > { %2131 = vst [vmem:[%s7749_s29 + $0x190] sm:$0xff] %v2067_v38  ;;  %v1417_v48 = vpop.f32.mrf.mxu0 }
 0x268   : > { %v6529_v51 = vpop.eup %6528  ;;  %v1863_v52 = vunpack.c.l.bf16 %v1748_v47  ;;  %v1864_v55 = vunpack.c.h.bf16 %v1748_v47  ;;  %v1506_v56 = vpop.f32.mrf.mxu1 }
 0x269   : > { %v6531_v57 = vpop.eup %6530  ;;  %v1751_v28 = vpack.c.bf16 %v1506_v56, %v1417_v48  ;;  %5727 = vmatmul.msk.bf16.gmra.mxu2 %vm973_vm6, %v6234_v10 }
 0x26a   : > { %v2066_v58 = vpack.c.bf16 %v6531_v57, %v6529_v51  ;;  %6536 = vtanh.f32 %v1863_v52  ;;  %5729 = vmatmul.msk.bf16.gmra.mxu3 %vm973_vm6, %v6234_v10 }
 0x26b   : > { %v6533_v59 = vpop.eup %6532  ;;  %6538 = vtanh.f32 %v1864_v55  ;;  %v1869_v60 = vunpack.c.l.bf16 %v1751_v28  ;;  %v1870_v53 = vunpack.c.h.bf16 %v1751_v28 }
 0x26c   : > { %v6535_v61 = vpop.eup %6534  ;;  %2130 = vst [vmem:[%s7749_s29 + $0x188] sm:$0xff] %v2066_v58  ;;  %v1593_v29 = vpop.f32.mrf.mxu2 }
 0x26d   : > { %v2069_v30 = vpack.c.bf16 %v6535_v61, %v6533_v59  ;;  %6540 = vtanh.f32 %v1869_v60  ;;  %v1682_v54 = vpop.f32.mrf.mxu3 }
 0x26e   : > { %6542 = vtanh.f32 %v1870_v53  ;;  %v1750_v49 = vpack.c.bf16 %v1682_v54, %v1593_v29 }
 0x26f   : > { %2133 = vst [vmem:[%s7749_s29 + $0x1a0] sm:$0xff] %v2069_v30  ;;  %v1420_v62 = vpop.f32.mrf.mxu0 }
 0x270   : > { %v6537_v63 = vpop.eup %6536  ;;  %v1867_v50 = vunpack.c.l.bf16 %v1750_v49  ;;  %v1868_v1 = vunpack.c.h.bf16 %v1750_v49  ;;  %v1509_v2 = vpop.f32.mrf.mxu1 }
 0x271   : > { %v6539_v3 = vpop.eup %6538  ;;  %v1753_v45 = vpack.c.bf16 %v1509_v2, %v1420_v62 }
 0x272   : > { %v2068_v46 = vpack.c.bf16 %v6539_v3, %v6537_v63  ;;  %6544 = vtanh.f32 %v1867_v50 }
 0x273   : > { %v6541_v4 = vpop.eup %6540  ;;  %6546 = vtanh.f32 %v1868_v1  ;;  %v1873_v5 = vunpack.c.l.bf16 %v1753_v45  ;;  %v1874_v7 = vunpack.c.h.bf16 %v1753_v45 }
 0x274   : > { %v6543_v8 = vpop.eup %6542  ;;  %2132 = vst [vmem:[%s7749_s29 + $0x198] sm:$0xff] %v2068_v46  ;;  %v1595_v15 = vpop.f32.mrf.mxu2 }
 0x275   : > { %v2071_v31 = vpack.c.bf16 %v6543_v8, %v6541_v4  ;;  %6548 = vtanh.f32 %v1873_v5  ;;  %v1684_v32 = vpop.f32.mrf.mxu3 }
 0x276   : > { %6550 = vtanh.f32 %v1874_v7  ;;  %v1752_v16 = vpack.c.bf16 %v1684_v32, %v1595_v15 }
 0x277   : > { %2135 = vst [vmem:[%s7749_s29 + $0x1b0] sm:$0xff] %v2071_v31  ;;  %v1422_v33 = vpop.f32.mrf.mxu0 }
 0x278   : > { %v6545_v34 = vpop.eup %6544  ;;  %v1871_v35 = vunpack.c.l.bf16 %v1752_v16  ;;  %v1872_v23 = vunpack.c.h.bf16 %v1752_v16  ;;  %v1511_v24 = vpop.f32.mrf.mxu1 }
 0x279   : > { %v6547_v0 = vpop.eup %6546  ;;  %v1755_v36 = vpack.c.bf16 %v1511_v24, %v1422_v33 }
 0x27a   : > { %v2070_v37 = vpack.c.bf16 %v6547_v0, %v6545_v34  ;;  %6552 = vtanh.f32 %v1871_v35 }
 0x27b   : > { %v6549_v39 = vpop.eup %6548  ;;  %6554 = vtanh.f32 %v1872_v23  ;;  %v1877_v41 = vunpack.c.l.bf16 %v1755_v36  ;;  %v1878_v42 = vunpack.c.h.bf16 %v1755_v36 }
 0x27c   : > { %v6551_v43 = vpop.eup %6550  ;;  %2134 = vst [vmem:[%s7749_s29 + $0x1a8] sm:$0xff] %v2070_v37  ;;  %v1598_v44 = vpop.f32.mrf.mxu2 }
 0x27d   : > { %v2073_v9 = vpack.c.bf16 %v6551_v43, %v6549_v39  ;;  %6556 = vtanh.f32 %v1877_v41  ;;  %v1687_v10 = vpop.f32.mrf.mxu3 }
 0x27e   : > { %6558 = vtanh.f32 %v1878_v42  ;;  %v1754_v11 = vpack.c.bf16 %v1687_v10, %v1598_v44 }
 0x27f   : > { %2137 = vst [vmem:[%s7749_s29 + $0x1c0] sm:$0xff] %v2073_v9  ;;  %v1425_v12 = vpop.f32.mrf.mxu0 }
 0x280   : > { %v6553_v13 = vpop.eup %6552  ;;  %v1875_v14 = vunpack.c.l.bf16 %v1754_v11  ;;  %v1876_v17 = vunpack.c.h.bf16 %v1754_v11  ;;  %v1514_v18 = vpop.f32.mrf.mxu1 }
 0x281   : > { %v6555_v19 = vpop.eup %6554  ;;  %v1757_v20 = vpack.c.bf16 %v1514_v18, %v1425_v12 }
 0x282   : > { %v2072_v21 = vpack.c.bf16 %v6555_v19, %v6553_v13  ;;  %6560 = vtanh.f32 %v1875_v14 }
 0x283   : > { %v6557_v22 = vpop.eup %6556  ;;  %6562 = vtanh.f32 %v1876_v17  ;;  %v1881_v25 = vunpack.c.l.bf16 %v1757_v20  ;;  %v1882_v26 = vunpack.c.h.bf16 %v1757_v20 }
 0x284   : > { %v6559_v27 = vpop.eup %6558  ;;  %2136 = vst [vmem:[%s7749_s29 + $0x1b8] sm:$0xff] %v2072_v21  ;;  %v1600_v38 = vpop.f32.mrf.mxu2 }
 0x285   : > { %v2075_v40 = vpack.c.bf16 %v6559_v27, %v6557_v22  ;;  %6564 = vtanh.f32 %v1881_v25  ;;  %v1689_v47 = vpop.f32.mrf.mxu3 }
 0x286   : > { %6566 = vtanh.f32 %v1882_v26  ;;  %v1756_v48 = vpack.c.bf16 %v1689_v47, %v1600_v38 }
 0x287   : > { %2139 = vst [vmem:[%s7749_s29 + $0x1d0] sm:$0xff] %v2075_v40  ;;  %v1427_v51 = vpop.f32.mrf.mxu0 }
 0x288   : > { %v6561_v52 = vpop.eup %6560  ;;  %v1879_v55 = vunpack.c.l.bf16 %v1756_v48  ;;  %v1880_v56 = vunpack.c.h.bf16 %v1756_v48  ;;  %v1516_v57 = vpop.f32.mrf.mxu1 }
 0x289   : > { %v6563_v28 = vpop.eup %6562  ;;  %v1759_v58 = vpack.c.bf16 %v1516_v57, %v1427_v51 }
 0x28a   : > { %v2074_v59 = vpack.c.bf16 %v6563_v28, %v6561_v52  ;;  %6568 = vtanh.f32 %v1879_v55 }
 0x28b   : > { %v6565_v60 = vpop.eup %6564  ;;  %6570 = vtanh.f32 %v1880_v56  ;;  %v1885_v53 = vunpack.c.l.bf16 %v1759_v58  ;;  %v1886_v61 = vunpack.c.h.bf16 %v1759_v58 }
 0x28c   : > { %v6567_v29 = vpop.eup %6566  ;;  %2138 = vst [vmem:[%s7749_s29 + $0x1c8] sm:$0xff] %v2074_v59  ;;  %v1603_v30 = vpop.f32.mrf.mxu2 }
 0x28d   : > { %v2077_v54 = vpack.c.bf16 %v6567_v29, %v6565_v60  ;;  %6572 = vtanh.f32 %v1885_v53  ;;  %v1692_v49 = vpop.f32.mrf.mxu3 }
 0x28e   : > { %6574 = vtanh.f32 %v1886_v61  ;;  %v1758_v62 = vpack.c.bf16 %v1692_v49, %v1603_v30 }
 0x28f   : > { %2141 = vst [vmem:[%s7749_s29 + $0x1e0] sm:$0xff] %v2077_v54  ;;  %v2174_v63 = vpop.f32.mrf.mxu0 }
 0x290   : > { %v6569_v50 = vpop.eup %6568  ;;  %v1883_v1 = vunpack.c.l.bf16 %v1758_v62  ;;  %v1884_v2 = vunpack.c.h.bf16 %v1758_v62  ;;  %v2187_v3 = vpop.f32.mrf.mxu1 }
 0x291   : > { %v6571_v45 = vpop.eup %6570 }
 0x292   : > { %v2076_v46 = vpack.c.bf16 %v6571_v45, %v6569_v50  ;;  %6576 = vtanh.f32 %v1883_v1 }
 0x293   : > { %v6573_v4 = vpop.eup %6572  ;;  %6578 = vtanh.f32 %v1884_v2 }
 0x294   : > { %v6575_v5 = vpop.eup %6574  ;;  %2140 = vst [vmem:[%s7749_s29 + $0x1d8] sm:$0xff] %v2076_v46  ;;  %v1605_v7 = vpop.f32.mrf.mxu2 }
 0x295   : > { %v2079_v8 = vpack.c.bf16 %v6575_v5, %v6573_v4  ;;  %v1694_v15 = vpop.f32.mrf.mxu3 }
 0x296   : > { %v1760_v31 = vpack.c.bf16 %v1694_v15, %v1605_v7 }
 0x297   : > { %2143 = vst [vmem:[%s7749_s29 + $0x1f0] sm:$0xff] %v2079_v8  ;;  %v2176_v32 = vpop.f32.mrf.mxu0 }
 0x298   : > { %v6577_v16 = vpop.eup %6576  ;;  %v1887_v33 = vunpack.c.l.bf16 %v1760_v31  ;;  %v1888_v34 = vunpack.c.h.bf16 %v1760_v31  ;;  %v2189_v35 = vpop.f32.mrf.mxu1 }
 0x299   : > { %v6579_v23 = vpop.eup %6578 }
 0x29a   : > { %v2078_v24 = vpack.c.bf16 %v6579_v23, %v6577_v16  ;;  %6580 = vtanh.f32 %v1887_v33 }
 0x29b   : > { %6582 = vtanh.f32 %v1888_v34 }
 0x29c   : > { %2142 = vst [vmem:[%s7749_s29 + $0x1e8] sm:$0xff] %v2078_v24  ;;  %v2200_v0 = vpop.f32.mrf.mxu2 }
 0x29d   : > { %v2213_v36 = vpop.f32.mrf.mxu3 }
 0x29f   : > { %v2255_v37 = vpop.f32.mrf.mxu0 }
 0x2a0   : > { %v6581_v39 = vpop.eup %6580  ;;  %v2691_v41 = vrot.slane %v2255_v37, 6  ;;  %v2268_v42 = vpop.f32.mrf.mxu1 }
 0x2a1   : > { %v6583_v43 = vpop.eup %6582  ;;  %v2692_v44 = vrot.slane %v2268_v42, 6 }
 0x2a2   : > { %v2080_v9 = vpack.c.bf16 %v6583_v43, %v6581_v39  ;;  %v2807_v10 = vsel %vm524_vm1, %v2174_v63, %v2691_v41 }
 0x2a3   : > { %v2808_v11 = vsel %vm524_vm1, %v2187_v3, %v2692_v44 }
 0x2a4   : > { %2144 = vst [vmem:[%s7749_s29 + $0x1f8] sm:$0xff] %v2080_v9  ;;  %v2202_v12 = vpop.f32.mrf.mxu2 }
 0x2a5   : > { %v2215_v13 = vpop.f32.mrf.mxu3 }
 0x2a7   : > { %v2257_v14 = vpop.f32.mrf.mxu0 }
 0x2a8   : > { %v2270_v17 = vpop.f32.mrf.mxu1 }
 0x2ac   : > { %v2281_v18 = vpop.f32.mrf.mxu2 }
 0x2ad   : > { %v2693_v19 = vrot.slane %v2281_v18, 6  ;;  %v2294_v20 = vpop.f32.mrf.mxu3 }
 0x2ae   : > { %v2694_v21 = vrot.slane %v2294_v20, 6 }
 0x2af   : > { %v2809_v22 = vsel %vm524_vm1, %v2200_v0, %v2693_v19  ;;  %v2336_v25 = vpop.f32.mrf.mxu0 }
 0x2b0   : > { %v2810_v26 = vsel %vm524_vm1, %v2213_v36, %v2694_v21  ;;  %v2703_v27 = vrot.slane %v2336_v25, 2  ;;  %v2349_v38 = vpop.f32.mrf.mxu1 }
 0x2b1   : > { %v2704_v40 = vrot.slane %v2349_v38, 2 }
 0x2b2   : > { %v8080_v47 = vsel %vm1088_vm7, %v2807_v10, %v2703_v27 }
 0x2b3   : > { %v8083_v48 = vsel %vm1088_vm7, %v2808_v11, %v2704_v40 }
 0x2b4   : > { %v2283_v51 = vpop.f32.mrf.mxu2 }
 0x2b5   : > { %v2296_v52 = vpop.f32.mrf.mxu3 }
 0x2b7   : > { %v2338_v55 = vpop.f32.mrf.mxu0 }
 0x2b8   : > { %v2351_v56 = vpop.f32.mrf.mxu1 }
 0x2bc   : > { %v2362_v57 = vpop.f32.mrf.mxu2 }
 0x2bd   : > { %v2705_v28 = vrot.slane %v2362_v57, 2  ;;  %v2375_v58 = vpop.f32.mrf.mxu3 }
 0x2be   : > { %v2706_v59 = vrot.slane %v2375_v58, 2 }
 0x2bf   : > { %v2447_v60 = vpop.f32.mrf.mxu0  ;;  %v8086_v53 = vsel %vm1088_vm7, %v2809_v22, %v2705_v28 }
 0x2c0   : > { %v2719_v61 = vrot.slane %v2447_v60, 2  ;;  %v2461_v29 = vpop.f32.mrf.mxu1  ;;  %v8089_v30 = vsel %vm1088_vm7, %v2810_v26, %v2706_v59 }
 0x2c1   : > { %v2720_v54 = vrot.slane %v2461_v29, 2 }
 0x2c2   : > { %v8092_v49 = vsel %vm1088_vm7, %v2703_v27, %v2719_v61 }
 0x2c3   : > { %v2827_v62 = vpack.c.bf16 %v8092_v49, %v8080_v47  ;;  %v8097_v63 = vsel %vm1088_vm7, %v2704_v40, %v2720_v54 }
 0x2c4   : > { %v2364_v50 = vpop.f32.mrf.mxu2  ;;  %v2828_v1 = vpack.c.bf16 %v8097_v63, %v8083_v48 }
 0x2c5   : > { %v2377_v2 = vpop.f32.mrf.mxu3 }
 0x2c7   : > { %v2449_v3 = vpop.f32.mrf.mxu0 }
 0x2c8   : > { %v2463_v45 = vpop.f32.mrf.mxu1  ;;  %v2723_v22 = vrot.slane %v2449_v3, 2 }
 0x2c9   : > { %v2725_v40 = vrot.slane %v2463_v45, 2 }
 0x2cc   : > { %v8101_v46 = vpop.f32.mrf.mxu2 }
 0x2cd   : > { %v2721_v4 = vrot.slane %v8101_v46, 2  ;;  %v8104_v5 = vpop.f32.mrf.mxu3  ;;  %v7097_v46 = vld [vmem:[%s8944_s0 + $0x8] sm:$0xff] }
 0x2ce   : > { %v2722_v7 = vrot.slane %v8104_v5, 2  ;;  %v7101_v5 = vld [vmem:[%s8944_s0 + $0x28] sm:$0xff] }
 0x2cf   : > { %v2620_v8 = vpop.f32.mrf.mxu0  ;;  %v8110_v15 = vsel %vm1088_vm7, %v2705_v28, %v2721_v4  ;;  %v2724_v28 = vsel %vm1088_vm7, %v2719_v61, %v2723_v22 }
 0x2d0   : > { %v2639_v31 = vpop.f32.mrf.mxu1  ;;  %v2829_v32 = vpack.c.bf16 %v8110_v15, %v8086_v53  ;;  %v8117_v16 = vsel %vm1088_vm7, %v2706_v59, %v2722_v7  ;;  %v2759_v17 = vrot.slane %v2620_v8, 2  ;;  %v2726_v59 = vsel %vm1088_vm7, %v2720_v54, %v2725_v40  ;;  %v7098_v53 = vld [vmem:[%s8944_s0 + $0x10] sm:$0xff]  ;;  %v7103_v15 = vld [vmem:[%s8944_s0 + $0x38] sm:$0xff] }
 0x2d1   : > { %v2830_v33 = vpack.c.bf16 %v8117_v16, %v8089_v30  ;;  %v2760_v19 = vrot.slane %v2639_v31, 2  ;;  %v7099_v30 = vld [vmem:[%s8944_s0 + $0x18] sm:$0xff] }
 0x2d2   : > { %v2819_v58 = vsel %vm1088_vm7, %v2723_v22, %v2759_v17 }
 0x2d3   : > { %v2820_v60 = vsel %vm1088_vm7, %v2725_v40, %v2760_v19  ;;  %v2831_v29 = vpack.c.bf16 %v2819_v58, %v2724_v28 }
 0x2d4   : > { %v8121_v34 = vpop.f32.mrf.mxu2  ;;  %v2832_v2 = vpack.c.bf16 %v2820_v60, %v2726_v59 }
 0x2d5   : > { %v8123_v35 = vpop.f32.mrf.mxu3 }
 0x2d6   : > { %v2729_v49 = vrot.slane %v8123_v35, 2 }
 0x2d7   : > { %v2622_v23 = vpop.f32.mrf.mxu0 }
 0x2d8   : > { %v2641_v24 = vpop.f32.mrf.mxu1  ;;  %v2763_v10 = vrot.slane %v2622_v23, 2 }
 0x2d9   : > { %v2765_v13 = vrot.slane %v2641_v24, 2 }
 0x2da   : > { %v2764_v27 = vsel %vm1088_vm7, %v2759_v17, %v2763_v10  ;;  %v2730_v17 = vsel %vm1088_vm7, %v2722_v7, %v2729_v49  ;;  %v7102_v7 = vld [vmem:[%s8944_s0 + $0x30] sm:$0xff] }
 0x2db   : > { %v2766_v52 = vsel %vm1088_vm7, %v2760_v19, %v2765_v13  ;;  %v3655_v19 = vld.sshfl [vmem:[#allocation1 + $0x10] sm:$0xff pattern:$0x73625140] }
 0x2dc   : > { %v8125_v0 = vpop.f32.mrf.mxu2 }
 0x2dd   : > { %v8127_v36 = vpop.f32.mrf.mxu3 }
 0x2df   : > { %v2625_v37 = vpop.f32.mrf.mxu0 }
 0x2e0   : > { %v2644_v39 = vpop.f32.mrf.mxu1  ;;  %v2771_v43 = vrot.slane %v2625_v37, 2 }
 0x2e1   : > { %v2773_v44 = vrot.slane %v2644_v39, 2 }
 0x2e2   : > { %v2772_v38 = vsel %vm1088_vm7, %v2763_v10, %v2771_v43  ;;  %v2762_v10 = vrot.slane %v8127_v36, 2  ;;  %v3653_v36 = vld.sshfl [vmem:[#allocation1] sm:$0xff pattern:$0x73625140] }
 0x2e3   : > { %v2774_v55 = vsel %vm1088_vm7, %v2765_v13, %v2773_v44  ;;  %v2835_v56 = vpack.c.bf16 %v2772_v38, %v2764_v27  ;;  %v3660_v35 = vsel %vm524_vm1, %v3653_v36, 0 }
 0x2e4   : > { %v2660_v41 = vpop.f32.mrf.mxu2  ;;  %v2836_v57 = vpack.c.bf16 %v2774_v55, %v2766_v52 }
 0x2e5   : > { %v8129_v42 = vpop.f32.mrf.mxu3  ;;  %v2767_v24 = vrot.slane %v2660_v41, 2 }
 0x2e6   : > { %v2769_v37 = vrot.slane %v8129_v42, 2  ;;  %v3654_v42 = vld.sshfl [vmem:[#allocation1 + $0x8] sm:$0xff pattern:$0x73625140] }
 0x2e7   : > { %v2627_v9 = vpop.f32.mrf.mxu0 }
 0x2e8   : > { %v2779_v11 = vrot.slane %v2627_v9, 2  ;;  %v2646_v12 = vpop.f32.mrf.mxu1  ;;  %v2770_v63 = vsel %vm1088_vm7, %v2762_v10, %v2769_v37 }
 0x2e9   : > { %v2781_v14 = vrot.slane %v2646_v12, 2  ;;  %v3662_v12 = vsel %vm524_vm1, %v3654_v42, 0 }
 0x2ea   : > { %v2780_v18 = vsel %vm1088_vm7, %v2771_v43, %v2779_v11  ;;  %v2761_v43 = vrot.slane %v8125_v0, 2  ;;  %v2727_v0 = vrot.slane %v8121_v34, 2 }
 0x2eb   : > { %v5731_v20 = vpack.c.bf16 %v2779_v11, %v2780_v18  ;;  %v2782_v21 = vsel %vm1088_vm7, %v2773_v44, %v2781_v14  ;;  %v2822_v11 = vsel %vm1088_vm7, %v2729_v49, %v2762_v10 }
 0x2ec   : > { %v5750_v25 = vpack.c.bf16 %v2781_v14, %v2782_v21  ;;  %v2663_v26 = vpop.f32.mrf.mxu2  ;;  %v2768_v47 = vsel %vm1088_vm7, %v2761_v43, %v2767_v24  ;;  %v2821_v34 = vsel %vm1088_vm7, %v2727_v0, %v2761_v43  ;;  %v2728_v13 = vsel %vm1088_vm7, %v2721_v4, %v2727_v0  ;;  %v7100_v4 = vld [vmem:[%s8944_s0 + $0x20] sm:$0xff] }
 0x2ed   : > { %v2682_v51 = vpop.f32.mrf.mxu3  ;;  %5732 = vmatpush.bf16.msk.msrb.mxu0 %vm7621_vm9, %v5731_v20  ;;  %v2775_v3 = vrot.slane %v2663_v26, 2  ;;  %v2833_v14 = vpack.c.bf16 %v2821_v34, %v2728_v13  ;;  %v2834_v18 = vpack.c.bf16 %v2822_v11, %v2730_v17  ;;  %v3656_v20 = vld.sshfl [vmem:[#allocation1 + $0x18] sm:$0xff pattern:$0x73625140]  ;;  %v3664_v21 = vsel %vm524_vm1, %v3655_v19, 0  ;;  %v7106_v13 = vld [vmem:[%s8944_s0 + $0x50] sm:$0xff] }
 0x2ee   : > { %5751 = vmatpush.bf16.msk.msrb.mxu1 %vm7621_vm9, %v5750_v25  ;;  %v2777_v31 = vrot.slane %v2682_v51, 2  ;;  %v3666_v22 = vsel %vm524_vm1, %v3656_v20, 0  ;;  %v7104_v25 = vld [vmem:[%s8944_s0 + $0x40] sm:$0xff] }
 0x2ef   : > { %v2776_v9 = vsel %vm1088_vm7, %v2767_v24, %v2775_v3 }
 0x2f0   : > { %v2778_v41 = vsel %vm1088_vm7, %v2769_v37, %v2777_v31  ;;  %v2837_v48 = vpack.c.bf16 %v2776_v9, %v2768_v47 }
 0x2f1   : > { %2848 = vmatpush.bf16.msrb.mxu0 %v2835_v56 }
 0x2f2   : > { %2937 = vmatpush.bf16.msrb.mxu1 %v2836_v57 }
 0x2f4   : > { %v2665_v50 = vpop.f32.mrf.mxu2 }
 0x2f5   : > { %v2783_v45 = vrot.slane %v2665_v50, 2  ;;  %v2684_v8 = vpop.f32.mrf.mxu3  ;;  %2849 = vmatpush.bf16.msrb.mxu0 %v2831_v29  ;;  %v7105_v50 = vld [vmem:[%s8944_s0 + $0x48] sm:$0xff] }
 0x2f6   : > { %v2785_v23 = vrot.slane %v2684_v8, 2  ;;  %2938 = vmatpush.bf16.msrb.mxu1 %v2832_v2 }
 0x2f7   : > { %v2784_v61 = vsel %vm1088_vm7, %v2775_v3, %v2783_v45 }
 0x2f8   : > { %v5769_v39 = vpack.c.bf16 %v2783_v45, %v2784_v61  ;;  %v2786_v54 = vsel %vm1088_vm7, %v2777_v31, %v2785_v23 }
 0x2f9   : > { %v5788_v44 = vpack.c.bf16 %v2785_v23, %v2786_v54  ;;  %2850 = vmatpush.bf16.msrb.mxu0 %v2827_v62  ;;  %v7096_v62 = vld [vmem:[%s8944_s0] sm:$0xff] }
 0x2fa   : > { %2939 = vmatpush.bf16.msrb.mxu1 %v2828_v1  ;;  %5770 = vmatpush.bf16.msk.msrb.mxu2 %vm7621_vm9, %v5769_v39  ;;  %v2838_v1 = vpack.c.bf16 %v2778_v41, %v2770_v63 }
 0x2fb   : > { %5789 = vmatpush.bf16.msk.msrb.mxu3 %vm7621_vm9, %v5788_v44 }
 0x2fc   : > { %5733 = vmatmul.msk.bf16.vlgmr.msrb.gmra.mxu0 %vm973_vm6, %v7096_v62 }
 0x2fd   : > { %5752 = vmatmul.msk.bf16.vlgmr.msrb.gmra.mxu1 %vm973_vm6, %v7096_v62  ;;  %3675 = vmatpush.bf16.msra.mxu0 %v3660_v35 }
 0x2fe   : > { %3026 = vmatpush.bf16.msrb.mxu2 %v2837_v48  ;;  %3688 = vmatpush.bf16.msra.mxu1 %v3662_v12 }
 0x2ff   : > { %3115 = vmatpush.bf16.msrb.mxu3 %v2838_v1 }
 0x302   : > { %3027 = vmatpush.bf16.msrb.mxu2 %v2833_v14 }
 0x303   : > { %3116 = vmatpush.bf16.msrb.mxu3 %v2834_v18 }
 0x306   : > { %3028 = vmatpush.bf16.msrb.mxu2 %v2829_v32 }
 0x307   : > { %3117 = vmatpush.bf16.msrb.mxu3 %v2830_v33 }
 0x309   : > { %5771 = vmatmul.msk.bf16.vlgmr.msrb.gmra.mxu2 %vm973_vm6, %v7096_v62 }
 0x30a   : > { %3701 = vmatpush.bf16.msra.mxu2 %v3664_v21  ;;  %5790 = vmatmul.msk.bf16.vlgmr.msrb.gmra.mxu3 %vm973_vm6, %v7096_v62 }
 0x30b   : > { %3714 = vmatpush.bf16.msra.mxu3 %v3666_v22 }
 0x30c   : > { %5734 = vmatmul.msk.bf16.gmra.mxu0 %vm973_vm6, %v7097_v46 }
 0x30d   : > { %5753 = vmatmul.msk.bf16.gmra.mxu1 %vm973_vm6, %v7097_v46 }
 0x319   : > { %5772 = vmatmul.msk.bf16.gmra.mxu2 %vm973_vm6, %v7097_v46 }
 0x31a   : > { %5791 = vmatmul.msk.bf16.gmra.mxu3 %vm973_vm6, %v7097_v46 }
 0x31c   : > { %5735 = vmatmul.msk.bf16.gmra.mxu0 %vm973_vm6, %v7098_v53 }
 0x31d   : > { %5754 = vmatmul.msk.bf16.gmra.mxu1 %vm973_vm6, %v7098_v53 }
 0x329   : > { %5773 = vmatmul.msk.bf16.gmra.mxu2 %vm973_vm6, %v7098_v53 }
 0x32a   : > { %5792 = vmatmul.msk.bf16.gmra.mxu3 %vm973_vm6, %v7098_v53 }
 0x32c   : > { %5736 = vmatmul.msk.bf16.gmra.mxu0 %vm973_vm6, %v7099_v30 }
 0x32d   : > { %5755 = vmatmul.msk.bf16.gmra.mxu1 %vm973_vm6, %v7099_v30 }
 0x339   : > { %5774 = vmatmul.msk.bf16.gmra.mxu2 %vm973_vm6, %v7099_v30 }
 0x33a   : > { %5793 = vmatmul.msk.bf16.gmra.mxu3 %vm973_vm6, %v7099_v30 }
 0x33c   : > { %5737 = vmatmul.msk.bf16.gmra.mxu0 %vm973_vm6, %v7100_v4 }
 0x33d   : > { %5756 = vmatmul.msk.bf16.gmra.mxu1 %vm973_vm6, %v7100_v4 }
 0x349   : > { %5775 = vmatmul.msk.bf16.gmra.mxu2 %vm973_vm6, %v7100_v4 }
 0x34a   : > { %5794 = vmatmul.msk.bf16.gmra.mxu3 %vm973_vm6, %v7100_v4 }
 0x34c   : > { %5738 = vmatmul.msk.bf16.gmra.mxu0 %vm973_vm6, %v7101_v5 }
 0x34d   : > { %5757 = vmatmul.msk.bf16.gmra.mxu1 %vm973_vm6, %v7101_v5 }
 0x359   : > { %5776 = vmatmul.msk.bf16.gmra.mxu2 %vm973_vm6, %v7101_v5 }
 0x35a   : > { %5795 = vmatmul.msk.bf16.gmra.mxu3 %vm973_vm6, %v7101_v5 }
 0x35c   : > { %5739 = vmatmul.msk.bf16.gmra.mxu0 %vm973_vm6, %v7102_v7 }
 0x35d   : > { %5758 = vmatmul.msk.bf16.gmra.mxu1 %vm973_vm6, %v7102_v7 }
 0x369   : > { %5777 = vmatmul.msk.bf16.gmra.mxu2 %vm973_vm6, %v7102_v7 }
 0x36a   : > { %5796 = vmatmul.msk.bf16.gmra.mxu3 %vm973_vm6, %v7102_v7 }
 0x36c   : > { %5740 = vmatmul.msk.bf16.gmra.mxu0 %vm973_vm6, %v7103_v15 }
 0x36d   : > { %5759 = vmatmul.msk.bf16.gmra.mxu1 %vm973_vm6, %v7103_v15 }
 0x379   : > { %5778 = vmatmul.msk.bf16.gmra.mxu2 %vm973_vm6, %v7103_v15  ;;  %v2852_v32 = vpop.f32.mrf.mxu0 }
 0x37a   : > { %5797 = vmatmul.msk.bf16.gmra.mxu3 %vm973_vm6, %v7103_v15  ;;  %v2941_v16 = vpop.f32.mrf.mxu1 }
 0x37b   : > { %v3199_v33 = vpack.c.bf16 %v2941_v16, %v2852_v32 }
 0x37c   : > { %5741 = vmatmul.msk.bf16.gmra.mxu0 %vm973_vm6, %v7104_v25 }
 0x37d   : > { %v3263_v26 = vunpack.c.l.bf16 %v3199_v33  ;;  %v3264_v27 = vunpack.c.h.bf16 %v3199_v33  ;;  %5760 = vmatmul.msk.bf16.gmra.mxu1 %vm973_vm6, %v7104_v25 }
 0x37f   : > { %6584 = vtanh.f32 %v3263_v26 }
 0x380   : > { %6586 = vtanh.f32 %v3264_v27 }
 0x381   : > { %v2854_v38 = vpop.f32.mrf.mxu0 }
 0x382   : > { %v2943_v40 = vpop.f32.mrf.mxu1 }
 0x383   : > { %v3201_v51 = vpack.c.bf16 %v2943_v40, %v2854_v38 }
 0x385   : > { %v6585_v52 = vpop.eup %6584  ;;  %v3267_v55 = vunpack.c.l.bf16 %v3201_v51  ;;  %v3268_v56 = vunpack.c.h.bf16 %v3201_v51 }
 0x386   : > { %v6587_v57 = vpop.eup %6586 }
 0x387   : > { %v3519_v28 = vpack.c.bf16 %v6587_v57, %v6585_v52  ;;  %6588 = vtanh.f32 %v3267_v55 }
 0x388   : > { %6590 = vtanh.f32 %v3268_v56 }
 0x389   : > { %5806 = vst [vmem:[%s7749_s29 + $0x200] sm:$0xff] %v3519_v28  ;;  %5779 = vmatmul.msk.bf16.gmra.mxu2 %vm973_vm6, %v7104_v25  ;;  %v2857_v58 = vpop.f32.mrf.mxu0 }
 0x38a   : > { %5798 = vmatmul.msk.bf16.gmra.mxu3 %vm973_vm6, %v7104_v25  ;;  %v2946_v59 = vpop.f32.mrf.mxu1 }
 0x38b   : > { %v3203_v60 = vpack.c.bf16 %v2946_v59, %v2857_v58 }
 0x38c   : > { %v3030_v29 = vpop.f32.mrf.mxu2  ;;  %5742 = vmatmul.msk.bf16.gmra.mxu0 %vm973_vm6, %v7105_v50 }
 0x38d   : > { %v6589_v2 = vpop.eup %6588  ;;  %v3271_v3 = vunpack.c.l.bf16 %v3203_v60  ;;  %v3272_v45 = vunpack.c.h.bf16 %v3203_v60  ;;  %v3119_v8 = vpop.f32.mrf.mxu3  ;;  %5761 = vmatmul.msk.bf16.gmra.mxu1 %vm973_vm6, %v7105_v50 }
 0x38e   : > { %v6591_v31 = vpop.eup %6590  ;;  %v3200_v23 = vpack.c.bf16 %v3119_v8, %v3030_v29 }
 0x38f   : > { %v3521_v24 = vpack.c.bf16 %v6591_v31, %v6589_v2  ;;  %6592 = vtanh.f32 %v3271_v3 }
 0x390   : > { %6594 = vtanh.f32 %v3272_v45  ;;  %v3265_v61 = vunpack.c.l.bf16 %v3200_v23  ;;  %v3266_v37 = vunpack.c.h.bf16 %v3200_v23 }
 0x391   : > { %5808 = vst [vmem:[%s7749_s29 + $0x210] sm:$0xff] %v3521_v24  ;;  %v2859_v39 = vpop.f32.mrf.mxu0 }
 0x392   : > { %6596 = vtanh.f32 %v3265_v61  ;;  %v2948_v54 = vpop.f32.mrf.mxu1 }
 0x393   : > { %6598 = vtanh.f32 %v3266_v37  ;;  %v3205_v43 = vpack.c.bf16 %v2948_v54, %v2859_v39 }
 0x394   : > { %v3032_v44 = vpop.f32.mrf.mxu2 }
 0x395   : > { %v6593_v9 = vpop.eup %6592  ;;  %v3275_v10 = vunpack.c.l.bf16 %v3205_v43  ;;  %v3276_v41 = vunpack.c.h.bf16 %v3205_v43  ;;  %v3121_v0 = vpop.f32.mrf.mxu3 }
 0x396   : > { %v6595_v47 = vpop.eup %6594  ;;  %v3202_v49 = vpack.c.bf16 %v3121_v0, %v3032_v44 }
 0x397   : > { %v3523_v62 = vpack.c.bf16 %v6595_v47, %v6593_v9  ;;  %6600 = vtanh.f32 %v3275_v10 }
 0x398   : > { %v6597_v48 = vpop.eup %6596  ;;  %6602 = vtanh.f32 %v3276_v41  ;;  %v3269_v63 = vunpack.c.l.bf16 %v3202_v49  ;;  %v3270_v1 = vunpack.c.h.bf16 %v3202_v49 }
 0x399   : > { %v6599_v34 = vpop.eup %6598  ;;  %5810 = vst [vmem:[%s7749_s29 + $0x220] sm:$0xff] %v3523_v62  ;;  %5780 = vmatmul.msk.bf16.gmra.mxu2 %vm973_vm6, %v7105_v50  ;;  %v2862_v36 = vpop.f32.mrf.mxu0 }
 0x39a   : > { %v3520_v42 = vpack.c.bf16 %v6599_v34, %v6597_v48  ;;  %6604 = vtanh.f32 %v3269_v63  ;;  %5799 = vmatmul.msk.bf16.gmra.mxu3 %vm973_vm6, %v7105_v50  ;;  %v2951_v11 = vpop.f32.mrf.mxu1  ;;  %v7107_v50 = vld [vmem:[%s8944_s0 + $0x58] sm:$0xff] }
 0x39b   : > { %6606 = vtanh.f32 %v3270_v1  ;;  %v3207_v35 = vpack.c.bf16 %v2951_v11, %v2862_v36 }
 0x39c   : > { %5807 = vst [vmem:[%s7749_s29 + $0x208] sm:$0xff] %v3520_v42  ;;  %v3035_v12 = vpop.f32.mrf.mxu2  ;;  %5743 = vmatmul.msk.bf16.gmra.mxu0 %vm973_vm6, %v7106_v13 }
 0x39d   : > { %v6601_v14 = vpop.eup %6600  ;;  %v3279_v17 = vunpack.c.l.bf16 %v3207_v35  ;;  %v3280_v18 = vunpack.c.h.bf16 %v3207_v35  ;;  %v3124_v19 = vpop.f32.mrf.mxu3  ;;  %5762 = vmatmul.msk.bf16.gmra.mxu1 %vm973_vm6, %v7106_v13 }
 0x39e   : > { %v6603_v20 = vpop.eup %6602  ;;  %v3204_v21 = vpack.c.bf16 %v3124_v19, %v3035_v12 }
 0x39f   : > { %v3525_v22 = vpack.c.bf16 %v6603_v20, %v6601_v14  ;;  %6608 = vtanh.f32 %v3279_v17 }
 0x3a0   : > { %v6605_v46 = vpop.eup %6604  ;;  %6610 = vtanh.f32 %v3280_v18  ;;  %v3273_v53 = vunpack.c.l.bf16 %v3204_v21  ;;  %v3274_v30 = vunpack.c.h.bf16 %v3204_v21  ;;  %v7108_v18 = vld [vmem:[%s8944_s0 + $0x60] sm:$0xff] }
 0x3a1   : > { %v6607_v4 = vpop.eup %6606  ;;  %5812 = vst [vmem:[%s7749_s29 + $0x230] sm:$0xff] %v3525_v22  ;;  %v2864_v5 = vpop.f32.mrf.mxu0 }
 0x3a2   : > { %v3522_v7 = vpack.c.bf16 %v6607_v4, %v6605_v46  ;;  %6612 = vtanh.f32 %v3273_v53  ;;  %v2953_v15 = vpop.f32.mrf.mxu1 }
 0x3a3   : > { %6614 = vtanh.f32 %v3274_v30  ;;  %v3209_v32 = vpack.c.bf16 %v2953_v15, %v2864_v5 }
 0x3a4   : > { %5809 = vst [vmem:[%s7749_s29 + $0x218] sm:$0xff] %v3522_v7  ;;  %v3037_v16 = vpop.f32.mrf.mxu2 }
 0x3a5   : > { %v6609_v33 = vpop.eup %6608  ;;  %v3283_v25 = vunpack.c.l.bf16 %v3209_v32  ;;  %v3284_v26 = vunpack.c.h.bf16 %v3209_v32  ;;  %v3126_v27 = vpop.f32.mrf.mxu3 }
 0x3a6   : > { %v6611_v38 = vpop.eup %6610  ;;  %v3206_v40 = vpack.c.bf16 %v3126_v27, %v3037_v16 }
 0x3a7   : > { %v3527_v51 = vpack.c.bf16 %v6611_v38, %v6609_v33  ;;  %6616 = vtanh.f32 %v3283_v25 }
 0x3a8   : > { %v6613_v52 = vpop.eup %6612  ;;  %6618 = vtanh.f32 %v3284_v26  ;;  %v3277_v55 = vunpack.c.l.bf16 %v3206_v40  ;;  %v3278_v56 = vunpack.c.h.bf16 %v3206_v40 }
 0x3a9   : > { %v6615_v57 = vpop.eup %6614  ;;  %5814 = vst [vmem:[%s7749_s29 + $0x240] sm:$0xff] %v3527_v51  ;;  %5781 = vmatmul.msk.bf16.gmra.mxu2 %vm973_vm6, %v7106_v13  ;;  %v2867_v28 = vpop.f32.mrf.mxu0 }
 0x3aa   : > { %v3524_v58 = vpack.c.bf16 %v6615_v57, %v6613_v52  ;;  %6620 = vtanh.f32 %v3277_v55  ;;  %5800 = vmatmul.msk.bf16.gmra.mxu3 %vm973_vm6, %v7106_v13  ;;  %v2956_v59 = vpop.f32.mrf.mxu1 }
 0x3ab   : > { %6622 = vtanh.f32 %v3278_v56  ;;  %v3211_v60 = vpack.c.bf16 %v2956_v59, %v2867_v28 }
 0x3ac   : > { %5811 = vst [vmem:[%s7749_s29 + $0x228] sm:$0xff] %v3524_v58  ;;  %v3040_v29 = vpop.f32.mrf.mxu2  ;;  %5744 = vmatmul.msk.bf16.gmra.mxu0 %vm973_vm6, %v7107_v50 }
 0x3ad   : > { %v6617_v2 = vpop.eup %6616  ;;  %v3287_v3 = vunpack.c.l.bf16 %v3211_v60  ;;  %v3288_v45 = vunpack.c.h.bf16 %v3211_v60  ;;  %v3129_v8 = vpop.f32.mrf.mxu3  ;;  %5763 = vmatmul.msk.bf16.gmra.mxu1 %vm973_vm6, %v7107_v50 }
 0x3ae   : > { %v6619_v31 = vpop.eup %6618  ;;  %v3208_v23 = vpack.c.bf16 %v3129_v8, %v3040_v29 }
 0x3af   : > { %v3529_v24 = vpack.c.bf16 %v6619_v31, %v6617_v2  ;;  %6624 = vtanh.f32 %v3287_v3 }
 0x3b0   : > { %v6621_v61 = vpop.eup %6620  ;;  %6626 = vtanh.f32 %v3288_v45  ;;  %v3281_v37 = vunpack.c.l.bf16 %v3208_v23  ;;  %v3282_v39 = vunpack.c.h.bf16 %v3208_v23  ;;  %v7109_v45 = vld [vmem:[%s8944_s0 + $0x68] sm:$0xff] }
 0x3b1   : > { %v6623_v54 = vpop.eup %6622  ;;  %5816 = vst [vmem:[%s7749_s29 + $0x250] sm:$0xff] %v3529_v24  ;;  %v2869_v43 = vpop.f32.mrf.mxu0 }
 0x3b2   : > { %v3526_v44 = vpack.c.bf16 %v6623_v54, %v6621_v61  ;;  %6628 = vtanh.f32 %v3281_v37  ;;  %v2958_v9 = vpop.f32.mrf.mxu1 }
 0x3b3   : > { %6630 = vtanh.f32 %v3282_v39  ;;  %v3213_v10 = vpack.c.bf16 %v2958_v9, %v2869_v43 }
 0x3b4   : > { %5813 = vst [vmem:[%s7749_s29 + $0x238] sm:$0xff] %v3526_v44  ;;  %v3042_v41 = vpop.f32.mrf.mxu2 }
 0x3b5   : > { %v6625_v0 = vpop.eup %6624  ;;  %v3291_v47 = vunpack.c.l.bf16 %v3213_v10  ;;  %v3292_v49 = vunpack.c.h.bf16 %v3213_v10  ;;  %v3131_v62 = vpop.f32.mrf.mxu3 }
 0x3b6   : > { %v6627_v48 = vpop.eup %6626  ;;  %v3210_v63 = vpack.c.bf16 %v3131_v62, %v3042_v41 }
 0x3b7   : > { %v3531_v1 = vpack.c.bf16 %v6627_v48, %v6625_v0  ;;  %6632 = vtanh.f32 %v3291_v47 }
 0x3b8   : > { %v6629_v34 = vpop.eup %6628  ;;  %6634 = vtanh.f32 %v3292_v49  ;;  %v3285_v36 = vunpack.c.l.bf16 %v3210_v63  ;;  %v3286_v42 = vunpack.c.h.bf16 %v3210_v63 }
 0x3b9   : > { %v6631_v11 = vpop.eup %6630  ;;  %5818 = vst [vmem:[%s7749_s29 + $0x260] sm:$0xff] %v3531_v1  ;;  %5782 = vmatmul.msk.bf16.gmra.mxu2 %vm973_vm6, %v7107_v50  ;;  %v2872_v35 = vpop.f32.mrf.mxu0 }
 0x3ba   : > { %v3528_v12 = vpack.c.bf16 %v6631_v11, %v6629_v34  ;;  %6636 = vtanh.f32 %v3285_v36  ;;  %5801 = vmatmul.msk.bf16.gmra.mxu3 %vm973_vm6, %v7107_v50  ;;  %v2961_v13 = vpop.f32.mrf.mxu1 }
 0x3bb   : > { %6638 = vtanh.f32 %v3286_v42  ;;  %v3215_v14 = vpack.c.bf16 %v2961_v13, %v2872_v35 }
 0x3bc   : > { %5815 = vst [vmem:[%s7749_s29 + $0x248] sm:$0xff] %v3528_v12  ;;  %v3045_v17 = vpop.f32.mrf.mxu2  ;;  %5745 = vmatmul.msk.bf16.gmra.mxu0 %vm973_vm6, %v7108_v18 }
 0x3bd   : > { %v6633_v19 = vpop.eup %6632  ;;  %v3295_v20 = vunpack.c.l.bf16 %v3215_v14  ;;  %v3296_v21 = vunpack.c.h.bf16 %v3215_v14  ;;  %v3134_v22 = vpop.f32.mrf.mxu3  ;;  %5764 = vmatmul.msk.bf16.gmra.mxu1 %vm973_vm6, %v7108_v18 }
 0x3be   : > { %v6635_v46 = vpop.eup %6634  ;;  %v3212_v53 = vpack.c.bf16 %v3134_v22, %v3045_v17 }
 0x3bf   : > { %v3533_v30 = vpack.c.bf16 %v6635_v46, %v6633_v19  ;;  %6640 = vtanh.f32 %v3295_v20 }
 0x3c0   : > { %v6637_v4 = vpop.eup %6636  ;;  %6642 = vtanh.f32 %v3296_v21  ;;  %v3289_v5 = vunpack.c.l.bf16 %v3212_v53  ;;  %v3290_v7 = vunpack.c.h.bf16 %v3212_v53  ;;  %v7110_v21 = vld [vmem:[%s8944_s0 + $0x70] sm:$0xff] }
 0x3c1   : > { %v6639_v15 = vpop.eup %6638  ;;  %5820 = vst [vmem:[%s7749_s29 + $0x270] sm:$0xff] %v3533_v30  ;;  %v2874_v32 = vpop.f32.mrf.mxu0 }
 0x3c2   : > { %v3530_v16 = vpack.c.bf16 %v6639_v15, %v6637_v4  ;;  %6644 = vtanh.f32 %v3289_v5  ;;  %v2963_v33 = vpop.f32.mrf.mxu1 }
 0x3c3   : > { %6646 = vtanh.f32 %v3290_v7  ;;  %v3217_v25 = vpack.c.bf16 %v2963_v33, %v2874_v32 }
 0x3c4   : > { %5817 = vst [vmem:[%s7749_s29 + $0x258] sm:$0xff] %v3530_v16  ;;  %v3047_v26 = vpop.f32.mrf.mxu2 }
 0x3c5   : > { %v6641_v27 = vpop.eup %6640  ;;  %v3299_v38 = vunpack.c.l.bf16 %v3217_v25  ;;  %v3300_v40 = vunpack.c.h.bf16 %v3217_v25  ;;  %v3136_v51 = vpop.f32.mrf.mxu3 }
 0x3c6   : > { %v6643_v52 = vpop.eup %6642  ;;  %v3214_v55 = vpack.c.bf16 %v3136_v51, %v3047_v26 }
 0x3c7   : > { %v3535_v56 = vpack.c.bf16 %v6643_v52, %v6641_v27  ;;  %6648 = vtanh.f32 %v3299_v38 }
 0x3c8   : > { %v6645_v57 = vpop.eup %6644  ;;  %6650 = vtanh.f32 %v3300_v40  ;;  %v3293_v28 = vunpack.c.l.bf16 %v3214_v55  ;;  %v3294_v58 = vunpack.c.h.bf16 %v3214_v55 }
 0x3c9   : > { %v6647_v59 = vpop.eup %6646  ;;  %5822 = vst [vmem:[%s7749_s29 + $0x280] sm:$0xff] %v3535_v56  ;;  %5783 = vmatmul.msk.bf16.gmra.mxu2 %vm973_vm6, %v7108_v18  ;;  %v2877_v60 = vpop.f32.mrf.mxu0 }
 0x3ca   : > { %v3532_v29 = vpack.c.bf16 %v6647_v59, %v6645_v57  ;;  %6652 = vtanh.f32 %v3293_v28  ;;  %5802 = vmatmul.msk.bf16.gmra.mxu3 %vm973_vm6, %v7108_v18  ;;  %v2966_v50 = vpop.f32.mrf.mxu1 }
 0x3cb   : > { %6654 = vtanh.f32 %v3294_v58  ;;  %v3219_v2 = vpack.c.bf16 %v2966_v50, %v2877_v60  ;;  %v3722_v58 = vld [vmem:[%s8946_s2] sm:$0xff] }
 0x3cc   : > { %5819 = vst [vmem:[%s7749_s29 + $0x268] sm:$0xff] %v3532_v29  ;;  %v3050_v3 = vpop.f32.mrf.mxu2  ;;  %5746 = vmatmul.msk.bf16.gmra.mxu0 %vm973_vm6, %v7109_v45  ;;  %v3726_v60 = vunpack.c.l.b16 %v3722_v58  ;;  %v3727_v29 = vunpack.c.h.b16 %v3722_v58 }
 0x3cd   : > { %v6649_v8 = vpop.eup %6648  ;;  %v3303_v31 = vunpack.c.l.bf16 %v3219_v2  ;;  %v3304_v23 = vunpack.c.h.bf16 %v3219_v2  ;;  %v3139_v24 = vpop.f32.mrf.mxu3  ;;  %5765 = vmatmul.msk.bf16.gmra.mxu1 %vm973_vm6, %v7109_v45 }
 0x3ce   : > { %v6651_v61 = vpop.eup %6650  ;;  %v3216_v37 = vpack.c.bf16 %v3139_v24, %v3050_v3 }
 0x3cf   : > { %v3537_v39 = vpack.c.bf16 %v6651_v61, %v6649_v8  ;;  %6656 = vtanh.f32 %v3303_v31  ;;  %v3730_v31 = vpack.c.b16 %v3726_v60, %v3726_v60 }
 0x3d0   : > { %v6653_v54 = vpop.eup %6652  ;;  %6658 = vtanh.f32 %v3304_v23  ;;  %v3297_v43 = vunpack.c.l.bf16 %v3216_v37  ;;  %v3298_v44 = vunpack.c.h.bf16 %v3216_v37  ;;  %v3731_v23 = vpack.c.b16 %v3727_v29, %v3727_v29 }
 0x3d1   : > { %v6655_v9 = vpop.eup %6654  ;;  %5824 = vst [vmem:[%s7749_s29 + $0x290] sm:$0xff] %v3537_v39  ;;  %v2879_v10 = vpop.f32.mrf.mxu0  ;;  %v3738_v39 = vsel %vm602_vm0, %v3730_v31, 0 }
 0x3d2   : > { %v3534_v41 = vpack.c.bf16 %v6655_v9, %v6653_v54  ;;  %6660 = vtanh.f32 %v3297_v43  ;;  %v2968_v0 = vpop.f32.mrf.mxu1  ;;  %v3741_v54 = vsel %vm602_vm0, %v3731_v23, 0  ;;  %3756 = vmatpush.bf16.msrb.mxu0 %v3738_v39 }
 0x3d3   : > { %6662 = vtanh.f32 %v3298_v44  ;;  %v3221_v47 = vpack.c.bf16 %v2968_v0, %v2879_v10  ;;  %v7111_v44 = vld [vmem:[%s8944_s0 + $0x78] sm:$0xff]  ;;  %3769 = vmatpush.bf16.msrb.mxu1 %v3741_v54 }
 0x3d4   : > { %5821 = vst [vmem:[%s7749_s29 + $0x278] sm:$0xff] %v3534_v41  ;;  %v3052_v49 = vpop.f32.mrf.mxu2 }
 0x3d5   : > { %v6657_v62 = vpop.eup %6656  ;;  %v3307_v48 = vunpack.c.l.bf16 %v3221_v47  ;;  %v3308_v63 = vunpack.c.h.bf16 %v3221_v47  ;;  %v3141_v1 = vpop.f32.mrf.mxu3 }
 0x3d6   : > { %v6659_v34 = vpop.eup %6658  ;;  %v3218_v36 = vpack.c.bf16 %v3141_v1, %v3052_v49 }
 0x3d7   : > { %v3539_v42 = vpack.c.bf16 %v6659_v34, %v6657_v62  ;;  %6664 = vtanh.f32 %v3307_v48 }
 0x3d8   : > { %v6661_v11 = vpop.eup %6660  ;;  %6666 = vtanh.f32 %v3308_v63  ;;  %v3301_v35 = vunpack.c.l.bf16 %v3218_v36  ;;  %v3302_v12 = vunpack.c.h.bf16 %v3218_v36 }
 0x3d9   : > { %v6663_v13 = vpop.eup %6662  ;;  %5826 = vst [vmem:[%s7749_s29 + $0x2a0] sm:$0xff] %v3539_v42  ;;  %5784 = vmatmul.msk.bf16.gmra.mxu2 %vm973_vm6, %v7109_v45  ;;  %v2882_v14 = vpop.f32.mrf.mxu0 }
 0x3da   : > { %v3536_v17 = vpack.c.bf16 %v6663_v13, %v6661_v11  ;;  %6668 = vtanh.f32 %v3301_v35  ;;  %5803 = vmatmul.msk.bf16.gmra.mxu3 %vm973_vm6, %v7109_v45  ;;  %v2971_v18 = vpop.f32.mrf.mxu1  ;;  %v3723_v35 = vld [vmem:[%s8946_s2 + $0x8] sm:$0xff] }
 0x3db   : > { %6670 = vtanh.f32 %v3302_v12  ;;  %v3223_v19 = vpack.c.bf16 %v2971_v18, %v2882_v14  ;;  %v3728_v13 = vunpack.c.l.b16 %v3723_v35  ;;  %v3729_v14 = vunpack.c.h.b16 %v3723_v35  ;;  %v6260_v35 = vld [vmem:[%s8948_s4 + $0x24] sm:$0xf] }
 0x3dc   : > { %5823 = vst [vmem:[%s7749_s29 + $0x288] sm:$0xff] %v3536_v17  ;;  %v3055_v20 = vpop.f32.mrf.mxu2  ;;  %5747 = vmatmul.msk.bf16.gmra.mxu0 %vm973_vm6, %v7110_v21 }
 0x3dd   : > { %v6665_v22 = vpop.eup %6664  ;;  %v3311_v46 = vunpack.c.l.bf16 %v3223_v19  ;;  %v3312_v53 = vunpack.c.h.bf16 %v3223_v19  ;;  %v3144_v30 = vpop.f32.mrf.mxu3  ;;  %5766 = vmatmul.msk.bf16.gmra.mxu1 %vm973_vm6, %v7110_v21 }
 0x3de   : > { %v6667_v4 = vpop.eup %6666  ;;  %v3220_v5 = vpack.c.bf16 %v3144_v30, %v3055_v20 }
 0x3df   : > { %v3541_v7 = vpack.c.bf16 %v6667_v4, %v6665_v22  ;;  %6672 = vtanh.f32 %v3311_v46  ;;  %v3732_v22 = vpack.c.b16 %v3728_v13, %v3728_v13  ;;  %v3733_v46 = vpack.c.b16 %v3729_v14, %v3729_v14 }
 0x3e0   : > { %v6669_v15 = vpop.eup %6668  ;;  %6674 = vtanh.f32 %v3312_v53  ;;  %v3305_v32 = vunpack.c.l.bf16 %v3220_v5  ;;  %v3306_v16 = vunpack.c.h.bf16 %v3220_v5 }
 0x3e1   : > { %v6671_v33 = vpop.eup %6670  ;;  %5828 = vst [vmem:[%s7749_s29 + $0x2b0] sm:$0xff] %v3541_v7  ;;  %v2884_v25 = vpop.f32.mrf.mxu0  ;;  %v3744_v5 = vsel %vm602_vm0, %v3732_v22, 0  ;;  %v3747_v7 = vsel %vm602_vm0, %v3733_v46, 0 }
 0x3e2   : > { %v3538_v26 = vpack.c.bf16 %v6671_v33, %v6669_v15  ;;  %6676 = vtanh.f32 %v3305_v32  ;;  %v2973_v27 = vpop.f32.mrf.mxu1  ;;  %v8331_v32 = vld [vmem:[%s7322_s25 + $0x2] sm:$0x1]  ;;  %3782 = vmatpush.bf16.msrb.mxu2 %v3744_v5  ;;  %3795 = vmatpush.bf16.msrb.mxu3 %v3747_v7  ;;  %v6256_v7 = vld [vmem:[%s8948_s4 + $0x4] sm:$0xf]  ;;  %s5167_s25 = sshll.u32 %s5164_s26, 4  ;;  %s5168_s25 = int_to_ptr.hbm [resolvable:$true] %s5167_s25 }
 0x3e3   : > { %6678 = vtanh.f32 %v3306_v16  ;;  %v3225_v38 = vpack.c.bf16 %v2973_v27, %v2884_v25  ;;  %v5883_v27 = vld [vmem:[%s8947_s3] sm:$0xf]  ;;  %s7142_s15 = sshra.s32 %s5168_s25, 4  ;;  %s7143_s15 = int_to_ptr.hbm [resolvable:$true] %s7142_s15 }
 0x3e4   : > { %5825 = vst [vmem:[%s7749_s29 + $0x298] sm:$0xff] %v3538_v26  ;;  %v3057_v40 = vpop.f32.mrf.mxu2  ;;  %s7144_s23 = scalar_lea.hbm %s7143_s15, 1536  ;;  %p7149_p0 = scmp.lt.s32.totalorder %s7143_s15, %s8955_s11 }
 0x3e5   : > { %v6673_v51 = vpop.eup %6672  ;;  %v3315_v52 = vunpack.c.l.bf16 %v3225_v38  ;;  %v3316_v55 = vunpack.c.h.bf16 %v3225_v38  ;;  %v3146_v56 = vpop.f32.mrf.mxu3  ;;  %v6253_v38 = vld [vmem:[%s8947_s3 + $0xc] sm:$0xf0]  ;;  %p7145_p11 = scmp.ne.s32.totalorder %s7143_s15, %s7144_s23  ;;  %p7150_p1 = scmp.lt.s32.totalorder %s7148_s12, %s7144_s23 }
 0x3e6   : > { %v6675_v57 = vpop.eup %6674  ;;  %v3222_v28 = vpack.c.bf16 %v3146_v56, %v3057_v40  ;;  %v5885_v56 = vld [vmem:[%s8947_s3 + $0x10] sm:$0xf0] }
 0x3e7   : > { %v3543_v59 = vpack.c.bf16 %v6675_v57, %v6673_v51  ;;  %6680 = vtanh.f32 %v3315_v52  ;;  %v5884_v52 = vor.u32 %v6253_v38, %v5883_v27  ;;  %p7146_p12 = pnand %p7145_p11, %p7293_p5  ;;  %p7151_p2 = por %p7150_p1, %p7149_p0 }
 0x3e8   : > { %v6677_v50 = vpop.eup %6676  ;;  %6682 = vtanh.f32 %v3316_v55  ;;  %v3309_v2 = vunpack.c.l.bf16 %v3222_v28  ;;  %v3310_v3 = vunpack.c.h.bf16 %v3222_v28  ;;  %v6251_v55 = vld [vmem:[%s8947_s3 + $0x4] sm:$0xf] }
 0x3e9   : > { %v6679_v45 = vpop.eup %6678  ;;  %5830 = vst [vmem:[%s7749_s29 + $0x2c0] sm:$0xff] %v3543_v59  ;;  %5785 = vmatmul.msk.bf16.gmra.mxu2 %vm973_vm6, %v7110_v21  ;;  %v2887_v8 = vpop.f32.mrf.mxu0  ;;  %v5888_v28 = vor.u32 %v6251_v55, %v5885_v56  ;;  %p7147_p13 = pneg %p7146_p12 }
 0x3ea   : > { %v3540_v24 = vpack.c.bf16 %v6679_v45, %v6677_v50  ;;  %6684 = vtanh.f32 %v3309_v2  ;;  %5804 = vmatmul.msk.bf16.gmra.mxu3 %vm973_vm6, %v7110_v21  ;;  %v2976_v61 = vpop.f32.mrf.mxu1 }
 0x3eb   : > { %6686 = vtanh.f32 %v3310_v3  ;;  %v3227_v37 = vpack.c.bf16 %v2976_v61, %v2887_v8  ;;  %p7152_p3 = pnand %p7151_p2, %p7147_p13 }
 0x3ec   : > { %5827 = vst [vmem:[%s7749_s29 + $0x2a8] sm:$0xff] %v3540_v24  ;;  %v3060_v43 = vpop.f32.mrf.mxu2  ;;  %5748 = vmatmul.msk.bf16.gmra.mxu0 %vm973_vm6, %v7111_v44 }
 0x3ed   : > { %v6681_v9 = vpop.eup %6680  ;;  %v3319_v10 = vunpack.c.l.bf16 %v3227_v37  ;;  %v3320_v41 = vunpack.c.h.bf16 %v3227_v37  ;;  %v3149_v0 = vpop.f32.mrf.mxu3  ;;  %5767 = vmatmul.msk.bf16.gmra.mxu1 %vm973_vm6, %v7111_v44 }
 0x3ee   : > { %v6683_v47 = vpop.eup %6682  ;;  %v3224_v49 = vpack.c.bf16 %v3149_v0, %v3060_v43  ;;  %v5891_v0 = vld [vmem:[%s8947_s3 + $0x8] sm:$0xf] }
 0x3ef   : > { %v3545_v62 = vpack.c.bf16 %v6683_v47, %v6681_v9  ;;  %6688 = vtanh.f32 %v3319_v10  ;;  %v6254_v47 = vld [vmem:[%s8947_s3 + $0x14] sm:$0xf0] }
 0x3f0   : > { %v6685_v48 = vpop.eup %6684  ;;  %6690 = vtanh.f32 %v3320_v41  ;;  %v3313_v63 = vunpack.c.l.bf16 %v3224_v49  ;;  %v3314_v1 = vunpack.c.h.bf16 %v3224_v49  ;;  %v6252_v49 = vld [vmem:[%s8947_s3 + $0xc] sm:$0xf] }
 0x3f1   : > { %v6687_v34 = vpop.eup %6686  ;;  %5832 = vst [vmem:[%s7749_s29 + $0x2d0] sm:$0xff] %v3545_v62  ;;  %v2889_v36 = vpop.f32.mrf.mxu0 }
 0x3f2   : > { %v3542_v42 = vpack.c.bf16 %v6687_v34, %v6685_v48  ;;  %6692 = vtanh.f32 %v3313_v63  ;;  %v2978_v11 = vpop.f32.mrf.mxu1  ;;  %v5892_v63 = vor.u32 %v6254_v47, %v5891_v0  ;;  %v5925_v34 = vld [vmem:[%s8948_s4 + $0x20] sm:$0xf]  ;;  %v5917_v47 = vld [vmem:[%s8948_s4 + $0x8] sm:$0xf] }
 0x3f3   : > { %6694 = vtanh.f32 %v3314_v1  ;;  %v3229_v12 = vpack.c.bf16 %v2978_v11, %v2889_v36  ;;  %v5893_v1 = vld [vmem:[%s8947_s3 + $0x18] sm:$0xf0]  ;;  %v6262_v36 = vld [vmem:[%s8948_s4 + $0x2c] sm:$0xf0] }
 0x3f4   : > { %5829 = vst [vmem:[%s7749_s29 + $0x2b8] sm:$0xff] %v3542_v42  ;;  %v3062_v17 = vpop.f32.mrf.mxu2  ;;  %v5896_v11 = vor.u32 %v6252_v49, %v5893_v1  ;;  %v6259_v49 = vld [vmem:[%s8948_s4 + $0x14] sm:$0xf0]  ;;  %v6257_v1 = vld [vmem:[%s8948_s4 + $0xc] sm:$0xf] }
 0x3f5   : > { %v6689_v18 = vpop.eup %6688  ;;  %v3323_v19 = vunpack.c.l.bf16 %v3229_v12  ;;  %v3324_v20 = vunpack.c.h.bf16 %v3229_v12  ;;  %v3151_v21 = vpop.f32.mrf.mxu3  ;;  %v5927_v12 = vld [vmem:[%s8948_s4 + $0x30] sm:$0xf0] }
 0x3f6   : > { %v6691_v53 = vpop.eup %6690  ;;  %v3226_v30 = vpack.c.bf16 %v3151_v21, %v3062_v17  ;;  %v5926_v21 = vor.u32 %v6262_v36, %v5925_v34  ;;  %v5919_v34 = vld [vmem:[%s8948_s4 + $0x18] sm:$0xf0] }
 0x3f7   : > { %v3547_v4 = vpack.c.bf16 %v6691_v53, %v6689_v18  ;;  %6696 = vtanh.f32 %v3323_v19  ;;  %v8380_v19 = vld [vmem:[%s7366_s24 + $0x4] sm:$0x3]  ;;  %v5930_v53 = vor.u32 %v6260_v35, %v5927_v12  ;;  %s5165_s24 = sshll.u32 %s7749_s29, 4  ;;  %s5166_s24 = int_to_ptr.vmem [resolvable:$true] %s5165_s24 }
 0x3f8   : > { %v6693_v15 = vpop.eup %6692  ;;  %6698 = vtanh.f32 %v3324_v20  ;;  %v3317_v16 = vunpack.c.l.bf16 %v3226_v30  ;;  %v3318_v33 = vunpack.c.h.bf16 %v3226_v30  ;;  %v5909_v30 = vld [vmem:[%s8948_s4] sm:$0xf] }
 0x3f9   : > { %v6695_v25 = vpop.eup %6694  ;;  %5834 = vst [vmem:[%s7749_s29 + $0x2e0] sm:$0xff] %v3547_v4  ;;  %5786 = vmatmul.msk.bf16.gmra.mxu2 %vm973_vm6, %v7111_v44  ;;  %v2892_v26 = vpop.f32.mrf.mxu0  ;;  %v6258_v4 = vld [vmem:[%s8948_s4 + $0xc] sm:$0xf0] }
 0x3fa   : > { %v3544_v40 = vpack.c.bf16 %v6695_v25, %v6693_v15  ;;  %6700 = vtanh.f32 %v3317_v16  ;;  %5805 = vmatmul.msk.bf16.gmra.mxu3 %vm973_vm6, %v7111_v44  ;;  %v2981_v51 = vpop.f32.mrf.mxu1  ;;  %v5911_v15 = vld [vmem:[%s8948_s4 + $0x10] sm:$0xf0]  ;;  %v5910_v27 = vor.u32 %v6258_v4, %v5909_v30 }
 0x3fb   : > { %6702 = vtanh.f32 %v3318_v33  ;;  %v3231_v57 = vpack.c.bf16 %v2981_v51, %v2892_v26  ;;  %v5914_v51 = vor.u32 %v6256_v7, %v5911_v15 }
 0x3fc   : > { %5831 = vst [vmem:[%s7749_s29 + $0x2c8] sm:$0xff] %v3544_v40  ;;  %v3065_v58 = vpop.f32.mrf.mxu2  ;;  %5871 = vmatmul.msk.bf16.vlgmr.msra.gmra.mxu0 %vm520_vm2, %v8331_v32 }
 0x3fd   : > { %v6697_v59 = vpop.eup %6696  ;;  %v3327_v60 = vunpack.c.l.bf16 %v3231_v57  ;;  %v3328_v29 = vunpack.c.h.bf16 %v3231_v57  ;;  %v3154_v50 = vpop.f32.mrf.mxu3  ;;  %5872 = vmatmul.msk.bf16.vlgmr.msra.gmra.mxu1 %vm520_vm2, %v8331_v32  ;;  %3837 = vmatpush.bf16.msra.mxu0 %v5884_v52 }
 0x3fe   : > { %v6699_v2 = vpop.eup %6698  ;;  %v3228_v3 = vpack.c.bf16 %v3154_v50, %v3065_v58  ;;  %3850 = vmatpush.bf16.msra.mxu1 %v5888_v28  ;;  %v5933_v50 = vld [vmem:[%s8948_s4 + $0x28] sm:$0xf] }
 0x3ff   : > { %v3549_v45 = vpack.c.bf16 %v6699_v2, %v6697_v59  ;;  %6704 = vtanh.f32 %v3327_v60  ;;  %v6263_v2 = vld [vmem:[%s8948_s4 + $0x34] sm:$0xf0] }
 0x400   : > { %v6701_v8 = vpop.eup %6700  ;;  %6706 = vtanh.f32 %v3328_v29  ;;  %v3321_v31 = vunpack.c.l.bf16 %v3228_v3  ;;  %v3322_v23 = vunpack.c.h.bf16 %v3228_v3 }
 0x401   : > { %v6703_v24 = vpop.eup %6702  ;;  %5836 = vst [vmem:[%s7749_s29 + $0x2f0] sm:$0xff] %v3549_v45  ;;  %v2894_v61 = vpop.f32.mrf.mxu0  ;;  %v6261_v45 = vld [vmem:[%s8948_s4 + $0x2c] sm:$0xf] }
 0x402   : > { %v3546_v37 = vpack.c.bf16 %v6703_v24, %v6701_v8  ;;  %6708 = vtanh.f32 %v3321_v31  ;;  %v2983_v39 = vpop.f32.mrf.mxu1  ;;  %v5935_v8 = vld [vmem:[%s8948_s4 + $0x38] sm:$0xf0] }
 0x403   : > { %6710 = vtanh.f32 %v3322_v23  ;;  %v3233_v54 = vpack.c.bf16 %v2983_v39, %v2894_v61  ;;  %v5938_v0 = vor.u32 %v6261_v45, %v5935_v8  ;;  %v5959_v45 = vld [vmem:[%s8949_s5 + $0x10] sm:$0xf0]  ;;  %v6013_v8 = vld [vmem:[%s8949_s5 + $0x68] sm:$0xf] }
 0x404   : > { %5833 = vst [vmem:[%s7749_s29 + $0x2d8] sm:$0xff] %v3546_v37  ;;  %v3067_v43 = vpop.f32.mrf.mxu2 }
 0x405   : > { %v6705_v44 = vpop.eup %6704  ;;  %v3331_v9 = vunpack.c.l.bf16 %v3233_v54  ;;  %v3332_v10 = vunpack.c.h.bf16 %v3233_v54  ;;  %v3156_v41 = vpop.f32.mrf.mxu3  ;;  %v6005_v54 = vld [vmem:[%s8949_s5 + $0x60] sm:$0xf] }
 0x406   : > { %v6707_v62 = vpop.eup %6706  ;;  %v3230_v48 = vpack.c.bf16 %v3156_v41, %v3067_v43  ;;  %v6280_v43 = vld [vmem:[%s8949_s5 + $0x6c] sm:$0xf0]  ;;  %v6007_v41 = vld [vmem:[%s8949_s5 + $0x70] sm:$0xf0] }
 0x407   : > { %v3551_v42 = vpack.c.bf16 %v6707_v62, %v6705_v44  ;;  %6712 = vtanh.f32 %v3331_v9  ;;  %v6278_v44 = vld [vmem:[%s8949_s5 + $0x64] sm:$0xf]  ;;  %v5934_v9 = vor.u32 %v6263_v2, %v5933_v50  ;;  %v6006_v35 = vor.u32 %v6280_v43, %v6005_v54  ;;  %v6268_v50 = vld [vmem:[%s8949_s5 + $0xc] sm:$0xf0] }
 0x408   : > { %v6709_v13 = vpop.eup %6708  ;;  %6714 = vtanh.f32 %v3332_v10  ;;  %v3325_v14 = vunpack.c.l.bf16 %v3230_v48  ;;  %v3326_v17 = vunpack.c.h.bf16 %v3230_v48  ;;  %v6266_v2 = vld [vmem:[%s8949_s5 + $0x4] sm:$0xf] }
 0x409   : > { %v6711_v18 = vpop.eup %6710  ;;  %5838 = vst [vmem:[%s7749_s29 + $0x300] sm:$0xff] %v3551_v42  ;;  %5873 = vmatmul.msk.bf16.vlgmr.msra.gmra.mxu2 %vm520_vm2, %v8331_v32  ;;  %v2897_v20 = vpop.f32.mrf.mxu0 }
 0x40a   : > { %v3548_v22 = vpack.c.bf16 %v6711_v18, %v6709_v13  ;;  %6716 = vtanh.f32 %v3325_v14  ;;  %5874 = vmatmul.msk.bf16.vlgmr.msra.gmra.mxu3 %vm520_vm2, %v8331_v32  ;;  %v2986_v46 = vpop.f32.mrf.mxu1  ;;  %3863 = vmatpush.bf16.msra.mxu2 %v5892_v63  ;;  %v6010_v14 = vor.u32 %v6278_v44, %v6007_v41  ;;  %v6276_v18 = vld [vmem:[%s8949_s5 + $0x4c] sm:$0xf0]  ;;  %v5962_v41 = vor.u32 %v6266_v2, %v5959_v45 }
 0x40b   : > { %6718 = vtanh.f32 %v3326_v17  ;;  %v3235_v5 = vpack.c.bf16 %v2986_v46, %v2897_v20  ;;  %3876 = vmatpush.bf16.msra.mxu3 %v5896_v11  ;;  %v8446_v11 = vld [vmem:[%s7425_s22 + $0x8] sm:$0xf]  ;;  %v5989_v17 = vld [vmem:[%s8949_s5 + $0x40] sm:$0xf]  ;;  %v5918_v20 = vor.u32 %v6259_v49, %v5917_v47  ;;  %v5922_v46 = vor.u32 %v6257_v1, %v5919_v34  ;;  %v8506_v47 = vld [vmem:[%s7532_s16 + $0x10] sm:$0xff] }
 0x40c   : > { %5835 = vst [vmem:[%s7749_s29 + $0x2e8] sm:$0xff] %v3548_v22  ;;  %v3070_v32 = vpop.f32.mrf.mxu2  ;;  %5876 = vmatmul.msk.bf16.vlgmr.msrb.gmra.mxu0 %vm598_vm3, %v8380_v19  ;;  %v6274_v22 = vld [vmem:[%s8949_s5 + $0x44] sm:$0xf]  ;;  %v5990_v15 = vor.u32 %v6276_v18, %v5989_v17 }
 0x40d   : > { %v6713_v16 = vpop.eup %6712  ;;  %v3335_v33 = vunpack.c.l.bf16 %v3235_v5  ;;  %v3336_v25 = vunpack.c.h.bf16 %v3235_v5  ;;  %v3159_v26 = vpop.f32.mrf.mxu3  ;;  %5877 = vmatmul.msk.bf16.vlgmr.msrb.gmra.mxu1 %vm598_vm3, %v8380_v19  ;;  %3947 = vmatpush.bf16.msrb.mxu0 %v5926_v21 }
 0x40e   : > { %v6715_v38 = vpop.eup %6714  ;;  %v3232_v40 = vpack.c.bf16 %v3159_v26, %v3070_v32  ;;  %3961 = vmatpush.bf16.msrb.mxu1 %v5930_v53  ;;  %v6272_v26 = vld [vmem:[%s8949_s5 + $0x2c] sm:$0xf0] }
 0x40f   : > { %v3553_v52 = vpack.c.bf16 %v6715_v38, %v6713_v16  ;;  %6720 = vtanh.f32 %v3335_v33  ;;  %v6270_v38 = vld [vmem:[%s8949_s5 + $0x24] sm:$0xf] }
 0x410   : > { %v6717_v55 = vpop.eup %6716  ;;  %6722 = vtanh.f32 %v3336_v25  ;;  %v3329_v56 = vunpack.c.l.bf16 %v3232_v40  ;;  %v3330_v57 = vunpack.c.h.bf16 %v3232_v40  ;;  %v5973_v25 = vld [vmem:[%s8949_s5 + $0x20] sm:$0xf]  ;;  %v5975_v40 = vld [vmem:[%s8949_s5 + $0x30] sm:$0xf0] }
 0x411   : > { %v6719_v28 = vpop.eup %6718  ;;  %5840 = vst [vmem:[%s7749_s29 + $0x310] sm:$0xff] %v3553_v52  ;;  %v2899_v58 = vpop.f32.mrf.mxu0  ;;  %3948 = vmatpush.bf16.msrb.mxu0 %v5910_v27 }
 0x412   : > { %v3550_v59 = vpack.c.bf16 %v6719_v28, %v6717_v55  ;;  %6724 = vtanh.f32 %v3329_v56  ;;  %v2988_v60 = vpop.f32.mrf.mxu1  ;;  %3962 = vmatpush.bf16.msrb.mxu1 %v5914_v51  ;;  %v5974_v28 = vor.u32 %v6272_v26, %v5973_v25  ;;  %v5965_v26 = vld [vmem:[%s8949_s5 + $0x8] sm:$0xf] }
 0x413   : > { %6726 = vtanh.f32 %v3330_v57  ;;  %v3237_v29 = vpack.c.bf16 %v2988_v60, %v2899_v58  ;;  %v5978_v60 = vor.u32 %v6270_v38, %v5975_v40 }
 0x414   : > { %5837 = vst [vmem:[%s7749_s29 + $0x2f8] sm:$0xff] %v3550_v59  ;;  %v3072_v3 = vpop.f32.mrf.mxu2 }
 0x415   : > { %v6721_v31 = vpop.eup %6720  ;;  %v3339_v23 = vunpack.c.l.bf16 %v3237_v29  ;;  %v3340_v24 = vunpack.c.h.bf16 %v3237_v29  ;;  %v3161_v61 = vpop.f32.mrf.mxu3  ;;  %v5957_v29 = vld [vmem:[%s8949_s5] sm:$0xf] }
 0x416   : > { %v6723_v37 = vpop.eup %6722  ;;  %v3234_v39 = vpack.c.bf16 %v3161_v61, %v3072_v3  ;;  %v6015_v61 = vld [vmem:[%s8949_s5 + $0x78] sm:$0xf0]  ;;  %v5958_v44 = vor.u32 %v6268_v50, %v5957_v29 }
 0x417   : > { %v3555_v10 = vpack.c.bf16 %v6723_v37, %v6721_v31  ;;  %6728 = vtanh.f32 %v3339_v23  ;;  %v6281_v31 = vld [vmem:[%s8949_s5 + $0x74] sm:$0xf0] }
 0x418   : > { %v6725_v62 = vpop.eup %6724  ;;  %6730 = vtanh.f32 %v3340_v24  ;;  %v3333_v48 = vunpack.c.l.bf16 %v3234_v39  ;;  %v3334_v63 = vunpack.c.h.bf16 %v3234_v39  ;;  %v6279_v24 = vld [vmem:[%s8949_s5 + $0x6c] sm:$0xf]  ;;  %v6014_v49 = vor.u32 %v6281_v31, %v6013_v8 }
 0x419   : > { %v6727_v36 = vpop.eup %6726  ;;  %5842 = vst [vmem:[%s7749_s29 + $0x320] sm:$0xff] %v3555_v10  ;;  %5878 = vmatmul.msk.bf16.vlgmr.msrb.gmra.mxu2 %vm598_vm3, %v8380_v19  ;;  %v2902_v42 = vpop.f32.mrf.mxu0 }
 0x41a   : > { %v3552_v12 = vpack.c.bf16 %v6727_v36, %v6725_v62  ;;  %6732 = vtanh.f32 %v3333_v48  ;;  %5879 = vmatmul.msk.bf16.vlgmr.msrb.gmra.mxu3 %vm598_vm3, %v8380_v19  ;;  %v2991_v13 = vpop.f32.mrf.mxu1  ;;  %3975 = vmatpush.bf16.msrb.mxu2 %v5934_v9  ;;  %v5991_v19 = vld [vmem:[%s8949_s5 + $0x50] sm:$0xf0]  ;;  %v6018_v62 = vor.u32 %v6279_v24, %v6015_v61  ;;  %v5997_v48 = vld [vmem:[%s8949_s5 + $0x48] sm:$0xf]  ;;  %v6277_v36 = vld [vmem:[%s8949_s5 + $0x54] sm:$0xf0] }
 0x41b   : > { %6734 = vtanh.f32 %v3334_v63  ;;  %v3239_v21 = vpack.c.bf16 %v2991_v13, %v2902_v42  ;;  %3989 = vmatpush.bf16.msrb.mxu3 %v5938_v0  ;;  %v5994_v33 = vor.u32 %v6274_v22, %v5991_v19  ;;  %v6275_v42 = vld [vmem:[%s8949_s5 + $0x4c] sm:$0xf]  ;;  %v5981_v22 = vld [vmem:[%s8949_s5 + $0x28] sm:$0xf]  ;;  %v6273_v19 = vld [vmem:[%s8949_s5 + $0x34] sm:$0xf0] }
 0x41c   : > { %5839 = vst [vmem:[%s7749_s29 + $0x308] sm:$0xff] %v3552_v12  ;;  %v3075_v53 = vpop.f32.mrf.mxu2  ;;  %5897 = vmatmul.msk.bf16.vlgmr.msra.gmra.mxu0 %vm692_vm4, %v8446_v11 }
 0x41d   : > { %v6729_v30 = vpop.eup %6728  ;;  %v3343_v4 = vunpack.c.l.bf16 %v3239_v21  ;;  %v3344_v5 = vunpack.c.h.bf16 %v3239_v21  ;;  %v3164_v7 = vpop.f32.mrf.mxu3  ;;  %5898 = vmatmul.msk.bf16.vlgmr.msra.gmra.mxu1 %vm692_vm4, %v8446_v11  ;;  %4118 = vmatpush.bf16.msra.mxu0 %v6006_v35  ;;  %v5999_v35 = vld [vmem:[%s8949_s5 + $0x58] sm:$0xf0] }
 0x41e   : > { %v6731_v32 = vpop.eup %6730  ;;  %v3236_v16 = vpack.c.bf16 %v3164_v7, %v3075_v53  ;;  %4137 = vmatpush.bf16.msra.mxu1 %v6010_v14  ;;  %3976 = vmatpush.bf16.msrb.mxu2 %v5918_v20  ;;  %v5998_v20 = vor.u32 %v6277_v36, %v5997_v48  ;;  %v6002_v21 = vor.u32 %v6275_v42, %v5999_v35  ;;  %v5983_v53 = vld [vmem:[%s8949_s5 + $0x38] sm:$0xf0] }
 0x41f   : > { %v3557_v27 = vpack.c.bf16 %v6731_v32, %v6729_v30  ;;  %6736 = vtanh.f32 %v3343_v4  ;;  %3990 = vmatpush.bf16.msrb.mxu3 %v5922_v46 }
 0x420   : > { %v6733_v51 = vpop.eup %6732  ;;  %6738 = vtanh.f32 %v3344_v5  ;;  %v3337_v52 = vunpack.c.l.bf16 %v3236_v16  ;;  %v3338_v55 = vunpack.c.h.bf16 %v3236_v16 }
 0x421   : > { %v6735_v56 = vpop.eup %6734  ;;  %5844 = vst [vmem:[%s7749_s29 + $0x330] sm:$0xff] %v3557_v27  ;;  %v2904_v57 = vpop.f32.mrf.mxu0  ;;  %4119 = vmatpush.bf16.msra.mxu0 %v5990_v15 }
 0x422   : > { %v3554_v58 = vpack.c.bf16 %v6735_v56, %v6733_v51  ;;  %6740 = vtanh.f32 %v3337_v52  ;;  %v2993_v59 = vpop.f32.mrf.mxu1  ;;  %4138 = vmatpush.bf16.msra.mxu1 %v5994_v33  ;;  %v5982_v33 = vor.u32 %v6273_v19, %v5981_v22  ;;  %v6269_v51 = vld [vmem:[%s8949_s5 + $0x14] sm:$0xf0]  ;;  %v6267_v52 = vld [vmem:[%s8949_s5 + $0xc] sm:$0xf] }
 0x423   : > { %6742 = vtanh.f32 %v3338_v55  ;;  %v3241_v3 = vpack.c.bf16 %v2993_v59, %v2904_v57  ;;  %v5967_v55 = vld [vmem:[%s8949_s5 + $0x18] sm:$0xf0] }
 0x424   : > { %5841 = vst [vmem:[%s7749_s29 + $0x318] sm:$0xff] %v3554_v58  ;;  %v3077_v23 = vpop.f32.mrf.mxu2  ;;  %v5970_v29 = vor.u32 %v6267_v52, %v5967_v55 }
 0x425   : > { %v6737_v37 = vpop.eup %6736  ;;  %v3347_v39 = vunpack.c.l.bf16 %v3241_v3  ;;  %v3348_v54 = vunpack.c.h.bf16 %v3241_v3  ;;  %v3166_v43 = vpop.f32.mrf.mxu3  ;;  %4120 = vmatpush.bf16.msra.mxu0 %v5974_v28 }
 0x426   : > { %v6739_v9 = vpop.eup %6738  ;;  %v3238_v10 = vpack.c.bf16 %v3166_v43, %v3077_v23  ;;  %4139 = vmatpush.bf16.msra.mxu1 %v5978_v60  ;;  %v5966_v60 = vor.u32 %v6269_v51, %v5965_v26 }
 0x427   : > { %v3559_v0 = vpack.c.bf16 %v6739_v9, %v6737_v37  ;;  %6744 = vtanh.f32 %v3347_v39 }
 0x428   : > { %v6741_v63 = vpop.eup %6740  ;;  %6746 = vtanh.f32 %v3348_v54  ;;  %v3341_v1 = vunpack.c.l.bf16 %v3238_v10  ;;  %v3342_v34 = vunpack.c.h.bf16 %v3238_v10  ;;  %v6264_v54 = vld [vmem:[%s7543_s6 + $0x20] sm:$0xff] }
 0x429   : > { %v6743_v12 = vpop.eup %6742  ;;  %5846 = vst [vmem:[%s7749_s29 + $0x340] sm:$0xff] %v3559_v0  ;;  %5899 = vmatmul.msk.bf16.vlgmr.msra.gmra.mxu2 %vm692_vm4, %v8446_v11  ;;  %v2907_v13 = vpop.f32.mrf.mxu0  ;;  %4121 = vmatpush.bf16.msra.mxu0 %v5958_v44 }
 0x42a   : > { %v3556_v14 = vpack.c.bf16 %v6743_v12, %v6741_v63  ;;  %6748 = vtanh.f32 %v3341_v1  ;;  %5900 = vmatmul.msk.bf16.vlgmr.msra.gmra.mxu3 %vm692_vm4, %v8446_v11  ;;  %v2996_v17 = vpop.f32.mrf.mxu1  ;;  %4140 = vmatpush.bf16.msra.mxu1 %v5962_v41  ;;  %v6271_v11 = vld [vmem:[%s8949_s5 + $0x2c] sm:$0xf] }
 0x42b   : > { %6750 = vtanh.f32 %v3342_v34  ;;  %v3243_v18 = vpack.c.bf16 %v2996_v17, %v2907_v13  ;;  %4156 = vmatpush.bf16.msra.mxu2 %v6014_v49  ;;  %4175 = vmatpush.bf16.msra.mxu3 %v6018_v62  ;;  %v5986_v25 = vor.u32 %v6271_v11, %v5983_v53 }
 0x42c   : > { %5843 = vst [vmem:[%s7749_s29 + $0x328] sm:$0xff] %v3556_v14  ;;  %v3080_v46 = vpop.f32.mrf.mxu2  ;;  %5939 = vmatmul.msk.bf16.vlgmr.msrb.gmra.mxu0 %vm803_vm5, %v8506_v47 }
 0x42d   : > { %v6745_v30 = vpop.eup %6744  ;;  %v3351_v4 = vunpack.c.l.bf16 %v3243_v18  ;;  %v3352_v5 = vunpack.c.h.bf16 %v3243_v18  ;;  %v3169_v7 = vpop.f32.mrf.mxu3  ;;  %5940 = vmatmul.msk.bf16.vlgmr.msrb.gmra.mxu1 %vm803_vm5, %v8506_v47 }
 0x42e   : > { %v6747_v15 = vpop.eup %6746  ;;  %v3240_v32 = vpack.c.bf16 %v3169_v7, %v3080_v46 }
 0x42f   : > { %v3561_v16 = vpack.c.bf16 %v6747_v15, %v6745_v30  ;;  %6752 = vtanh.f32 %v3351_v4  ;;  %4157 = vmatpush.bf16.msra.mxu2 %v5998_v20  ;;  %4176 = vmatpush.bf16.msra.mxu3 %v6002_v21  ;;  %v6265_v15 = vld [vmem:[%s7543_s6 + $0x28] sm:$0xff] }
 0x430   : > { %v6749_v27 = vpop.eup %6748  ;;  %6754 = vtanh.f32 %v3352_v5  ;;  %v3345_v38 = vunpack.c.l.bf16 %v3240_v32  ;;  %v3346_v40 = vunpack.c.h.bf16 %v3240_v32 }
 0x431   : > { %v6751_v56 = vpop.eup %6750  ;;  %5848 = vst [vmem:[%s7749_s29 + $0x350] sm:$0xff] %v3561_v16  ;;  %v2909_v57 = vpop.f32.mrf.mxu0 }
 0x432   : > { %v3558_v28 = vpack.c.bf16 %v6751_v56, %v6749_v27  ;;  %6756 = vtanh.f32 %v3345_v38  ;;  %v2998_v58 = vpop.f32.mrf.mxu1 }
 0x433   : > { %6758 = vtanh.f32 %v3346_v40  ;;  %v3245_v59 = vpack.c.bf16 %v2998_v58, %v2909_v57  ;;  %4158 = vmatpush.bf16.msra.mxu2 %v5982_v33  ;;  %4177 = vmatpush.bf16.msra.mxu3 %v5986_v25 }
 0x434   : > { %5845 = vst [vmem:[%s7749_s29 + $0x338] sm:$0xff] %v3558_v28  ;;  %v3082_v50 = vpop.f32.mrf.mxu2 }
 0x435   : > { %v6753_v2 = vpop.eup %6752  ;;  %v3355_v3 = vunpack.c.l.bf16 %v3245_v59  ;;  %v3356_v45 = vunpack.c.h.bf16 %v3245_v59  ;;  %v3171_v8 = vpop.f32.mrf.mxu3 }
 0x436   : > { %v6755_v31 = vpop.eup %6754  ;;  %v3242_v23 = vpack.c.bf16 %v3171_v8, %v3082_v50 }
 0x437   : > { %v3563_v24 = vpack.c.bf16 %v6755_v31, %v6753_v2  ;;  %6760 = vtanh.f32 %v3355_v3  ;;  %4159 = vmatpush.bf16.msra.mxu2 %v5966_v60  ;;  %4178 = vmatpush.bf16.msra.mxu3 %v5970_v29 }
 0x438   : > { %v6757_v61 = vpop.eup %6756  ;;  %6762 = vtanh.f32 %v3356_v45  ;;  %v3349_v37 = vunpack.c.l.bf16 %v3242_v23  ;;  %v3350_v39 = vunpack.c.h.bf16 %v3242_v23 }
 0x439   : > { %v6759_v43 = vpop.eup %6758  ;;  %5850 = vst [vmem:[%s7749_s29 + $0x360] sm:$0xff] %v3563_v24  ;;  %5941 = vmatmul.msk.bf16.vlgmr.msrb.gmra.mxu2 %vm803_vm5, %v8506_v47  ;;  %v2912_v44 = vpop.f32.mrf.mxu0 }
 0x43a   : > { %v3560_v9 = vpack.c.bf16 %v6759_v43, %v6757_v61  ;;  %6764 = vtanh.f32 %v3349_v37  ;;  %5942 = vmatmul.msk.bf16.vlgmr.msrb.gmra.mxu3 %vm803_vm5, %v8506_v47  ;;  %v3001_v10 = vpop.f32.mrf.mxu1 }
 0x43b   : > { %6766 = vtanh.f32 %v3350_v39  ;;  %v3247_v41 = vpack.c.bf16 %v3001_v10, %v2912_v44 }
 0x43c   : > { %5847 = vst [vmem:[%s7749_s29 + $0x348] sm:$0xff] %v3560_v9  ;;  %v3085_v0 = vpop.f32.mrf.mxu2  ;;  %6019 = vmatmul.msk.bf16.vlgmr.msra.gmra.mxu0 %vm973_vm6, %v6264_v54 }
 0x43d   : > { %v6761_v49 = vpop.eup %6760  ;;  %v3359_v62 = vunpack.c.l.bf16 %v3247_v41  ;;  %v3360_v48 = vunpack.c.h.bf16 %v3247_v41  ;;  %v3174_v63 = vpop.f32.mrf.mxu3  ;;  %6021 = vmatmul.msk.bf16.vlgmr.msra.gmra.mxu1 %vm973_vm6, %v6264_v54 }
 0x43e   : > { %v6763_v1 = vpop.eup %6762  ;;  %v3244_v34 = vpack.c.bf16 %v3174_v63, %v3085_v0 }
 0x43f   : > { %v3565_v36 = vpack.c.bf16 %v6763_v1, %v6761_v49  ;;  %6768 = vtanh.f32 %v3359_v62 }
 0x440   : > { %v6765_v47 = vpop.eup %6764  ;;  %6770 = vtanh.f32 %v3360_v48  ;;  %v3353_v42 = vunpack.c.l.bf16 %v3244_v34  ;;  %v3354_v35 = vunpack.c.h.bf16 %v3244_v34 }
 0x441   : > { %v6767_v12 = vpop.eup %6766  ;;  %5852 = vst [vmem:[%s7749_s29 + $0x370] sm:$0xff] %v3565_v36  ;;  %v2914_v13 = vpop.f32.mrf.mxu0 }
 0x442   : > { %v3562_v14 = vpack.c.bf16 %v6767_v12, %v6765_v47  ;;  %6772 = vtanh.f32 %v3353_v42  ;;  %v3003_v17 = vpop.f32.mrf.mxu1 }
 0x443   : > { %6774 = vtanh.f32 %v3354_v35  ;;  %v3249_v18 = vpack.c.bf16 %v3003_v17, %v2914_v13 }
 0x444   : > { %5849 = vst [vmem:[%s7749_s29 + $0x358] sm:$0xff] %v3562_v14  ;;  %v3087_v20 = vpop.f32.mrf.mxu2 }
 0x445   : > { %v6769_v21 = vpop.eup %6768  ;;  %v3363_v22 = vunpack.c.l.bf16 %v3249_v18  ;;  %v3364_v19 = vunpack.c.h.bf16 %v3249_v18  ;;  %v3176_v46 = vpop.f32.mrf.mxu3 }
 0x446   : > { %v6771_v11 = vpop.eup %6770  ;;  %v3246_v53 = vpack.c.bf16 %v3176_v46, %v3087_v20 }
 0x447   : > { %v3567_v30 = vpack.c.bf16 %v6771_v11, %v6769_v21  ;;  %6776 = vtanh.f32 %v3363_v22 }
 0x448   : > { %v6773_v4 = vpop.eup %6772  ;;  %6778 = vtanh.f32 %v3364_v19  ;;  %v3357_v5 = vunpack.c.l.bf16 %v3246_v53  ;;  %v3358_v7 = vunpack.c.h.bf16 %v3246_v53 }
 0x449   : > { %v6775_v32 = vpop.eup %6774  ;;  %5854 = vst [vmem:[%s7749_s29 + $0x380] sm:$0xff] %v3567_v30  ;;  %6023 = vmatmul.msk.bf16.vlgmr.msra.gmra.mxu2 %vm973_vm6, %v6264_v54  ;;  %v2917_v16 = vpop.f32.mrf.mxu0 }
 0x44a   : > { %v3564_v33 = vpack.c.bf16 %v6775_v32, %v6773_v4  ;;  %6780 = vtanh.f32 %v3357_v5  ;;  %6025 = vmatmul.msk.bf16.vlgmr.msra.gmra.mxu3 %vm973_vm6, %v6264_v54  ;;  %v3006_v25 = vpop.f32.mrf.mxu1 }
 0x44b   : > { %6782 = vtanh.f32 %v3358_v7  ;;  %v3251_v26 = vpack.c.bf16 %v3006_v25, %v2917_v16 }
 0x44c   : > { %5851 = vst [vmem:[%s7749_s29 + $0x368] sm:$0xff] %v3564_v33  ;;  %v3090_v27 = vpop.f32.mrf.mxu2  ;;  %6020 = vmatmul.msk.bf16.gmra.mxu0 %vm973_vm6, %v6265_v15 }
 0x44d   : > { %v6777_v38 = vpop.eup %6776  ;;  %v3367_v40 = vunpack.c.l.bf16 %v3251_v26  ;;  %v3368_v51 = vunpack.c.h.bf16 %v3251_v26  ;;  %v3179_v52 = vpop.f32.mrf.mxu3  ;;  %6022 = vmatmul.msk.bf16.gmra.mxu1 %vm973_vm6, %v6265_v15 }
 0x44e   : > { %v6779_v55 = vpop.eup %6778  ;;  %v3248_v56 = vpack.c.bf16 %v3179_v52, %v3090_v27 }
 0x44f   : > { %v3569_v57 = vpack.c.bf16 %v6779_v55, %v6777_v38  ;;  %6784 = vtanh.f32 %v3367_v40 }
 0x450   : > { %v6781_v28 = vpop.eup %6780  ;;  %6786 = vtanh.f32 %v3368_v51  ;;  %v3361_v58 = vunpack.c.l.bf16 %v3248_v56  ;;  %v3362_v59 = vunpack.c.h.bf16 %v3248_v56 }
 0x451   : > { %v6783_v60 = vpop.eup %6782  ;;  %5856 = vst [vmem:[%s7749_s29 + $0x390] sm:$0xff] %v3569_v57  ;;  %v2919_v29 = vpop.f32.mrf.mxu0 }
 0x452   : > { %v3566_v50 = vpack.c.bf16 %v6783_v60, %v6781_v28  ;;  %6788 = vtanh.f32 %v3361_v58  ;;  %v3008_v2 = vpop.f32.mrf.mxu1 }
 0x453   : > { %6790 = vtanh.f32 %v3362_v59  ;;  %v3253_v3 = vpack.c.bf16 %v3008_v2, %v2919_v29 }
 0x454   : > { %5853 = vst [vmem:[%s7749_s29 + $0x378] sm:$0xff] %v3566_v50  ;;  %v3092_v45 = vpop.f32.mrf.mxu2 }
 0x455   : > { %v6785_v8 = vpop.eup %6784  ;;  %v3371_v31 = vunpack.c.l.bf16 %v3253_v3  ;;  %v3372_v23 = vunpack.c.h.bf16 %v3253_v3  ;;  %v3181_v24 = vpop.f32.mrf.mxu3 }
 0x456   : > { %v6787_v61 = vpop.eup %6786  ;;  %v3250_v37 = vpack.c.bf16 %v3181_v24, %v3092_v45 }
 0x457   : > { %v3571_v39 = vpack.c.bf16 %v6787_v61, %v6785_v8  ;;  %6792 = vtanh.f32 %v3371_v31 }
 0x458   : > { %v6789_v54 = vpop.eup %6788  ;;  %6794 = vtanh.f32 %v3372_v23  ;;  %v3365_v43 = vunpack.c.l.bf16 %v3250_v37  ;;  %v3366_v44 = vunpack.c.h.bf16 %v3250_v37 }
 0x459   : > { %v6791_v9 = vpop.eup %6790  ;;  %5858 = vst [vmem:[%s7749_s29 + $0x3a0] sm:$0xff] %v3571_v39  ;;  %6024 = vmatmul.msk.bf16.gmra.mxu2 %vm973_vm6, %v6265_v15  ;;  %v2922_v10 = vpop.f32.mrf.mxu0 }
 0x45a   : > { %v3568_v41 = vpack.c.bf16 %v6791_v9, %v6789_v54  ;;  %6796 = vtanh.f32 %v3365_v43  ;;  %6026 = vmatmul.msk.bf16.gmra.mxu3 %vm973_vm6, %v6265_v15  ;;  %v3011_v0 = vpop.f32.mrf.mxu1 }
 0x45b   : > { %6798 = vtanh.f32 %v3366_v44  ;;  %v3255_v49 = vpack.c.bf16 %v3011_v0, %v2922_v10 }
 0x45c   : > { %5855 = vst [vmem:[%s7749_s29 + $0x388] sm:$0xff] %v3568_v41  ;;  %v3095_v62 = vpop.f32.mrf.mxu2 }
 0x45d   : > { %v6793_v48 = vpop.eup %6792  ;;  %v3375_v63 = vunpack.c.l.bf16 %v3255_v49  ;;  %v3376_v1 = vunpack.c.h.bf16 %v3255_v49  ;;  %v3184_v34 = vpop.f32.mrf.mxu3 }
 0x45e   : > { %v6795_v36 = vpop.eup %6794  ;;  %v3252_v47 = vpack.c.bf16 %v3184_v34, %v3095_v62 }
 0x45f   : > { %v3573_v42 = vpack.c.bf16 %v6795_v36, %v6793_v48  ;;  %6800 = vtanh.f32 %v3375_v63 }
 0x460   : > { %v6797_v35 = vpop.eup %6796  ;;  %6802 = vtanh.f32 %v3376_v1  ;;  %v3369_v12 = vunpack.c.l.bf16 %v3252_v47  ;;  %v3370_v13 = vunpack.c.h.bf16 %v3252_v47 }
 0x461   : > { %v6799_v14 = vpop.eup %6798  ;;  %5860 = vst [vmem:[%s7749_s29 + $0x3b0] sm:$0xff] %v3573_v42  ;;  %v2924_v17 = vpop.f32.mrf.mxu0 }
 0x462   : > { %v3570_v18 = vpack.c.bf16 %v6799_v14, %v6797_v35  ;;  %6804 = vtanh.f32 %v3369_v12  ;;  %v3013_v20 = vpop.f32.mrf.mxu1 }
 0x463   : > { %6806 = vtanh.f32 %v3370_v13  ;;  %v3257_v21 = vpack.c.bf16 %v3013_v20, %v2924_v17 }
 0x464   : > { %5857 = vst [vmem:[%s7749_s29 + $0x398] sm:$0xff] %v3570_v18  ;;  %v3097_v22 = vpop.f32.mrf.mxu2 }
 0x465   : > { %v6801_v19 = vpop.eup %6800  ;;  %v3379_v46 = vunpack.c.l.bf16 %v3257_v21  ;;  %v3380_v11 = vunpack.c.h.bf16 %v3257_v21  ;;  %v3186_v53 = vpop.f32.mrf.mxu3 }
 0x466   : > { %v6803_v30 = vpop.eup %6802  ;;  %v3254_v4 = vpack.c.bf16 %v3186_v53, %v3097_v22 }
 0x467   : > { %v3575_v5 = vpack.c.bf16 %v6803_v30, %v6801_v19  ;;  %6808 = vtanh.f32 %v3379_v46 }
 0x468   : > { %v6805_v7 = vpop.eup %6804  ;;  %6810 = vtanh.f32 %v3380_v11  ;;  %v3373_v15 = vunpack.c.l.bf16 %v3254_v4  ;;  %v3374_v32 = vunpack.c.h.bf16 %v3254_v4 }
 0x469   : > { %v6807_v16 = vpop.eup %6806  ;;  %5862 = vst [vmem:[%s7749_s29 + $0x3c0] sm:$0xff] %v3575_v5  ;;  %v2927_v33 = vpop.f32.mrf.mxu0 }
 0x46a   : > { %v3572_v25 = vpack.c.bf16 %v6807_v16, %v6805_v7  ;;  %6812 = vtanh.f32 %v3373_v15  ;;  %v3016_v26 = vpop.f32.mrf.mxu1 }
 0x46b   : > { %6814 = vtanh.f32 %v3374_v32  ;;  %v3259_v27 = vpack.c.bf16 %v3016_v26, %v2927_v33 }
 0x46c   : > { %5859 = vst [vmem:[%s7749_s29 + $0x3a8] sm:$0xff] %v3572_v25  ;;  %v3100_v38 = vpop.f32.mrf.mxu2 }
 0x46d   : > { %v6809_v40 = vpop.eup %6808  ;;  %v3383_v51 = vunpack.c.l.bf16 %v3259_v27  ;;  %v3384_v52 = vunpack.c.h.bf16 %v3259_v27  ;;  %v3189_v55 = vpop.f32.mrf.mxu3 }
 0x46e   : > { %v6811_v56 = vpop.eup %6810  ;;  %v3256_v57 = vpack.c.bf16 %v3189_v55, %v3100_v38 }
 0x46f   : > { %v3577_v28 = vpack.c.bf16 %v6811_v56, %v6809_v40  ;;  %6816 = vtanh.f32 %v3383_v51 }
 0x470   : > { %v6813_v58 = vpop.eup %6812  ;;  %6818 = vtanh.f32 %v3384_v52  ;;  %v3377_v59 = vunpack.c.l.bf16 %v3256_v57  ;;  %v3378_v60 = vunpack.c.h.bf16 %v3256_v57 }
 0x471   : > { %v6815_v29 = vpop.eup %6814  ;;  %5864 = vst [vmem:[%s7749_s29 + $0x3d0] sm:$0xff] %v3577_v28  ;;  %v2929_v50 = vpop.f32.mrf.mxu0 }
 0x472   : > { %v3574_v2 = vpack.c.bf16 %v6815_v29, %v6813_v58  ;;  %6820 = vtanh.f32 %v3377_v59  ;;  %v3018_v3 = vpop.f32.mrf.mxu1 }
 0x473   : > { %6822 = vtanh.f32 %v3378_v60  ;;  %v3261_v45 = vpack.c.bf16 %v3018_v3, %v2929_v50 }
 0x474   : > { %5861 = vst [vmem:[%s7749_s29 + $0x3b8] sm:$0xff] %v3574_v2  ;;  %v3102_v8 = vpop.f32.mrf.mxu2 }
 0x475   : > { %v6817_v31 = vpop.eup %6816  ;;  %v3387_v23 = vunpack.c.l.bf16 %v3261_v45  ;;  %v3388_v24 = vunpack.c.h.bf16 %v3261_v45  ;;  %v3191_v61 = vpop.f32.mrf.mxu3 }
 0x476   : > { %v6819_v37 = vpop.eup %6818  ;;  %v3258_v39 = vpack.c.bf16 %v3191_v61, %v3102_v8 }
 0x477   : > { %v3579_v54 = vpack.c.bf16 %v6819_v37, %v6817_v31  ;;  %6824 = vtanh.f32 %v3387_v23 }
 0x478   : > { %v6821_v43 = vpop.eup %6820  ;;  %6826 = vtanh.f32 %v3388_v24  ;;  %v3381_v44 = vunpack.c.l.bf16 %v3258_v39  ;;  %v3382_v9 = vunpack.c.h.bf16 %v3258_v39 }
 0x479   : > { %v6823_v10 = vpop.eup %6822  ;;  %5866 = vst [vmem:[%s7749_s29 + $0x3e0] sm:$0xff] %v3579_v54  ;;  %v3677_v41 = vpop.f32.mrf.mxu0 }
 0x47a   : > { %v3576_v0 = vpack.c.bf16 %v6823_v10, %v6821_v43  ;;  %6828 = vtanh.f32 %v3381_v44  ;;  %v3690_v49 = vpop.f32.mrf.mxu1 }
 0x47b   : > { %6830 = vtanh.f32 %v3382_v9 }
 0x47c   : > { %5863 = vst [vmem:[%s7749_s29 + $0x3c8] sm:$0xff] %v3576_v0  ;;  %v3105_v62 = vpop.f32.mrf.mxu2 }
 0x47d   : > { %v6825_v48 = vpop.eup %6824  ;;  %v3194_v63 = vpop.f32.mrf.mxu3 }
 0x47e   : > { %v6827_v1 = vpop.eup %6826  ;;  %v3260_v34 = vpack.c.bf16 %v3194_v63, %v3105_v62 }
 0x47f   : > { %v3581_v36 = vpack.c.bf16 %v6827_v1, %v6825_v48 }
 0x480   : > { %v6829_v47 = vpop.eup %6828  ;;  %v3385_v42 = vunpack.c.l.bf16 %v3260_v34  ;;  %v3386_v35 = vunpack.c.h.bf16 %v3260_v34 }
 0x481   : > { %v6831_v12 = vpop.eup %6830  ;;  %5868 = vst [vmem:[%s7749_s29 + $0x3f0] sm:$0xff] %v3581_v36  ;;  %v3679_v13 = vpop.f32.mrf.mxu0 }
 0x482   : > { %v3578_v14 = vpack.c.bf16 %v6831_v12, %v6829_v47  ;;  %6832 = vtanh.f32 %v3385_v42  ;;  %v3692_v17 = vpop.f32.mrf.mxu1 }
 0x483   : > { %6834 = vtanh.f32 %v3386_v35 }
 0x484   : > { %5865 = vst [vmem:[%s7749_s29 + $0x3d8] sm:$0xff] %v3578_v14  ;;  %v3107_v18 = vpop.f32.mrf.mxu2 }
 0x485   : > { %v3196_v20 = vpop.f32.mrf.mxu3 }
 0x486   : > { %v3262_v21 = vpack.c.bf16 %v3196_v20, %v3107_v18 }
 0x488   : > { %v6833_v22 = vpop.eup %6832  ;;  %v3389_v19 = vunpack.c.l.bf16 %v3262_v21  ;;  %v3390_v46 = vunpack.c.h.bf16 %v3262_v21 }
 0x489   : > { %v6835_v11 = vpop.eup %6834  ;;  %v3758_v53 = vpop.f32.mrf.mxu0 }
 0x48a   : > { %v3580_v30 = vpack.c.bf16 %v6835_v11, %v6833_v22  ;;  %6836 = vtanh.f32 %v3389_v19  ;;  %v4194_v4 = vrot.slane %v3758_v53, 6  ;;  %v3771_v5 = vpop.f32.mrf.mxu1 }
 0x48b   : > { %6838 = vtanh.f32 %v3390_v46  ;;  %v4195_v7 = vrot.slane %v3771_v5, 6 }
 0x48c   : > { %5867 = vst [vmem:[%s7749_s29 + $0x3e8] sm:$0xff] %v3580_v30  ;;  %v4310_v15 = vsel %vm524_vm1, %v3677_v41, %v4194_v4  ;;  %v3703_v32 = vpop.f32.mrf.mxu2 }
 0x48d   : > { %v4311_v16 = vsel %vm524_vm1, %v3690_v49, %v4195_v7  ;;  %v3716_v33 = vpop.f32.mrf.mxu3 }
 0x490   : > { %v6837_v25 = vpop.eup %6836 }
 0x491   : > { %v6839_v26 = vpop.eup %6838  ;;  %v3760_v27 = vpop.f32.mrf.mxu0 }
 0x492   : > { %v3582_v38 = vpack.c.bf16 %v6839_v26, %v6837_v25  ;;  %v3773_v40 = vpop.f32.mrf.mxu1 }
 0x494   : > { %5869 = vst [vmem:[%s7749_s29 + $0x3f8] sm:$0xff] %v3582_v38  ;;  %v3705_v51 = vpop.f32.mrf.mxu2 }
 0x495   : > { %v3718_v52 = vpop.f32.mrf.mxu3 }
 0x499   : > { %v3839_v55 = vpop.f32.mrf.mxu0 }
 0x49a   : > { %v4206_v56 = vrot.slane %v3839_v55, 2  ;;  %v3852_v57 = vpop.f32.mrf.mxu1 }
 0x49b   : > { %v4207_v28 = vrot.slane %v3852_v57, 2 }
 0x49c   : > { %v3784_v58 = vpop.f32.mrf.mxu2  ;;  %v8595_v59 = vsel %vm1088_vm7, %v4310_v15, %v4206_v56 }
 0x49d   : > { %v4196_v60 = vrot.slane %v3784_v58, 6  ;;  %v3797_v29 = vpop.f32.mrf.mxu3  ;;  %v8598_v50 = vsel %vm1088_vm7, %v4311_v16, %v4207_v28 }
 0x49e   : > { %v4197_v2 = vrot.slane %v3797_v29, 6 }
 0x49f   : > { %v4312_v3 = vsel %vm524_vm1, %v3703_v32, %v4196_v60 }
 0x4a0   : > { %v4313_v45 = vsel %vm524_vm1, %v3716_v33, %v4197_v2 }
 0x4a1   : > { %v3841_v8 = vpop.f32.mrf.mxu0 }
 0x4a2   : > { %v3854_v31 = vpop.f32.mrf.mxu1 }
 0x4a4   : > { %v3786_v23 = vpop.f32.mrf.mxu2 }
 0x4a5   : > { %v3799_v24 = vpop.f32.mrf.mxu3 }
 0x4a9   : > { %v8602_v61 = vpop.f32.mrf.mxu0 }
 0x4aa   : > { %v4222_v37 = vrot.slane %v8602_v61, 2  ;;  %v8605_v39 = vpop.f32.mrf.mxu1 }
 0x4ab   : > { %v4223_v54 = vrot.slane %v8605_v39, 2 }
 0x4ac   : > { %v3865_v43 = vpop.f32.mrf.mxu2  ;;  %v8609_v44 = vsel %vm1088_vm7, %v4206_v56, %v4222_v37 }
 0x4ad   : > { %v4208_v9 = vrot.slane %v3865_v43, 2  ;;  %v3878_v10 = vpop.f32.mrf.mxu3  ;;  %v4330_v41 = vpack.c.bf16 %v8609_v44, %v8595_v59  ;;  %v8616_v0 = vsel %vm1088_vm7, %v4207_v28, %v4223_v54 }
 0x4ae   : > { %v4209_v49 = vrot.slane %v3878_v10, 2  ;;  %v4331_v62 = vpack.c.bf16 %v8616_v0, %v8598_v50 }
 0x4af   : > { %v8621_v48 = vsel %vm1088_vm7, %v4312_v3, %v4208_v9 }
 0x4b0   : > { %v8624_v63 = vsel %vm1088_vm7, %v4313_v45, %v4209_v49 }
 0x4b1   : > { %v3952_v1 = vpop.f32.mrf.mxu0 }
 0x4b2   : > { %v3966_v34 = vpop.f32.mrf.mxu1  ;;  %v4226_v58 = vrot.slane %v3952_v1, 2 }
 0x4b3   : > { %v4228_v3 = vrot.slane %v3966_v34, 2 }
 0x4b4   : > { %v3867_v36 = vpop.f32.mrf.mxu2  ;;  %v4227_v24 = vsel %vm1088_vm7, %v4222_v37, %v4226_v58 }
 0x4b5   : > { %v3880_v47 = vpop.f32.mrf.mxu3  ;;  %v4229_v43 = vsel %vm1088_vm7, %v4223_v54, %v4228_v3 }
 0x4b9   : > { %v4123_v42 = vpop.f32.mrf.mxu0 }
 0x4ba   : > { %v4142_v35 = vpop.f32.mrf.mxu1  ;;  %v4262_v40 = vrot.slane %v4123_v42, 2 }
 0x4bb   : > { %v4263_v55 = vrot.slane %v4142_v35, 2  ;;  %v7112_v35 = vld [vmem:[%s8944_s0] sm:$0xff] }
 0x4bc   : > { %v8626_v12 = vpop.f32.mrf.mxu2  ;;  %v4322_v61 = vsel %vm1088_vm7, %v4226_v58, %v4262_v40 }
 0x4bd   : > { %v4224_v13 = vrot.slane %v8626_v12, 2  ;;  %v8629_v14 = vpop.f32.mrf.mxu3  ;;  %v4334_v1 = vpack.c.bf16 %v4322_v61, %v4227_v24  ;;  %v7116_v12 = vld [vmem:[%s8944_s0 + $0x20] sm:$0xff] }
 0x4be   : > { %v4225_v17 = vrot.slane %v8629_v14, 2  ;;  %v7118_v14 = vld [vmem:[%s8944_s0 + $0x30] sm:$0xff] }
 0x4bf   : > { %v8635_v18 = vsel %vm1088_vm7, %v4208_v9, %v4224_v13  ;;  %v4323_v9 = vsel %vm1088_vm7, %v4228_v3, %v4263_v55 }
 0x4c0   : > { %v4332_v20 = vpack.c.bf16 %v8635_v18, %v8621_v48  ;;  %v8642_v21 = vsel %vm1088_vm7, %v4209_v49, %v4225_v17  ;;  %v4335_v34 = vpack.c.bf16 %v4323_v9, %v4229_v43  ;;  %v7114_v48 = vld [vmem:[%s8944_s0 + $0x10] sm:$0xff] }
 0x4c1   : > { %v4125_v22 = vpop.f32.mrf.mxu0  ;;  %v4333_v19 = vpack.c.bf16 %v8642_v21, %v8624_v63  ;;  %v7115_v63 = vld [vmem:[%s8944_s0 + $0x18] sm:$0xff] }
 0x4c2   : > { %v4144_v46 = vpop.f32.mrf.mxu1  ;;  %v4266_v33 = vrot.slane %v4125_v22, 2 }
 0x4c3   : > { %v4268_v27 = vrot.slane %v4144_v46, 2 }
 0x4c4   : > { %v8646_v11 = vpop.f32.mrf.mxu2  ;;  %v4267_v29 = vsel %vm1088_vm7, %v4262_v40, %v4266_v33 }
 0x4c5   : > { %v8648_v53 = vpop.f32.mrf.mxu3  ;;  %v4269_v45 = vsel %vm1088_vm7, %v4263_v55, %v4268_v27 }
 0x4c9   : > { %v4128_v30 = vpop.f32.mrf.mxu0 }
 0x4ca   : > { %v4147_v4 = vpop.f32.mrf.mxu1  ;;  %v4274_v15 = vrot.slane %v4128_v30, 2 }
 0x4cb   : > { %v4276_v32 = vrot.slane %v4147_v4, 2 }
 0x4cc   : > { %v8650_v5 = vpop.f32.mrf.mxu2  ;;  %v4275_v2 = vsel %vm1088_vm7, %v4266_v33, %v4274_v15 }
 0x4cd   : > { %v8652_v7 = vpop.f32.mrf.mxu3  ;;  %v4277_v8 = vsel %vm1088_vm7, %v4268_v27, %v4276_v32  ;;  %v4338_v31 = vpack.c.bf16 %v4275_v2, %v4267_v29  ;;  %v4264_v0 = vrot.slane %v8650_v5, 2 }
 0x4ce   : > { %v4339_v23 = vpack.c.bf16 %v4277_v8, %v4269_v45  ;;  %v4265_v30 = vrot.slane %v8652_v7, 2  ;;  %v7121_v8 = vld [vmem:[%s8944_s0 + $0x48] sm:$0xff] }
 0x4d1   : > { %v4130_v16 = vpop.f32.mrf.mxu0 }
 0x4d2   : > { %v4282_v25 = vrot.slane %v4130_v16, 2  ;;  %v4149_v26 = vpop.f32.mrf.mxu1  ;;  %v4232_v16 = vrot.slane %v8648_v53, 2 }
 0x4d3   : > { %v4284_v38 = vrot.slane %v4149_v26, 2 }
 0x4d4   : > { %v4283_v51 = vsel %vm1088_vm7, %v4274_v15, %v4282_v25  ;;  %v4163_v52 = vpop.f32.mrf.mxu2  ;;  %v4230_v15 = vrot.slane %v8646_v11, 2  ;;  %v4325_v26 = vsel %vm1088_vm7, %v4232_v16, %v4265_v30  ;;  %v4233_v27 = vsel %vm1088_vm7, %v4225_v17, %v4232_v16  ;;  %v7119_v17 = vld [vmem:[%s8944_s0 + $0x38] sm:$0xff] }
 0x4d5   : > { %v6028_v56 = vpack.c.bf16 %v4282_v25, %v4283_v51  ;;  %v4285_v57 = vsel %vm1088_vm7, %v4276_v32, %v4284_v38  ;;  %v4182_v28 = vpop.f32.mrf.mxu3  ;;  %v4270_v22 = vrot.slane %v4163_v52, 2  ;;  %v4337_v53 = vpack.c.bf16 %v4325_v26, %v4233_v27 }
 0x4d6   : > { %v6047_v60 = vpack.c.bf16 %v4284_v38, %v4285_v57  ;;  %v4272_v44 = vrot.slane %v4182_v28, 2  ;;  %v4324_v7 = vsel %vm1088_vm7, %v4230_v15, %v4264_v0  ;;  %v4231_v11 = vsel %vm1088_vm7, %v4224_v13, %v4230_v15  ;;  %v7113_v38 = vld [vmem:[%s8944_s0 + $0x8] sm:$0xff] }
 0x4d7   : > { %6029 = vmatpush.bf16.msk.msrb.mxu0 %vm7621_vm9, %v6028_v56  ;;  %v4271_v32 = vsel %vm1088_vm7, %v4264_v0, %v4270_v22  ;;  %v4336_v6 = vpack.c.bf16 %v4324_v7, %v4231_v11  ;;  %v7117_v13 = vld [vmem:[%s8944_s0 + $0x28] sm:$0xff] }
 0x4d8   : > { %6048 = vmatpush.bf16.msk.msrb.mxu1 %vm7621_vm9, %v6047_v60  ;;  %v4273_v33 = vsel %vm1088_vm7, %v4265_v30, %v4272_v44 }
 0x4db   : > { %4351 = vmatpush.bf16.msrb.mxu0 %v4338_v31 }
 0x4dc   : > { %v4166_v10 = vpop.f32.mrf.mxu2  ;;  %4440 = vmatpush.bf16.msrb.mxu1 %v4339_v23 }
 0x4dd   : > { %v4185_v49 = vpop.f32.mrf.mxu3  ;;  %v4278_v39 = vrot.slane %v4166_v10, 2 }
 0x4de   : > { %v4280_v47 = vrot.slane %v4185_v49, 2 }
 0x4df   : > { %4352 = vmatpush.bf16.msrb.mxu0 %v4334_v1  ;;  %v4279_v46 = vsel %vm1088_vm7, %v4270_v22, %v4278_v39 }
 0x4e0   : > { %4441 = vmatpush.bf16.msrb.mxu1 %v4335_v34  ;;  %v4281_v4 = vsel %vm1088_vm7, %v4272_v44, %v4280_v47  ;;  %v4340_v5 = vpack.c.bf16 %v4279_v46, %v4271_v32  ;;  %v8778_v46 = vld [vmem:[%s8944_s0 + $0x50] sm:$0xff] }
 0x4e1   : > { %v4341_v25 = vpack.c.bf16 %v4281_v4, %v4273_v33 }
 0x4e3   : > { %4353 = vmatpush.bf16.msrb.mxu0 %v4330_v41 }
 0x4e4   : > { %v4168_v37 = vpop.f32.mrf.mxu2  ;;  %4442 = vmatpush.bf16.msrb.mxu1 %v4331_v62 }
 0x4e5   : > { %v4286_v54 = vrot.slane %v4168_v37, 2  ;;  %v4187_v36 = vpop.f32.mrf.mxu3 }
 0x4e6   : > { %v4288_v42 = vrot.slane %v4187_v36, 2  ;;  %6030 = vmatmul.msk.bf16.vlgmr.msrb.gmra.mxu0 %vm973_vm6, %v7112_v35 }
 0x4e7   : > { %v4287_v59 = vsel %vm1088_vm7, %v4278_v39, %v4286_v54  ;;  %6049 = vmatmul.msk.bf16.vlgmr.msrb.gmra.mxu1 %vm973_vm6, %v7112_v35 }
 0x4e8   : > { %v6066_v41 = vpack.c.bf16 %v4286_v54, %v4287_v59  ;;  %v4289_v50 = vsel %vm1088_vm7, %v4280_v47, %v4288_v42 }
 0x4e9   : > { %v6085_v62 = vpack.c.bf16 %v4288_v42, %v4289_v50 }
 0x4ea   : > { %6067 = vmatpush.bf16.msk.msrb.mxu2 %vm7621_vm9, %v6066_v41 }
 0x4eb   : > { %6086 = vmatpush.bf16.msk.msrb.mxu3 %vm7621_vm9, %v6085_v62 }
 0x4ee   : > { %4529 = vmatpush.bf16.msrb.mxu2 %v4340_v5 }
 0x4ef   : > { %4618 = vmatpush.bf16.msrb.mxu3 %v4341_v25 }
 0x4f2   : > { %4530 = vmatpush.bf16.msrb.mxu2 %v4336_v6 }
 0x4f3   : > { %4619 = vmatpush.bf16.msrb.mxu3 %v4337_v53 }
 0x4f6   : > { %4531 = vmatpush.bf16.msrb.mxu2 %v4332_v20  ;;  %6031 = vmatmul.msk.bf16.gmra.mxu0 %vm973_vm6, %v7113_v38 }
 0x4f7   : > { %4620 = vmatpush.bf16.msrb.mxu3 %v4333_v19  ;;  %6050 = vmatmul.msk.bf16.gmra.mxu1 %vm973_vm6, %v7113_v38  ;;  %v7120_v19 = vld [vmem:[%s8944_s0 + $0x40] sm:$0xff] }
 0x4f9   : > { %6068 = vmatmul.msk.bf16.vlgmr.msrb.gmra.mxu2 %vm973_vm6, %v7112_v35 }
 0x4fa   : > { %6087 = vmatmul.msk.bf16.vlgmr.msrb.gmra.mxu3 %vm973_vm6, %v7112_v35 }
 0x506   : > { %6032 = vmatmul.msk.bf16.gmra.mxu0 %vm973_vm6, %v7114_v48 }
 0x507   : > { %6051 = vmatmul.msk.bf16.gmra.mxu1 %vm973_vm6, %v7114_v48 }
 0x509   : > { %6069 = vmatmul.msk.bf16.gmra.mxu2 %vm973_vm6, %v7113_v38 }
 0x50a   : > { %6088 = vmatmul.msk.bf16.gmra.mxu3 %vm973_vm6, %v7113_v38 }
 0x516   : > { %6033 = vmatmul.msk.bf16.gmra.mxu0 %vm973_vm6, %v7115_v63 }
 0x517   : > { %6052 = vmatmul.msk.bf16.gmra.mxu1 %vm973_vm6, %v7115_v63 }
 0x519   : > { %6070 = vmatmul.msk.bf16.gmra.mxu2 %vm973_vm6, %v7114_v48 }
 0x51a   : > { %6089 = vmatmul.msk.bf16.gmra.mxu3 %vm973_vm6, %v7114_v48 }
 0x526   : > { %6034 = vmatmul.msk.bf16.gmra.mxu0 %vm973_vm6, %v7116_v12 }
 0x527   : > { %6053 = vmatmul.msk.bf16.gmra.mxu1 %vm973_vm6, %v7116_v12 }
 0x529   : > { %6071 = vmatmul.msk.bf16.gmra.mxu2 %vm973_vm6, %v7115_v63 }
 0x52a   : > { %6090 = vmatmul.msk.bf16.gmra.mxu3 %vm973_vm6, %v7115_v63 }
 0x536   : > { %6035 = vmatmul.msk.bf16.gmra.mxu0 %vm973_vm6, %v7117_v13 }
 0x537   : > { %6054 = vmatmul.msk.bf16.gmra.mxu1 %vm973_vm6, %v7117_v13 }
 0x539   : > { %6072 = vmatmul.msk.bf16.gmra.mxu2 %vm973_vm6, %v7116_v12 }
 0x53a   : > { %6091 = vmatmul.msk.bf16.gmra.mxu3 %vm973_vm6, %v7116_v12 }
 0x546   : > { %6036 = vmatmul.msk.bf16.gmra.mxu0 %vm973_vm6, %v7118_v14 }
 0x547   : > { %6055 = vmatmul.msk.bf16.gmra.mxu1 %vm973_vm6, %v7118_v14 }
 0x549   : > { %6073 = vmatmul.msk.bf16.gmra.mxu2 %vm973_vm6, %v7117_v13 }
 0x54a   : > { %6092 = vmatmul.msk.bf16.gmra.mxu3 %vm973_vm6, %v7117_v13 }
 0x556   : > { %6037 = vmatmul.msk.bf16.gmra.mxu0 %vm973_vm6, %v7119_v17 }
 0x557   : > { %6056 = vmatmul.msk.bf16.gmra.mxu1 %vm973_vm6, %v7119_v17 }
 0x559   : > { %6074 = vmatmul.msk.bf16.gmra.mxu2 %vm973_vm6, %v7118_v14 }
 0x55a   : > { %6093 = vmatmul.msk.bf16.gmra.mxu3 %vm973_vm6, %v7118_v14 }
 0x563   : > { %v4355_v18 = vpop.f32.mrf.mxu0 }
 0x564   : > { %v4444_v20 = vpop.f32.mrf.mxu1 }
 0x565   : > { %v4702_v21 = vpack.c.bf16 %v4444_v20, %v4355_v18 }
 0x566   : > { %6038 = vmatmul.msk.bf16.gmra.mxu0 %vm973_vm6, %v7120_v19 }
 0x567   : > { %v4766_v40 = vunpack.c.l.bf16 %v4702_v21  ;;  %v4767_v51 = vunpack.c.h.bf16 %v4702_v21  ;;  %6057 = vmatmul.msk.bf16.gmra.mxu1 %vm973_vm6, %v7120_v19 }
 0x569   : > { %6075 = vmatmul.msk.bf16.gmra.mxu2 %vm973_vm6, %v7119_v17  ;;  %6840 = vtanh.f32 %v4766_v40 }
 0x56a   : > { %6094 = vmatmul.msk.bf16.gmra.mxu3 %vm973_vm6, %v7119_v17  ;;  %6842 = vtanh.f32 %v4767_v51 }
 0x56b   : > { %v4357_v52 = vpop.f32.mrf.mxu0 }
 0x56c   : > { %v4446_v55 = vpop.f32.mrf.mxu1 }
 0x56d   : > { %v4704_v56 = vpack.c.bf16 %v4446_v55, %v4357_v52 }
 0x56f   : > { %v6841_v57 = vpop.eup %6840  ;;  %v4770_v28 = vunpack.c.l.bf16 %v4704_v56  ;;  %v4771_v58 = vunpack.c.h.bf16 %v4704_v56 }
 0x570   : > { %v6843_v60 = vpop.eup %6842 }
 0x571   : > { %v5022_v29 = vpack.c.bf16 %v6843_v60, %v6841_v57  ;;  %6844 = vtanh.f32 %v4770_v28 }
 0x572   : > { %6846 = vtanh.f32 %v4771_v58  ;;  %v8793_v58 = vld [vmem:[%s8944_s0 + $0x58] sm:$0xff] }
 0x573   : > { %6103 = vst [vmem:[%s7749_s29 + $0x400] sm:$0xff] %v5022_v29  ;;  %v4360_v2 = vpop.f32.mrf.mxu0 }
 0x574   : > { %v4449_v3 = vpop.f32.mrf.mxu1 }
 0x575   : > { %v4706_v45 = vpack.c.bf16 %v4449_v3, %v4360_v2 }
 0x576   : > { %6039 = vmatmul.msk.bf16.gmra.mxu0 %vm973_vm6, %v7121_v8 }
 0x577   : > { %v6845_v31 = vpop.eup %6844  ;;  %v4774_v23 = vunpack.c.l.bf16 %v4706_v45  ;;  %v4775_v24 = vunpack.c.h.bf16 %v4706_v45  ;;  %6058 = vmatmul.msk.bf16.gmra.mxu1 %vm973_vm6, %v7121_v8 }
 0x578   : > { %v6847_v61 = vpop.eup %6846 }
 0x579   : > { %6076 = vmatmul.msk.bf16.gmra.mxu2 %vm973_vm6, %v7120_v19  ;;  %v5024_v43 = vpack.c.bf16 %v6847_v61, %v6845_v31  ;;  %6848 = vtanh.f32 %v4774_v23 }
 0x57a   : > { %6095 = vmatmul.msk.bf16.gmra.mxu3 %vm973_vm6, %v7120_v19  ;;  %6850 = vtanh.f32 %v4775_v24 }
 0x57b   : > { %6105 = vst [vmem:[%s7749_s29 + $0x410] sm:$0xff] %v5024_v43  ;;  %v4362_v9 = vpop.f32.mrf.mxu0 }
 0x57c   : > { %v4533_v10 = vpop.f32.mrf.mxu2  ;;  %v4451_v49 = vpop.f32.mrf.mxu1 }
 0x57d   : > { %v4622_v1 = vpop.f32.mrf.mxu3  ;;  %v4708_v34 = vpack.c.bf16 %v4451_v49, %v4362_v9 }
 0x57e   : > { %v4703_v37 = vpack.c.bf16 %v4622_v1, %v4533_v10 }
 0x57f   : > { %v6849_v39 = vpop.eup %6848  ;;  %v4778_v54 = vunpack.c.l.bf16 %v4708_v34  ;;  %v4779_v35 = vunpack.c.h.bf16 %v4708_v34 }
 0x580   : > { %v6851_v36 = vpop.eup %6850  ;;  %v4768_v47 = vunpack.c.l.bf16 %v4703_v37  ;;  %v4769_v42 = vunpack.c.h.bf16 %v4703_v37 }
 0x581   : > { %v5026_v22 = vpack.c.bf16 %v6851_v36, %v6849_v39  ;;  %6852 = vtanh.f32 %v4778_v54 }
 0x582   : > { %6854 = vtanh.f32 %v4768_v47 }
 0x583   : > { %6856 = vtanh.f32 %v4769_v42  ;;  %6107 = vst [vmem:[%s7749_s29 + $0x420] sm:$0xff] %v5026_v22  ;;  %v4365_v59 = vpop.f32.mrf.mxu0 }
 0x584   : > { %v4535_v44 = vpop.f32.mrf.mxu2  ;;  %6858 = vtanh.f32 %v4779_v35  ;;  %v4454_v41 = vpop.f32.mrf.mxu1 }
 0x585   : > { %v4624_v50 = vpop.f32.mrf.mxu3  ;;  %v4710_v0 = vpack.c.bf16 %v4454_v41, %v4365_v59 }
 0x586   : > { %v4705_v62 = vpack.c.bf16 %v4624_v50, %v4535_v44  ;;  %6040 = vmatmul.msk.bf16.gmra.mxu0 %vm973_vm6, %v8778_v46 }
 0x587   : > { %v6853_v30 = vpop.eup %6852  ;;  %v4782_v4 = vunpack.c.l.bf16 %v4710_v0  ;;  %6059 = vmatmul.msk.bf16.gmra.mxu1 %vm973_vm6, %v8778_v46  ;;  %v4783_v5 = vunpack.c.h.bf16 %v4710_v0 }
 0x588   : > { %v6855_v15 = vpop.eup %6854  ;;  %v4772_v32 = vunpack.c.l.bf16 %v4705_v62  ;;  %v4773_v16 = vunpack.c.h.bf16 %v4705_v62 }
 0x589   : > { %v6857_v33 = vpop.eup %6856  ;;  %6077 = vmatmul.msk.bf16.gmra.mxu2 %vm973_vm6, %v7121_v8  ;;  %6860 = vtanh.f32 %v4782_v4  ;;  %v8810_v4 = vld [vmem:[%s8944_s0 + $0x60] sm:$0xff] }
 0x58a   : > { %v6859_v25 = vpop.eup %6858  ;;  %v5023_v7 = vpack.c.bf16 %v6857_v33, %v6855_v15  ;;  %6862 = vtanh.f32 %v4772_v32  ;;  %6096 = vmatmul.msk.bf16.gmra.mxu3 %vm973_vm6, %v7121_v8 }
 0x58b   : > { %6864 = vtanh.f32 %v4773_v16  ;;  %v5028_v26 = vpack.c.bf16 %v6859_v25, %v6853_v30  ;;  %v4367_v11 = vpop.f32.mrf.mxu0 }
 0x58c   : > { %6104 = vst [vmem:[%s7749_s29 + $0x408] sm:$0xff] %v5023_v7  ;;  %v4538_v6 = vpop.f32.mrf.mxu2  ;;  %6866 = vtanh.f32 %v4783_v5  ;;  %v4456_v27 = vpop.f32.mrf.mxu1 }
 0x58d   : > { %v4627_v53 = vpop.f32.mrf.mxu3  ;;  %6109 = vst [vmem:[%s7749_s29 + $0x430] sm:$0xff] %v5028_v26  ;;  %v4712_v38 = vpack.c.bf16 %v4456_v27, %v4367_v11 }
 0x58e   : > { %v4707_v48 = vpack.c.bf16 %v4627_v53, %v4538_v6 }
 0x58f   : > { %v6861_v63 = vpop.eup %6860  ;;  %v4786_v12 = vunpack.c.l.bf16 %v4712_v38  ;;  %v4787_v18 = vunpack.c.h.bf16 %v4712_v38 }
 0x590   : > { %v6863_v13 = vpop.eup %6862  ;;  %v4776_v14 = vunpack.c.l.bf16 %v4707_v48  ;;  %v4777_v17 = vunpack.c.h.bf16 %v4707_v48 }
 0x591   : > { %v6865_v20 = vpop.eup %6864  ;;  %6868 = vtanh.f32 %v4786_v12 }
 0x592   : > { %v6867_v21 = vpop.eup %6866  ;;  %v5025_v19 = vpack.c.bf16 %v6865_v20, %v6863_v13  ;;  %6870 = vtanh.f32 %v4776_v14 }
 0x593   : > { %6872 = vtanh.f32 %v4777_v17  ;;  %v5030_v40 = vpack.c.bf16 %v6867_v21, %v6861_v63  ;;  %v4370_v51 = vpop.f32.mrf.mxu0 }
 0x594   : > { %6106 = vst [vmem:[%s7749_s29 + $0x418] sm:$0xff] %v5025_v19  ;;  %v4540_v52 = vpop.f32.mrf.mxu2  ;;  %6874 = vtanh.f32 %v4787_v18  ;;  %v4459_v55 = vpop.f32.mrf.mxu1 }
 0x595   : > { %v4629_v56 = vpop.f32.mrf.mxu3  ;;  %6111 = vst [vmem:[%s7749_s29 + $0x440] sm:$0xff] %v5030_v40  ;;  %v4714_v57 = vpack.c.bf16 %v4459_v55, %v4370_v51 }
 0x596   : > { %v4709_v28 = vpack.c.bf16 %v4629_v56, %v4540_v52  ;;  %6041 = vmatmul.msk.bf16.gmra.mxu0 %vm973_vm6, %v8793_v58 }
 0x597   : > { %v6869_v60 = vpop.eup %6868  ;;  %v4790_v29 = vunpack.c.l.bf16 %v4714_v57  ;;  %6060 = vmatmul.msk.bf16.gmra.mxu1 %vm973_vm6, %v8793_v58  ;;  %v4791_v8 = vunpack.c.h.bf16 %v4714_v57 }
 0x598   : > { %v6871_v2 = vpop.eup %6870  ;;  %v4780_v3 = vunpack.c.l.bf16 %v4709_v28  ;;  %v4781_v45 = vunpack.c.h.bf16 %v4709_v28 }
 0x599   : > { %v6873_v31 = vpop.eup %6872  ;;  %6078 = vmatmul.msk.bf16.gmra.mxu2 %vm973_vm6, %v8778_v46  ;;  %6876 = vtanh.f32 %v4790_v29  ;;  %v8827_v29 = vld [vmem:[%s8944_s0 + $0x68] sm:$0xff] }
 0x59a   : > { %v6875_v23 = vpop.eup %6874  ;;  %v5027_v24 = vpack.c.bf16 %v6873_v31, %v6871_v2  ;;  %6878 = vtanh.f32 %v4780_v3  ;;  %6097 = vmatmul.msk.bf16.gmra.mxu3 %vm973_vm6, %v8778_v46 }
 0x59b   : > { %6880 = vtanh.f32 %v4781_v45  ;;  %v5032_v61 = vpack.c.bf16 %v6875_v23, %v6869_v60  ;;  %v4372_v43 = vpop.f32.mrf.mxu0 }
 0x59c   : > { %6108 = vst [vmem:[%s7749_s29 + $0x428] sm:$0xff] %v5027_v24  ;;  %v4543_v9 = vpop.f32.mrf.mxu2  ;;  %6882 = vtanh.f32 %v4791_v8  ;;  %v4461_v10 = vpop.f32.mrf.mxu1 }
 0x59d   : > { %v4632_v49 = vpop.f32.mrf.mxu3  ;;  %6113 = vst [vmem:[%s7749_s29 + $0x450] sm:$0xff] %v5032_v61  ;;  %v4716_v1 = vpack.c.bf16 %v4461_v10, %v4372_v43 }
 0x59e   : > { %v4711_v34 = vpack.c.bf16 %v4632_v49, %v4543_v9 }
 0x59f   : > { %v6877_v37 = vpop.eup %6876  ;;  %v4794_v39 = vunpack.c.l.bf16 %v4716_v1  ;;  %v4795_v42 = vunpack.c.h.bf16 %v4716_v1 }
 0x5a0   : > { %v6879_v54 = vpop.eup %6878  ;;  %v4784_v36 = vunpack.c.l.bf16 %v4711_v34  ;;  %v4785_v47 = vunpack.c.h.bf16 %v4711_v34 }
 0x5a1   : > { %v6881_v35 = vpop.eup %6880  ;;  %6884 = vtanh.f32 %v4794_v39 }
 0x5a2   : > { %v6883_v22 = vpop.eup %6882  ;;  %v5029_v59 = vpack.c.bf16 %v6881_v35, %v6879_v54  ;;  %6886 = vtanh.f32 %v4784_v36 }
 0x5a3   : > { %6888 = vtanh.f32 %v4785_v47  ;;  %v5034_v44 = vpack.c.bf16 %v6883_v22, %v6877_v37  ;;  %v4375_v41 = vpop.f32.mrf.mxu0 }
 0x5a4   : > { %6110 = vst [vmem:[%s7749_s29 + $0x438] sm:$0xff] %v5029_v59  ;;  %v4545_v50 = vpop.f32.mrf.mxu2  ;;  %6890 = vtanh.f32 %v4795_v42  ;;  %v4464_v0 = vpop.f32.mrf.mxu1 }
 0x5a5   : > { %v4634_v62 = vpop.f32.mrf.mxu3  ;;  %6115 = vst [vmem:[%s7749_s29 + $0x460] sm:$0xff] %v5034_v44  ;;  %v4718_v46 = vpack.c.bf16 %v4464_v0, %v4375_v41 }
 0x5a6   : > { %v4713_v30 = vpack.c.bf16 %v4634_v62, %v4545_v50  ;;  %6042 = vmatmul.msk.bf16.gmra.mxu0 %vm973_vm6, %v8810_v4 }
 0x5a7   : > { %v6885_v15 = vpop.eup %6884  ;;  %v4798_v32 = vunpack.c.l.bf16 %v4718_v46  ;;  %6061 = vmatmul.msk.bf16.gmra.mxu1 %vm973_vm6, %v8810_v4  ;;  %v4799_v25 = vunpack.c.h.bf16 %v4718_v46 }
 0x5a8   : > { %v6887_v16 = vpop.eup %6886  ;;  %v4788_v5 = vunpack.c.l.bf16 %v4713_v30  ;;  %v4789_v33 = vunpack.c.h.bf16 %v4713_v30 }
 0x5a9   : > { %v6889_v7 = vpop.eup %6888  ;;  %6079 = vmatmul.msk.bf16.gmra.mxu2 %vm973_vm6, %v8793_v58  ;;  %6892 = vtanh.f32 %v4798_v32  ;;  %v8844_v32 = vld [vmem:[%s8944_s0 + $0x70] sm:$0xff] }
 0x5aa   : > { %v6891_v26 = vpop.eup %6890  ;;  %v5031_v11 = vpack.c.bf16 %v6889_v7, %v6887_v16  ;;  %6894 = vtanh.f32 %v4788_v5  ;;  %6098 = vmatmul.msk.bf16.gmra.mxu3 %vm973_vm6, %v8793_v58 }
 0x5ab   : > { %6896 = vtanh.f32 %v4789_v33  ;;  %v5036_v6 = vpack.c.bf16 %v6891_v26, %v6885_v15  ;;  %v4377_v27 = vpop.f32.mrf.mxu0 }
 0x5ac   : > { %6112 = vst [vmem:[%s7749_s29 + $0x448] sm:$0xff] %v5031_v11  ;;  %v4548_v53 = vpop.f32.mrf.mxu2  ;;  %6898 = vtanh.f32 %v4799_v25  ;;  %v4466_v38 = vpop.f32.mrf.mxu1 }
 0x5ad   : > { %v4637_v48 = vpop.f32.mrf.mxu3  ;;  %6117 = vst [vmem:[%s7749_s29 + $0x470] sm:$0xff] %v5036_v6  ;;  %v4720_v63 = vpack.c.bf16 %v4466_v38, %v4377_v27 }
 0x5ae   : > { %v4715_v12 = vpack.c.bf16 %v4637_v48, %v4548_v53 }
 0x5af   : > { %v6893_v13 = vpop.eup %6892  ;;  %v4802_v14 = vunpack.c.l.bf16 %v4720_v63  ;;  %v4803_v21 = vunpack.c.h.bf16 %v4720_v63 }
 0x5b0   : > { %v6895_v17 = vpop.eup %6894  ;;  %v4792_v18 = vunpack.c.l.bf16 %v4715_v12  ;;  %v4793_v20 = vunpack.c.h.bf16 %v4715_v12 }
 0x5b1   : > { %v6897_v19 = vpop.eup %6896  ;;  %6900 = vtanh.f32 %v4802_v14 }
 0x5b2   : > { %v6899_v40 = vpop.eup %6898  ;;  %v5033_v51 = vpack.c.bf16 %v6897_v19, %v6895_v17  ;;  %6902 = vtanh.f32 %v4792_v18 }
 0x5b3   : > { %6904 = vtanh.f32 %v4793_v20  ;;  %v5038_v52 = vpack.c.bf16 %v6899_v40, %v6893_v13  ;;  %v4380_v55 = vpop.f32.mrf.mxu0 }
 0x5b4   : > { %6114 = vst [vmem:[%s7749_s29 + $0x458] sm:$0xff] %v5033_v51  ;;  %v4550_v56 = vpop.f32.mrf.mxu2  ;;  %6906 = vtanh.f32 %v4803_v21  ;;  %v4469_v57 = vpop.f32.mrf.mxu1 }
 0x5b5   : > { %v4639_v28 = vpop.f32.mrf.mxu3  ;;  %6119 = vst [vmem:[%s7749_s29 + $0x480] sm:$0xff] %v5038_v52  ;;  %v4722_v58 = vpack.c.bf16 %v4469_v57, %v4380_v55 }
 0x5b6   : > { %v4717_v60 = vpack.c.bf16 %v4639_v28, %v4550_v56  ;;  %6043 = vmatmul.msk.bf16.gmra.mxu0 %vm973_vm6, %v8827_v29 }
 0x5b7   : > { %v6901_v2 = vpop.eup %6900  ;;  %v4806_v3 = vunpack.c.l.bf16 %v4722_v58  ;;  %6062 = vmatmul.msk.bf16.gmra.mxu1 %vm973_vm6, %v8827_v29  ;;  %v4807_v23 = vunpack.c.h.bf16 %v4722_v58 }
 0x5b8   : > { %v6903_v45 = vpop.eup %6902  ;;  %v4796_v8 = vunpack.c.l.bf16 %v4717_v60  ;;  %v4797_v31 = vunpack.c.h.bf16 %v4717_v60 }
 0x5b9   : > { %v6905_v24 = vpop.eup %6904  ;;  %6080 = vmatmul.msk.bf16.gmra.mxu2 %vm973_vm6, %v8810_v4  ;;  %6908 = vtanh.f32 %v4806_v3  ;;  %v7127_v3 = vld [vmem:[%s8944_s0 + $0x78] sm:$0xff] }
 0x5ba   : > { %v6907_v61 = vpop.eup %6906  ;;  %v5035_v43 = vpack.c.bf16 %v6905_v24, %v6903_v45  ;;  %6910 = vtanh.f32 %v4796_v8  ;;  %6099 = vmatmul.msk.bf16.gmra.mxu3 %vm973_vm6, %v8810_v4 }
 0x5bb   : > { %6912 = vtanh.f32 %v4797_v31  ;;  %v5040_v9 = vpack.c.bf16 %v6907_v61, %v6901_v2  ;;  %v4382_v10 = vpop.f32.mrf.mxu0 }
 0x5bc   : > { %6116 = vst [vmem:[%s7749_s29 + $0x468] sm:$0xff] %v5035_v43  ;;  %v4553_v49 = vpop.f32.mrf.mxu2  ;;  %6914 = vtanh.f32 %v4807_v23  ;;  %v4471_v1 = vpop.f32.mrf.mxu1 }
 0x5bd   : > { %v4642_v34 = vpop.f32.mrf.mxu3  ;;  %6121 = vst [vmem:[%s7749_s29 + $0x490] sm:$0xff] %v5040_v9  ;;  %v4724_v37 = vpack.c.bf16 %v4471_v1, %v4382_v10 }
 0x5be   : > { %v4719_v39 = vpack.c.bf16 %v4642_v34, %v4553_v49 }
 0x5bf   : > { %v6909_v54 = vpop.eup %6908  ;;  %v4810_v36 = vunpack.c.l.bf16 %v4724_v37  ;;  %v4811_v22 = vunpack.c.h.bf16 %v4724_v37 }
 0x5c0   : > { %v6911_v47 = vpop.eup %6910  ;;  %v4800_v42 = vunpack.c.l.bf16 %v4719_v39  ;;  %v4801_v35 = vunpack.c.h.bf16 %v4719_v39 }
 0x5c1   : > { %v6913_v59 = vpop.eup %6912  ;;  %6916 = vtanh.f32 %v4810_v36 }
 0x5c2   : > { %v6915_v44 = vpop.eup %6914  ;;  %v5037_v41 = vpack.c.bf16 %v6913_v59, %v6911_v47  ;;  %6918 = vtanh.f32 %v4800_v42 }
 0x5c3   : > { %6920 = vtanh.f32 %v4801_v35  ;;  %v5042_v50 = vpack.c.bf16 %v6915_v44, %v6909_v54  ;;  %v4385_v0 = vpop.f32.mrf.mxu0 }
 0x5c4   : > { %6118 = vst [vmem:[%s7749_s29 + $0x478] sm:$0xff] %v5037_v41  ;;  %v4555_v62 = vpop.f32.mrf.mxu2  ;;  %6922 = vtanh.f32 %v4811_v22  ;;  %v4474_v46 = vpop.f32.mrf.mxu1 }
 0x5c5   : > { %v4644_v30 = vpop.f32.mrf.mxu3  ;;  %6123 = vst [vmem:[%s7749_s29 + $0x4a0] sm:$0xff] %v5042_v50  ;;  %v4726_v4 = vpack.c.bf16 %v4474_v46, %v4385_v0 }
 0x5c6   : > { %v4721_v15 = vpack.c.bf16 %v4644_v30, %v4555_v62  ;;  %6044 = vmatmul.msk.bf16.gmra.mxu0 %vm973_vm6, %v8844_v32 }
 0x5c7   : > { %v6917_v16 = vpop.eup %6916  ;;  %v4814_v5 = vunpack.c.l.bf16 %v4726_v4  ;;  %6063 = vmatmul.msk.bf16.gmra.mxu1 %vm973_vm6, %v8844_v32  ;;  %v4815_v26 = vunpack.c.h.bf16 %v4726_v4 }
 0x5c8   : > { %v6919_v33 = vpop.eup %6918  ;;  %v4804_v25 = vunpack.c.l.bf16 %v4721_v15  ;;  %v4805_v7 = vunpack.c.h.bf16 %v4721_v15 }
 0x5c9   : > { %v6921_v11 = vpop.eup %6920  ;;  %6081 = vmatmul.msk.bf16.gmra.mxu2 %vm973_vm6, %v8827_v29  ;;  %6924 = vtanh.f32 %v4814_v5 }
 0x5ca   : > { %v6923_v6 = vpop.eup %6922  ;;  %v5039_v27 = vpack.c.bf16 %v6921_v11, %v6919_v33  ;;  %6926 = vtanh.f32 %v4804_v25  ;;  %6100 = vmatmul.msk.bf16.gmra.mxu3 %vm973_vm6, %v8827_v29 }
 0x5cb   : > { %6928 = vtanh.f32 %v4805_v7  ;;  %v5044_v53 = vpack.c.bf16 %v6923_v6, %v6917_v16  ;;  %v4387_v38 = vpop.f32.mrf.mxu0 }
 0x5cc   : > { %6120 = vst [vmem:[%s7749_s29 + $0x488] sm:$0xff] %v5039_v27  ;;  %v4558_v48 = vpop.f32.mrf.mxu2  ;;  %6930 = vtanh.f32 %v4815_v26  ;;  %v4476_v63 = vpop.f32.mrf.mxu1 }
 0x5cd   : > { %v4647_v12 = vpop.f32.mrf.mxu3  ;;  %6125 = vst [vmem:[%s7749_s29 + $0x4b0] sm:$0xff] %v5044_v53  ;;  %v4728_v13 = vpack.c.bf16 %v4476_v63, %v4387_v38 }
 0x5ce   : > { %v4723_v14 = vpack.c.bf16 %v4647_v12, %v4558_v48 }
 0x5cf   : > { %v6925_v17 = vpop.eup %6924  ;;  %v4818_v18 = vunpack.c.l.bf16 %v4728_v13  ;;  %v4819_v40 = vunpack.c.h.bf16 %v4728_v13 }
 0x5d0   : > { %v6927_v20 = vpop.eup %6926  ;;  %v4808_v21 = vunpack.c.l.bf16 %v4723_v14  ;;  %v4809_v19 = vunpack.c.h.bf16 %v4723_v14 }
 0x5d1   : > { %v6929_v51 = vpop.eup %6928  ;;  %6932 = vtanh.f32 %v4818_v18 }
 0x5d2   : > { %v6931_v52 = vpop.eup %6930  ;;  %v5041_v55 = vpack.c.bf16 %v6929_v51, %v6927_v20  ;;  %6934 = vtanh.f32 %v4808_v21 }
 0x5d3   : > { %6936 = vtanh.f32 %v4809_v19  ;;  %v5046_v56 = vpack.c.bf16 %v6931_v52, %v6925_v17  ;;  %v4390_v57 = vpop.f32.mrf.mxu0 }
 0x5d4   : > { %6122 = vst [vmem:[%s7749_s29 + $0x498] sm:$0xff] %v5041_v55  ;;  %v4560_v28 = vpop.f32.mrf.mxu2  ;;  %6938 = vtanh.f32 %v4819_v40  ;;  %v4479_v58 = vpop.f32.mrf.mxu1 }
 0x5d5   : > { %v4649_v60 = vpop.f32.mrf.mxu3  ;;  %6127 = vst [vmem:[%s7749_s29 + $0x4c0] sm:$0xff] %v5046_v56  ;;  %v4730_v29 = vpack.c.bf16 %v4479_v58, %v4390_v57 }
 0x5d6   : > { %v4725_v2 = vpack.c.bf16 %v4649_v60, %v4560_v28  ;;  %6045 = vmatmul.msk.bf16.gmra.mxu0 %vm973_vm6, %v7127_v3 }
 0x5d7   : > { %v6933_v45 = vpop.eup %6932  ;;  %v4822_v8 = vunpack.c.l.bf16 %v4730_v29  ;;  %6064 = vmatmul.msk.bf16.gmra.mxu1 %vm973_vm6, %v7127_v3  ;;  %v4823_v61 = vunpack.c.h.bf16 %v4730_v29 }
 0x5d8   : > { %v6935_v31 = vpop.eup %6934  ;;  %v4812_v23 = vunpack.c.l.bf16 %v4725_v2  ;;  %v4813_v24 = vunpack.c.h.bf16 %v4725_v2 }
 0x5d9   : > { %v6937_v43 = vpop.eup %6936  ;;  %6082 = vmatmul.msk.bf16.gmra.mxu2 %vm973_vm6, %v8844_v32  ;;  %6940 = vtanh.f32 %v4822_v8 }
 0x5da   : > { %v6939_v9 = vpop.eup %6938  ;;  %v5043_v10 = vpack.c.bf16 %v6937_v43, %v6935_v31  ;;  %6942 = vtanh.f32 %v4812_v23  ;;  %6101 = vmatmul.msk.bf16.gmra.mxu3 %vm973_vm6, %v8844_v32 }
 0x5db   : > { %6944 = vtanh.f32 %v4813_v24  ;;  %v5048_v49 = vpack.c.bf16 %v6939_v9, %v6933_v45  ;;  %v4392_v1 = vpop.f32.mrf.mxu0 }
 0x5dc   : > { %6124 = vst [vmem:[%s7749_s29 + $0x4a8] sm:$0xff] %v5043_v10  ;;  %v4563_v34 = vpop.f32.mrf.mxu2  ;;  %6946 = vtanh.f32 %v4823_v61  ;;  %v4481_v37 = vpop.f32.mrf.mxu1 }
 0x5dd   : > { %v4652_v39 = vpop.f32.mrf.mxu3  ;;  %6129 = vst [vmem:[%s7749_s29 + $0x4d0] sm:$0xff] %v5048_v49  ;;  %v4732_v54 = vpack.c.bf16 %v4481_v37, %v4392_v1 }
 0x5de   : > { %v4727_v36 = vpack.c.bf16 %v4652_v39, %v4563_v34 }
 0x5df   : > { %v6941_v47 = vpop.eup %6940  ;;  %v4826_v42 = vunpack.c.l.bf16 %v4732_v54  ;;  %v4827_v44 = vunpack.c.h.bf16 %v4732_v54 }
 0x5e0   : > { %v6943_v35 = vpop.eup %6942  ;;  %v4816_v22 = vunpack.c.l.bf16 %v4727_v36  ;;  %v4817_v59 = vunpack.c.h.bf16 %v4727_v36 }
 0x5e1   : > { %v6945_v41 = vpop.eup %6944  ;;  %6948 = vtanh.f32 %v4826_v42 }
 0x5e2   : > { %v6947_v50 = vpop.eup %6946  ;;  %v5045_v0 = vpack.c.bf16 %v6945_v41, %v6943_v35  ;;  %6950 = vtanh.f32 %v4816_v22 }
 0x5e3   : > { %6952 = vtanh.f32 %v4817_v59  ;;  %v5050_v62 = vpack.c.bf16 %v6947_v50, %v6941_v47  ;;  %v4395_v46 = vpop.f32.mrf.mxu0 }
 0x5e4   : > { %6126 = vst [vmem:[%s7749_s29 + $0x4b8] sm:$0xff] %v5045_v0  ;;  %v4565_v30 = vpop.f32.mrf.mxu2  ;;  %6954 = vtanh.f32 %v4827_v44  ;;  %v4484_v4 = vpop.f32.mrf.mxu1 }
 0x5e5   : > { %v4654_v15 = vpop.f32.mrf.mxu3  ;;  %6131 = vst [vmem:[%s7749_s29 + $0x4e0] sm:$0xff] %v5050_v62  ;;  %v4734_v32 = vpack.c.bf16 %v4484_v4, %v4395_v46 }
 0x5e6   : > { %v4729_v16 = vpack.c.bf16 %v4654_v15, %v4565_v30 }
 0x5e7   : > { %v6949_v5 = vpop.eup %6948  ;;  %v4830_v33 = vunpack.c.l.bf16 %v4734_v32  ;;  %v4831_v11 = vunpack.c.h.bf16 %v4734_v32 }
 0x5e8   : > { %v6951_v25 = vpop.eup %6950  ;;  %v4820_v7 = vunpack.c.l.bf16 %v4729_v16  ;;  %v4821_v26 = vunpack.c.h.bf16 %v4729_v16 }
 0x5e9   : > { %v6953_v6 = vpop.eup %6952  ;;  %6083 = vmatmul.msk.bf16.gmra.mxu2 %vm973_vm6, %v7127_v3  ;;  %6956 = vtanh.f32 %v4830_v33 }
 0x5ea   : > { %v6955_v27 = vpop.eup %6954  ;;  %v5047_v53 = vpack.c.bf16 %v6953_v6, %v6951_v25  ;;  %6958 = vtanh.f32 %v4820_v7  ;;  %6102 = vmatmul.msk.bf16.gmra.mxu3 %vm973_vm6, %v7127_v3 }
 0x5eb   : > { %6960 = vtanh.f32 %v4821_v26  ;;  %v5052_v38 = vpack.c.bf16 %v6955_v27, %v6949_v5  ;;  %v4397_v48 = vpop.f32.mrf.mxu0 }
 0x5ec   : > { %6128 = vst [vmem:[%s7749_s29 + $0x4c8] sm:$0xff] %v5047_v53  ;;  %v4568_v63 = vpop.f32.mrf.mxu2  ;;  %6962 = vtanh.f32 %v4831_v11  ;;  %v4486_v12 = vpop.f32.mrf.mxu1 }
 0x5ed   : > { %v4657_v13 = vpop.f32.mrf.mxu3  ;;  %6133 = vst [vmem:[%s7749_s29 + $0x4f0] sm:$0xff] %v5052_v38  ;;  %v4736_v14 = vpack.c.bf16 %v4486_v12, %v4397_v48 }
 0x5ee   : > { %v4731_v17 = vpack.c.bf16 %v4657_v13, %v4568_v63 }
 0x5ef   : > { %v6957_v18 = vpop.eup %6956  ;;  %v4834_v20 = vunpack.c.l.bf16 %v4736_v14  ;;  %v4835_v51 = vunpack.c.h.bf16 %v4736_v14 }
 0x5f0   : > { %v6959_v21 = vpop.eup %6958  ;;  %v4824_v19 = vunpack.c.l.bf16 %v4731_v17  ;;  %v4825_v40 = vunpack.c.h.bf16 %v4731_v17 }
 0x5f1   : > { %v6961_v52 = vpop.eup %6960  ;;  %6964 = vtanh.f32 %v4834_v20 }
 0x5f2   : > { %v6963_v55 = vpop.eup %6962  ;;  %v5049_v56 = vpack.c.bf16 %v6961_v52, %v6959_v21  ;;  %6966 = vtanh.f32 %v4824_v19 }
 0x5f3   : > { %6968 = vtanh.f32 %v4825_v40  ;;  %v5054_v57 = vpack.c.bf16 %v6963_v55, %v6957_v18  ;;  %v4400_v28 = vpop.f32.mrf.mxu0 }
 0x5f4   : > { %6130 = vst [vmem:[%s7749_s29 + $0x4d8] sm:$0xff] %v5049_v56  ;;  %v4570_v58 = vpop.f32.mrf.mxu2  ;;  %6970 = vtanh.f32 %v4835_v51  ;;  %v4489_v60 = vpop.f32.mrf.mxu1 }
 0x5f5   : > { %v4659_v29 = vpop.f32.mrf.mxu3  ;;  %6135 = vst [vmem:[%s7749_s29 + $0x500] sm:$0xff] %v5054_v57  ;;  %v4738_v2 = vpack.c.bf16 %v4489_v60, %v4400_v28 }
 0x5f6   : > { %v4733_v3 = vpack.c.bf16 %v4659_v29, %v4570_v58 }
 0x5f7   : > { %v6965_v45 = vpop.eup %6964  ;;  %v4838_v8 = vunpack.c.l.bf16 %v4738_v2  ;;  %v4839_v61 = vunpack.c.h.bf16 %v4738_v2 }
 0x5f8   : > { %v6967_v31 = vpop.eup %6966  ;;  %v4828_v23 = vunpack.c.l.bf16 %v4733_v3  ;;  %v4829_v24 = vunpack.c.h.bf16 %v4733_v3 }
 0x5f9   : > { %v6969_v43 = vpop.eup %6968  ;;  %6972 = vtanh.f32 %v4838_v8 }
 0x5fa   : > { %v6971_v9 = vpop.eup %6970  ;;  %v5051_v10 = vpack.c.bf16 %v6969_v43, %v6967_v31  ;;  %6974 = vtanh.f32 %v4828_v23 }
 0x5fb   : > { %6976 = vtanh.f32 %v4829_v24  ;;  %v5056_v49 = vpack.c.bf16 %v6971_v9, %v6965_v45  ;;  %v4402_v1 = vpop.f32.mrf.mxu0 }
 0x5fc   : > { %6132 = vst [vmem:[%s7749_s29 + $0x4e8] sm:$0xff] %v5051_v10  ;;  %v4573_v34 = vpop.f32.mrf.mxu2  ;;  %6978 = vtanh.f32 %v4839_v61  ;;  %v4491_v37 = vpop.f32.mrf.mxu1 }
 0x5fd   : > { %v4662_v39 = vpop.f32.mrf.mxu3  ;;  %6137 = vst [vmem:[%s7749_s29 + $0x510] sm:$0xff] %v5056_v49  ;;  %v4740_v54 = vpack.c.bf16 %v4491_v37, %v4402_v1 }
 0x5fe   : > { %v4735_v36 = vpack.c.bf16 %v4662_v39, %v4573_v34 }
 0x5ff   : > { %v6973_v47 = vpop.eup %6972  ;;  %v4842_v42 = vunpack.c.l.bf16 %v4740_v54  ;;  %v4843_v44 = vunpack.c.h.bf16 %v4740_v54 }
 0x600   : > { %v6975_v35 = vpop.eup %6974  ;;  %v4832_v22 = vunpack.c.l.bf16 %v4735_v36  ;;  %v4833_v59 = vunpack.c.h.bf16 %v4735_v36 }
 0x601   : > { %v6977_v41 = vpop.eup %6976  ;;  %6980 = vtanh.f32 %v4842_v42 }
 0x602   : > { %v6979_v50 = vpop.eup %6978  ;;  %v5053_v0 = vpack.c.bf16 %v6977_v41, %v6975_v35  ;;  %6982 = vtanh.f32 %v4832_v22 }
 0x603   : > { %6984 = vtanh.f32 %v4833_v59  ;;  %v5058_v62 = vpack.c.bf16 %v6979_v50, %v6973_v47  ;;  %v4405_v46 = vpop.f32.mrf.mxu0 }
 0x604   : > { %6134 = vst [vmem:[%s7749_s29 + $0x4f8] sm:$0xff] %v5053_v0  ;;  %v4575_v30 = vpop.f32.mrf.mxu2  ;;  %6986 = vtanh.f32 %v4843_v44  ;;  %v4494_v4 = vpop.f32.mrf.mxu1 }
 0x605   : > { %v4664_v15 = vpop.f32.mrf.mxu3  ;;  %6139 = vst [vmem:[%s7749_s29 + $0x520] sm:$0xff] %v5058_v62  ;;  %v4742_v32 = vpack.c.bf16 %v4494_v4, %v4405_v46 }
 0x606   : > { %v4737_v16 = vpack.c.bf16 %v4664_v15, %v4575_v30 }
 0x607   : > { %v6981_v5 = vpop.eup %6980  ;;  %v4846_v33 = vunpack.c.l.bf16 %v4742_v32  ;;  %v4847_v11 = vunpack.c.h.bf16 %v4742_v32 }
 0x608   : > { %v6983_v25 = vpop.eup %6982  ;;  %v4836_v7 = vunpack.c.l.bf16 %v4737_v16  ;;  %v4837_v26 = vunpack.c.h.bf16 %v4737_v16 }
 0x609   : > { %v6985_v6 = vpop.eup %6984  ;;  %6988 = vtanh.f32 %v4846_v33 }
 0x60a   : > { %v6987_v27 = vpop.eup %6986  ;;  %v5055_v53 = vpack.c.bf16 %v6985_v6, %v6983_v25  ;;  %6990 = vtanh.f32 %v4836_v7 }
 0x60b   : > { %6992 = vtanh.f32 %v4837_v26  ;;  %v5060_v38 = vpack.c.bf16 %v6987_v27, %v6981_v5  ;;  %v4407_v48 = vpop.f32.mrf.mxu0 }
 0x60c   : > { %6136 = vst [vmem:[%s7749_s29 + $0x508] sm:$0xff] %v5055_v53  ;;  %v4578_v63 = vpop.f32.mrf.mxu2  ;;  %6994 = vtanh.f32 %v4847_v11  ;;  %v4496_v12 = vpop.f32.mrf.mxu1 }
 0x60d   : > { %v4667_v13 = vpop.f32.mrf.mxu3  ;;  %6141 = vst [vmem:[%s7749_s29 + $0x530] sm:$0xff] %v5060_v38  ;;  %v4744_v14 = vpack.c.bf16 %v4496_v12, %v4407_v48 }
 0x60e   : > { %v4739_v17 = vpack.c.bf16 %v4667_v13, %v4578_v63 }
 0x60f   : > { %v6989_v18 = vpop.eup %6988  ;;  %v4850_v20 = vunpack.c.l.bf16 %v4744_v14  ;;  %v4851_v51 = vunpack.c.h.bf16 %v4744_v14 }
 0x610   : > { %v6991_v21 = vpop.eup %6990  ;;  %v4840_v19 = vunpack.c.l.bf16 %v4739_v17  ;;  %v4841_v40 = vunpack.c.h.bf16 %v4739_v17 }
 0x611   : > { %v6993_v52 = vpop.eup %6992  ;;  %6996 = vtanh.f32 %v4850_v20 }
 0x612   : > { %v6995_v55 = vpop.eup %6994  ;;  %v5057_v56 = vpack.c.bf16 %v6993_v52, %v6991_v21  ;;  %6998 = vtanh.f32 %v4840_v19 }
 0x613   : > { %7000 = vtanh.f32 %v4841_v40  ;;  %v5062_v57 = vpack.c.bf16 %v6995_v55, %v6989_v18  ;;  %v4410_v28 = vpop.f32.mrf.mxu0 }
 0x614   : > { %6138 = vst [vmem:[%s7749_s29 + $0x518] sm:$0xff] %v5057_v56  ;;  %v4580_v58 = vpop.f32.mrf.mxu2  ;;  %7002 = vtanh.f32 %v4851_v51  ;;  %v4499_v60 = vpop.f32.mrf.mxu1 }
 0x615   : > { %v4669_v29 = vpop.f32.mrf.mxu3  ;;  %6143 = vst [vmem:[%s7749_s29 + $0x540] sm:$0xff] %v5062_v57  ;;  %v4746_v2 = vpack.c.bf16 %v4499_v60, %v4410_v28 }
 0x616   : > { %v4741_v3 = vpack.c.bf16 %v4669_v29, %v4580_v58 }
 0x617   : > { %v6997_v45 = vpop.eup %6996  ;;  %v4854_v8 = vunpack.c.l.bf16 %v4746_v2  ;;  %v4855_v61 = vunpack.c.h.bf16 %v4746_v2 }
 0x618   : > { %v6999_v31 = vpop.eup %6998  ;;  %v4844_v23 = vunpack.c.l.bf16 %v4741_v3  ;;  %v4845_v24 = vunpack.c.h.bf16 %v4741_v3 }
 0x619   : > { %v7001_v43 = vpop.eup %7000  ;;  %7004 = vtanh.f32 %v4854_v8 }
 0x61a   : > { %v7003_v9 = vpop.eup %7002  ;;  %v5059_v10 = vpack.c.bf16 %v7001_v43, %v6999_v31  ;;  %7006 = vtanh.f32 %v4844_v23 }
 0x61b   : > { %7008 = vtanh.f32 %v4845_v24  ;;  %v5064_v49 = vpack.c.bf16 %v7003_v9, %v6997_v45  ;;  %v4412_v1 = vpop.f32.mrf.mxu0 }
 0x61c   : > { %6140 = vst [vmem:[%s7749_s29 + $0x528] sm:$0xff] %v5059_v10  ;;  %v4583_v34 = vpop.f32.mrf.mxu2  ;;  %7010 = vtanh.f32 %v4855_v61  ;;  %v4501_v37 = vpop.f32.mrf.mxu1 }
 0x61d   : > { %v4672_v39 = vpop.f32.mrf.mxu3  ;;  %6145 = vst [vmem:[%s7749_s29 + $0x550] sm:$0xff] %v5064_v49  ;;  %v4748_v54 = vpack.c.bf16 %v4501_v37, %v4412_v1 }
 0x61e   : > { %v4743_v36 = vpack.c.bf16 %v4672_v39, %v4583_v34 }
 0x61f   : > { %v7005_v47 = vpop.eup %7004  ;;  %v4858_v42 = vunpack.c.l.bf16 %v4748_v54  ;;  %v4859_v44 = vunpack.c.h.bf16 %v4748_v54 }
 0x620   : > { %v7007_v35 = vpop.eup %7006  ;;  %v4848_v22 = vunpack.c.l.bf16 %v4743_v36  ;;  %v4849_v59 = vunpack.c.h.bf16 %v4743_v36 }
 0x621   : > { %v7009_v41 = vpop.eup %7008  ;;  %7012 = vtanh.f32 %v4858_v42 }
 0x622   : > { %v7011_v50 = vpop.eup %7010  ;;  %v5061_v0 = vpack.c.bf16 %v7009_v41, %v7007_v35  ;;  %7014 = vtanh.f32 %v4848_v22 }
 0x623   : > { %7016 = vtanh.f32 %v4849_v59  ;;  %v5066_v62 = vpack.c.bf16 %v7011_v50, %v7005_v47  ;;  %v4415_v46 = vpop.f32.mrf.mxu0 }
 0x624   : > { %6142 = vst [vmem:[%s7749_s29 + $0x538] sm:$0xff] %v5061_v0  ;;  %v4585_v30 = vpop.f32.mrf.mxu2  ;;  %7018 = vtanh.f32 %v4859_v44  ;;  %v4504_v4 = vpop.f32.mrf.mxu1 }
 0x625   : > { %v4674_v15 = vpop.f32.mrf.mxu3  ;;  %6147 = vst [vmem:[%s7749_s29 + $0x560] sm:$0xff] %v5066_v62  ;;  %v4750_v32 = vpack.c.bf16 %v4504_v4, %v4415_v46 }
 0x626   : > { %v4745_v16 = vpack.c.bf16 %v4674_v15, %v4585_v30 }
 0x627   : > { %v7013_v5 = vpop.eup %7012  ;;  %v4862_v33 = vunpack.c.l.bf16 %v4750_v32  ;;  %v4863_v11 = vunpack.c.h.bf16 %v4750_v32 }
 0x628   : > { %v7015_v25 = vpop.eup %7014  ;;  %v4852_v7 = vunpack.c.l.bf16 %v4745_v16  ;;  %v4853_v26 = vunpack.c.h.bf16 %v4745_v16 }
 0x629   : > { %v7017_v6 = vpop.eup %7016  ;;  %7020 = vtanh.f32 %v4862_v33 }
 0x62a   : > { %v7019_v27 = vpop.eup %7018  ;;  %v5063_v53 = vpack.c.bf16 %v7017_v6, %v7015_v25  ;;  %7022 = vtanh.f32 %v4852_v7 }
 0x62b   : > { %7024 = vtanh.f32 %v4853_v26  ;;  %v5068_v38 = vpack.c.bf16 %v7019_v27, %v7013_v5  ;;  %v4417_v48 = vpop.f32.mrf.mxu0 }
 0x62c   : > { %6144 = vst [vmem:[%s7749_s29 + $0x548] sm:$0xff] %v5063_v53  ;;  %v4588_v63 = vpop.f32.mrf.mxu2  ;;  %7026 = vtanh.f32 %v4863_v11  ;;  %v4506_v12 = vpop.f32.mrf.mxu1 }
 0x62d   : > { %v4677_v13 = vpop.f32.mrf.mxu3  ;;  %6149 = vst [vmem:[%s7749_s29 + $0x570] sm:$0xff] %v5068_v38  ;;  %v4752_v14 = vpack.c.bf16 %v4506_v12, %v4417_v48 }
 0x62e   : > { %v4747_v17 = vpack.c.bf16 %v4677_v13, %v4588_v63 }
 0x62f   : > { %v7021_v18 = vpop.eup %7020  ;;  %v4866_v20 = vunpack.c.l.bf16 %v4752_v14  ;;  %v4867_v51 = vunpack.c.h.bf16 %v4752_v14 }
 0x630   : > { %v7023_v21 = vpop.eup %7022  ;;  %v4856_v19 = vunpack.c.l.bf16 %v4747_v17  ;;  %v4857_v40 = vunpack.c.h.bf16 %v4747_v17 }
 0x631   : > { %v7025_v52 = vpop.eup %7024  ;;  %7028 = vtanh.f32 %v4866_v20 }
 0x632   : > { %v7027_v55 = vpop.eup %7026  ;;  %v5065_v56 = vpack.c.bf16 %v7025_v52, %v7023_v21  ;;  %7030 = vtanh.f32 %v4856_v19 }
 0x633   : > { %7032 = vtanh.f32 %v4857_v40  ;;  %v5070_v57 = vpack.c.bf16 %v7027_v55, %v7021_v18  ;;  %v4420_v28 = vpop.f32.mrf.mxu0 }
 0x634   : > { %6146 = vst [vmem:[%s7749_s29 + $0x558] sm:$0xff] %v5065_v56  ;;  %v4590_v58 = vpop.f32.mrf.mxu2  ;;  %7034 = vtanh.f32 %v4867_v51  ;;  %v4509_v60 = vpop.f32.mrf.mxu1 }
 0x635   : > { %v4679_v29 = vpop.f32.mrf.mxu3  ;;  %6151 = vst [vmem:[%s7749_s29 + $0x580] sm:$0xff] %v5070_v57  ;;  %v4754_v2 = vpack.c.bf16 %v4509_v60, %v4420_v28 }
 0x636   : > { %v4749_v3 = vpack.c.bf16 %v4679_v29, %v4590_v58 }
 0x637   : > { %v7029_v45 = vpop.eup %7028  ;;  %v4870_v8 = vunpack.c.l.bf16 %v4754_v2  ;;  %v4871_v61 = vunpack.c.h.bf16 %v4754_v2 }
 0x638   : > { %v7031_v31 = vpop.eup %7030  ;;  %v4860_v23 = vunpack.c.l.bf16 %v4749_v3  ;;  %v4861_v24 = vunpack.c.h.bf16 %v4749_v3 }
 0x639   : > { %v7033_v43 = vpop.eup %7032  ;;  %7036 = vtanh.f32 %v4870_v8 }
 0x63a   : > { %v7035_v9 = vpop.eup %7034  ;;  %v5067_v10 = vpack.c.bf16 %v7033_v43, %v7031_v31  ;;  %7038 = vtanh.f32 %v4860_v23 }
 0x63b   : > { %7040 = vtanh.f32 %v4861_v24  ;;  %v5072_v49 = vpack.c.bf16 %v7035_v9, %v7029_v45  ;;  %v4422_v1 = vpop.f32.mrf.mxu0 }
 0x63c   : > { %6148 = vst [vmem:[%s7749_s29 + $0x568] sm:$0xff] %v5067_v10  ;;  %v4593_v34 = vpop.f32.mrf.mxu2  ;;  %7042 = vtanh.f32 %v4871_v61  ;;  %v4511_v37 = vpop.f32.mrf.mxu1 }
 0x63d   : > { %v4682_v39 = vpop.f32.mrf.mxu3  ;;  %6153 = vst [vmem:[%s7749_s29 + $0x590] sm:$0xff] %v5072_v49  ;;  %v4756_v54 = vpack.c.bf16 %v4511_v37, %v4422_v1 }
 0x63e   : > { %v4751_v36 = vpack.c.bf16 %v4682_v39, %v4593_v34 }
 0x63f   : > { %v7037_v47 = vpop.eup %7036  ;;  %v4874_v42 = vunpack.c.l.bf16 %v4756_v54  ;;  %v4875_v44 = vunpack.c.h.bf16 %v4756_v54 }
 0x640   : > { %v7039_v35 = vpop.eup %7038  ;;  %v4864_v22 = vunpack.c.l.bf16 %v4751_v36  ;;  %v4865_v59 = vunpack.c.h.bf16 %v4751_v36 }
 0x641   : > { %v7041_v41 = vpop.eup %7040  ;;  %7044 = vtanh.f32 %v4874_v42 }
 0x642   : > { %v7043_v50 = vpop.eup %7042  ;;  %v5069_v0 = vpack.c.bf16 %v7041_v41, %v7039_v35  ;;  %7046 = vtanh.f32 %v4864_v22 }
 0x643   : > { %7048 = vtanh.f32 %v4865_v59  ;;  %v5074_v62 = vpack.c.bf16 %v7043_v50, %v7037_v47  ;;  %v4425_v46 = vpop.f32.mrf.mxu0 }
 0x644   : > { %6150 = vst [vmem:[%s7749_s29 + $0x578] sm:$0xff] %v5069_v0  ;;  %v4595_v30 = vpop.f32.mrf.mxu2  ;;  %7050 = vtanh.f32 %v4875_v44  ;;  %v4514_v4 = vpop.f32.mrf.mxu1 }
 0x645   : > { %v4684_v15 = vpop.f32.mrf.mxu3  ;;  %6155 = vst [vmem:[%s7749_s29 + $0x5a0] sm:$0xff] %v5074_v62  ;;  %v4758_v32 = vpack.c.bf16 %v4514_v4, %v4425_v46 }
 0x646   : > { %v4753_v16 = vpack.c.bf16 %v4684_v15, %v4595_v30 }
 0x647   : > { %v7045_v5 = vpop.eup %7044  ;;  %v4878_v33 = vunpack.c.l.bf16 %v4758_v32  ;;  %v4879_v11 = vunpack.c.h.bf16 %v4758_v32 }
 0x648   : > { %v7047_v25 = vpop.eup %7046  ;;  %v4868_v7 = vunpack.c.l.bf16 %v4753_v16  ;;  %v4869_v26 = vunpack.c.h.bf16 %v4753_v16 }
 0x649   : > { %v7049_v6 = vpop.eup %7048  ;;  %7052 = vtanh.f32 %v4878_v33 }
 0x64a   : > { %v7051_v27 = vpop.eup %7050  ;;  %v5071_v53 = vpack.c.bf16 %v7049_v6, %v7047_v25  ;;  %7054 = vtanh.f32 %v4868_v7 }
 0x64b   : > { %7056 = vtanh.f32 %v4869_v26  ;;  %v5076_v38 = vpack.c.bf16 %v7051_v27, %v7045_v5  ;;  %v4427_v48 = vpop.f32.mrf.mxu0 }
 0x64c   : > { %6152 = vst [vmem:[%s7749_s29 + $0x588] sm:$0xff] %v5071_v53  ;;  %v4598_v63 = vpop.f32.mrf.mxu2  ;;  %7058 = vtanh.f32 %v4879_v11  ;;  %v4516_v12 = vpop.f32.mrf.mxu1 }
 0x64d   : > { %v4687_v13 = vpop.f32.mrf.mxu3  ;;  %6157 = vst [vmem:[%s7749_s29 + $0x5b0] sm:$0xff] %v5076_v38  ;;  %v4760_v14 = vpack.c.bf16 %v4516_v12, %v4427_v48 }
 0x64e   : > { %v4755_v17 = vpack.c.bf16 %v4687_v13, %v4598_v63 }
 0x64f   : > { %v7053_v18 = vpop.eup %7052  ;;  %v4882_v20 = vunpack.c.l.bf16 %v4760_v14  ;;  %v4883_v51 = vunpack.c.h.bf16 %v4760_v14 }
 0x650   : > { %v7055_v21 = vpop.eup %7054  ;;  %v4872_v19 = vunpack.c.l.bf16 %v4755_v17  ;;  %v4873_v40 = vunpack.c.h.bf16 %v4755_v17 }
 0x651   : > { %v7057_v52 = vpop.eup %7056  ;;  %7060 = vtanh.f32 %v4882_v20 }
 0x652   : > { %v7059_v55 = vpop.eup %7058  ;;  %v5073_v56 = vpack.c.bf16 %v7057_v52, %v7055_v21  ;;  %7062 = vtanh.f32 %v4872_v19 }
 0x653   : > { %7064 = vtanh.f32 %v4873_v40  ;;  %v5078_v57 = vpack.c.bf16 %v7059_v55, %v7053_v18  ;;  %v4430_v28 = vpop.f32.mrf.mxu0 }
 0x654   : > { %6154 = vst [vmem:[%s7749_s29 + $0x598] sm:$0xff] %v5073_v56  ;;  %v4600_v58 = vpop.f32.mrf.mxu2  ;;  %7066 = vtanh.f32 %v4883_v51  ;;  %v4519_v60 = vpop.f32.mrf.mxu1 }
 0x655   : > { %v4689_v29 = vpop.f32.mrf.mxu3  ;;  %6159 = vst [vmem:[%s7749_s29 + $0x5c0] sm:$0xff] %v5078_v57  ;;  %v4762_v2 = vpack.c.bf16 %v4519_v60, %v4430_v28 }
 0x656   : > { %v4757_v3 = vpack.c.bf16 %v4689_v29, %v4600_v58 }
 0x657   : > { %v7061_v45 = vpop.eup %7060  ;;  %v4886_v8 = vunpack.c.l.bf16 %v4762_v2  ;;  %v4887_v61 = vunpack.c.h.bf16 %v4762_v2 }
 0x658   : > { %v7063_v31 = vpop.eup %7062  ;;  %v4876_v23 = vunpack.c.l.bf16 %v4757_v3  ;;  %v4877_v24 = vunpack.c.h.bf16 %v4757_v3 }
 0x659   : > { %v7065_v43 = vpop.eup %7064  ;;  %7068 = vtanh.f32 %v4886_v8 }
 0x65a   : > { %v7067_v9 = vpop.eup %7066  ;;  %v5075_v10 = vpack.c.bf16 %v7065_v43, %v7063_v31  ;;  %7070 = vtanh.f32 %v4876_v23 }
 0x65b   : > { %7072 = vtanh.f32 %v4877_v24  ;;  %v5080_v49 = vpack.c.bf16 %v7067_v9, %v7061_v45  ;;  %v4432_v1 = vpop.f32.mrf.mxu0 }
 0x65c   : > { %6156 = vst [vmem:[%s7749_s29 + $0x5a8] sm:$0xff] %v5075_v10  ;;  %v4603_v34 = vpop.f32.mrf.mxu2  ;;  %7074 = vtanh.f32 %v4887_v61  ;;  %v4521_v37 = vpop.f32.mrf.mxu1 }
 0x65d   : > { %v4692_v39 = vpop.f32.mrf.mxu3  ;;  %6161 = vst [vmem:[%s7749_s29 + $0x5d0] sm:$0xff] %v5080_v49  ;;  %v4764_v54 = vpack.c.bf16 %v4521_v37, %v4432_v1 }
 0x65e   : > { %v4759_v36 = vpack.c.bf16 %v4692_v39, %v4603_v34 }
 0x65f   : > { %v7069_v47 = vpop.eup %7068  ;;  %v4890_v42 = vunpack.c.l.bf16 %v4764_v54  ;;  %v4891_v44 = vunpack.c.h.bf16 %v4764_v54 }
 0x660   : > { %v7071_v35 = vpop.eup %7070  ;;  %v4880_v22 = vunpack.c.l.bf16 %v4759_v36  ;;  %v4881_v59 = vunpack.c.h.bf16 %v4759_v36 }
 0x661   : > { %v7073_v41 = vpop.eup %7072  ;;  %7076 = vtanh.f32 %v4890_v42 }
 0x662   : > { %v7075_v50 = vpop.eup %7074  ;;  %v5077_v0 = vpack.c.bf16 %v7073_v41, %v7071_v35  ;;  %7078 = vtanh.f32 %v4880_v22 }
 0x663   : > { %7080 = vtanh.f32 %v4881_v59  ;;  %v5082_v62 = vpack.c.bf16 %v7075_v50, %v7069_v47 }
 0x664   : > { %6158 = vst [vmem:[%s7749_s29 + $0x5b8] sm:$0xff] %v5077_v0  ;;  %v4605_v46 = vpop.f32.mrf.mxu2  ;;  %7082 = vtanh.f32 %v4891_v44 }
 0x665   : > { %v4694_v30 = vpop.f32.mrf.mxu3  ;;  %6163 = vst [vmem:[%s7749_s29 + $0x5e0] sm:$0xff] %v5082_v62 }
 0x666   : > { %v4761_v4 = vpack.c.bf16 %v4694_v30, %v4605_v46 }
 0x667   : > { %v7077_v15 = vpop.eup %7076 }
 0x668   : > { %v7079_v32 = vpop.eup %7078  ;;  %v4884_v16 = vunpack.c.l.bf16 %v4761_v4  ;;  %v4885_v5 = vunpack.c.h.bf16 %v4761_v4 }
 0x669   : > { %v7081_v33 = vpop.eup %7080 }
 0x66a   : > { %v7083_v25 = vpop.eup %7082  ;;  %v5079_v7 = vpack.c.bf16 %v7081_v33, %v7079_v32  ;;  %7084 = vtanh.f32 %v4884_v16 }
 0x66b   : > { %7086 = vtanh.f32 %v4885_v5  ;;  %v5084_v26 = vpack.c.bf16 %v7083_v25, %v7077_v15 }
 0x66c   : > { %6160 = vst [vmem:[%s7749_s29 + $0x5c8] sm:$0xff] %v5079_v7  ;;  %v4608_v11 = vpop.f32.mrf.mxu2 }
 0x66d   : > { %v4697_v6 = vpop.f32.mrf.mxu3  ;;  %6165 = vst [vmem:[%s7749_s29 + $0x5f0] sm:$0xff] %v5084_v26 }
 0x66e   : > { %v4763_v27 = vpack.c.bf16 %v4697_v6, %v4608_v11 }
 0x670   : > { %v7085_v53 = vpop.eup %7084  ;;  %v4888_v38 = vunpack.c.l.bf16 %v4763_v27  ;;  %v4889_v48 = vunpack.c.h.bf16 %v4763_v27 }
 0x671   : > { %v7087_v63 = vpop.eup %7086 }
 0x672   : > { %v5081_v12 = vpack.c.bf16 %v7087_v63, %v7085_v53  ;;  %7088 = vtanh.f32 %v4888_v38 }
 0x673   : > { %7090 = vtanh.f32 %v4889_v48 }
 0x674   : > { %6162 = vst [vmem:[%s7749_s29 + $0x5d8] sm:$0xff] %v5081_v12  ;;  %v4610_v13 = vpop.f32.mrf.mxu2 }
 0x675   : > { %v4699_v14 = vpop.f32.mrf.mxu3 }
 0x676   : > { %v4765_v17 = vpack.c.bf16 %v4699_v14, %v4610_v13 }
 0x678   : > { %v7089_v18 = vpop.eup %7088  ;;  %v4892_v20 = vunpack.c.l.bf16 %v4765_v17  ;;  %v4893_v21 = vunpack.c.h.bf16 %v4765_v17 }
 0x679   : > { %v7091_v19 = vpop.eup %7090 }
 0x67a   : > { %v5083_v40 = vpack.c.bf16 %v7091_v19, %v7089_v18  ;;  %7092 = vtanh.f32 %v4892_v20 }
 0x67b   : > { %7094 = vtanh.f32 %v4893_v21 }
 0x67c   : > { %6164 = vst [vmem:[%s7749_s29 + $0x5e8] sm:$0xff] %v5083_v40 }
 0x680   : > { %v7093_v51 = vpop.eup %7092 }
 0x681   : > { %v7095_v52 = vpop.eup %7094 }
 0x682   : > { %v5085_v55 = vpack.c.bf16 %v7095_v52, %v7093_v51 }
 0x684   : > { %6166 = vst [vmem:[%s7749_s29 + $0x5f8] sm:$0xff] %v5085_v55 }
 0x685   : > { %7155 = shalt.err (!%p7152_p3)
}
 0x686   : > { %s7193_s19 = smov 256   ;;  %s7194_s29 = smov 16  }
 0x687   : > { %6286 = dma.vmem_to_hbm [thread:$0]  (%p7293_p5), %s5166_s24, 24576, %s5168_s25, %s5152_s21, %s7193_s19, %s7193_s19, %s7194_s29  }
 0x688 PF: > { %p6292_p4 = scmp.ge.s32.totalorder %s7190_s20, 2  ;;  %s5182_s6 = sand.u32 1, %s7178_s17  }
 0x689   : > { %s5183_s30 = scalar_lea.sflag [#allocation3], %s5182_s6 }
 0x68a   : > { %p6289_p7 = pnand %p6292_p4, %p7297_p6 }
 0x68c   : > { %p6290_p8 = pneg %p6289_p7 }
 0x68e   : > { %7173 = dma.done.wait (%p6290_p8), %s5183_s30, 24576  }
 0x68f   : > { %7175 = vsyncadd (%p6290_p8), %s5183_s30, 4294942720  ;;  %s8974_s20 = sld [smem:[#allocation6_spill]]  ;;  %s8977_s17 = smov %s7182_s18 }
 0x690   : > { %s8975_s13 = sld [smem:[#allocation5_spill]] }
 0x691   : > { %s8976_s19 = sld [smem:[#allocation7_spill]] }
 0x695   : > { %p21_p9 = scmp.ge.s32.totalorder %s8974_s20, 4  }
 0x696   : > { %s8978_s18 = smov %s8975_s13 }
 0x697   :  { %23 = sbr.rel (!%p21_p9) target bundleno = 8 (0x8), region = 123 }
 0x69c   :  { %5189 = vsyncpa [#allocation3], 1 }
 0x69d   :  { %5191 = vsyncpa [#allocation3 + $0x1], 1 }

</bundles_post_ra>
